<compile_context>
chip_gen: v7x
topology: tpu7x:2x2x1
jax: 0.10.0
libtpu: 0.0.40
codegen_flags: <defaults>
</compile_context>

<pallas_src>
import functools

import jax
import jax.numpy as jnp
from jax.experimental import pallas as pl
from jax.experimental.pallas import tpu as pltpu

LRELU_SLOPE = 0.2
BN_EPS = 1e-5


def _leaky(v):
    return jnp.where(v >= 0, v, LRELU_SLOPE * v)


# --------------------------------------------------------------------------------------
# Fused kernel: one grid step == BB batch elements.
# --------------------------------------------------------------------------------------
def audio_encoder_kernel(xim_ref, w1_ref, b1_ref, w2_ref, b2_ref, w3_ref, b3_ref,
                         fcw_ref, fcb_ref, aw_ref, ab_ref, out_ref,
                         pad2_ref, pad3_ref, *, H0, W0):
    BB = xim_ref.shape[0]
    C1 = w1_ref.shape[1]                                  # 32
    C2 = w2_ref.shape[2]                                  # 64
    C3 = w3_ref.shape[2]                                  # 128
    H1, H2 = H0 // 2, H0 // 4

    def hpair_max(y, Hc):
        # MaxPool2d((2,1)) over H pairs — leading-dim slicing only (no sublane games).
        t = y.reshape(BB, Hc // 2, 2, W0, y.shape[-1])
        return jnp.maximum(t[:, :, 0], t[:, :, 1])        # (BB, Hc//2, W0, C)

    def conv3x3_from_pad(pad_ref, w_ref, b_ref, Hc, Cin):
        # 3x3 "same" conv as 9 windowed-load MXU matmuls from a zero-padded VMEM scratch.
        acc = None
        for dy in range(3):
            for dx in range(3):
                patch = pad_ref[:, dy:dy + Hc, dx:dx + W0, :].reshape(BB * Hc * W0, Cin)
                term = jnp.dot(patch, w_ref[dy * 3 + dx],
                               preferred_element_type=jnp.float32)
                acc = term if acc is None else acc + term
        return _leaky(acc + b_ref[...])                   # (BB*Hc*W0, Cout), BN folded

    # ---- conv block 1: single im2col matmul (BB*H0*W0, 9*Cin) @ (9*Cin, 32) ----
    x = xim_ref[...].reshape(BB * H0 * W0, xim_ref.shape[2])
    y = _leaky(jnp.dot(x, w1_ref[...], preferred_element_type=jnp.float32) + b1_ref[...])
    y = hpair_max(y.reshape(BB, H0, W0, C1), H0)          # (BB, H1, W0, 32)

    # ---- conv block 2 (padding via zeroed scratch + interior store) ----
    pad2_ref[...] = jnp.zeros_like(pad2_ref)
    pad2_ref[:, 1:H1 + 1, 1:W0 + 1, :] = y
    y = conv3x3_from_pad(pad2_ref, w2_ref, b2_ref, H1, C1)
    y = hpair_max(y.reshape(BB, H1, W0, C2), H1)          # (BB, H2, W0, 64)

    # ---- conv block 3 ----
    pad3_ref[...] = jnp.zeros_like(pad3_ref)
    pad3_ref[:, 1:H2 + 1, 1:W0 + 1, :] = y
    y = conv3x3_from_pad(pad3_ref, w3_ref, b3_ref, H2, C2)
    y = y.reshape(BB, H2, W0, C3)

    # ---- MaxPool(2,2) + AdaptiveAvgPool2d((4,2)): vectorized, maxes before means ----
    H3, W3 = H2 // 2, W0 // 2
    kh, kw = H3 // 4, W3 // 2
    y = hpair_max(y, H2)                                  # H-pair max   (BB, H3, W0, C3)
    t = y.reshape(BB, H3, W3, 2, C3)
    y = jnp.maximum(t[:, :, :, 0, :], t[:, :, :, 1, :])   # W-pair max   (BB, H3, W3, C3)
    t = y.reshape(BB, 4, kh, W3, C3)                      # adaptive H regions
    s = t[:, :, 0]
    for i in range(1, kh):
        s = s + t[:, :, i]                                # (BB, 4, W3, C3)
    t = s.reshape(BB, 4, 2, kw, C3)                       # adaptive W regions
    s = t[:, :, :, 0, :]
    for j in range(1, kw):
        s = s + t[:, :, :, j, :]                          # (BB, 4, 2, C3)
    feat = (s * (1.0 / float(kh * kw))).reshape(BB, 8 * C3)   # (BB, 1024), (h,w,c) order

    # ---- FC + LeakyReLU + attention gate (lane reduce instead of N=1 matmul) ----
    fc = _leaky(jnp.dot(feat, fcw_ref[...], preferred_element_type=jnp.float32)
                + fcb_ref[...])                           # (BB, hidden); Dropout = id
    att = jax.nn.sigmoid(jnp.sum(fc * aw_ref[...], axis=-1, keepdims=True) + ab_ref[...])
    out_ref[0] = fc * att                                 # (BB, hidden) lane-dense store


# --------------------------------------------------------------------------------------
# Wrapper: layout plumbing (NCHW->NHWC, im2col for conv1, BN folding, weight re-layout).
# --------------------------------------------------------------------------------------
def _fold_bn(conv_w, conv_b, g, beta, mean, var):
    scale = g / jnp.sqrt(var + BN_EPS)                    # (Cout,)
    w = conv_w * scale[:, None, None, None]               # (Cout, Cin, 3, 3)
    b = (conv_b - mean) * scale + beta
    w_hwio = jnp.transpose(w, (2, 3, 1, 0))               # (ky, kx, Cin, Cout)
    return w_hwio, b.reshape(1, -1)


def audio_encoder_forward(params, x, *, block_batch=None):
    if x.ndim == 5:                                       # matches torch x.squeeze(2)
        x = x[:, :, 0]
    B, Cin, H0, W0 = x.shape
    assert H0 % 32 == 0 and W0 % 4 == 0, "evenly-divisible pooling path"

    # Batch block: fold BB elements into matmul M; keep >= 2 grid steps for megacore/v7x.
    if block_batch is None:
        block_batch = max(1, min(8, B // 2))
    BB = block_batch
    grid = -(-B // BB)
    B_pad = grid * BB

    # conv1 im2col in the wrapper: (B, H0*W0, 9*Cin), channel order (ky, kx, cin).
    xp = jnp.pad(jnp.transpose(x, (0, 2, 3, 1)), ((0, 0), (1, 1), (1, 1), (0, 0)))
    patches = [xp[:, dy:dy + H0, dx:dx + W0, :] for dy in range(3) for dx in range(3)]
    xim = jnp.concatenate(patches, axis=-1).reshape(B, H0 * W0, 9 * Cin)
    if B_pad != B:
        xim = jnp.pad(xim, ((0, B_pad - B), (0, 0), (0, 0)))

    w1h, b1 = _fold_bn(params["conv1_w"], params["conv1_b"], params["bn1_g"],
                       params["bn1_b"], params["bn1_m"], params["bn1_v"])
    w2h, b2 = _fold_bn(params["conv2_w"], params["conv2_b"], params["bn2_g"],
                       params["bn2_b"], params["bn2_m"], params["bn2_v"])
    w3h, b3 = _fold_bn(params["conv3_w"], params["conv3_b"], params["bn3_g"],
                       params["bn3_b"], params["bn3_m"], params["bn3_v"])
    c1, c2, c3 = w1h.shape[3], w2h.shape[3], w3h.shape[3]
    w1 = w1h.reshape(9 * Cin, c1)                         # im2col weight, rows (ky,kx,cin)
    w2 = w2h.reshape(9, c1, c2)                           # tap-major
    w3 = w3h.reshape(9, c2, c3)

    hidden = params["fc_w"].shape[0]
    # torch Flatten is (c,h,w)-ordered; kernel feat rows are (h,w,c)-ordered.
    fcw = jnp.transpose(params["fc_w"].reshape(hidden, c3, 4, 2), (2, 3, 1, 0))
    fcw = fcw.reshape(4 * 2 * c3, hidden)
    fcb = params["fc_b"].reshape(1, hidden)
    aw = params["att_w"].reshape(1, hidden)
    ab = params["att_b"].reshape(1, 1)

    args = (xim, w1, b1, w2, b2, w3, b3, fcw, fcb, aw, ab)

    def _full(a):
        return pl.BlockSpec(a.shape, lambda b, n=a.ndim: (0,) * n)

    in_specs = [pl.BlockSpec((BB, H0 * W0, 9 * Cin), lambda b: (b, 0, 0))]
    in_specs += [_full(a) for a in args[1:]]

    kernel = functools.partial(audio_encoder_kernel, H0=H0, W0=W0)
    out = pl.pallas_call(
        kernel,
        out_shape=jax.ShapeDtypeStruct((grid, BB, hidden), jnp.float32),
        grid=(grid,),
        in_specs=in_specs,
        out_specs=pl.BlockSpec((1, BB, hidden), lambda b: (b, 0, 0)),
        scratch_shapes=[pltpu.VMEM((BB, H0 // 2 + 2, W0 + 2, c1), jnp.float32),
                        pltpu.VMEM((BB, H0 // 4 + 2, W0 + 2, c2), jnp.float32)],
        compiler_params=pltpu.CompilerParams(dimension_semantics=("parallel",)),
    )(*args)
    return out.reshape(B_pad, hidden)[:B]                 # (B, hidden)


# --------------------------------------------------------------------------------------
# deterministic parameter init (PyTorch layouts) + pure-JAX reference (eval mode)
# --------------------------------------------------------------------------------------
def init_params(key, in_channels=5, hidden_dim=256):
    ks = iter(jax.random.split(key, 32))
    p = {}

    def u(shape, bound):
        return jax.random.uniform(next(ks), shape, jnp.float32, -bound, bound)

    def conv(name, cin, cout):
        bound = 1.0 / (cin * 9) ** 0.5
        p[name + "_w"] = u((cout, cin, 3, 3), bound)
        p[name + "_b"] = u((cout,), bound)

    def bn(name, c):
        p[name + "_g"] = jax.random.uniform(next(ks), (c,), jnp.float32, 0.5, 1.5)
        p[name + "_b"] = u((c,), 0.5)
        p[name + "_m"] = u((c,), 0.5)
        p[name + "_v"] = jax.random.uniform(next(ks), (c,), jnp.float32, 0.5, 1.5)

    conv("conv1", in_channels, 32); bn("bn1", 32)
    conv("conv2", 32, 64);          bn("bn2", 64)
    conv("conv3", 64, 128);         bn("bn3", 128)
    fin = 128 * 4 * 2
    p["fc_w"] = u((hidden_dim, fin), 1.0 / fin ** 0.5)
    p["fc_b"] = u((hidden_dim,), 1.0 / fin ** 0.5)
    p["att_w"] = u((1, hidden_dim), 1.0 / hidden_dim ** 0.5)
    p["att_b"] = u((1,), 1.0 / hidden_dim ** 0.5)
    return p


def reference_forward(p, x):
    if x.ndim == 5:
        x = x[:, :, 0]

    def block(x, cw, cb, g, beta, m, v, pool):
        y = jax.lax.conv_general_dilated(x, cw, (1, 1), ((1, 1), (1, 1)),
                                         dimension_numbers=("NCHW", "OIHW", "NCHW"))
        y = y + cb[None, :, None, None]
        scale = (g / jnp.sqrt(v + BN_EPS))[None, :, None, None]
        y = (y - m[None, :, None, None]) * scale + beta[None, :, None, None]
        y = jnp.where(y >= 0, y, LRELU_SLOPE * y)
        return jax.lax.reduce_window(y, -jnp.inf, jax.lax.max,
                                     (1, 1) + pool, (1, 1) + pool, "VALID")

    y = block(x, p["conv1_w"], p["conv1_b"], p["bn1_g"], p["bn1_b"], p["bn1_m"], p["bn1_v"], (2, 1))
    y = block(y, p["conv2_w"], p["conv2_b"], p["bn2_g"], p["bn2_b"], p["bn2_m"], p["bn2_v"], (2, 1))
    y = block(y, p["conv3_w"], p["conv3_b"], p["bn3_g"], p["bn3_b"], p["bn3_m"], p["bn3_v"], (2, 2))
    B, C, Hh, Ww = y.shape
    y = y.reshape(B, C, 4, Hh // 4, 2, Ww // 2).mean(axis=(3, 5))   # AdaptiveAvgPool2d((4,2))
    feat = y.reshape(B, C * 8)                                      # Flatten (C,H,W)
    h = feat @ p["fc_w"].T + p["fc_b"]
    h = jnp.where(h >= 0, h, LRELU_SLOPE * h)
    att = jax.nn.sigmoid(h @ p["att_w"].T + p["att_b"])
    return h * att


if __name__ == "__main__":
    key = jax.random.PRNGKey(0)
    kp, kx = jax.random.split(key)

    B, C, H, W = 4, 5, 64, 8                     # (batch, channels, n_mels, time frames)
    params = init_params(kp, in_channels=C, hidden_dim=256)
    x = jax.random.normal(kx, (B, C, H, W), jnp.float32)

    fwd = jax.jit(audio_encoder_forward)
    out = fwd(params, x)
    out = jax.block_until_ready(out)

    ref = reference_forward(params, x)
    assert out.shape == (B, 256), out.shape
    max_err = float(jnp.max(jnp.abs(out - ref)))
    assert jnp.allclose(out, ref, rtol=1e-3, atol=1e-3), max_err
    print("KERNEL_OK")
</pallas_src>

<mosaic_0001>
module attributes {stable_mosaic.version = 11 : i64} {
  func.func @audio_encoder_kernel(%arg0: i32, %arg1: memref<2x512x45xf32, #tpu.memory_space<vmem>>, %arg2: memref<45x32xf32, #tpu.memory_space<vmem>>, %arg3: memref<1x32xf32, #tpu.memory_space<vmem>>, %arg4: memref<9x32x64xf32, #tpu.memory_space<vmem>>, %arg5: memref<1x64xf32, #tpu.memory_space<vmem>>, %arg6: memref<9x64x128xf32, #tpu.memory_space<vmem>>, %arg7: memref<1x128xf32, #tpu.memory_space<vmem>>, %arg8: memref<1024x256xf32, #tpu.memory_space<vmem>>, %arg9: memref<1x256xf32, #tpu.memory_space<vmem>>, %arg10: memref<1x256xf32, #tpu.memory_space<vmem>>, %arg11: memref<1x1xf32, #tpu.memory_space<vmem>>, %arg12: memref<1x2x256xf32, #tpu.memory_space<vmem>>, %arg13: memref<2x34x10x32xf32, #tpu.memory_space<vmem>>, %arg14: memref<2x18x10x64xf32, #tpu.memory_space<vmem>>) attributes {dimension_semantics = [#tpu.dimension_semantics<parallel>], iteration_bounds = array<i64: 2>, scalar_prefetch = 0 : i64, scratch_operands = 2 : i64, tpu.core_type = #tpu.core_type<tc>, window_params = [{transform_indices = @transform_0, window_bounds = array<i64: 2, 512, 45>}, {pipeline_mode = #tpu.pipeline_mode<synchronous>, transform_indices = @transform_1, window_bounds = array<i64: 45, 32>}, {pipeline_mode = #tpu.pipeline_mode<synchronous>, transform_indices = @transform_2, window_bounds = array<i64: 1, 32>}, {pipeline_mode = #tpu.pipeline_mode<synchronous>, transform_indices = @transform_3, window_bounds = array<i64: 9, 32, 64>}, {pipeline_mode = #tpu.pipeline_mode<synchronous>, transform_indices = @transform_4, window_bounds = array<i64: 1, 64>}, {pipeline_mode = #tpu.pipeline_mode<synchronous>, transform_indices = @transform_5, window_bounds = array<i64: 9, 64, 128>}, {pipeline_mode = #tpu.pipeline_mode<synchronous>, transform_indices = @transform_6, window_bounds = array<i64: 1, 128>}, {pipeline_mode = #tpu.pipeline_mode<synchronous>, transform_indices = @transform_7, window_bounds = array<i64: 1024, 256>}, {pipeline_mode = #tpu.pipeline_mode<synchronous>, transform_indices = @transform_8, window_bounds = array<i64: 1, 256>}, {pipeline_mode = #tpu.pipeline_mode<synchronous>, transform_indices = @transform_9, window_bounds = array<i64: 1, 256>}, {pipeline_mode = #tpu.pipeline_mode<synchronous>, transform_indices = @transform_10, window_bounds = array<i64: 1, 1>}, {transform_indices = @transform_11, window_bounds = array<i64: 1, 2, 256>}]} {
    %c0 = arith.constant 0 : index
    %c0_0 = arith.constant 0 : index
    %c0_1 = arith.constant 0 : index
    %0 = vector.load %arg1[%c0, %c0_0, %c0_1] : memref<2x512x45xf32, #tpu.memory_space<vmem>>, vector<2x512x45xf32>
    %1 = vector.shape_cast %0 : vector<2x512x45xf32> to vector<1024x45xf32>
    %c0_2 = arith.constant 0 : index
    %c0_3 = arith.constant 0 : index
    %2 = vector.load %arg2[%c0_2, %c0_3] : memref<45x32xf32, #tpu.memory_space<vmem>>, vector<45x32xf32>
    %cst = arith.constant dense<0.000000e+00> : vector<1024x32xf32>
    %3 = tpu.matmul %1, %2, %cst {dimension_numbers = #tpu.dot_dimension_numbers<[1], [0], [0], [1], [0, 0, 1, 1], [], []>} : vector<1024x45xf32>, vector<45x32xf32>, vector<1024x32xf32> -> vector<1024x32xf32>
    %c0_4 = arith.constant 0 : index
    %c0_5 = arith.constant 0 : index
    %4 = vector.load %arg3[%c0_4, %c0_5] : memref<1x32xf32, #tpu.memory_space<vmem>>, vector<1x32xf32>
    %5 = vector.broadcast %4 : vector<1x32xf32> to vector<1024x32xf32>
    %6 = arith.addf %3, %5 : vector<1024x32xf32>
    %cst_6 = arith.constant 0.000000e+00 : f32
    %7 = vector.broadcast %cst_6 : f32 to vector<1024x32xf32>
    %8 = arith.cmpf oge, %6, %7 : vector<1024x32xf32>
    %cst_7 = arith.constant 2.000000e-01 : f32
    %9 = vector.broadcast %cst_7 : f32 to vector<1024x32xf32>
    %10 = arith.mulf %9, %6 : vector<1024x32xf32>
    %11 = arith.select %8, %6, %10 : vector<1024x32xi1>, vector<1024x32xf32>
    %12 = vector.shape_cast %11 : vector<1024x32xf32> to vector<2x64x8x32xf32>
    %13 = vector.shape_cast %12 : vector<2x64x8x32xf32> to vector<2x32x2x8x32xf32>
    %14 = vector.extract_strided_slice %13 {offsets = [0, 0, 0, 0, 0], sizes = [2, 32, 1, 8, 32], strides = [1, 1, 1, 1, 1]} : vector<2x32x2x8x32xf32> to vector<2x32x1x8x32xf32>
    %15 = vector.shape_cast %14 : vector<2x32x1x8x32xf32> to vector<2x32x8x32xf32>
    %16 = vector.extract_strided_slice %13 {offsets = [0, 0, 1, 0, 0], sizes = [2, 32, 1, 8, 32], strides = [1, 1, 1, 1, 1]} : vector<2x32x2x8x32xf32> to vector<2x32x1x8x32xf32>
    %17 = vector.shape_cast %16 : vector<2x32x1x8x32xf32> to vector<2x32x8x32xf32>
    %18 = arith.maximumf %15, %17 : vector<2x32x8x32xf32>
    %cst_8 = arith.constant 0.000000e+00 : f32
    %19 = vector.broadcast %cst_8 : f32 to vector<2x34x10x32xf32>
    %c0_9 = arith.constant 0 : index
    %c0_10 = arith.constant 0 : index
    %c0_11 = arith.constant 0 : index
    %c0_12 = arith.constant 0 : index
    %20 = vector.load %arg13[%c0_9, %c0_10, %c0_11, %c0_12] : memref<2x34x10x32xf32, #tpu.memory_space<vmem>>, vector<2x34x10x32xf32>
    tpu.vector_store %arg13[%c0_9, %c0_10, %c0_11, %c0_12], %19 {strides = array<i32>} : memref<2x34x10x32xf32, #tpu.memory_space<vmem>>, vector<2x34x10x32xf32>,
    %c0_13 = arith.constant 0 : index
    %c1 = arith.constant 1 : index
    %c1_14 = arith.constant 1 : index
    %c0_15 = arith.constant 0 : index
    %21 = vector.load %arg13[%c0_13, %c1, %c1_14, %c0_15] : memref<2x34x10x32xf32, #tpu.memory_space<vmem>>, vector<2x32x8x32xf32>
    tpu.vector_store %arg13[%c0_13, %c1, %c1_14, %c0_15], %18 {strides = array<i32>} : memref<2x34x10x32xf32, #tpu.memory_space<vmem>>, vector<2x32x8x32xf32>,
    %c0_16 = arith.constant 0 : index
    %c0_17 = arith.constant 0 : index
    %c0_18 = arith.constant 0 : index
    %c0_19 = arith.constant 0 : index
    %22 = vector.load %arg13[%c0_16, %c0_17, %c0_18, %c0_19] : memref<2x34x10x32xf32, #tpu.memory_space<vmem>>, vector<2x32x8x32xf32>
    %23 = vector.shape_cast %22 : vector<2x32x8x32xf32> to vector<512x32xf32>
    %c0_20 = arith.constant 0 : index
    %c0_21 = arith.constant 0 : index
    %c0_22 = arith.constant 0 : index
    %24 = vector.load %arg4[%c0_20, %c0_21, %c0_22] : memref<9x32x64xf32, #tpu.memory_space<vmem>>, vector<1x32x64xf32>
    %25 = vector.shape_cast %24 : vector<1x32x64xf32> to vector<32x64xf32>
    %cst_23 = arith.constant dense<0.000000e+00> : vector<512x64xf32>
    %26 = tpu.matmul %23, %25, %cst_23 {dimension_numbers = #tpu.dot_dimension_numbers<[1], [0], [0], [1], [0, 0, 1, 1], [], []>} : vector<512x32xf32>, vector<32x64xf32>, vector<512x64xf32> -> vector<512x64xf32>
    %c0_24 = arith.constant 0 : index
    %c0_25 = arith.constant 0 : index
    %c1_26 = arith.constant 1 : index
    %c0_27 = arith.constant 0 : index
    %27 = vector.load %arg13[%c0_24, %c0_25, %c1_26, %c0_27] : memref<2x34x10x32xf32, #tpu.memory_space<vmem>>, vector<2x32x8x32xf32>
    %28 = vector.shape_cast %27 : vector<2x32x8x32xf32> to vector<512x32xf32>
    %c1_28 = arith.constant 1 : index
    %c0_29 = arith.constant 0 : index
    %c0_30 = arith.constant 0 : index
    %29 = vector.load %arg4[%c1_28, %c0_29, %c0_30] : memref<9x32x64xf32, #tpu.memory_space<vmem>>, vector<1x32x64xf32>
    %30 = vector.shape_cast %29 : vector<1x32x64xf32> to vector<32x64xf32>
    %cst_31 = arith.constant dense<0.000000e+00> : vector<512x64xf32>
    %31 = tpu.matmul %28, %30, %cst_31 {dimension_numbers = #tpu.dot_dimension_numbers<[1], [0], [0], [1], [0, 0, 1, 1], [], []>} : vector<512x32xf32>, vector<32x64xf32>, vector<512x64xf32> -> vector<512x64xf32>
    %32 = arith.addf %26, %31 : vector<512x64xf32>
    %c0_32 = arith.constant 0 : index
    %c0_33 = arith.constant 0 : index
    %c2 = arith.constant 2 : index
    %c0_34 = arith.constant 0 : index
    %33 = vector.load %arg13[%c0_32, %c0_33, %c2, %c0_34] : memref<2x34x10x32xf32, #tpu.memory_space<vmem>>, vector<2x32x8x32xf32>
    %34 = vector.shape_cast %33 : vector<2x32x8x32xf32> to vector<512x32xf32>
    %c2_35 = arith.constant 2 : index
    %c0_36 = arith.constant 0 : index
    %c0_37 = arith.constant 0 : index
    %35 = vector.load %arg4[%c2_35, %c0_36, %c0_37] : memref<9x32x64xf32, #tpu.memory_space<vmem>>, vector<1x32x64xf32>
    %36 = vector.shape_cast %35 : vector<1x32x64xf32> to vector<32x64xf32>
    %cst_38 = arith.constant dense<0.000000e+00> : vector<512x64xf32>
    %37 = tpu.matmul %34, %36, %cst_38 {dimension_numbers = #tpu.dot_dimension_numbers<[1], [0], [0], [1], [0, 0, 1, 1], [], []>} : vector<512x32xf32>, vector<32x64xf32>, vector<512x64xf32> -> vector<512x64xf32>
    %38 = arith.addf %32, %37 : vector<512x64xf32>
    %c0_39 = arith.constant 0 : index
    %c1_40 = arith.constant 1 : index
    %c0_41 = arith.constant 0 : index
    %c0_42 = arith.constant 0 : index
    %39 = vector.load %arg13[%c0_39, %c1_40, %c0_41, %c0_42] : memref<2x34x10x32xf32, #tpu.memory_space<vmem>>, vector<2x32x8x32xf32>
    %40 = vector.shape_cast %39 : vector<2x32x8x32xf32> to vector<512x32xf32>
    %c3 = arith.constant 3 : index
    %c0_43 = arith.constant 0 : index
    %c0_44 = arith.constant 0 : index
    %41 = vector.load %arg4[%c3, %c0_43, %c0_44] : memref<9x32x64xf32, #tpu.memory_space<vmem>>, vector<1x32x64xf32>
    %42 = vector.shape_cast %41 : vector<1x32x64xf32> to vector<32x64xf32>
    %cst_45 = arith.constant dense<0.000000e+00> : vector<512x64xf32>
    %43 = tpu.matmul %40, %42, %cst_45 {dimension_numbers = #tpu.dot_dimension_numbers<[1], [0], [0], [1], [0, 0, 1, 1], [], []>} : vector<512x32xf32>, vector<32x64xf32>, vector<512x64xf32> -> vector<512x64xf32>
    %44 = arith.addf %38, %43 : vector<512x64xf32>
    %c0_46 = arith.constant 0 : index
    %c1_47 = arith.constant 1 : index
    %c1_48 = arith.constant 1 : index
    %c0_49 = arith.constant 0 : index
    %45 = vector.load %arg13[%c0_46, %c1_47, %c1_48, %c0_49] : memref<2x34x10x32xf32, #tpu.memory_space<vmem>>, vector<2x32x8x32xf32>
    %46 = vector.shape_cast %45 : vector<2x32x8x32xf32> to vector<512x32xf32>
    %c4 = arith.constant 4 : index
    %c0_50 = arith.constant 0 : index
    %c0_51 = arith.constant 0 : index
    %47 = vector.load %arg4[%c4, %c0_50, %c0_51] : memref<9x32x64xf32, #tpu.memory_space<vmem>>, vector<1x32x64xf32>
    %48 = vector.shape_cast %47 : vector<1x32x64xf32> to vector<32x64xf32>
    %cst_52 = arith.constant dense<0.000000e+00> : vector<512x64xf32>
    %49 = tpu.matmul %46, %48, %cst_52 {dimension_numbers = #tpu.dot_dimension_numbers<[1], [0], [0], [1], [0, 0, 1, 1], [], []>} : vector<512x32xf32>, vector<32x64xf32>, vector<512x64xf32> -> vector<512x64xf32>
    %50 = arith.addf %44, %49 : vector<512x64xf32>
    %c0_53 = arith.constant 0 : index
    %c1_54 = arith.constant 1 : index
    %c2_55 = arith.constant 2 : index
    %c0_56 = arith.constant 0 : index
    %51 = vector.load %arg13[%c0_53, %c1_54, %c2_55, %c0_56] : memref<2x34x10x32xf32, #tpu.memory_space<vmem>>, vector<2x32x8x32xf32>
    %52 = vector.shape_cast %51 : vector<2x32x8x32xf32> to vector<512x32xf32>
    %c5 = arith.constant 5 : index
    %c0_57 = arith.constant 0 : index
    %c0_58 = arith.constant 0 : index
    %53 = vector.load %arg4[%c5, %c0_57, %c0_58] : memref<9x32x64xf32, #tpu.memory_space<vmem>>, vector<1x32x64xf32>
    %54 = vector.shape_cast %53 : vector<1x32x64xf32> to vector<32x64xf32>
    %cst_59 = arith.constant dense<0.000000e+00> : vector<512x64xf32>
    %55 = tpu.matmul %52, %54, %cst_59 {dimension_numbers = #tpu.dot_dimension_numbers<[1], [0], [0], [1], [0, 0, 1, 1], [], []>} : vector<512x32xf32>, vector<32x64xf32>, vector<512x64xf32> -> vector<512x64xf32>
    %56 = arith.addf %50, %55 : vector<512x64xf32>
    %c0_60 = arith.constant 0 : index
    %c2_61 = arith.constant 2 : index
    %c0_62 = arith.constant 0 : index
    %c0_63 = arith.constant 0 : index
    %57 = vector.load %arg13[%c0_60, %c2_61, %c0_62, %c0_63] : memref<2x34x10x32xf32, #tpu.memory_space<vmem>>, vector<2x32x8x32xf32>
    %58 = vector.shape_cast %57 : vector<2x32x8x32xf32> to vector<512x32xf32>
    %c6 = arith.constant 6 : index
    %c0_64 = arith.constant 0 : index
    %c0_65 = arith.constant 0 : index
    %59 = vector.load %arg4[%c6, %c0_64, %c0_65] : memref<9x32x64xf32, #tpu.memory_space<vmem>>, vector<1x32x64xf32>
    %60 = vector.shape_cast %59 : vector<1x32x64xf32> to vector<32x64xf32>
    %cst_66 = arith.constant dense<0.000000e+00> : vector<512x64xf32>
    %61 = tpu.matmul %58, %60, %cst_66 {dimension_numbers = #tpu.dot_dimension_numbers<[1], [0], [0], [1], [0, 0, 1, 1], [], []>} : vector<512x32xf32>, vector<32x64xf32>, vector<512x64xf32> -> vector<512x64xf32>
    %62 = arith.addf %56, %61 : vector<512x64xf32>
    %c0_67 = arith.constant 0 : index
    %c2_68 = arith.constant 2 : index
    %c1_69 = arith.constant 1 : index
    %c0_70 = arith.constant 0 : index
    %63 = vector.load %arg13[%c0_67, %c2_68, %c1_69, %c0_70] : memref<2x34x10x32xf32, #tpu.memory_space<vmem>>, vector<2x32x8x32xf32>
    %64 = vector.shape_cast %63 : vector<2x32x8x32xf32> to vector<512x32xf32>
    %c7 = arith.constant 7 : index
    %c0_71 = arith.constant 0 : index
    %c0_72 = arith.constant 0 : index
    %65 = vector.load %arg4[%c7, %c0_71, %c0_72] : memref<9x32x64xf32, #tpu.memory_space<vmem>>, vector<1x32x64xf32>
    %66 = vector.shape_cast %65 : vector<1x32x64xf32> to vector<32x64xf32>
    %cst_73 = arith.constant dense<0.000000e+00> : vector<512x64xf32>
    %67 = tpu.matmul %64, %66, %cst_73 {dimension_numbers = #tpu.dot_dimension_numbers<[1], [0], [0], [1], [0, 0, 1, 1], [], []>} : vector<512x32xf32>, vector<32x64xf32>, vector<512x64xf32> -> vector<512x64xf32>
    %68 = arith.addf %62, %67 : vector<512x64xf32>
    %c0_74 = arith.constant 0 : index
    %c2_75 = arith.constant 2 : index
    %c2_76 = arith.constant 2 : index
    %c0_77 = arith.constant 0 : index
    %69 = vector.load %arg13[%c0_74, %c2_75, %c2_76, %c0_77] : memref<2x34x10x32xf32, #tpu.memory_space<vmem>>, vector<2x32x8x32xf32>
    %70 = vector.shape_cast %69 : vector<2x32x8x32xf32> to vector<512x32xf32>
    %c8 = arith.constant 8 : index
    %c0_78 = arith.constant 0 : index
    %c0_79 = arith.constant 0 : index
    %71 = vector.load %arg4[%c8, %c0_78, %c0_79] : memref<9x32x64xf32, #tpu.memory_space<vmem>>, vector<1x32x64xf32>
    %72 = vector.shape_cast %71 : vector<1x32x64xf32> to vector<32x64xf32>
    %cst_80 = arith.constant dense<0.000000e+00> : vector<512x64xf32>
    %73 = tpu.matmul %70, %72, %cst_80 {dimension_numbers = #tpu.dot_dimension_numbers<[1], [0], [0], [1], [0, 0, 1, 1], [], []>} : vector<512x32xf32>, vector<32x64xf32>, vector<512x64xf32> -> vector<512x64xf32>
    %74 = arith.addf %68, %73 : vector<512x64xf32>
    %c0_81 = arith.constant 0 : index
    %c0_82 = arith.constant 0 : index
    %75 = vector.load %arg5[%c0_81, %c0_82] : memref<1x64xf32, #tpu.memory_space<vmem>>, vector<1x64xf32>
    %76 = vector.broadcast %75 : vector<1x64xf32> to vector<512x64xf32>
    %77 = arith.addf %74, %76 : vector<512x64xf32>
    %cst_83 = arith.constant 0.000000e+00 : f32
    %78 = vector.broadcast %cst_83 : f32 to vector<512x64xf32>
    %79 = arith.cmpf oge, %77, %78 : vector<512x64xf32>
    %cst_84 = arith.constant 2.000000e-01 : f32
    %80 = vector.broadcast %cst_84 : f32 to vector<512x64xf32>
    %81 = arith.mulf %80, %77 : vector<512x64xf32>
    %82 = arith.select %79, %77, %81 : vector<512x64xi1>, vector<512x64xf32>
    %83 = vector.shape_cast %82 : vector<512x64xf32> to vector<2x32x8x64xf32>
    %84 = vector.shape_cast %83 : vector<2x32x8x64xf32> to vector<2x16x2x8x64xf32>
    %85 = vector.extract_strided_slice %84 {offsets = [0, 0, 0, 0, 0], sizes = [2, 16, 1, 8, 64], strides = [1, 1, 1, 1, 1]} : vector<2x16x2x8x64xf32> to vector<2x16x1x8x64xf32>
    %86 = vector.shape_cast %85 : vector<2x16x1x8x64xf32> to vector<2x16x8x64xf32>
    %87 = vector.extract_strided_slice %84 {offsets = [0, 0, 1, 0, 0], sizes = [2, 16, 1, 8, 64], strides = [1, 1, 1, 1, 1]} : vector<2x16x2x8x64xf32> to vector<2x16x1x8x64xf32>
    %88 = vector.shape_cast %87 : vector<2x16x1x8x64xf32> to vector<2x16x8x64xf32>
    %89 = arith.maximumf %86, %88 : vector<2x16x8x64xf32>
    %cst_85 = arith.constant 0.000000e+00 : f32
    %90 = vector.broadcast %cst_85 : f32 to vector<2x18x10x64xf32>
    %c0_86 = arith.constant 0 : index
    %c0_87 = arith.constant 0 : index
    %c0_88 = arith.constant 0 : index
    %c0_89 = arith.constant 0 : index
    %91 = vector.load %arg14[%c0_86, %c0_87, %c0_88, %c0_89] : memref<2x18x10x64xf32, #tpu.memory_space<vmem>>, vector<2x18x10x64xf32>
    tpu.vector_store %arg14[%c0_86, %c0_87, %c0_88, %c0_89], %90 {strides = array<i32>} : memref<2x18x10x64xf32, #tpu.memory_space<vmem>>, vector<2x18x10x64xf32>,
    %c0_90 = arith.constant 0 : index
    %c1_91 = arith.constant 1 : index
    %c1_92 = arith.constant 1 : index
    %c0_93 = arith.constant 0 : index
    %92 = vector.load %arg14[%c0_90, %c1_91, %c1_92, %c0_93] : memref<2x18x10x64xf32, #tpu.memory_space<vmem>>, vector<2x16x8x64xf32>
    tpu.vector_store %arg14[%c0_90, %c1_91, %c1_92, %c0_93], %89 {strides = array<i32>} : memref<2x18x10x64xf32, #tpu.memory_space<vmem>>, vector<2x16x8x64xf32>,
    %c0_94 = arith.constant 0 : index
    %c0_95 = arith.constant 0 : index
    %c0_96 = arith.constant 0 : index
    %c0_97 = arith.constant 0 : index
    %93 = vector.load %arg14[%c0_94, %c0_95, %c0_96, %c0_97] : memref<2x18x10x64xf32, #tpu.memory_space<vmem>>, vector<2x16x8x64xf32>
    %94 = vector.shape_cast %93 : vector<2x16x8x64xf32> to vector<256x64xf32>
    %c0_98 = arith.constant 0 : index
    %c0_99 = arith.constant 0 : index
    %c0_100 = arith.constant 0 : index
    %95 = vector.load %arg6[%c0_98, %c0_99, %c0_100] : memref<9x64x128xf32, #tpu.memory_space<vmem>>, vector<1x64x128xf32>
    %96 = vector.shape_cast %95 : vector<1x64x128xf32> to vector<64x128xf32>
    %cst_101 = arith.constant dense<0.000000e+00> : vector<256x128xf32>
    %97 = tpu.matmul %94, %96, %cst_101 {dimension_numbers = #tpu.dot_dimension_numbers<[1], [0], [0], [1], [0, 0, 1, 1], [], []>} : vector<256x64xf32>, vector<64x128xf32>, vector<256x128xf32> -> vector<256x128xf32>
    %c0_102 = arith.constant 0 : index
    %c0_103 = arith.constant 0 : index
    %c1_104 = arith.constant 1 : index
    %c0_105 = arith.constant 0 : index
    %98 = vector.load %arg14[%c0_102, %c0_103, %c1_104, %c0_105] : memref<2x18x10x64xf32, #tpu.memory_space<vmem>>, vector<2x16x8x64xf32>
    %99 = vector.shape_cast %98 : vector<2x16x8x64xf32> to vector<256x64xf32>
    %c1_106 = arith.constant 1 : index
    %c0_107 = arith.constant 0 : index
    %c0_108 = arith.constant 0 : index
    %100 = vector.load %arg6[%c1_106, %c0_107, %c0_108] : memref<9x64x128xf32, #tpu.memory_space<vmem>>, vector<1x64x128xf32>
    %101 = vector.shape_cast %100 : vector<1x64x128xf32> to vector<64x128xf32>
    %cst_109 = arith.constant dense<0.000000e+00> : vector<256x128xf32>
    %102 = tpu.matmul %99, %101, %cst_109 {dimension_numbers = #tpu.dot_dimension_numbers<[1], [0], [0], [1], [0, 0, 1, 1], [], []>} : vector<256x64xf32>, vector<64x128xf32>, vector<256x128xf32> -> vector<256x128xf32>
    %103 = arith.addf %97, %102 : vector<256x128xf32>
    %c0_110 = arith.constant 0 : index
    %c0_111 = arith.constant 0 : index
    %c2_112 = arith.constant 2 : index
    %c0_113 = arith.constant 0 : index
    %104 = vector.load %arg14[%c0_110, %c0_111, %c2_112, %c0_113] : memref<2x18x10x64xf32, #tpu.memory_space<vmem>>, vector<2x16x8x64xf32>
    %105 = vector.shape_cast %104 : vector<2x16x8x64xf32> to vector<256x64xf32>
    %c2_114 = arith.constant 2 : index
    %c0_115 = arith.constant 0 : index
    %c0_116 = arith.constant 0 : index
    %106 = vector.load %arg6[%c2_114, %c0_115, %c0_116] : memref<9x64x128xf32, #tpu.memory_space<vmem>>, vector<1x64x128xf32>
    %107 = vector.shape_cast %106 : vector<1x64x128xf32> to vector<64x128xf32>
    %cst_117 = arith.constant dense<0.000000e+00> : vector<256x128xf32>
    %108 = tpu.matmul %105, %107, %cst_117 {dimension_numbers = #tpu.dot_dimension_numbers<[1], [0], [0], [1], [0, 0, 1, 1], [], []>} : vector<256x64xf32>, vector<64x128xf32>, vector<256x128xf32> -> vector<256x128xf32>
    %109 = arith.addf %103, %108 : vector<256x128xf32>
    %c0_118 = arith.constant 0 : index
    %c1_119 = arith.constant 1 : index
    %c0_120 = arith.constant 0 : index
    %c0_121 = arith.constant 0 : index
    %110 = vector.load %arg14[%c0_118, %c1_119, %c0_120, %c0_121] : memref<2x18x10x64xf32, #tpu.memory_space<vmem>>, vector<2x16x8x64xf32>
    %111 = vector.shape_cast %110 : vector<2x16x8x64xf32> to vector<256x64xf32>
    %c3_122 = arith.constant 3 : index
    %c0_123 = arith.constant 0 : index
    %c0_124 = arith.constant 0 : index
    %112 = vector.load %arg6[%c3_122, %c0_123, %c0_124] : memref<9x64x128xf32, #tpu.memory_space<vmem>>, vector<1x64x128xf32>
    %113 = vector.shape_cast %112 : vector<1x64x128xf32> to vector<64x128xf32>
    %cst_125 = arith.constant dense<0.000000e+00> : vector<256x128xf32>
    %114 = tpu.matmul %111, %113, %cst_125 {dimension_numbers = #tpu.dot_dimension_numbers<[1], [0], [0], [1], [0, 0, 1, 1], [], []>} : vector<256x64xf32>, vector<64x128xf32>, vector<256x128xf32> -> vector<256x128xf32>
    %115 = arith.addf %109, %114 : vector<256x128xf32>
    %c0_126 = arith.constant 0 : index
    %c1_127 = arith.constant 1 : index
    %c1_128 = arith.constant 1 : index
    %c0_129 = arith.constant 0 : index
    %116 = vector.load %arg14[%c0_126, %c1_127, %c1_128, %c0_129] : memref<2x18x10x64xf32, #tpu.memory_space<vmem>>, vector<2x16x8x64xf32>
    %117 = vector.shape_cast %116 : vector<2x16x8x64xf32> to vector<256x64xf32>
    %c4_130 = arith.constant 4 : index
    %c0_131 = arith.constant 0 : index
    %c0_132 = arith.constant 0 : index
    %118 = vector.load %arg6[%c4_130, %c0_131, %c0_132] : memref<9x64x128xf32, #tpu.memory_space<vmem>>, vector<1x64x128xf32>
    %119 = vector.shape_cast %118 : vector<1x64x128xf32> to vector<64x128xf32>
    %cst_133 = arith.constant dense<0.000000e+00> : vector<256x128xf32>
    %120 = tpu.matmul %117, %119, %cst_133 {dimension_numbers = #tpu.dot_dimension_numbers<[1], [0], [0], [1], [0, 0, 1, 1], [], []>} : vector<256x64xf32>, vector<64x128xf32>, vector<256x128xf32> -> vector<256x128xf32>
    %121 = arith.addf %115, %120 : vector<256x128xf32>
    %c0_134 = arith.constant 0 : index
    %c1_135 = arith.constant 1 : index
    %c2_136 = arith.constant 2 : index
    %c0_137 = arith.constant 0 : index
    %122 = vector.load %arg14[%c0_134, %c1_135, %c2_136, %c0_137] : memref<2x18x10x64xf32, #tpu.memory_space<vmem>>, vector<2x16x8x64xf32>
    %123 = vector.shape_cast %122 : vector<2x16x8x64xf32> to vector<256x64xf32>
    %c5_138 = arith.constant 5 : index
    %c0_139 = arith.constant 0 : index
    %c0_140 = arith.constant 0 : index
    %124 = vector.load %arg6[%c5_138, %c0_139, %c0_140] : memref<9x64x128xf32, #tpu.memory_space<vmem>>, vector<1x64x128xf32>
    %125 = vector.shape_cast %124 : vector<1x64x128xf32> to vector<64x128xf32>
    %cst_141 = arith.constant dense<0.000000e+00> : vector<256x128xf32>
    %126 = tpu.matmul %123, %125, %cst_141 {dimension_numbers = #tpu.dot_dimension_numbers<[1], [0], [0], [1], [0, 0, 1, 1], [], []>} : vector<256x64xf32>, vector<64x128xf32>, vector<256x128xf32> -> vector<256x128xf32>
    %127 = arith.addf %121, %126 : vector<256x128xf32>
    %c0_142 = arith.constant 0 : index
    %c2_143 = arith.constant 2 : index
    %c0_144 = arith.constant 0 : index
    %c0_145 = arith.constant 0 : index
    %128 = vector.load %arg14[%c0_142, %c2_143, %c0_144, %c0_145] : memref<2x18x10x64xf32, #tpu.memory_space<vmem>>, vector<2x16x8x64xf32>
    %129 = vector.shape_cast %128 : vector<2x16x8x64xf32> to vector<256x64xf32>
    %c6_146 = arith.constant 6 : index
    %c0_147 = arith.constant 0 : index
    %c0_148 = arith.constant 0 : index
    %130 = vector.load %arg6[%c6_146, %c0_147, %c0_148] : memref<9x64x128xf32, #tpu.memory_space<vmem>>, vector<1x64x128xf32>
    %131 = vector.shape_cast %130 : vector<1x64x128xf32> to vector<64x128xf32>
    %cst_149 = arith.constant dense<0.000000e+00> : vector<256x128xf32>
    %132 = tpu.matmul %129, %131, %cst_149 {dimension_numbers = #tpu.dot_dimension_numbers<[1], [0], [0], [1], [0, 0, 1, 1], [], []>} : vector<256x64xf32>, vector<64x128xf32>, vector<256x128xf32> -> vector<256x128xf32>
    %133 = arith.addf %127, %132 : vector<256x128xf32>
    %c0_150 = arith.constant 0 : index
    %c2_151 = arith.constant 2 : index
    %c1_152 = arith.constant 1 : index
    %c0_153 = arith.constant 0 : index
    %134 = vector.load %arg14[%c0_150, %c2_151, %c1_152, %c0_153] : memref<2x18x10x64xf32, #tpu.memory_space<vmem>>, vector<2x16x8x64xf32>
    %135 = vector.shape_cast %134 : vector<2x16x8x64xf32> to vector<256x64xf32>
    %c7_154 = arith.constant 7 : index
    %c0_155 = arith.constant 0 : index
    %c0_156 = arith.constant 0 : index
    %136 = vector.load %arg6[%c7_154, %c0_155, %c0_156] : memref<9x64x128xf32, #tpu.memory_space<vmem>>, vector<1x64x128xf32>
    %137 = vector.shape_cast %136 : vector<1x64x128xf32> to vector<64x128xf32>
    %cst_157 = arith.constant dense<0.000000e+00> : vector<256x128xf32>
    %138 = tpu.matmul %135, %137, %cst_157 {dimension_numbers = #tpu.dot_dimension_numbers<[1], [0], [0], [1], [0, 0, 1, 1], [], []>} : vector<256x64xf32>, vector<64x128xf32>, vector<256x128xf32> -> vector<256x128xf32>
    %139 = arith.addf %133, %138 : vector<256x128xf32>
    %c0_158 = arith.constant 0 : index
    %c2_159 = arith.constant 2 : index
    %c2_160 = arith.constant 2 : index
    %c0_161 = arith.constant 0 : index
    %140 = vector.load %arg14[%c0_158, %c2_159, %c2_160, %c0_161] : memref<2x18x10x64xf32, #tpu.memory_space<vmem>>, vector<2x16x8x64xf32>
    %141 = vector.shape_cast %140 : vector<2x16x8x64xf32> to vector<256x64xf32>
    %c8_162 = arith.constant 8 : index
    %c0_163 = arith.constant 0 : index
    %c0_164 = arith.constant 0 : index
    %142 = vector.load %arg6[%c8_162, %c0_163, %c0_164] : memref<9x64x128xf32, #tpu.memory_space<vmem>>, vector<1x64x128xf32>
    %143 = vector.shape_cast %142 : vector<1x64x128xf32> to vector<64x128xf32>
    %cst_165 = arith.constant dense<0.000000e+00> : vector<256x128xf32>
    %144 = tpu.matmul %141, %143, %cst_165 {dimension_numbers = #tpu.dot_dimension_numbers<[1], [0], [0], [1], [0, 0, 1, 1], [], []>} : vector<256x64xf32>, vector<64x128xf32>, vector<256x128xf32> -> vector<256x128xf32>
    %145 = arith.addf %139, %144 : vector<256x128xf32>
    %c0_166 = arith.constant 0 : index
    %c0_167 = arith.constant 0 : index
    %146 = vector.load %arg7[%c0_166, %c0_167] : memref<1x128xf32, #tpu.memory_space<vmem>>, vector<1x128xf32>
    %147 = vector.broadcast %146 : vector<1x128xf32> to vector<256x128xf32>
    %148 = arith.addf %145, %147 : vector<256x128xf32>
    %cst_168 = arith.constant 0.000000e+00 : f32
    %149 = vector.broadcast %cst_168 : f32 to vector<256x128xf32>
    %150 = arith.cmpf oge, %148, %149 : vector<256x128xf32>
    %cst_169 = arith.constant 2.000000e-01 : f32
    %151 = vector.broadcast %cst_169 : f32 to vector<256x128xf32>
    %152 = arith.mulf %151, %148 : vector<256x128xf32>
    %153 = arith.select %150, %148, %152 : vector<256x128xi1>, vector<256x128xf32>
    %154 = vector.shape_cast %153 : vector<256x128xf32> to vector<2x16x8x128xf32>
    %155 = vector.shape_cast %154 : vector<2x16x8x128xf32> to vector<2x8x2x8x128xf32>
    %156 = vector.extract_strided_slice %155 {offsets = [0, 0, 0, 0, 0], sizes = [2, 8, 1, 8, 128], strides = [1, 1, 1, 1, 1]} : vector<2x8x2x8x128xf32> to vector<2x8x1x8x128xf32>
    %157 = vector.shape_cast %156 : vector<2x8x1x8x128xf32> to vector<2x8x8x128xf32>
    %158 = vector.extract_strided_slice %155 {offsets = [0, 0, 1, 0, 0], sizes = [2, 8, 1, 8, 128], strides = [1, 1, 1, 1, 1]} : vector<2x8x2x8x128xf32> to vector<2x8x1x8x128xf32>
    %159 = vector.shape_cast %158 : vector<2x8x1x8x128xf32> to vector<2x8x8x128xf32>
    %160 = arith.maximumf %157, %159 : vector<2x8x8x128xf32>
    %161 = vector.shape_cast %160 : vector<2x8x8x128xf32> to vector<2x8x4x2x128xf32>
    %162 = vector.extract_strided_slice %161 {offsets = [0, 0, 0, 0, 0], sizes = [2, 8, 4, 1, 128], strides = [1, 1, 1, 1, 1]} : vector<2x8x4x2x128xf32> to vector<2x8x4x1x128xf32>
    %163 = vector.shape_cast %162 : vector<2x8x4x1x128xf32> to vector<2x8x4x128xf32>
    %164 = vector.extract_strided_slice %161 {offsets = [0, 0, 0, 1, 0], sizes = [2, 8, 4, 1, 128], strides = [1, 1, 1, 1, 1]} : vector<2x8x4x2x128xf32> to vector<2x8x4x1x128xf32>
    %165 = vector.shape_cast %164 : vector<2x8x4x1x128xf32> to vector<2x8x4x128xf32>
    %166 = arith.maximumf %163, %165 : vector<2x8x4x128xf32>
    %167 = vector.shape_cast %166 : vector<2x8x4x128xf32> to vector<2x4x2x4x128xf32>
    %168 = vector.extract_strided_slice %167 {offsets = [0, 0, 0, 0, 0], sizes = [2, 4, 1, 4, 128], strides = [1, 1, 1, 1, 1]} : vector<2x4x2x4x128xf32> to vector<2x4x1x4x128xf32>
    %169 = vector.shape_cast %168 : vector<2x4x1x4x128xf32> to vector<2x4x4x128xf32>
    %170 = vector.extract_strided_slice %167 {offsets = [0, 0, 1, 0, 0], sizes = [2, 4, 1, 4, 128], strides = [1, 1, 1, 1, 1]} : vector<2x4x2x4x128xf32> to vector<2x4x1x4x128xf32>
    %171 = vector.shape_cast %170 : vector<2x4x1x4x128xf32> to vector<2x4x4x128xf32>
    %172 = arith.addf %169, %171 : vector<2x4x4x128xf32>
    %173 = vector.shape_cast %172 : vector<2x4x4x128xf32> to vector<2x4x2x2x128xf32>
    %174 = vector.extract_strided_slice %173 {offsets = [0, 0, 0, 0, 0], sizes = [2, 4, 2, 1, 128], strides = [1, 1, 1, 1, 1]} : vector<2x4x2x2x128xf32> to vector<2x4x2x1x128xf32>
    %175 = vector.shape_cast %174 : vector<2x4x2x1x128xf32> to vector<2x4x2x128xf32>
    %176 = vector.extract_strided_slice %173 {offsets = [0, 0, 0, 1, 0], sizes = [2, 4, 2, 1, 128], strides = [1, 1, 1, 1, 1]} : vector<2x4x2x2x128xf32> to vector<2x4x2x1x128xf32>
    %177 = vector.shape_cast %176 : vector<2x4x2x1x128xf32> to vector<2x4x2x128xf32>
    %178 = arith.addf %175, %177 : vector<2x4x2x128xf32>
    %cst_170 = arith.constant 2.500000e-01 : f32
    %179 = vector.broadcast %cst_170 : f32 to vector<2x4x2x128xf32>
    %180 = arith.mulf %178, %179 : vector<2x4x2x128xf32>
    %181 = vector.shape_cast %180 : vector<2x4x2x128xf32> to vector<2x1024xf32>
    %c0_171 = arith.constant 0 : index
    %c0_172 = arith.constant 0 : index
    %182 = vector.load %arg8[%c0_171, %c0_172] : memref<1024x256xf32, #tpu.memory_space<vmem>>, vector<1024x256xf32>
    %cst_173 = arith.constant dense<0.000000e+00> : vector<2x256xf32>
    %183 = tpu.matmul %181, %182, %cst_173 {dimension_numbers = #tpu.dot_dimension_numbers<[1], [0], [0], [1], [0, 0, 1, 1], [], []>} : vector<2x1024xf32>, vector<1024x256xf32>, vector<2x256xf32> -> vector<2x256xf32>
    %c0_174 = arith.constant 0 : index
    %c0_175 = arith.constant 0 : index
    %184 = vector.load %arg9[%c0_174, %c0_175] : memref<1x256xf32, #tpu.memory_space<vmem>>, vector<1x256xf32>
    %185 = vector.broadcast %184 : vector<1x256xf32> to vector<2x256xf32>
    %186 = arith.addf %183, %185 : vector<2x256xf32>
    %cst_176 = arith.constant 0.000000e+00 : f32
    %187 = vector.broadcast %cst_176 : f32 to vector<2x256xf32>
    %188 = arith.cmpf oge, %186, %187 : vector<2x256xf32>
    %cst_177 = arith.constant 2.000000e-01 : f32
    %189 = vector.broadcast %cst_177 : f32 to vector<2x256xf32>
    %190 = arith.mulf %189, %186 : vector<2x256xf32>
    %191 = arith.select %188, %186, %190 : vector<2x256xi1>, vector<2x256xf32>
    %c0_178 = arith.constant 0 : index
    %c0_179 = arith.constant 0 : index
    %192 = vector.load %arg10[%c0_178, %c0_179] : memref<1x256xf32, #tpu.memory_space<vmem>>, vector<1x256xf32>
    %193 = vector.broadcast %192 : vector<1x256xf32> to vector<2x256xf32>
    %194 = arith.mulf %191, %193 : vector<2x256xf32>
    %cst_180 = arith.constant dense<0.000000e+00> : vector<2xf32>
    %195 = vector.multi_reduction <add>, %194, %cst_180 [1] : vector<2x256xf32> to vector<2xf32>
    %196 = vector.shape_cast %195 : vector<2xf32> to vector<2x1xf32>
    %c0_181 = arith.constant 0 : index
    %c0_182 = arith.constant 0 : index
    %197 = vector.load %arg11[%c0_181, %c0_182] : memref<1x1xf32, #tpu.memory_space<vmem>>, vector<1x1xf32>
    %198 = vector.broadcast %197 : vector<1x1xf32> to vector<2x1xf32>
    %199 = arith.addf %196, %198 : vector<2x1xf32>
    %200 = arith.negf %199 : vector<2x1xf32>
    %201 = math.exp %200 : vector<2x1xf32>
    %cst_183 = arith.constant 1.000000e+00 : f32
    %202 = vector.broadcast %cst_183 : f32 to vector<2x1xf32>
    %203 = arith.addf %202, %201 : vector<2x1xf32>
    %204 = arith.divf %202, %203 : vector<2x1xf32>
    %205 = vector.broadcast %204 : vector<2x1xf32> to vector<2x256xf32>
    %206 = arith.mulf %191, %205 : vector<2x256xf32>
    %c0_184 = arith.constant 0 : index
    %c0_185 = arith.constant 0 : index
    %c0_186 = arith.constant 0 : index
    %207 = vector.load %arg12[%c0_184, %c0_185, %c0_186] : memref<1x2x256xf32, #tpu.memory_space<vmem>>, vector<1x2x256xf32>
    %208 = vector.shape_cast %207 : vector<1x2x256xf32> to vector<2x256xf32>
    %209 = vector.shape_cast %206 : vector<2x256xf32> to vector<1x2x256xf32>
    tpu.vector_store %arg12[%c0_184, %c0_185, %c0_186], %209 {strides = array<i32>} : memref<1x2x256xf32, #tpu.memory_space<vmem>>, vector<1x2x256xf32>,
    return
  }
  func.func @transform_0(%arg0: i32) -> (i32, i32, i32) {
    %c0_i32 = arith.constant 0 : i32
    %c0_i32_0 = arith.constant 0 : i32
    %c0_i32_1 = arith.constant 0 : i32
    return %arg0, %c0_i32, %c0_i32_0 : i32, i32, i32
  }
  func.func @transform_1(%arg0: i32) -> (i32, i32) {
    %c0_i32 = arith.constant 0 : i32
    %c0_i32_0 = arith.constant 0 : i32
    %c0_i32_1 = arith.constant 0 : i32
    return %c0_i32, %c0_i32_0 : i32, i32
  }
  func.func @transform_2(%arg0: i32) -> (i32, i32) {
    %c0_i32 = arith.constant 0 : i32
    %c0_i32_0 = arith.constant 0 : i32
    %c0_i32_1 = arith.constant 0 : i32
    return %c0_i32, %c0_i32_0 : i32, i32
  }
  func.func @transform_3(%arg0: i32) -> (i32, i32, i32) {
    %c0_i32 = arith.constant 0 : i32
    %c0_i32_0 = arith.constant 0 : i32
    %c0_i32_1 = arith.constant 0 : i32
    %c0_i32_2 = arith.constant 0 : i32
    return %c0_i32, %c0_i32_0, %c0_i32_1 : i32, i32, i32
  }
  func.func @transform_4(%arg0: i32) -> (i32, i32) {
    %c0_i32 = arith.constant 0 : i32
    %c0_i32_0 = arith.constant 0 : i32
    %c0_i32_1 = arith.constant 0 : i32
    return %c0_i32, %c0_i32_0 : i32, i32
  }
  func.func @transform_5(%arg0: i32) -> (i32, i32, i32) {
    %c0_i32 = arith.constant 0 : i32
    %c0_i32_0 = arith.constant 0 : i32
    %c0_i32_1 = arith.constant 0 : i32
    %c0_i32_2 = arith.constant 0 : i32
    return %c0_i32, %c0_i32_0, %c0_i32_1 : i32, i32, i32
  }
  func.func @transform_6(%arg0: i32) -> (i32, i32) {
    %c0_i32 = arith.constant 0 : i32
    %c0_i32_0 = arith.constant 0 : i32
    %c0_i32_1 = arith.constant 0 : i32
    return %c0_i32, %c0_i32_0 : i32, i32
  }
  func.func @transform_7(%arg0: i32) -> (i32, i32) {
    %c0_i32 = arith.constant 0 : i32
    %c0_i32_0 = arith.constant 0 : i32
    %c0_i32_1 = arith.constant 0 : i32
    return %c0_i32, %c0_i32_0 : i32, i32
  }
  func.func @transform_8(%arg0: i32) -> (i32, i32) {
    %c0_i32 = arith.constant 0 : i32
    %c0_i32_0 = arith.constant 0 : i32
    %c0_i32_1 = arith.constant 0 : i32
    return %c0_i32, %c0_i32_0 : i32, i32
  }
  func.func @transform_9(%arg0: i32) -> (i32, i32) {
    %c0_i32 = arith.constant 0 : i32
    %c0_i32_0 = arith.constant 0 : i32
    %c0_i32_1 = arith.constant 0 : i32
    return %c0_i32, %c0_i32_0 : i32, i32
  }
  func.func @transform_10(%arg0: i32) -> (i32, i32) {
    %c0_i32 = arith.constant 0 : i32
    %c0_i32_0 = arith.constant 0 : i32
    %c0_i32_1 = arith.constant 0 : i32
    return %c0_i32, %c0_i32_0 : i32, i32
  }
  func.func @transform_11(%arg0: i32) -> (i32, i32, i32) {
    %c0_i32 = arith.constant 0 : i32
    %c0_i32_0 = arith.constant 0 : i32
    %c0_i32_1 = arith.constant 0 : i32
    return %arg0, %c0_i32, %c0_i32_0 : i32, i32, i32
  }
}

</mosaic_0001>

<bundles_post_ra>
// kernel: audio_encoder_forward.1
= control target key start
LH: loop header
LB: loop body
LE: loop exit
PB: predicated region body
PF: predicated region fallthrough
CT: control target
= control target key end

     0   :  { %s19391_s19 = smov 0   ;;  %s24260_s0 = inlined_call_operand.vmem [shape: f32[4,512,45], index: 0, kind: input, shape index: {}]   ;;  %s24261_s1 = inlined_call_operand.vmem [shape: f32[45,32], index: 1, kind: input, shape index: {}]   ;;  %s24262_s2 = inlined_call_operand.vmem [shape: f32[1,32], index: 2, kind: input, shape index: {}]   ;;  %s24263_s3 = inlined_call_operand.vmem [shape: f32[9,32,64], index: 3, kind: input, shape index: {}]   ;;  %s24264_s4 = inlined_call_operand.vmem [shape: f32[1,64], index: 4, kind: input, shape index: {}]   ;;  %s24265_s5 = inlined_call_operand.vmem [shape: f32[9,64,128], index: 5, kind: input, shape index: {}]   ;;  %s24266_s6 = inlined_call_operand.vmem [shape: f32[1,128], index: 6, kind: input, shape index: {}]   ;;  %s24267_s7 = inlined_call_operand.vmem [shape: f32[1024,256], index: 7, kind: input, shape index: {}]   ;;  %s24268_s8 = inlined_call_operand.vmem [shape: f32[1,256], index: 8, kind: input, shape index: {}]   ;;  %s24269_s9 = inlined_call_operand.vmem [shape: f32[1,256], index: 9, kind: input, shape index: {}]   ;;  %s24270_s10 = inlined_call_operand.<no memory space> [shape: f32[1,1], index: 10, kind: input, shape index: {}]   ;;  %s24271_s11 = inlined_call_operand.vmem [shape: f32[2,2,256], index: 11, kind: output, shape index: {}]  }
   0x1   :  { %v16_v0 = vstv %s24270_s10 }
   0x2   :  { %17 = vst [vmem:[#allocation4] sm:$0x1] %v16_v0 }
   0x3 LB: > { %s19397_s20 = sadd.s32 4294967295, %s19322_s19   ;;  %p14041_p0 = scmp.ge.s32.totalorder %s19322_s19, 1  ;;  %s19322_s19 = sphi %s19391_s19, %s23_s19  }
   0x4   : > { %p341_p1 = scmp.lt.s32.totalorder %s19322_s19, 3 }
   0x6   : > { %p342_p2 = pnand %p14041_p0, %p341_p1 }
   0x8   : > { %345 = sbr.rel (%p342_p2) target bundleno = 3233 (0xca1), region = 64 }
   0xf   : > { %v522_v1 = vld [vmem:[%s24261_s1] sm:$0xff]  ;;  %v523_v2 = vld [vmem:[%s24261_s1 + $0x8] sm:$0xff]  ;;  %v524_v3 = vld [vmem:[%s24261_s1 + $0x10] sm:$0xff]  ;;  %s14042_s26 = sshll.u32 %s19397_s20, 1  ;;  %vm920_vm0 = vcmask 1044480   ;;  %vm535_vm1 = vcmask 367616  }
  0x10   : > { %v18032_v4 = vpack.c.bf16 %v523_v2, %v522_v1  ;;  %v525_v5 = vld [vmem:[%s24261_s1 + $0x18] sm:$0xff]  ;;  %p383_p3 = scmp.lt.s32.totalorder %s14042_s26, 3  ;;  %v526_v7 = vld [vmem:[%s24261_s1 + $0x20] sm:$0xff]  ;;  %v527_v8 = vld [vmem:[%s24261_s1 + $0x28] sm:$0x1f]  ;;  %vm19324_vm2 = vmmov 1  }
  0x11   : > { %v18036_v6 = vpack.c.bf16 %v525_v5, %v524_v3  ;;  %v18040_v9 = vpack.c.bf16 %v527_v8, %v526_v7  ;;  %vm18041_vm3 = vmpackc.low %vm920_vm0, %vm19324_vm2  ;;  %vm2077_vm4 = vcmask 261120   ;;  %vm2079_vm5 = vcmask 254976   ;;  %p389_p4 = scmp.lt.s32.totalorder %s19397_s20, 1 }
  0x12   : > { %18033 = vmatprep.subr.bf16.mxu0 %v18032_v4  ;;  %s24792_s26 = smov (!%p383_p3, %s14042_s26), 3  ;;  %v24272_v59 = vmov 0.0  }
  0x13   : > { %18035 = vmatpush3.bf16.msra.mxu0 %v18032_v4  ;;  %s15208_s14 = sshll.u32 %s24792_s26, 9  ;;  %2081 = vst.msk [vmem:[#allocation2 + $0x10] sm:$0xff] %vm2077_vm4, %v24272_v59  ;;  %2078 = vst.msk [vmem:[#allocation2] sm:$0xff] %vm2077_vm4, %v24272_v59  ;;  %s24794_s20 = smov (!%p389_p4, %s19397_s20), 1 }
  0x14   : > { %18037 = vmatprep.subr.bf16.mxu0 %v18036_v6  ;;  %s19423_s17 = scalar_lea.vmem %s24260_s0, %s15208_s14  ;;  %2082 = vst.msk [vmem:[#allocation2 + $0x18] sm:$0x3] %vm2079_vm5, %v24272_v59  ;;  %2080 = vst.msk [vmem:[#allocation2 + $0x8] sm:$0x3] %vm2079_vm5, %v24272_v59  ;;  %s15209_s22 = sshll.u32 %s24794_s20, 2 }
  0x15   : > { %v394_v10 = vld [vmem:[%s19423_s17] sm:$0xff]  ;;  %v395_v11 = vld [vmem:[%s19423_s17 + $0x8] sm:$0xff]  ;;  %v396_v12 = vld [vmem:[%s19423_s17 + $0x10] sm:$0xff]  ;;  %2083 = vst.msk [vmem:[#allocation2 + $0x20] sm:$0xff] %vm2077_vm4, %v24272_v59  ;;  %s393_s24 = scalar_lea.vmem %s24271_s11, %s15209_s22 }
  0x16   : > { %16328 = vmatprep.mubr.msk.f32.mxu0 %vm535_vm1, %v394_v10  ;;  %v397_v13 = vld [vmem:[%s19423_s17 + $0x18] sm:$0xff]  ;;  %v398_v14 = vld [vmem:[%s19423_s17 + $0x20] sm:$0xff]  ;;  %v399_v15 = vld [vmem:[%s19423_s17 + $0x28] sm:$0xff]  ;;  %2084 = vst.msk [vmem:[#allocation2 + $0x28] sm:$0x3] %vm2079_vm5, %v24272_v59 }
  0x17   : > { %18039 = vmatpush3.bf16.msra.mxu0 %v18036_v6  ;;  %v400_v16 = vld [vmem:[%s19423_s17 + $0x30] sm:$0xff]  ;;  %v401_v17 = vld [vmem:[%s19423_s17 + $0x38] sm:$0xff]  ;;  %v402_v18 = vld [vmem:[%s19423_s17 + $0x40] sm:$0xff]  ;;  %2085 = vst.msk [vmem:[#allocation2 + $0x30] sm:$0xff] %vm2077_vm4, %v24272_v59 }
  0x18   : > { %18042 = vmatprep.subr.msk.bf16.mxu0 %vm18041_vm3, %v18040_v9  ;;  %v403_v19 = vld [vmem:[%s19423_s17 + $0x48] sm:$0xff]  ;;  %v404_v20 = vld [vmem:[%s19423_s17 + $0x50] sm:$0xff]  ;;  %v405_v21 = vld [vmem:[%s19423_s17 + $0x58] sm:$0xff]  ;;  %2086 = vst.msk [vmem:[#allocation2 + $0x38] sm:$0x3] %vm2079_vm5, %v24272_v59 }
  0x19   : > { %v406_v22 = vld [vmem:[%s19423_s17 + $0x60] sm:$0xff]  ;;  %v407_v23 = vld [vmem:[%s19423_s17 + $0x68] sm:$0xff]  ;;  %v408_v24 = vld [vmem:[%s19423_s17 + $0x70] sm:$0xff]  ;;  %2087 = vst.msk [vmem:[#allocation2 + $0x40] sm:$0xff] %vm2077_vm4, %v24272_v59 }
  0x1a   : > { %v409_v25 = vld [vmem:[%s19423_s17 + $0x78] sm:$0xff]  ;;  %v410_v26 = vld [vmem:[%s19423_s17 + $0x80] sm:$0xff]  ;;  %v411_v27 = vld [vmem:[%s19423_s17 + $0x88] sm:$0xff]  ;;  %2088 = vst.msk [vmem:[#allocation2 + $0x48] sm:$0x3] %vm2079_vm5, %v24272_v59 }
  0x1b   : > { %18045 = vmatpush3.bf16.msk.msra.mxu0 %vm18041_vm3, %v18040_v9  ;;  %v412_v28 = vld [vmem:[%s19423_s17 + $0x90] sm:$0xff]  ;;  %v413_v29 = vld [vmem:[%s19423_s17 + $0x98] sm:$0xff]  ;;  %v414_v30 = vld [vmem:[%s19423_s17 + $0xa0] sm:$0xff]  ;;  %2089 = vst.msk [vmem:[#allocation2 + $0x50] sm:$0xff] %vm2077_vm4, %v24272_v59 }
  0x1c   : > { %v415_v31 = vld [vmem:[%s19423_s17 + $0xa8] sm:$0xff]  ;;  %v416_v32 = vld [vmem:[%s19423_s17 + $0xb0] sm:$0xff]  ;;  %v417_v33 = vld [vmem:[%s19423_s17 + $0xb8] sm:$0xff]  ;;  %2090 = vst.msk [vmem:[#allocation2 + $0x58] sm:$0x3] %vm2079_vm5, %v24272_v59 }
  0x1d   : > { %v418_v34 = vld [vmem:[%s19423_s17 + $0xc0] sm:$0xff]  ;;  %v419_v35 = vld [vmem:[%s19423_s17 + $0xc8] sm:$0xff]  ;;  %v420_v36 = vld [vmem:[%s19423_s17 + $0xd0] sm:$0xff]  ;;  %2091 = vst.msk [vmem:[#allocation2 + $0x60] sm:$0xff] %vm2077_vm4, %v24272_v59 }
  0x1e   : > { %16329 = vmatmul.mubr.msk.f32.vlgmr.msra.gmra.mrb[0].mxu0 %vm535_vm1, %v395_v11  ;;  %v421_v37 = vld [vmem:[%s19423_s17 + $0xd8] sm:$0xff]  ;;  %v422_v38 = vld [vmem:[%s19423_s17 + $0xe0] sm:$0xff]  ;;  %v423_v39 = vld [vmem:[%s19423_s17 + $0xe8] sm:$0xff]  ;;  %2092 = vst.msk [vmem:[#allocation2 + $0x68] sm:$0x3] %vm2079_vm5, %v24272_v59 }
  0x1f   : > { %16331 = vmatprep.mubr.msk.f32.mxu0 %vm535_vm1, %v396_v12  ;;  %v424_v40 = vld [vmem:[%s19423_s17 + $0xf0] sm:$0xff]  ;;  %v425_v41 = vld [vmem:[%s19423_s17 + $0xf8] sm:$0xff]  ;;  %v426_v42 = vld [vmem:[%s19423_s17 + $0x100] sm:$0xff]  ;;  %2093 = vst.msk [vmem:[#allocation2 + $0x70] sm:$0xff] %vm2077_vm4, %v24272_v59 }
  0x20   : > { %v427_v43 = vld [vmem:[%s19423_s17 + $0x108] sm:$0xff]  ;;  %v428_v44 = vld [vmem:[%s19423_s17 + $0x110] sm:$0xff]  ;;  %v429_v45 = vld [vmem:[%s19423_s17 + $0x118] sm:$0xff]  ;;  %2094 = vst.msk [vmem:[#allocation2 + $0x78] sm:$0x3] %vm2079_vm5, %v24272_v59 }
  0x21   : > { %v430_v46 = vld [vmem:[%s19423_s17 + $0x120] sm:$0xff]  ;;  %v431_v47 = vld [vmem:[%s19423_s17 + $0x128] sm:$0xff]  ;;  %v432_v48 = vld [vmem:[%s19423_s17 + $0x130] sm:$0xff]  ;;  %2095 = vst.msk [vmem:[#allocation2 + $0x80] sm:$0xff] %vm2077_vm4, %v24272_v59 }
  0x22   : > { %16332 = vmatmul.mubr.msk.f32.gmra.mrb[2].mxu0 %vm535_vm1, %v397_v13  ;;  %v433_v49 = vld [vmem:[%s19423_s17 + $0x138] sm:$0xff]  ;;  %v434_v50 = vld [vmem:[%s19423_s17 + $0x140] sm:$0xff]  ;;  %v435_v51 = vld [vmem:[%s19423_s17 + $0x148] sm:$0xff]  ;;  %2096 = vst.msk [vmem:[#allocation2 + $0x88] sm:$0x3] %vm2079_vm5, %v24272_v59 }
  0x23   : > { %16334 = vmatprep.mubr.msk.f32.mxu0 %vm535_vm1, %v398_v14  ;;  %v436_v52 = vld [vmem:[%s19423_s17 + $0x150] sm:$0xff]  ;;  %v437_v53 = vld [vmem:[%s19423_s17 + $0x158] sm:$0xff]  ;;  %v438_v54 = vld [vmem:[%s19423_s17 + $0x160] sm:$0xff]  ;;  %2097 = vst.msk [vmem:[#allocation2 + $0x90] sm:$0xff] %vm2077_vm4, %v24272_v59 }
  0x24   : > { %v439_v55 = vld [vmem:[%s19423_s17 + $0x168] sm:$0xff]  ;;  %v440_v56 = vld [vmem:[%s19423_s17 + $0x170] sm:$0xff]  ;;  %v19520_v57 = vld [vmem:[%s19423_s17 + $0x178] sm:$0xff]  ;;  %2098 = vst.msk [vmem:[#allocation2 + $0x98] sm:$0x3] %vm2079_vm5, %v24272_v59 }
  0x25   : > { %v19523_v58 = vld [vmem:[%s19423_s17 + $0x180] sm:$0xff]  ;;  %2099 = vst.msk [vmem:[#allocation2 + $0xa0] sm:$0xff] %vm2077_vm4, %v24272_v59  ;;  %2101 = vst.msk [vmem:[#allocation2 + $0xb0] sm:$0xff] %vm2077_vm4, %v24272_v59  ;;  %v443_v60 = vld [vmem:[%s19423_s17 + $0x188] sm:$0xff] }
  0x26   : > { %16335 = vmatmul.mubr.msk.f32.gmra.mrb[4].mxu0 %vm535_vm1, %v399_v15  ;;  %2100 = vst.msk [vmem:[#allocation2 + $0xa8] sm:$0x3] %vm2079_vm5, %v24272_v59  ;;  %2102 = vst.msk [vmem:[#allocation2 + $0xb8] sm:$0x3] %vm2079_vm5, %v24272_v59  ;;  %v444_v61 = vld [vmem:[%s19423_s17 + $0x190] sm:$0xff]  ;;  %v445_v62 = vld [vmem:[%s19423_s17 + $0x198] sm:$0xff] }
  0x27   : > { %16337 = vmatprep.mubr.msk.f32.mxu0 %vm535_vm1, %v400_v16  ;;  %2103 = vst.msk [vmem:[#allocation2 + $0xc0] sm:$0xff] %vm2077_vm4, %v24272_v59  ;;  %2105 = vst.msk [vmem:[#allocation2 + $0xd0] sm:$0xff] %vm2077_vm4, %v24272_v59  ;;  %v446_v63 = vld [vmem:[%s19423_s17 + $0x1a0] sm:$0xff]  ;;  %v447_v0 = vld [vmem:[%s19423_s17 + $0x1a8] sm:$0xff] }
  0x28   : > { %2104 = vst.msk [vmem:[#allocation2 + $0xc8] sm:$0x3] %vm2079_vm5, %v24272_v59  ;;  %2106 = vst.msk [vmem:[#allocation2 + $0xd8] sm:$0x3] %vm2079_vm5, %v24272_v59  ;;  %v448_v1 = vld [vmem:[%s19423_s17 + $0x1b0] sm:$0xff]  ;;  %v449_v2 = vld [vmem:[%s19423_s17 + $0x1b8] sm:$0xff] }
  0x29   : > { %2107 = vst.msk [vmem:[#allocation2 + $0xe0] sm:$0xff] %vm2077_vm4, %v24272_v59  ;;  %2109 = vst.msk [vmem:[#allocation2 + $0xf0] sm:$0xff] %vm2077_vm4, %v24272_v59  ;;  %v450_v3 = vld [vmem:[%s19423_s17 + $0x1c0] sm:$0xff]  ;;  %v451_v4 = vld [vmem:[%s19423_s17 + $0x1c8] sm:$0xff] }
  0x2a   : > { %16338 = vmatmul.mubr.msk.f32.gmra.mrb[6].mxu0 %vm535_vm1, %v401_v17  ;;  %2108 = vst.msk [vmem:[#allocation2 + $0xe8] sm:$0x3] %vm2079_vm5, %v24272_v59  ;;  %2110 = vst.msk [vmem:[#allocation2 + $0xf8] sm:$0x3] %vm2079_vm5, %v24272_v59  ;;  %v452_v5 = vld [vmem:[%s19423_s17 + $0x1d0] sm:$0xff]  ;;  %v453_v6 = vld [vmem:[%s19423_s17 + $0x1d8] sm:$0xff] }
  0x2b   : > { %16340 = vmatprep.mubr.msk.f32.mxu0 %vm535_vm1, %v402_v18  ;;  %2111 = vst.msk [vmem:[#allocation2 + $0x100] sm:$0xff] %vm2077_vm4, %v24272_v59  ;;  %2113 = vst.msk [vmem:[#allocation2 + $0x110] sm:$0xff] %vm2077_vm4, %v24272_v59  ;;  %v454_v7 = vld [vmem:[%s19423_s17 + $0x1e0] sm:$0xff]  ;;  %v455_v8 = vld [vmem:[%s19423_s17 + $0x1e8] sm:$0xff] }
  0x2c   : > { %2112 = vst.msk [vmem:[#allocation2 + $0x108] sm:$0x3] %vm2079_vm5, %v24272_v59  ;;  %2114 = vst.msk [vmem:[#allocation2 + $0x118] sm:$0x3] %vm2079_vm5, %v24272_v59  ;;  %v14177_v9 = vld [vmem:[%s24263_s3 + $0x20] sm:$0xff]  ;;  %v14178_v10 = vld [vmem:[%s24263_s3 + $0x28] sm:$0xff] }
  0x2d   : > { %2115 = vst.msk [vmem:[#allocation2 + $0x120] sm:$0xff] %vm2077_vm4, %v24272_v59  ;;  %2117 = vst.msk [vmem:[#allocation2 + $0x130] sm:$0xff] %vm2077_vm4, %v24272_v59  ;;  %v456_v11 = vld [vmem:[%s19423_s17 + $0x1f0] sm:$0xff]  ;;  %v18046_v12 = vpack.c.bf16 %v14178_v10, %v14177_v9  ;;  %v457_v13 = vld [vmem:[%s19423_s17 + $0x1f8] sm:$0xff] }
  0x2e   : > { %16341 = vmatmul.mubr.msk.f32.gmra.mrb[8].mxu0 %vm535_vm1, %v403_v19  ;;  %2116 = vst.msk [vmem:[#allocation2 + $0x128] sm:$0x3] %vm2079_vm5, %v24272_v59  ;;  %2118 = vst.msk [vmem:[#allocation2 + $0x138] sm:$0x3] %vm2079_vm5, %v24272_v59  ;;  %v14179_v14 = vld [vmem:[%s24263_s3 + $0x30] sm:$0xff]  ;;  %v14180_v15 = vld [vmem:[%s24263_s3 + $0x38] sm:$0xff] }
  0x2f   : > { %16343 = vmatprep.mubr.msk.f32.mxu0 %vm535_vm1, %v404_v20  ;;  %2119 = vst.msk [vmem:[#allocation2 + $0x140] sm:$0xff] %vm2077_vm4, %v24272_v59  ;;  %2121 = vst.msk [vmem:[#allocation2 + $0x150] sm:$0xff] %vm2077_vm4, %v24272_v59  ;;  %18047 = vmatprep.subr.bf16.mxu0 %v18046_v12  ;;  %v458_v16 = vld [vmem:[%s19423_s17 + $0x200] sm:$0xff]  ;;  %v18050_v17 = vpack.c.bf16 %v14180_v15, %v14179_v14  ;;  %v459_v18 = vld [vmem:[%s19423_s17 + $0x208] sm:$0xff] }
  0x30   : > { %2120 = vst.msk [vmem:[#allocation2 + $0x148] sm:$0x3] %vm2079_vm5, %v24272_v59  ;;  %2122 = vst.msk [vmem:[#allocation2 + $0x158] sm:$0x3] %vm2079_vm5, %v24272_v59  ;;  %18049 = vmatpush3.bf16.msra.mxu0 %v18046_v12  ;;  %18518 = vmatprep.subr.bf16.mxu1 %v18046_v12  ;;  %v460_v19 = vld [vmem:[%s19423_s17 + $0x210] sm:$0xff]  ;;  %v461_v20 = vld [vmem:[%s19423_s17 + $0x218] sm:$0xff] }
  0x31   : > { %2123 = vst.msk [vmem:[#allocation2 + $0x160] sm:$0xff] %vm2077_vm4, %v24272_v59  ;;  %2125 = vst.msk [vmem:[#allocation2 + $0x170] sm:$0xff] %vm2077_vm4, %v24272_v59  ;;  %18520 = vmatpush3.bf16.msra.mxu1 %v18046_v12  ;;  %18051 = vmatprep.subr.bf16.mxu0 %v18050_v17  ;;  %v505_v14 = vld [vmem:[%s19423_s17 + $0x378] sm:$0xff] }
  0x32   : > { %16344 = vmatmul.mubr.msk.f32.gmra.mrb[10].mxu0 %vm535_vm1, %v405_v21  ;;  %2124 = vst.msk [vmem:[#allocation2 + $0x168] sm:$0x3] %vm2079_vm5, %v24272_v59  ;;  %2126 = vst.msk [vmem:[#allocation2 + $0x178] sm:$0x3] %vm2079_vm5, %v24272_v59  ;;  %18519 = vmatprep.subr.bf16.mxu1 %v18050_v17  ;;  %v462_v21 = vld [vmem:[%s19423_s17 + $0x220] sm:$0xff] }
  0x33   : > { %16346 = vmatprep.mubr.msk.f32.mxu0 %vm535_vm1, %v406_v22  ;;  %2127 = vst.msk [vmem:[#allocation2 + $0x180] sm:$0xff] %vm2077_vm4, %v24272_v59  ;;  %2129 = vst.msk [vmem:[#allocation2 + $0x190] sm:$0xff] %vm2077_vm4, %v24272_v59  ;;  %v463_v22 = vld [vmem:[%s19423_s17 + $0x228] sm:$0xff] }
  0x34   : > { %2128 = vst.msk [vmem:[#allocation2 + $0x188] sm:$0x3] %vm2079_vm5, %v24272_v59  ;;  %2130 = vst.msk [vmem:[#allocation2 + $0x198] sm:$0x3] %vm2079_vm5, %v24272_v59  ;;  %18053 = vmatpush3.bf16.msra.mxu0 %v18050_v17 }
  0x35   : > { %2131 = vst.msk [vmem:[#allocation2 + $0x1a0] sm:$0xff] %vm2077_vm4, %v24272_v59  ;;  %2133 = vst.msk [vmem:[#allocation2 + $0x1b0] sm:$0xff] %vm2077_vm4, %v24272_v59  ;;  %18521 = vmatpush3.bf16.msra.mxu1 %v18050_v17  ;;  %v506_v17 = vld [vmem:[%s19423_s17 + $0x380] sm:$0xff] }
  0x36   : > { %16347 = vmatmul.mubr.msk.f32.gmra.mrb[12].mxu0 %vm535_vm1, %v407_v23  ;;  %2132 = vst.msk [vmem:[#allocation2 + $0x1a8] sm:$0x3] %vm2079_vm5, %v24272_v59  ;;  %2134 = vst.msk [vmem:[#allocation2 + $0x1b8] sm:$0x3] %vm2079_vm5, %v24272_v59  ;;  %v464_v23 = vld [vmem:[%s19423_s17 + $0x230] sm:$0xff] }
  0x37   : > { %16349 = vmatprep.mubr.msk.f32.mxu0 %vm535_vm1, %v408_v24  ;;  %2135 = vst.msk [vmem:[#allocation2 + $0x1c0] sm:$0xff] %vm2077_vm4, %v24272_v59  ;;  %2137 = vst.msk [vmem:[#allocation2 + $0x1d0] sm:$0xff] %vm2077_vm4, %v24272_v59  ;;  %v465_v24 = vld [vmem:[%s19423_s17 + $0x238] sm:$0xff] }
  0x38   : > { %2136 = vst.msk [vmem:[#allocation2 + $0x1c8] sm:$0x3] %vm2079_vm5, %v24272_v59  ;;  %2138 = vst.msk [vmem:[#allocation2 + $0x1d8] sm:$0x3] %vm2079_vm5, %v24272_v59 }
  0x39   : > { %2139 = vst.msk [vmem:[#allocation2 + $0x1e0] sm:$0xff] %vm2077_vm4, %v24272_v59  ;;  %2141 = vst.msk [vmem:[#allocation2 + $0x1f0] sm:$0xff] %vm2077_vm4, %v24272_v59 }
  0x3a   : > { %16350 = vmatmul.mubr.msk.f32.gmra.mrb[14].mxu0 %vm535_vm1, %v409_v25  ;;  %2140 = vst.msk [vmem:[#allocation2 + $0x1e8] sm:$0x3] %vm2079_vm5, %v24272_v59  ;;  %2142 = vst.msk [vmem:[#allocation2 + $0x1f8] sm:$0x3] %vm2079_vm5, %v24272_v59  ;;  %v466_v25 = vld [vmem:[%s19423_s17 + $0x240] sm:$0xff] }
  0x3b   : > { %16352 = vmatprep.mubr.msk.f32.mxu0 %vm535_vm1, %v410_v26  ;;  %2143 = vst.msk [vmem:[#allocation2 + $0x200] sm:$0xff] %vm2077_vm4, %v24272_v59  ;;  %2145 = vst.msk [vmem:[#allocation2 + $0x210] sm:$0xff] %vm2077_vm4, %v24272_v59  ;;  %v467_v26 = vld [vmem:[%s19423_s17 + $0x248] sm:$0xff] }
  0x3c   : > { %2144 = vst.msk [vmem:[#allocation2 + $0x208] sm:$0x3] %vm2079_vm5, %v24272_v59  ;;  %2146 = vst.msk [vmem:[#allocation2 + $0x218] sm:$0x3] %vm2079_vm5, %v24272_v59 }
  0x3d   : > { %2147 = vst.msk [vmem:[#allocation2 + $0x220] sm:$0xff] %vm2077_vm4, %v24272_v59  ;;  %2149 = vst.msk [vmem:[#allocation2 + $0x230] sm:$0xff] %vm2077_vm4, %v24272_v59 }
  0x3e   : > { %16353 = vmatmul.mubr.msk.f32.gmra.mrb[16].mxu0 %vm535_vm1, %v411_v27  ;;  %2148 = vst.msk [vmem:[#allocation2 + $0x228] sm:$0x3] %vm2079_vm5, %v24272_v59  ;;  %2150 = vst.msk [vmem:[#allocation2 + $0x238] sm:$0x3] %vm2079_vm5, %v24272_v59  ;;  %v468_v27 = vld [vmem:[%s19423_s17 + $0x250] sm:$0xff] }
  0x3f   : > { %16355 = vmatprep.mubr.msk.f32.mxu0 %vm535_vm1, %v412_v28  ;;  %2151 = vst.msk [vmem:[#allocation2 + $0x240] sm:$0xff] %vm2077_vm4, %v24272_v59  ;;  %2153 = vst.msk [vmem:[#allocation2 + $0x250] sm:$0xff] %vm2077_vm4, %v24272_v59  ;;  %v469_v28 = vld [vmem:[%s19423_s17 + $0x258] sm:$0xff] }
  0x40   : > { %2152 = vst.msk [vmem:[#allocation2 + $0x248] sm:$0x3] %vm2079_vm5, %v24272_v59  ;;  %2154 = vst.msk [vmem:[#allocation2 + $0x258] sm:$0x3] %vm2079_vm5, %v24272_v59 }
  0x41   : > { %2155 = vst.msk [vmem:[#allocation2 + $0x260] sm:$0xff] %vm2077_vm4, %v24272_v59  ;;  %2157 = vst.msk [vmem:[#allocation2 + $0x270] sm:$0xff] %vm2077_vm4, %v24272_v59 }
  0x42   : > { %16356 = vmatmul.mubr.msk.f32.gmra.mrb[18].mxu0 %vm535_vm1, %v413_v29  ;;  %2156 = vst.msk [vmem:[#allocation2 + $0x268] sm:$0x3] %vm2079_vm5, %v24272_v59  ;;  %2158 = vst.msk [vmem:[#allocation2 + $0x278] sm:$0x3] %vm2079_vm5, %v24272_v59  ;;  %v470_v29 = vld [vmem:[%s19423_s17 + $0x260] sm:$0xff] }
  0x43   : > { %16358 = vmatprep.mubr.msk.f32.mxu0 %vm535_vm1, %v414_v30  ;;  %2159 = vst.msk [vmem:[#allocation2 + $0x280] sm:$0xff] %vm2077_vm4, %v24272_v59  ;;  %2161 = vst.msk [vmem:[#allocation2 + $0x290] sm:$0xff] %vm2077_vm4, %v24272_v59  ;;  %v471_v30 = vld [vmem:[%s19423_s17 + $0x268] sm:$0xff] }
  0x44   : > { %2160 = vst.msk [vmem:[#allocation2 + $0x288] sm:$0x3] %vm2079_vm5, %v24272_v59  ;;  %2162 = vst.msk [vmem:[#allocation2 + $0x298] sm:$0x3] %vm2079_vm5, %v24272_v59 }
  0x45   : > { %2163 = vst.msk [vmem:[#allocation2 + $0x2a0] sm:$0xff] %vm2077_vm4, %v24272_v59  ;;  %2165 = vst.msk [vmem:[#allocation2 + $0x2b0] sm:$0xff] %vm2077_vm4, %v24272_v59 }
  0x46   : > { %16359 = vmatmul.mubr.msk.f32.gmra.mrb[20].mxu0 %vm535_vm1, %v415_v31  ;;  %2164 = vst.msk [vmem:[#allocation2 + $0x2a8] sm:$0x3] %vm2079_vm5, %v24272_v59  ;;  %2166 = vst.msk [vmem:[#allocation2 + $0x2b8] sm:$0x3] %vm2079_vm5, %v24272_v59  ;;  %v472_v31 = vld [vmem:[%s19423_s17 + $0x270] sm:$0xff] }
  0x47   : > { %16361 = vmatprep.mubr.msk.f32.mxu0 %vm535_vm1, %v416_v32  ;;  %2167 = vst.msk [vmem:[#allocation2 + $0x2c0] sm:$0xff] %vm2077_vm4, %v24272_v59  ;;  %2169 = vst.msk [vmem:[#allocation2 + $0x2d0] sm:$0xff] %vm2077_vm4, %v24272_v59  ;;  %v473_v32 = vld [vmem:[%s19423_s17 + $0x278] sm:$0xff] }
  0x48   : > { %2168 = vst.msk [vmem:[#allocation2 + $0x2c8] sm:$0x3] %vm2079_vm5, %v24272_v59  ;;  %2170 = vst.msk [vmem:[#allocation2 + $0x2d8] sm:$0x3] %vm2079_vm5, %v24272_v59 }
  0x49   : > { %2171 = vst.msk [vmem:[#allocation2 + $0x2e0] sm:$0xff] %vm2077_vm4, %v24272_v59  ;;  %2173 = vst.msk [vmem:[#allocation2 + $0x2f0] sm:$0xff] %vm2077_vm4, %v24272_v59 }
  0x4a   : > { %16362 = vmatmul.mubr.msk.f32.gmra.mrb[22].mxu0 %vm535_vm1, %v417_v33  ;;  %2172 = vst.msk [vmem:[#allocation2 + $0x2e8] sm:$0x3] %vm2079_vm5, %v24272_v59  ;;  %2174 = vst.msk [vmem:[#allocation2 + $0x2f8] sm:$0x3] %vm2079_vm5, %v24272_v59  ;;  %v474_v33 = vld [vmem:[%s19423_s17 + $0x280] sm:$0xff] }
  0x4b   : > { %16364 = vmatprep.mubr.msk.f32.mxu0 %vm535_vm1, %v418_v34  ;;  %2175 = vst.msk [vmem:[#allocation2 + $0x300] sm:$0xff] %vm2077_vm4, %v24272_v59  ;;  %2177 = vst.msk [vmem:[#allocation2 + $0x310] sm:$0xff] %vm2077_vm4, %v24272_v59  ;;  %v475_v34 = vld [vmem:[%s19423_s17 + $0x288] sm:$0xff] }
  0x4c   : > { %2176 = vst.msk [vmem:[#allocation2 + $0x308] sm:$0x3] %vm2079_vm5, %v24272_v59  ;;  %2178 = vst.msk [vmem:[#allocation2 + $0x318] sm:$0x3] %vm2079_vm5, %v24272_v59 }
  0x4d   : > { %2179 = vst.msk [vmem:[#allocation2 + $0x320] sm:$0xff] %vm2077_vm4, %v24272_v59  ;;  %2181 = vst.msk [vmem:[#allocation2 + $0x330] sm:$0xff] %vm2077_vm4, %v24272_v59 }
  0x4e   : > { %16365 = vmatmul.mubr.msk.f32.gmra.mrb[24].mxu0 %vm535_vm1, %v419_v35  ;;  %2180 = vst.msk [vmem:[#allocation2 + $0x328] sm:$0x3] %vm2079_vm5, %v24272_v59  ;;  %2182 = vst.msk [vmem:[#allocation2 + $0x338] sm:$0x3] %vm2079_vm5, %v24272_v59  ;;  %v476_v35 = vld [vmem:[%s19423_s17 + $0x290] sm:$0xff] }
  0x4f   : > { %16367 = vmatprep.mubr.msk.f32.mxu0 %vm535_vm1, %v420_v36  ;;  %2183 = vst.msk [vmem:[#allocation2 + $0x340] sm:$0xff] %vm2077_vm4, %v24272_v59  ;;  %2185 = vst.msk [vmem:[#allocation2 + $0x350] sm:$0xff] %vm2077_vm4, %v24272_v59  ;;  %v477_v36 = vld [vmem:[%s19423_s17 + $0x298] sm:$0xff] }
  0x50   : > { %2184 = vst.msk [vmem:[#allocation2 + $0x348] sm:$0x3] %vm2079_vm5, %v24272_v59  ;;  %2186 = vst.msk [vmem:[#allocation2 + $0x358] sm:$0x3] %vm2079_vm5, %v24272_v59 }
  0x51   : > { %2187 = vst.msk [vmem:[#allocation2 + $0x360] sm:$0xff] %vm2077_vm4, %v24272_v59  ;;  %2189 = vst.msk [vmem:[#allocation2 + $0x370] sm:$0xff] %vm2077_vm4, %v24272_v59 }
  0x52   : > { %16368 = vmatmul.mubr.msk.f32.gmra.mrb[26].mxu0 %vm535_vm1, %v421_v37  ;;  %2188 = vst.msk [vmem:[#allocation2 + $0x368] sm:$0x3] %vm2079_vm5, %v24272_v59  ;;  %2190 = vst.msk [vmem:[#allocation2 + $0x378] sm:$0x3] %vm2079_vm5, %v24272_v59  ;;  %v478_v37 = vld [vmem:[%s19423_s17 + $0x2a0] sm:$0xff] }
  0x53   : > { %16370 = vmatprep.mubr.msk.f32.mxu0 %vm535_vm1, %v422_v38  ;;  %2191 = vst.msk [vmem:[#allocation2 + $0x380] sm:$0xff] %vm2077_vm4, %v24272_v59  ;;  %2193 = vst.msk [vmem:[#allocation2 + $0x390] sm:$0xff] %vm2077_vm4, %v24272_v59  ;;  %v479_v38 = vld [vmem:[%s19423_s17 + $0x2a8] sm:$0xff] }
  0x54   : > { %2192 = vst.msk [vmem:[#allocation2 + $0x388] sm:$0x3] %vm2079_vm5, %v24272_v59  ;;  %2194 = vst.msk [vmem:[#allocation2 + $0x398] sm:$0x3] %vm2079_vm5, %v24272_v59 }
  0x55   : > { %2195 = vst.msk [vmem:[#allocation2 + $0x3a0] sm:$0xff] %vm2077_vm4, %v24272_v59  ;;  %2197 = vst.msk [vmem:[#allocation2 + $0x3b0] sm:$0xff] %vm2077_vm4, %v24272_v59 }
  0x56   : > { %16371 = vmatmul.mubr.msk.f32.gmra.mrb[28].mxu0 %vm535_vm1, %v423_v39  ;;  %2196 = vst.msk [vmem:[#allocation2 + $0x3a8] sm:$0x3] %vm2079_vm5, %v24272_v59  ;;  %2198 = vst.msk [vmem:[#allocation2 + $0x3b8] sm:$0x3] %vm2079_vm5, %v24272_v59  ;;  %v480_v39 = vld [vmem:[%s19423_s17 + $0x2b0] sm:$0xff] }
  0x57   : > { %16373 = vmatprep.mubr.msk.f32.mxu0 %vm535_vm1, %v424_v40  ;;  %2199 = vst.msk [vmem:[#allocation2 + $0x3c0] sm:$0xff] %vm2077_vm4, %v24272_v59  ;;  %2201 = vst.msk [vmem:[#allocation2 + $0x3d0] sm:$0xff] %vm2077_vm4, %v24272_v59  ;;  %v481_v40 = vld [vmem:[%s19423_s17 + $0x2b8] sm:$0xff] }
  0x58   : > { %2200 = vst.msk [vmem:[#allocation2 + $0x3c8] sm:$0x3] %vm2079_vm5, %v24272_v59  ;;  %2202 = vst.msk [vmem:[#allocation2 + $0x3d8] sm:$0x3] %vm2079_vm5, %v24272_v59 }
  0x59   : > { %2203 = vst.msk [vmem:[#allocation2 + $0x3e0] sm:$0xff] %vm2077_vm4, %v24272_v59  ;;  %2205 = vst.msk [vmem:[#allocation2 + $0x3f0] sm:$0xff] %vm2077_vm4, %v24272_v59 }
  0x5a   : > { %16374 = vmatmul.mubr.msk.f32.gmra.mrb[30].mxu0 %vm535_vm1, %v425_v41  ;;  %2204 = vst.msk [vmem:[#allocation2 + $0x3e8] sm:$0x3] %vm2079_vm5, %v24272_v59  ;;  %2206 = vst.msk [vmem:[#allocation2 + $0x3f8] sm:$0x3] %vm2079_vm5, %v24272_v59  ;;  %v482_v41 = vld [vmem:[%s19423_s17 + $0x2c0] sm:$0xff] }
  0x5b   : > { %16376 = vmatprep.mubr.msk.f32.mxu0 %vm535_vm1, %v426_v42  ;;  %2207 = vst.msk [vmem:[#allocation2 + $0x400] sm:$0xff] %vm2077_vm4, %v24272_v59  ;;  %2209 = vst.msk [vmem:[#allocation2 + $0x410] sm:$0xff] %vm2077_vm4, %v24272_v59  ;;  %v483_v42 = vld [vmem:[%s19423_s17 + $0x2c8] sm:$0xff] }
  0x5c   : > { %2208 = vst.msk [vmem:[#allocation2 + $0x408] sm:$0x3] %vm2079_vm5, %v24272_v59  ;;  %2210 = vst.msk [vmem:[#allocation2 + $0x418] sm:$0x3] %vm2079_vm5, %v24272_v59 }
  0x5d   : > { %2211 = vst.msk [vmem:[#allocation2 + $0x420] sm:$0xff] %vm2077_vm4, %v24272_v59  ;;  %2213 = vst.msk [vmem:[#allocation2 + $0x430] sm:$0xff] %vm2077_vm4, %v24272_v59 }
  0x5e   : > { %16377 = vmatmul.mubr.msk.f32.gmra.mrb[32].mxu0 %vm535_vm1, %v427_v43  ;;  %2212 = vst.msk [vmem:[#allocation2 + $0x428] sm:$0x3] %vm2079_vm5, %v24272_v59  ;;  %2214 = vst.msk [vmem:[#allocation2 + $0x438] sm:$0x3] %vm2079_vm5, %v24272_v59  ;;  %v484_v43 = vld [vmem:[%s19423_s17 + $0x2d0] sm:$0xff] }
  0x5f   : > { %16379 = vmatprep.mubr.msk.f32.mxu0 %vm535_vm1, %v428_v44  ;;  %v485_v44 = vld [vmem:[%s19423_s17 + $0x2d8] sm:$0xff] }
  0x62   : > { %16380 = vmatmul.mubr.msk.f32.gmra.mrb[34].mxu0 %vm535_vm1, %v429_v45  ;;  %v486_v45 = vld [vmem:[%s19423_s17 + $0x2e0] sm:$0xff] }
  0x63   : > { %16382 = vmatprep.mubr.msk.f32.mxu0 %vm535_vm1, %v430_v46  ;;  %v487_v46 = vld [vmem:[%s19423_s17 + $0x2e8] sm:$0xff] }
  0x66   : > { %16383 = vmatmul.mubr.msk.f32.gmra.mrb[36].mxu0 %vm535_vm1, %v431_v47  ;;  %v488_v47 = vld [vmem:[%s19423_s17 + $0x2f0] sm:$0xff] }
  0x67   : > { %16385 = vmatprep.mubr.msk.f32.mxu0 %vm535_vm1, %v432_v48  ;;  %v489_v48 = vld [vmem:[%s19423_s17 + $0x2f8] sm:$0xff] }
  0x6a   : > { %16386 = vmatmul.mubr.msk.f32.gmra.mrb[38].mxu0 %vm535_vm1, %v433_v49  ;;  %v490_v49 = vld [vmem:[%s19423_s17 + $0x300] sm:$0xff] }
  0x6b   : > { %16388 = vmatprep.mubr.msk.f32.mxu0 %vm535_vm1, %v434_v50  ;;  %v491_v50 = vld [vmem:[%s19423_s17 + $0x308] sm:$0xff] }
  0x6e   : > { %16389 = vmatmul.mubr.msk.f32.gmra.mrb[40].mxu0 %vm535_vm1, %v435_v51  ;;  %v492_v51 = vld [vmem:[%s19423_s17 + $0x310] sm:$0xff] }
  0x6f   : > { %16391 = vmatprep.mubr.msk.f32.mxu0 %vm535_vm1, %v436_v52  ;;  %v493_v52 = vld [vmem:[%s19423_s17 + $0x318] sm:$0xff] }
  0x72   : > { %16392 = vmatmul.mubr.msk.f32.gmra.mrb[42].mxu0 %vm535_vm1, %v437_v53  ;;  %v494_v53 = vld [vmem:[%s19423_s17 + $0x320] sm:$0xff] }
  0x73   : > { %16394 = vmatprep.mubr.msk.f32.mxu0 %vm535_vm1, %v438_v54  ;;  %v495_v54 = vld [vmem:[%s19423_s17 + $0x328] sm:$0xff] }
  0x76   : > { %16395 = vmatmul.mubr.msk.f32.gmra.mrb[44].mxu0 %vm535_vm1, %v439_v55  ;;  %v496_v55 = vld [vmem:[%s19423_s17 + $0x330] sm:$0xff] }
  0x77   : > { %16397 = vmatprep.mubr.msk.f32.mxu0 %vm535_vm1, %v440_v56  ;;  %v497_v56 = vld [vmem:[%s19423_s17 + $0x338] sm:$0xff] }
  0x7a   : > { %16398 = vmatmul.mubr.msk.f32.gmra.mrb[46].mxu0 %vm535_vm1, %v19520_v57  ;;  %v498_v57 = vld [vmem:[%s19423_s17 + $0x340] sm:$0xff] }
  0x7b   : > { %16400 = vmatprep.mubr.msk.f32.mxu0 %vm535_vm1, %v19523_v58  ;;  %v499_v58 = vld [vmem:[%s19423_s17 + $0x348] sm:$0xff] }
  0x7e   : > { %16401 = vmatmul.mubr.msk.f32.gmra.mrb[48].mxu0 %vm535_vm1, %v443_v60  ;;  %v500_v60 = vld [vmem:[%s19423_s17 + $0x350] sm:$0xff] }
  0x7f   : > { %16403 = vmatprep.mubr.msk.f32.mxu0 %vm535_vm1, %v444_v61  ;;  %v19931_v61 = vld [vmem:[%s24262_s2] ss:$0 sm:$0xff] }
  0x82   : > { %16404 = vmatmul.mubr.msk.f32.gmra.mrb[50].mxu0 %vm535_vm1, %v445_v62  ;;  %v501_v62 = vld [vmem:[%s19423_s17 + $0x358] sm:$0xff] }
  0x83   : > { %16406 = vmatprep.mubr.msk.f32.mxu0 %vm535_vm1, %v446_v63  ;;  %v502_v63 = vld [vmem:[%s19423_s17 + $0x360] sm:$0xff] }
  0x86   : > { %16407 = vmatmul.mubr.msk.f32.gmra.mrb[52].mxu0 %vm535_vm1, %v447_v0 }
  0x87   : > { %16409 = vmatprep.mubr.msk.f32.mxu0 %vm535_vm1, %v448_v1 }
  0x8a   : > { %16410 = vmatmul.mubr.msk.f32.gmra.mrb[54].mxu0 %vm535_vm1, %v449_v2 }
  0x8b   : > { %16412 = vmatprep.mubr.msk.f32.mxu0 %vm535_vm1, %v450_v3 }
  0x8e   : > { %16413 = vmatmul.mubr.msk.f32.gmra.mrb[56].mxu0 %vm535_vm1, %v451_v4  ;;  %v503_v4 = vld [vmem:[%s19423_s17 + $0x368] sm:$0xff] }
  0x8f   : > { %16415 = vmatprep.mubr.msk.f32.mxu0 %vm535_vm1, %v452_v5 }
  0x92   : > { %16416 = vmatmul.mubr.msk.f32.gmra.mrb[58].mxu0 %vm535_vm1, %v453_v6  ;;  %v504_v6 = vld [vmem:[%s19423_s17 + $0x370] sm:$0xff] }
  0x93   : > { %16418 = vmatprep.mubr.msk.f32.mxu0 %vm535_vm1, %v454_v7 }
  0x96   : > { %16419 = vmatmul.mubr.msk.f32.gmra.mrb[60].mxu0 %vm535_vm1, %v455_v8 }
  0x97   : > { %16421 = vmatprep.mubr.msk.f32.mxu0 %vm535_vm1, %v456_v11 }
  0x9a   : > { %16422 = vmatmul.mubr.msk.f32.gmra.mrb[62].mxu0 %vm535_vm1, %v457_v13 }
  0x9b   : > { %16424 = vmatprep.mubr.msk.f32.mxu0 %vm535_vm1, %v458_v16 }
  0x9e   : > { %16425 = vmatmul.mubr.msk.f32.gmra.mrb[64].mxu0 %vm535_vm1, %v459_v18 }
  0x9f   : > { %16427 = vmatprep.mubr.msk.f32.mxu0 %vm535_vm1, %v460_v19 }
  0xa2   : > { %16428 = vmatmul.mubr.msk.f32.gmra.mrb[66].mxu0 %vm535_vm1, %v461_v20 }
  0xa3   : > { %16430 = vmatprep.mubr.msk.f32.mxu0 %vm535_vm1, %v462_v21 }
  0xa6   : > { %16431 = vmatmul.mubr.msk.f32.gmra.mrb[68].mxu0 %vm535_vm1, %v463_v22 }
  0xa7   : > { %16433 = vmatprep.mubr.msk.f32.mxu0 %vm535_vm1, %v464_v23 }
  0xaa   : > { %16434 = vmatmul.mubr.msk.f32.gmra.mrb[70].mxu0 %vm535_vm1, %v465_v24 }
  0xab   : > { %16436 = vmatprep.mubr.msk.f32.mxu0 %vm535_vm1, %v466_v25  ;;  %v507_v25 = vld [vmem:[%s19423_s17 + $0x388] sm:$0xff] }
  0xae   : > { %16437 = vmatmul.mubr.msk.f32.gmra.mrb[72].mxu0 %vm535_vm1, %v467_v26 }
  0xaf   : > { %16439 = vmatprep.mubr.msk.f32.mxu0 %vm535_vm1, %v468_v27 }
  0xb2   : > { %16440 = vmatmul.mubr.msk.f32.gmra.mrb[74].mxu0 %vm535_vm1, %v469_v28  ;;  %v508_v28 = vld [vmem:[%s19423_s17 + $0x390] sm:$0xff] }
  0xb3   : > { %16442 = vmatprep.mubr.msk.f32.mxu0 %vm535_vm1, %v470_v29 }
  0xb6   : > { %16443 = vmatmul.mubr.msk.f32.gmra.mrb[76].mxu0 %vm535_vm1, %v471_v30 }
  0xb7   : > { %16445 = vmatprep.mubr.msk.f32.mxu0 %vm535_vm1, %v472_v31 }
  0xba   : > { %16446 = vmatmul.mubr.msk.f32.gmra.mrb[78].mxu0 %vm535_vm1, %v473_v32 }
  0xbb   : > { %16448 = vmatprep.mubr.msk.f32.mxu0 %vm535_vm1, %v474_v33 }
  0xbe   : > { %16449 = vmatmul.mubr.msk.f32.gmra.mrb[80].mxu0 %vm535_vm1, %v475_v34 }
  0xbf   : > { %16451 = vmatprep.mubr.msk.f32.mxu0 %vm535_vm1, %v476_v35 }
  0xc2   : > { %16452 = vmatmul.mubr.msk.f32.gmra.mrb[82].mxu0 %vm535_vm1, %v477_v36  ;;  %v509_v36 = vld [vmem:[%s19423_s17 + $0x398] sm:$0xff] }
  0xc3   : > { %16454 = vmatprep.mubr.msk.f32.mxu0 %vm535_vm1, %v478_v37 }
  0xc6   : > { %16455 = vmatmul.mubr.msk.f32.gmra.mrb[84].mxu0 %vm535_vm1, %v479_v38 }
  0xc7   : > { %16457 = vmatprep.mubr.msk.f32.mxu0 %vm535_vm1, %v480_v39  ;;  %v510_v39 = vld [vmem:[%s19423_s17 + $0x3a0] sm:$0xff] }
  0xca   : > { %16458 = vmatmul.mubr.msk.f32.gmra.mrb[86].mxu0 %vm535_vm1, %v481_v40 }
  0xcb   : > { %16460 = vmatprep.mubr.msk.f32.mxu0 %vm535_vm1, %v482_v41 }
  0xce   : > { %16461 = vmatmul.mubr.msk.f32.gmra.mrb[88].mxu0 %vm535_vm1, %v483_v42 }
  0xcf   : > { %16463 = vmatprep.mubr.msk.f32.mxu0 %vm535_vm1, %v484_v43 }
  0xd2   : > { %16464 = vmatmul.mubr.msk.f32.gmra.mrb[90].mxu0 %vm535_vm1, %v485_v44 }
  0xd3   : > { %16466 = vmatprep.mubr.msk.f32.mxu0 %vm535_vm1, %v486_v45 }
  0xd6   : > { %16467 = vmatmul.mubr.msk.f32.gmra.mrb[92].mxu0 %vm535_vm1, %v487_v46 }
  0xd7   : > { %16469 = vmatprep.mubr.msk.f32.mxu0 %vm535_vm1, %v488_v47  ;;  %v511_v47 = vld [vmem:[%s19423_s17 + $0x3a8] sm:$0xff] }
  0xda   : > { %16470 = vmatmul.mubr.msk.f32.gmra.mrb[94].mxu0 %vm535_vm1, %v489_v48 }
  0xdb   : > { %16472 = vmatprep.mubr.msk.f32.mxu0 %vm535_vm1, %v490_v49 }
  0xde   : > { %16473 = vmatmul.mubr.msk.f32.gmra.mrb[96].mxu0 %vm535_vm1, %v491_v50  ;;  %v512_v50 = vld [vmem:[%s19423_s17 + $0x3b0] sm:$0xff] }
  0xdf   : > { %16475 = vmatprep.mubr.msk.f32.mxu0 %vm535_vm1, %v492_v51 }
  0xe2   : > { %16476 = vmatmul.mubr.msk.f32.gmra.mrb[98].mxu0 %vm535_vm1, %v493_v52 }
  0xe3   : > { %16478 = vmatprep.mubr.msk.f32.mxu0 %vm535_vm1, %v494_v53 }
  0xe6   : > { %16479 = vmatmul.mubr.msk.f32.gmra.mrb[100].mxu0 %vm535_vm1, %v495_v54 }
  0xe7   : > { %16481 = vmatprep.mubr.msk.f32.mxu0 %vm535_vm1, %v496_v55 }
  0xea   : > { %16482 = vmatmul.mubr.msk.f32.gmra.mrb[102].mxu0 %vm535_vm1, %v497_v56 }
  0xeb   : > { %16484 = vmatprep.mubr.msk.f32.mxu0 %vm535_vm1, %v498_v57 }
  0xee   : > { %16485 = vmatmul.mubr.msk.f32.gmra.mrb[104].mxu0 %vm535_vm1, %v499_v58  ;;  %v513_v58 = vld [vmem:[%s19423_s17 + $0x3b8] sm:$0xff] }
  0xef   : > { %16487 = vmatprep.mubr.msk.f32.mxu0 %vm535_vm1, %v500_v60 }
  0xf1   : > { %v16330_v0 = vpop.f32.mrb[0].mxu0 }
  0xf2   : > { %v996_v1 = vadd.f32 %v16330_v0, %v19931_v61  ;;  %v990_v2 = vpop.f32.mrb[1].mxu0  ;;  %16488 = vmatmul.mubr.msk.f32.gmra.mrb[106].mxu0 %vm535_vm1, %v501_v62 }
  0xf3   : > { %v991_v3 = vadd.f32 %v19931_v61, %v990_v2  ;;  %16490 = vmatprep.mubr.msk.f32.mxu0 %vm535_vm1, %v502_v63  ;;  %v514_v63 = vld [vmem:[%s19423_s17 + $0x3c0] sm:$0xff] }
  0xf4   : > { %vm1630_vm6 = vcmp.ge.f32.partialorder %v996_v1, 0.0  ;;  %v1758_v5 = vmul.f32 0.2, %v996_v1 }
  0xf5   : > { %vm1629_vm7 = vcmp.ge.f32.partialorder %v991_v3, 0.0  ;;  %v1757_v7 = vmul.f32 0.2, %v991_v3  ;;  %v16333_v8 = vpop.f32.mrb[2].mxu0 }
  0xf6   : > { %v1886_v9 = vsel %vm1630_vm6, %v996_v1, %v1758_v5  ;;  %v1006_v10 = vadd.f32 %v16333_v8, %v19931_v61  ;;  %v1000_v11 = vpop.f32.mrb[3].mxu0  ;;  %16491 = vmatmul.mubr.msk.f32.gmra.mrb[108].mxu0 %vm535_vm1, %v503_v4 }
  0xf7   : > { %v1885_v12 = vsel %vm1629_vm7, %v991_v3, %v1757_v7  ;;  %v1001_v13 = vadd.f32 %v19931_v61, %v1000_v11  ;;  %16493 = vmatprep.mubr.msk.f32.mxu0 %vm535_vm1, %v504_v6  ;;  %v515_v7 = vld [vmem:[%s19423_s17 + $0x3c8] sm:$0xff] }
  0xf8   : > { %v2013_v15 = vmax.f32 %v1885_v12, %v1886_v9  ;;  %vm1632_vm8 = vcmp.ge.f32.partialorder %v1006_v10, 0.0  ;;  %v1760_v16 = vmul.f32 0.2, %v1006_v10 }
  0xf9   : > { %vm1631_vm9 = vcmp.ge.f32.partialorder %v1001_v13, 0.0  ;;  %v1759_v18 = vmul.f32 0.2, %v1001_v13  ;;  %v16336_v19 = vpop.f32.mrb[4].mxu0 }
  0xfa   : > { %2216 = vst.msk [vmem:[#allocation2 + $0x11] sm:$0xff] %vm2077_vm4, %v2013_v15  ;;  %v1888_v20 = vsel %vm1632_vm8, %v1006_v10, %v1760_v16  ;;  %v1016_v21 = vadd.f32 %v16336_v19, %v19931_v61  ;;  %v1010_v22 = vpop.f32.mrb[5].mxu0  ;;  %16494 = vmatmul.mubr.msk.f32.gmra.mrb[110].mxu0 %vm535_vm1, %v505_v14  ;;  %v516_v10 = vld [vmem:[%s19423_s17 + $0x3d0] sm:$0xff] }
  0xfb   : > { %v1887_v23 = vsel %vm1631_vm9, %v1001_v13, %v1759_v18  ;;  %v1011_v24 = vadd.f32 %v19931_v61, %v1010_v22  ;;  %16496 = vmatprep.mubr.msk.f32.mxu0 %vm535_vm1, %v506_v17  ;;  %v517_v18 = vld [vmem:[%s19423_s17 + $0x3d8] sm:$0xff] }
  0xfc   : > { %v2014_v26 = vmax.f32 %v1887_v23, %v1888_v20  ;;  %vm1634_vm10 = vcmp.ge.f32.partialorder %v1016_v21, 0.0  ;;  %v1762_v27 = vmul.f32 0.2, %v1016_v21 }
  0xfd   : > { %vm1633_vm11 = vcmp.ge.f32.partialorder %v1011_v24, 0.0  ;;  %v1761_v29 = vmul.f32 0.2, %v1011_v24  ;;  %v16339_v30 = vpop.f32.mrb[6].mxu0 }
  0xfe   : > { %2217 = vst.msk [vmem:[#allocation2 + $0x21] sm:$0xff] %vm2077_vm4, %v2014_v26  ;;  %v1890_v31 = vsel %vm1634_vm10, %v1016_v21, %v1762_v27  ;;  %v1026_v32 = vadd.f32 %v16339_v30, %v19931_v61  ;;  %v1020_v33 = vpop.f32.mrb[7].mxu0  ;;  %16497 = vmatmul.mubr.msk.f32.gmra.mrb[112].mxu0 %vm535_vm1, %v507_v25  ;;  %v518_v21 = vld [vmem:[%s19423_s17 + $0x3e0] sm:$0xff] }
  0xff   : > { %v1889_v34 = vsel %vm1633_vm11, %v1011_v24, %v1761_v29  ;;  %v1021_v35 = vadd.f32 %v19931_v61, %v1020_v33  ;;  %16499 = vmatprep.mubr.msk.f32.mxu0 %vm535_vm1, %v508_v28  ;;  %v519_v29 = vld [vmem:[%s19423_s17 + $0x3e8] sm:$0xff] }
 0x100   : > { %v2015_v37 = vmax.f32 %v1889_v34, %v1890_v31  ;;  %vm1636_vm12 = vcmp.ge.f32.partialorder %v1026_v32, 0.0  ;;  %v1764_v38 = vmul.f32 0.2, %v1026_v32 }
 0x101   : > { %vm1635_vm13 = vcmp.ge.f32.partialorder %v1021_v35, 0.0  ;;  %v1763_v40 = vmul.f32 0.2, %v1021_v35  ;;  %v16342_v41 = vpop.f32.mrb[8].mxu0 }
 0x102   : > { %2218 = vst.msk [vmem:[#allocation2 + $0x31] sm:$0xff] %vm2077_vm4, %v2015_v37  ;;  %v1892_v42 = vsel %vm1636_vm12, %v1026_v32, %v1764_v38  ;;  %v1036_v43 = vadd.f32 %v16342_v41, %v19931_v61  ;;  %v1030_v44 = vpop.f32.mrb[9].mxu0  ;;  %16500 = vmatmul.mubr.msk.f32.gmra.mrb[114].mxu0 %vm535_vm1, %v509_v36  ;;  %v520_v32 = vld [vmem:[%s19423_s17 + $0x3f0] sm:$0xff] }
 0x103   : > { %v1891_v45 = vsel %vm1635_vm13, %v1021_v35, %v1763_v40  ;;  %v1031_v46 = vadd.f32 %v19931_v61, %v1030_v44  ;;  %16502 = vmatprep.mubr.msk.f32.mxu0 %vm535_vm1, %v510_v39  ;;  %v521_v40 = vld [vmem:[%s19423_s17 + $0x3f8] sm:$0xff] }
 0x104   : > { %v2016_v48 = vmax.f32 %v1891_v45, %v1892_v42  ;;  %vm1638_vm14 = vcmp.ge.f32.partialorder %v1036_v43, 0.0  ;;  %v1766_v49 = vmul.f32 0.2, %v1036_v43 }
 0x105   : > { %vm1637_vm15 = vcmp.ge.f32.partialorder %v1031_v46, 0.0  ;;  %v1765_v51 = vmul.f32 0.2, %v1031_v46  ;;  %v16345_v52 = vpop.f32.mrb[10].mxu0 }
 0x106   : > { %2219 = vst.msk [vmem:[#allocation2 + $0x41] sm:$0xff] %vm2077_vm4, %v2016_v48  ;;  %v1894_v53 = vsel %vm1638_vm14, %v1036_v43, %v1766_v49  ;;  %v1046_v54 = vadd.f32 %v16345_v52, %v19931_v61  ;;  %v1040_v55 = vpop.f32.mrb[11].mxu0  ;;  %16503 = vmatmul.mubr.msk.f32.gmra.mrb[116].mxu0 %vm535_vm1, %v511_v47  ;;  %v2348_v43 = vld [vmem:[#allocation2 + $0x1] sm:$0xff] }
 0x107   : > { %v1893_v56 = vsel %vm1637_vm15, %v1031_v46, %v1765_v51  ;;  %v1041_v57 = vadd.f32 %v19931_v61, %v1040_v55  ;;  %16505 = vmatprep.mubr.msk.f32.mxu0 %vm535_vm1, %v512_v50  ;;  %v2349_v55 = vld [vmem:[#allocation2 + $0x11] sm:$0xff] }
 0x108   : > { %v2017_v60 = vmax.f32 %v1893_v56, %v1894_v53  ;;  %vm1640_vm0 = vcmp.ge.f32.partialorder %v1046_v54, 0.0  ;;  %v1768_v62 = vmul.f32 0.2, %v1046_v54 }
 0x109   : > { %vm1639_vm2 = vcmp.ge.f32.partialorder %v1041_v57, 0.0  ;;  %v1767_v0 = vmul.f32 0.2, %v1041_v57  ;;  %v16348_v1 = vpop.f32.mrb[12].mxu0 }
 0x10a   : > { %2220 = vst.msk [vmem:[#allocation2 + $0x51] sm:$0xff] %vm2077_vm4, %v2017_v60  ;;  %v1896_v2 = vsel %vm1640_vm0, %v1046_v54, %v1768_v62  ;;  %v1056_v3 = vadd.f32 %v16348_v1, %v19931_v61  ;;  %v1050_v4 = vpop.f32.mrb[13].mxu0  ;;  %16506 = vmatmul.mubr.msk.f32.gmra.mrb[118].mxu0 %vm535_vm1, %v513_v58  ;;  %v2350_v60 = vld [vmem:[#allocation2 + $0x21] sm:$0xff] }
 0x10b   : > { %v1895_v5 = vsel %vm1639_vm2, %v1041_v57, %v1767_v0  ;;  %v1051_v6 = vadd.f32 %v19931_v61, %v1050_v4  ;;  %16508 = vmatprep.mubr.msk.f32.mxu0 %vm535_vm1, %v514_v63  ;;  %v2351_v4 = vld [vmem:[#allocation2 + $0x31] sm:$0xff] }
 0x10c   : > { %v2018_v8 = vmax.f32 %v1895_v5, %v1896_v2  ;;  %vm1642_vm3 = vcmp.ge.f32.partialorder %v1056_v3, 0.0  ;;  %v1770_v9 = vmul.f32 0.2, %v1056_v3 }
 0x10d   : > { %vm1641_vm5 = vcmp.ge.f32.partialorder %v1051_v6, 0.0  ;;  %v1769_v11 = vmul.f32 0.2, %v1051_v6  ;;  %v16351_v12 = vpop.f32.mrb[14].mxu0 }
 0x10e   : > { %2221 = vst.msk [vmem:[#allocation2 + $0x61] sm:$0xff] %vm2077_vm4, %v2018_v8  ;;  %v1898_v13 = vsel %vm1642_vm3, %v1056_v3, %v1770_v9  ;;  %v1066_v14 = vadd.f32 %v16351_v12, %v19931_v61  ;;  %v1060_v15 = vpop.f32.mrb[15].mxu0  ;;  %16509 = vmatmul.mubr.msk.f32.gmra.mrb[120].mxu0 %vm535_vm1, %v515_v7  ;;  %v2352_v8 = vld [vmem:[#allocation2 + $0x41] sm:$0xff] }
 0x10f   : > { %v1897_v16 = vsel %vm1641_vm5, %v1051_v6, %v1769_v11  ;;  %v1061_v17 = vadd.f32 %v19931_v61, %v1060_v15  ;;  %16511 = vmatprep.mubr.msk.f32.mxu0 %vm535_vm1, %v516_v10 }
 0x110   : > { %v2019_v19 = vmax.f32 %v1897_v16, %v1898_v13  ;;  %vm1644_vm6 = vcmp.ge.f32.partialorder %v1066_v14, 0.0  ;;  %v1772_v20 = vmul.f32 0.2, %v1066_v14 }
 0x111   : > { %vm1643_vm7 = vcmp.ge.f32.partialorder %v1061_v17, 0.0  ;;  %v1771_v22 = vmul.f32 0.2, %v1061_v17  ;;  %v16354_v23 = vpop.f32.mrb[16].mxu0  ;;  %v2353_v15 = vld [vmem:[#allocation2 + $0x51] sm:$0xff] }
 0x112   : > { %2222 = vst.msk [vmem:[#allocation2 + $0x71] sm:$0xff] %vm2077_vm4, %v2019_v19  ;;  %v1900_v24 = vsel %vm1644_vm6, %v1066_v14, %v1772_v20  ;;  %v1076_v25 = vadd.f32 %v16354_v23, %v19931_v61  ;;  %v1070_v26 = vpop.f32.mrb[17].mxu0  ;;  %16512 = vmatmul.mubr.msk.f32.gmra.mrb[122].mxu0 %vm535_vm1, %v517_v18 }
 0x113   : > { %v1899_v27 = vsel %vm1643_vm7, %v1061_v17, %v1771_v22  ;;  %v1071_v28 = vadd.f32 %v19931_v61, %v1070_v26  ;;  %16514 = vmatprep.mubr.msk.f32.mxu0 %vm535_vm1, %v518_v21 }
 0x114   : > { %v2020_v30 = vmax.f32 %v1899_v27, %v1900_v24  ;;  %vm1646_vm8 = vcmp.ge.f32.partialorder %v1076_v25, 0.0  ;;  %v1774_v31 = vmul.f32 0.2, %v1076_v25 }
 0x115   : > { %vm1645_vm9 = vcmp.ge.f32.partialorder %v1071_v28, 0.0  ;;  %v1773_v33 = vmul.f32 0.2, %v1071_v28  ;;  %v16357_v34 = vpop.f32.mrb[18].mxu0  ;;  %v2354_v19 = vld [vmem:[#allocation2 + $0x61] sm:$0xff] }
 0x116   : > { %2223 = vst.msk [vmem:[#allocation2 + $0x81] sm:$0xff] %vm2077_vm4, %v2020_v30  ;;  %v1902_v35 = vsel %vm1646_vm8, %v1076_v25, %v1774_v31  ;;  %v1086_v36 = vadd.f32 %v16357_v34, %v19931_v61  ;;  %v1080_v37 = vpop.f32.mrb[19].mxu0  ;;  %16515 = vmatmul.mubr.msk.f32.gmra.mrb[124].mxu0 %vm535_vm1, %v519_v29 }
 0x117   : > { %v1901_v38 = vsel %vm1645_vm9, %v1071_v28, %v1773_v33  ;;  %v1081_v39 = vadd.f32 %v19931_v61, %v1080_v37  ;;  %16517 = vmatprep.mubr.msk.f32.mxu0 %vm535_vm1, %v520_v32 }
 0x118   : > { %v2021_v41 = vmax.f32 %v1901_v38, %v1902_v35  ;;  %vm1648_vm10 = vcmp.ge.f32.partialorder %v1086_v36, 0.0  ;;  %v1776_v42 = vmul.f32 0.2, %v1086_v36 }
 0x119   : > { %vm1647_vm11 = vcmp.ge.f32.partialorder %v1081_v39, 0.0  ;;  %v1775_v44 = vmul.f32 0.2, %v1081_v39  ;;  %v16360_v45 = vpop.f32.mrb[20].mxu0  ;;  %v2355_v26 = vld [vmem:[#allocation2 + $0x71] sm:$0xff] }
 0x11a   : > { %2224 = vst.msk [vmem:[#allocation2 + $0x91] sm:$0xff] %vm2077_vm4, %v2021_v41  ;;  %v1904_v46 = vsel %vm1648_vm10, %v1086_v36, %v1776_v42  ;;  %v1096_v47 = vadd.f32 %v16360_v45, %v19931_v61  ;;  %v1090_v48 = vpop.f32.mrb[21].mxu0  ;;  %16518 = vmatmul.mubr.msk.f32.gmra.mrb[126].mxu0 %vm535_vm1, %v521_v40 }
 0x11b   : > { %v1903_v49 = vsel %vm1647_vm11, %v1081_v39, %v1775_v44  ;;  %v1091_v50 = vadd.f32 %v19931_v61, %v1090_v48  ;;  %16528 = vmatprep.mubr.msk.f32.mxu0 %vm2077_vm4, %v2348_v43 }
 0x11c   : > { %v2022_v51 = vmax.f32 %v1903_v49, %v1904_v46  ;;  %vm1650_vm12 = vcmp.ge.f32.partialorder %v1096_v47, 0.0  ;;  %v1778_v52 = vmul.f32 0.2, %v1096_v47 }
 0x11d   : > { %vm1649_vm13 = vcmp.ge.f32.partialorder %v1091_v50, 0.0  ;;  %v1777_v53 = vmul.f32 0.2, %v1091_v50  ;;  %v16363_v54 = vpop.f32.mrb[22].mxu0  ;;  %v2356_v30 = vld [vmem:[#allocation2 + $0x81] sm:$0xff] }
 0x11e   : > { %2225 = vst.msk [vmem:[#allocation2 + $0xa1] sm:$0xff] %vm2077_vm4, %v2022_v51  ;;  %v1906_v56 = vsel %vm1650_vm12, %v1096_v47, %v1778_v52  ;;  %v1106_v57 = vadd.f32 %v16363_v54, %v19931_v61  ;;  %v1100_v58 = vpop.f32.mrb[23].mxu0  ;;  %16529 = vmatmul.mubr.msk.f32.vlgmr.msra.gmra.mrb[128].mxu0 %vm2077_vm4, %v2349_v55 }
 0x11f   : > { %v1905_v62 = vsel %vm1649_vm13, %v1091_v50, %v1777_v53  ;;  %v1101_v63 = vadd.f32 %v19931_v61, %v1100_v58  ;;  %16531 = vmatprep.mubr.msk.f32.mxu0 %vm2077_vm4, %v2350_v60 }
 0x120   : > { %v2023_v0 = vmax.f32 %v1905_v62, %v1906_v56  ;;  %vm1652_vm1 = vcmp.ge.f32.partialorder %v1106_v57, 0.0  ;;  %v1780_v1 = vmul.f32 0.2, %v1106_v57 }
 0x121   : > { %vm1651_vm14 = vcmp.ge.f32.partialorder %v1101_v63, 0.0  ;;  %v1779_v2 = vmul.f32 0.2, %v1101_v63  ;;  %v16366_v3 = vpop.f32.mrb[24].mxu0  ;;  %v2357_v37 = vld [vmem:[#allocation2 + $0x91] sm:$0xff] }
 0x122   : > { %2226 = vst.msk [vmem:[#allocation2 + $0xb1] sm:$0xff] %vm2077_vm4, %v2023_v0  ;;  %v1908_v5 = vsel %vm1652_vm1, %v1106_v57, %v1780_v1  ;;  %v1116_v6 = vadd.f32 %v16366_v3, %v19931_v61  ;;  %v1110_v7 = vpop.f32.mrb[25].mxu0  ;;  %16532 = vmatmul.mubr.msk.f32.gmra.mrb[130].mxu0 %vm2077_vm4, %v2351_v4 }
 0x123   : > { %v1907_v9 = vsel %vm1651_vm14, %v1101_v63, %v1779_v2  ;;  %v1111_v10 = vadd.f32 %v19931_v61, %v1110_v7  ;;  %16534 = vmatprep.mubr.msk.f32.mxu0 %vm2077_vm4, %v2352_v8 }
 0x124   : > { %v2024_v11 = vmax.f32 %v1907_v9, %v1908_v5  ;;  %vm1654_vm15 = vcmp.ge.f32.partialorder %v1116_v6, 0.0  ;;  %v1782_v12 = vmul.f32 0.2, %v1116_v6 }
 0x125   : > { %vm1653_vm0 = vcmp.ge.f32.partialorder %v1111_v10, 0.0  ;;  %v1781_v13 = vmul.f32 0.2, %v1111_v10  ;;  %v16369_v14 = vpop.f32.mrb[26].mxu0  ;;  %v2358_v41 = vld [vmem:[#allocation2 + $0xa1] sm:$0xff] }
 0x126   : > { %2227 = vst.msk [vmem:[#allocation2 + $0xc1] sm:$0xff] %vm2077_vm4, %v2024_v11  ;;  %v1910_v16 = vsel %vm1654_vm15, %v1116_v6, %v1782_v12  ;;  %v1126_v17 = vadd.f32 %v16369_v14, %v19931_v61  ;;  %v1120_v18 = vpop.f32.mrb[27].mxu0  ;;  %16535 = vmatmul.mubr.msk.f32.gmra.mrb[132].mxu0 %vm2077_vm4, %v2353_v15 }
 0x127   : > { %v1909_v20 = vsel %vm1653_vm0, %v1111_v10, %v1781_v13  ;;  %v1121_v21 = vadd.f32 %v19931_v61, %v1120_v18  ;;  %16537 = vmatprep.mubr.msk.f32.mxu0 %vm2077_vm4, %v2354_v19 }
 0x128   : > { %v2025_v22 = vmax.f32 %v1909_v20, %v1910_v16  ;;  %vm1656_vm2 = vcmp.ge.f32.partialorder %v1126_v17, 0.0  ;;  %v1784_v23 = vmul.f32 0.2, %v1126_v17 }
 0x129   : > { %vm1655_vm3 = vcmp.ge.f32.partialorder %v1121_v21, 0.0  ;;  %v1783_v24 = vmul.f32 0.2, %v1121_v21  ;;  %v16372_v25 = vpop.f32.mrb[28].mxu0  ;;  %v2359_v48 = vld [vmem:[#allocation2 + $0xb1] sm:$0xff] }
 0x12a   : > { %2228 = vst.msk [vmem:[#allocation2 + $0xd1] sm:$0xff] %vm2077_vm4, %v2025_v22  ;;  %v1912_v27 = vsel %vm1656_vm2, %v1126_v17, %v1784_v23  ;;  %v1136_v28 = vadd.f32 %v16372_v25, %v19931_v61  ;;  %v1130_v29 = vpop.f32.mrb[29].mxu0  ;;  %16538 = vmatmul.mubr.msk.f32.gmra.mrb[134].mxu0 %vm2077_vm4, %v2355_v26  ;;  %v2344_v22 = vld [vmem:[%s24263_s3] sm:$0xff]  ;;  %v2345_v23 = vld [vmem:[%s24263_s3 + $0x8] sm:$0xff] }
 0x12b   : > { %v1911_v31 = vsel %vm1655_vm3, %v1121_v21, %v1783_v24  ;;  %v1131_v32 = vadd.f32 %v19931_v61, %v1130_v29  ;;  %16540 = vmatprep.mubr.msk.f32.mxu0 %vm2077_vm4, %v2356_v30  ;;  %v20057_v26 = vpack.c.bf16 %v2345_v23, %v2344_v22 }
 0x12c   : > { %v2026_v33 = vmax.f32 %v1911_v31, %v1912_v27  ;;  %vm1658_vm5 = vcmp.ge.f32.partialorder %v1136_v28, 0.0  ;;  %v1786_v34 = vmul.f32 0.2, %v1136_v28 }
 0x12d   : > { %vm1657_vm6 = vcmp.ge.f32.partialorder %v1131_v32, 0.0  ;;  %v1785_v35 = vmul.f32 0.2, %v1131_v32  ;;  %v16375_v36 = vpop.f32.mrb[30].mxu0  ;;  %v2360_v52 = vld [vmem:[#allocation2 + $0xc1] sm:$0xff]  ;;  %18055 = vmatprep.subr.bf16.mxu1 %v20057_v26 }
 0x12e   : > { %2229 = vst.msk [vmem:[#allocation2 + $0xe1] sm:$0xff] %vm2077_vm4, %v2026_v33  ;;  %v1914_v38 = vsel %vm1658_vm5, %v1136_v28, %v1786_v34  ;;  %v1146_v39 = vadd.f32 %v16375_v36, %v19931_v61  ;;  %v1140_v40 = vpop.f32.mrb[31].mxu0  ;;  %16541 = vmatmul.mubr.msk.f32.gmra.mrb[136].mxu0 %vm2077_vm4, %v2357_v37 }
 0x12f   : > { %v1913_v42 = vsel %vm1657_vm6, %v1131_v32, %v1785_v35  ;;  %v1141_v43 = vadd.f32 %v19931_v61, %v1140_v40  ;;  %16543 = vmatprep.mubr.msk.f32.mxu0 %vm2077_vm4, %v2358_v41 }
 0x130   : > { %v2027_v44 = vmax.f32 %v1913_v42, %v1914_v38  ;;  %vm1660_vm7 = vcmp.ge.f32.partialorder %v1146_v39, 0.0  ;;  %v1788_v45 = vmul.f32 0.2, %v1146_v39 }
 0x131   : > { %vm1659_vm8 = vcmp.ge.f32.partialorder %v1141_v43, 0.0  ;;  %v1787_v46 = vmul.f32 0.2, %v1141_v43  ;;  %v16378_v47 = vpop.f32.mrb[32].mxu0  ;;  %v2361_v60 = vld [vmem:[#allocation2 + $0xd1] sm:$0xff] }
 0x132   : > { %2230 = vst.msk [vmem:[#allocation2 + $0xf1] sm:$0xff] %vm2077_vm4, %v2027_v44  ;;  %v1916_v49 = vsel %vm1660_vm7, %v1146_v39, %v1788_v45  ;;  %v1156_v50 = vadd.f32 %v16378_v47, %v19931_v61  ;;  %v1150_v51 = vpop.f32.mrb[33].mxu0  ;;  %16544 = vmatmul.mubr.msk.f32.gmra.mrb[138].mxu0 %vm2077_vm4, %v2359_v48 }
 0x133   : > { %v1915_v53 = vsel %vm1659_vm8, %v1141_v43, %v1787_v46  ;;  %v1151_v54 = vadd.f32 %v19931_v61, %v1150_v51  ;;  %16546 = vmatprep.mubr.msk.f32.mxu0 %vm2077_vm4, %v2360_v52 }
 0x134   : > { %v2028_v55 = vmax.f32 %v1915_v53, %v1916_v49  ;;  %vm1662_vm9 = vcmp.ge.f32.partialorder %v1156_v50, 0.0  ;;  %v1790_v56 = vmul.f32 0.2, %v1156_v50 }
 0x135   : > { %vm1661_vm10 = vcmp.ge.f32.partialorder %v1151_v54, 0.0  ;;  %v1789_v57 = vmul.f32 0.2, %v1151_v54  ;;  %v16381_v58 = vpop.f32.mrb[34].mxu0  ;;  %v2362_v62 = vld [vmem:[#allocation2 + $0xe1] sm:$0xff] }
 0x136   : > { %2231 = vst.msk [vmem:[#allocation2 + $0x101] sm:$0xff] %vm2077_vm4, %v2028_v55  ;;  %v1918_v63 = vsel %vm1662_vm9, %v1156_v50, %v1790_v56  ;;  %v1166_v0 = vadd.f32 %v16381_v58, %v19931_v61  ;;  %v1160_v1 = vpop.f32.mrb[35].mxu0  ;;  %16547 = vmatmul.mubr.msk.f32.gmra.mrb[140].mxu0 %vm2077_vm4, %v2361_v60 }
 0x137   : > { %v1917_v2 = vsel %vm1661_vm10, %v1151_v54, %v1789_v57  ;;  %v1161_v3 = vadd.f32 %v19931_v61, %v1160_v1  ;;  %16549 = vmatprep.mubr.msk.f32.mxu0 %vm2077_vm4, %v2362_v62 }
 0x138   : > { %v2029_v4 = vmax.f32 %v1917_v2, %v1918_v63  ;;  %vm1664_vm11 = vcmp.ge.f32.partialorder %v1166_v0, 0.0  ;;  %v1792_v5 = vmul.f32 0.2, %v1166_v0 }
 0x139   : > { %vm1663_vm12 = vcmp.ge.f32.partialorder %v1161_v3, 0.0  ;;  %v1791_v6 = vmul.f32 0.2, %v1161_v3  ;;  %v16384_v7 = vpop.f32.mrb[36].mxu0  ;;  %v2363_v8 = vld [vmem:[#allocation2 + $0xf1] sm:$0xff] }
 0x13a   : > { %2232 = vst.msk [vmem:[#allocation2 + $0x111] sm:$0xff] %vm2077_vm4, %v2029_v4  ;;  %v1920_v9 = vsel %vm1664_vm11, %v1166_v0, %v1792_v5  ;;  %v1176_v10 = vadd.f32 %v16384_v7, %v19931_v61  ;;  %v1170_v11 = vpop.f32.mrb[37].mxu0  ;;  %16550 = vmatmul.mubr.msk.f32.gmra.mrb[142].mxu0 %vm2077_vm4, %v2363_v8 }
 0x13b   : > { %v1919_v12 = vsel %vm1663_vm12, %v1161_v3, %v1791_v6  ;;  %v1171_v13 = vadd.f32 %v19931_v61, %v1170_v11 }
 0x13c   : > { %v2030_v14 = vmax.f32 %v1919_v12, %v1920_v9  ;;  %vm1666_vm13 = vcmp.ge.f32.partialorder %v1176_v10, 0.0  ;;  %v1794_v15 = vmul.f32 0.2, %v1176_v10 }
 0x13d   : > { %vm1665_vm1 = vcmp.ge.f32.partialorder %v1171_v13, 0.0  ;;  %v1793_v16 = vmul.f32 0.2, %v1171_v13  ;;  %v16387_v17 = vpop.f32.mrb[38].mxu0  ;;  %v2364_v18 = vld [vmem:[#allocation2 + $0x101] sm:$0xff] }
 0x13e   : > { %2233 = vst.msk [vmem:[#allocation2 + $0x121] sm:$0xff] %vm2077_vm4, %v2030_v14  ;;  %v1922_v19 = vsel %vm1666_vm13, %v1176_v10, %v1794_v15  ;;  %v1186_v20 = vadd.f32 %v16387_v17, %v19931_v61  ;;  %v1180_v21 = vpop.f32.mrb[39].mxu0  ;;  %16552 = vmatprep.mubr.msk.f32.mxu0 %vm2077_vm4, %v2364_v18 }
 0x13f   : > { %v1921_v24 = vsel %vm1665_vm1, %v1171_v13, %v1793_v16  ;;  %v1181_v25 = vadd.f32 %v19931_v61, %v1180_v21 }
 0x140   : > { %v2031_v27 = vmax.f32 %v1921_v24, %v1922_v19  ;;  %vm1668_vm14 = vcmp.ge.f32.partialorder %v1186_v20, 0.0  ;;  %v1796_v28 = vmul.f32 0.2, %v1186_v20 }
 0x141   : > { %vm1667_vm15 = vcmp.ge.f32.partialorder %v1181_v25, 0.0  ;;  %v1795_v29 = vmul.f32 0.2, %v1181_v25  ;;  %v16390_v30 = vpop.f32.mrb[40].mxu0  ;;  %v2365_v31 = vld [vmem:[#allocation2 + $0x111] sm:$0xff] }
 0x142   : > { %2234 = vst.msk [vmem:[#allocation2 + $0x131] sm:$0xff] %vm2077_vm4, %v2031_v27  ;;  %v1924_v32 = vsel %vm1668_vm14, %v1186_v20, %v1796_v28  ;;  %v1196_v33 = vadd.f32 %v16390_v30, %v19931_v61  ;;  %v1190_v34 = vpop.f32.mrb[41].mxu0  ;;  %16553 = vmatmul.mubr.msk.f32.gmra.mrb[144].mxu0 %vm2077_vm4, %v2365_v31 }
 0x143   : > { %v1923_v35 = vsel %vm1667_vm15, %v1181_v25, %v1795_v29  ;;  %v1191_v36 = vadd.f32 %v19931_v61, %v1190_v34 }
 0x144   : > { %v2032_v37 = vmax.f32 %v1923_v35, %v1924_v32  ;;  %vm1670_vm0 = vcmp.ge.f32.partialorder %v1196_v33, 0.0  ;;  %v1798_v38 = vmul.f32 0.2, %v1196_v33 }
 0x145   : > { %vm1669_vm2 = vcmp.ge.f32.partialorder %v1191_v36, 0.0  ;;  %v1797_v39 = vmul.f32 0.2, %v1191_v36  ;;  %v16393_v40 = vpop.f32.mrb[42].mxu0  ;;  %v2366_v41 = vld [vmem:[#allocation2 + $0x121] sm:$0xff] }
 0x146   : > { %2235 = vst.msk [vmem:[#allocation2 + $0x141] sm:$0xff] %vm2077_vm4, %v2032_v37  ;;  %v1926_v42 = vsel %vm1670_vm0, %v1196_v33, %v1798_v38  ;;  %v1206_v43 = vadd.f32 %v16393_v40, %v19931_v61  ;;  %v1200_v44 = vpop.f32.mrb[43].mxu0  ;;  %16555 = vmatprep.mubr.msk.f32.mxu0 %vm2077_vm4, %v2366_v41 }
 0x147   : > { %v1925_v45 = vsel %vm1669_vm2, %v1191_v36, %v1797_v39  ;;  %v1201_v46 = vadd.f32 %v19931_v61, %v1200_v44 }
 0x148   : > { %v2033_v47 = vmax.f32 %v1925_v45, %v1926_v42  ;;  %vm1672_vm3 = vcmp.ge.f32.partialorder %v1206_v43, 0.0  ;;  %v1800_v48 = vmul.f32 0.2, %v1206_v43 }
 0x149   : > { %vm1671_vm5 = vcmp.ge.f32.partialorder %v1201_v46, 0.0  ;;  %v1799_v49 = vmul.f32 0.2, %v1201_v46  ;;  %v16396_v50 = vpop.f32.mrb[44].mxu0  ;;  %v2367_v51 = vld [vmem:[#allocation2 + $0x131] sm:$0xff] }
 0x14a   : > { %2236 = vst.msk [vmem:[#allocation2 + $0x151] sm:$0xff] %vm2077_vm4, %v2033_v47  ;;  %v1928_v52 = vsel %vm1672_vm3, %v1206_v43, %v1800_v48  ;;  %v1216_v53 = vadd.f32 %v16396_v50, %v19931_v61  ;;  %v1210_v54 = vpop.f32.mrb[45].mxu0  ;;  %16556 = vmatmul.mubr.msk.f32.gmra.mrb[146].mxu0 %vm2077_vm4, %v2367_v51 }
 0x14b   : > { %v1927_v55 = vsel %vm1671_vm5, %v1201_v46, %v1799_v49  ;;  %v1211_v56 = vadd.f32 %v19931_v61, %v1210_v54 }
 0x14c   : > { %v2034_v57 = vmax.f32 %v1927_v55, %v1928_v52  ;;  %vm1674_vm6 = vcmp.ge.f32.partialorder %v1216_v53, 0.0  ;;  %v1802_v58 = vmul.f32 0.2, %v1216_v53 }
 0x14d   : > { %vm1673_vm7 = vcmp.ge.f32.partialorder %v1211_v56, 0.0  ;;  %v1801_v60 = vmul.f32 0.2, %v1211_v56  ;;  %v16399_v62 = vpop.f32.mrb[46].mxu0  ;;  %v2368_v63 = vld [vmem:[#allocation2 + $0x141] sm:$0xff] }
 0x14e   : > { %2237 = vst.msk [vmem:[#allocation2 + $0x161] sm:$0xff] %vm2077_vm4, %v2034_v57  ;;  %v1930_v0 = vsel %vm1674_vm6, %v1216_v53, %v1802_v58  ;;  %v1226_v1 = vadd.f32 %v16399_v62, %v19931_v61  ;;  %v1220_v2 = vpop.f32.mrb[47].mxu0  ;;  %16558 = vmatprep.mubr.msk.f32.mxu0 %vm2077_vm4, %v2368_v63 }
 0x14f   : > { %v1929_v3 = vsel %vm1673_vm7, %v1211_v56, %v1801_v60  ;;  %v1221_v4 = vadd.f32 %v19931_v61, %v1220_v2 }
 0x150   : > { %v2035_v5 = vmax.f32 %v1929_v3, %v1930_v0  ;;  %vm1676_vm8 = vcmp.ge.f32.partialorder %v1226_v1, 0.0  ;;  %v1804_v6 = vmul.f32 0.2, %v1226_v1 }
 0x151   : > { %vm1675_vm9 = vcmp.ge.f32.partialorder %v1221_v4, 0.0  ;;  %v1803_v7 = vmul.f32 0.2, %v1221_v4  ;;  %v16402_v8 = vpop.f32.mrb[48].mxu0  ;;  %v2369_v9 = vld [vmem:[#allocation2 + $0x151] sm:$0xff] }
 0x152   : > { %2238 = vst.msk [vmem:[#allocation2 + $0x171] sm:$0xff] %vm2077_vm4, %v2035_v5  ;;  %v1932_v10 = vsel %vm1676_vm8, %v1226_v1, %v1804_v6  ;;  %v1236_v11 = vadd.f32 %v16402_v8, %v19931_v61  ;;  %v1230_v12 = vpop.f32.mrb[49].mxu0  ;;  %16559 = vmatmul.mubr.msk.f32.gmra.mrb[148].mxu0 %vm2077_vm4, %v2369_v9 }
 0x153   : > { %v1931_v13 = vsel %vm1675_vm9, %v1221_v4, %v1803_v7  ;;  %v1231_v14 = vadd.f32 %v19931_v61, %v1230_v12 }
 0x154   : > { %v2036_v15 = vmax.f32 %v1931_v13, %v1932_v10  ;;  %vm1678_vm10 = vcmp.ge.f32.partialorder %v1236_v11, 0.0  ;;  %v1806_v16 = vmul.f32 0.2, %v1236_v11 }
 0x155   : > { %vm1677_vm11 = vcmp.ge.f32.partialorder %v1231_v14, 0.0  ;;  %v1805_v17 = vmul.f32 0.2, %v1231_v14  ;;  %v16405_v18 = vpop.f32.mrb[50].mxu0  ;;  %v2370_v19 = vld [vmem:[#allocation2 + $0x161] sm:$0xff] }
 0x156   : > { %2239 = vst.msk [vmem:[#allocation2 + $0x181] sm:$0xff] %vm2077_vm4, %v2036_v15  ;;  %v1934_v20 = vsel %vm1678_vm10, %v1236_v11, %v1806_v16  ;;  %v1246_v21 = vadd.f32 %v16405_v18, %v19931_v61  ;;  %v1240_v22 = vpop.f32.mrb[51].mxu0  ;;  %16561 = vmatprep.mubr.msk.f32.mxu0 %vm2077_vm4, %v2370_v19 }
 0x157   : > { %v1933_v23 = vsel %vm1677_vm11, %v1231_v14, %v1805_v17  ;;  %v1241_v24 = vadd.f32 %v19931_v61, %v1240_v22 }
 0x158   : > { %v2037_v25 = vmax.f32 %v1933_v23, %v1934_v20  ;;  %vm1680_vm12 = vcmp.ge.f32.partialorder %v1246_v21, 0.0  ;;  %v1808_v27 = vmul.f32 0.2, %v1246_v21 }
 0x159   : > { %vm1679_vm13 = vcmp.ge.f32.partialorder %v1241_v24, 0.0  ;;  %v1807_v28 = vmul.f32 0.2, %v1241_v24  ;;  %v16408_v29 = vpop.f32.mrb[52].mxu0  ;;  %v2371_v30 = vld [vmem:[#allocation2 + $0x171] sm:$0xff] }
 0x15a   : > { %2240 = vst.msk [vmem:[#allocation2 + $0x191] sm:$0xff] %vm2077_vm4, %v2037_v25  ;;  %v1936_v31 = vsel %vm1680_vm12, %v1246_v21, %v1808_v27  ;;  %v1256_v32 = vadd.f32 %v16408_v29, %v19931_v61  ;;  %v1250_v33 = vpop.f32.mrb[53].mxu0  ;;  %16562 = vmatmul.mubr.msk.f32.gmra.mrb[150].mxu0 %vm2077_vm4, %v2371_v30 }
 0x15b   : > { %v1935_v34 = vsel %vm1679_vm13, %v1241_v24, %v1807_v28  ;;  %v1251_v35 = vadd.f32 %v19931_v61, %v1250_v33 }
 0x15c   : > { %v2038_v36 = vmax.f32 %v1935_v34, %v1936_v31  ;;  %vm1682_vm1 = vcmp.ge.f32.partialorder %v1256_v32, 0.0  ;;  %v1810_v37 = vmul.f32 0.2, %v1256_v32 }
 0x15d   : > { %vm1681_vm14 = vcmp.ge.f32.partialorder %v1251_v35, 0.0  ;;  %v1809_v38 = vmul.f32 0.2, %v1251_v35  ;;  %v16411_v39 = vpop.f32.mrb[54].mxu0  ;;  %v2372_v40 = vld [vmem:[#allocation2 + $0x181] sm:$0xff] }
 0x15e   : > { %2241 = vst.msk [vmem:[#allocation2 + $0x1a1] sm:$0xff] %vm2077_vm4, %v2038_v36  ;;  %v1938_v41 = vsel %vm1682_vm1, %v1256_v32, %v1810_v37  ;;  %v1266_v42 = vadd.f32 %v16411_v39, %v19931_v61  ;;  %v1260_v43 = vpop.f32.mrb[55].mxu0  ;;  %16564 = vmatprep.mubr.msk.f32.mxu0 %vm2077_vm4, %v2372_v40  ;;  %v2346_v37 = vld [vmem:[%s24263_s3 + $0x10] sm:$0xff] }
 0x15f   : > { %v1937_v44 = vsel %vm1681_vm14, %v1251_v35, %v1809_v38  ;;  %v1261_v45 = vadd.f32 %v19931_v61, %v1260_v43 }
 0x160   : > { %v2039_v46 = vmax.f32 %v1937_v44, %v1938_v41  ;;  %vm1684_vm15 = vcmp.ge.f32.partialorder %v1266_v42, 0.0  ;;  %v1812_v47 = vmul.f32 0.2, %v1266_v42  ;;  %v2347_v41 = vld [vmem:[%s24263_s3 + $0x18] sm:$0xff] }
 0x161   : > { %vm1683_vm0 = vcmp.ge.f32.partialorder %v1261_v45, 0.0  ;;  %v1811_v48 = vmul.f32 0.2, %v1261_v45  ;;  %v16414_v49 = vpop.f32.mrb[56].mxu0  ;;  %v2373_v50 = vld [vmem:[#allocation2 + $0x191] sm:$0xff] }
 0x162   : > { %2242 = vst.msk [vmem:[#allocation2 + $0x1b1] sm:$0xff] %vm2077_vm4, %v2039_v46  ;;  %v1940_v51 = vsel %vm1684_vm15, %v1266_v42, %v1812_v47  ;;  %v1276_v52 = vadd.f32 %v16414_v49, %v19931_v61  ;;  %v1270_v53 = vpop.f32.mrb[57].mxu0  ;;  %16565 = vmatmul.mubr.msk.f32.gmra.mrb[152].mxu0 %vm2077_vm4, %v2373_v50  ;;  %v2380_v49 = vld [vmem:[#allocation2 + $0x221] sm:$0xff]  ;;  %v18058_v50 = vpack.c.bf16 %v2347_v41, %v2346_v37 }
 0x163   : > { %v1939_v54 = vsel %vm1683_vm0, %v1261_v45, %v1811_v48  ;;  %v1271_v55 = vadd.f32 %v19931_v61, %v1270_v53 }
 0x164   : > { %v2040_v56 = vmax.f32 %v1939_v54, %v1940_v51  ;;  %vm1686_vm2 = vcmp.ge.f32.partialorder %v1276_v52, 0.0  ;;  %v1814_v57 = vmul.f32 0.2, %v1276_v52 }
 0x165   : > { %vm1685_vm3 = vcmp.ge.f32.partialorder %v1271_v55, 0.0  ;;  %v1813_v58 = vmul.f32 0.2, %v1271_v55  ;;  %v16417_v60 = vpop.f32.mrb[58].mxu0  ;;  %v2374_v62 = vld [vmem:[#allocation2 + $0x1a1] sm:$0xff] }
 0x166   : > { %2243 = vst.msk [vmem:[#allocation2 + $0x1c1] sm:$0xff] %vm2077_vm4, %v2040_v56  ;;  %v1942_v63 = vsel %vm1686_vm2, %v1276_v52, %v1814_v57  ;;  %v1286_v0 = vadd.f32 %v16417_v60, %v19931_v61  ;;  %v1280_v1 = vpop.f32.mrb[59].mxu0  ;;  %16567 = vmatprep.mubr.msk.f32.mxu0 %vm2077_vm4, %v2374_v62 }
 0x167   : > { %v1941_v2 = vsel %vm1685_vm3, %v1271_v55, %v1813_v58  ;;  %v1281_v3 = vadd.f32 %v19931_v61, %v1280_v1  ;;  %v20126_v55 = vld [vmem:[%s24262_s2] ss:$0 sm:$0xff] }
 0x168   : > { %v2041_v4 = vmax.f32 %v1941_v2, %v1942_v63  ;;  %vm1688_vm5 = vcmp.ge.f32.partialorder %v1286_v0, 0.0  ;;  %v1816_v5 = vmul.f32 0.2, %v1286_v0  ;;  %v14309_v1 = vld [vmem:[%s24263_s3 + $0x40] sm:$0xff]  ;;  %v14310_v2 = vld [vmem:[%s24263_s3 + $0x48] sm:$0xff] }
 0x169   : > { %vm1687_vm6 = vcmp.ge.f32.partialorder %v1281_v3, 0.0  ;;  %v1815_v6 = vmul.f32 0.2, %v1281_v3  ;;  %v16420_v7 = vpop.f32.mrb[60].mxu0  ;;  %v2375_v8 = vld [vmem:[#allocation2 + $0x1b1] sm:$0xff] }
 0x16a   : > { %2244 = vst.msk [vmem:[#allocation2 + $0x1d1] sm:$0xff] %vm2077_vm4, %v2041_v4  ;;  %v1944_v9 = vsel %vm1688_vm5, %v1286_v0, %v1816_v5  ;;  %v1296_v10 = vadd.f32 %v16420_v7, %v19931_v61  ;;  %v1290_v11 = vpop.f32.mrb[61].mxu0  ;;  %16568 = vmatmul.mubr.msk.f32.gmra.mrb[154].mxu0 %vm2077_vm4, %v2375_v8  ;;  %v20141_v5 = vpack.c.bf16 %v14310_v2, %v14309_v1 }
 0x16b   : > { %v1943_v12 = vsel %vm1687_vm6, %v1281_v3, %v1815_v6  ;;  %v1291_v13 = vadd.f32 %v19931_v61, %v1290_v11 }
 0x16c   : > { %v2042_v14 = vmax.f32 %v1943_v12, %v1944_v9  ;;  %vm1690_vm7 = vcmp.ge.f32.partialorder %v1296_v10, 0.0  ;;  %v1818_v15 = vmul.f32 0.2, %v1296_v10 }
 0x16d   : > { %vm1689_vm8 = vcmp.ge.f32.partialorder %v1291_v13, 0.0  ;;  %v1817_v16 = vmul.f32 0.2, %v1291_v13  ;;  %v16423_v17 = vpop.f32.mrb[62].mxu0  ;;  %v2376_v18 = vld [vmem:[#allocation2 + $0x1c1] sm:$0xff] }
 0x16e   : > { %2245 = vst.msk [vmem:[#allocation2 + $0x1e1] sm:$0xff] %vm2077_vm4, %v2042_v14  ;;  %v1946_v19 = vsel %vm1690_vm7, %v1296_v10, %v1818_v15  ;;  %v1306_v20 = vadd.f32 %v16423_v17, %v19931_v61  ;;  %v1300_v21 = vpop.f32.mrb[63].mxu0  ;;  %16570 = vmatprep.mubr.msk.f32.mxu0 %vm2077_vm4, %v2376_v18 }
 0x16f   : > { %v1945_v22 = vsel %vm1689_vm8, %v1291_v13, %v1817_v16  ;;  %v1301_v23 = vadd.f32 %v19931_v61, %v1300_v21 }
 0x170   : > { %v2043_v24 = vmax.f32 %v1945_v22, %v1946_v19  ;;  %vm1692_vm9 = vcmp.ge.f32.partialorder %v1306_v20, 0.0  ;;  %v1820_v25 = vmul.f32 0.2, %v1306_v20 }
 0x171   : > { %vm1691_vm10 = vcmp.ge.f32.partialorder %v1301_v23, 0.0  ;;  %v1819_v27 = vmul.f32 0.2, %v1301_v23  ;;  %v16426_v28 = vpop.f32.mrb[64].mxu0  ;;  %v2377_v29 = vld [vmem:[#allocation2 + $0x1d1] sm:$0xff] }
 0x172   : > { %2246 = vst.msk [vmem:[#allocation2 + $0x1f1] sm:$0xff] %vm2077_vm4, %v2043_v24  ;;  %v1948_v30 = vsel %vm1692_vm9, %v1306_v20, %v1820_v25  ;;  %v1316_v31 = vadd.f32 %v16426_v28, %v19931_v61  ;;  %v1310_v32 = vpop.f32.mrb[65].mxu0  ;;  %16571 = vmatmul.mubr.msk.f32.gmra.mrb[156].mxu0 %vm2077_vm4, %v2377_v29 }
 0x173   : > { %v1947_v33 = vsel %vm1691_vm10, %v1301_v23, %v1819_v27  ;;  %v1311_v34 = vadd.f32 %v19931_v61, %v1310_v32 }
 0x174   : > { %v2044_v35 = vmax.f32 %v1947_v33, %v1948_v30  ;;  %vm1694_vm11 = vcmp.ge.f32.partialorder %v1316_v31, 0.0  ;;  %v1822_v36 = vmul.f32 0.2, %v1316_v31 }
 0x175   : > { %vm1693_vm12 = vcmp.ge.f32.partialorder %v1311_v34, 0.0  ;;  %v1821_v38 = vmul.f32 0.2, %v1311_v34  ;;  %v16429_v39 = vpop.f32.mrb[66].mxu0  ;;  %v2378_v40 = vld [vmem:[#allocation2 + $0x1e1] sm:$0xff] }
 0x176   : > { %2247 = vst.msk [vmem:[#allocation2 + $0x201] sm:$0xff] %vm2077_vm4, %v2044_v35  ;;  %v1950_v42 = vsel %vm1694_vm11, %v1316_v31, %v1822_v36  ;;  %v1326_v43 = vadd.f32 %v16429_v39, %v19931_v61  ;;  %v1320_v44 = vpop.f32.mrb[67].mxu0  ;;  %16573 = vmatprep.mubr.msk.f32.mxu1 %vm2077_vm4, %v2378_v40 }
 0x177   : > { %v1949_v45 = vsel %vm1693_vm12, %v1311_v34, %v1821_v38  ;;  %v1321_v46 = vadd.f32 %v19931_v61, %v1320_v44 }
 0x178   : > { %v2045_v47 = vmax.f32 %v1949_v45, %v1950_v42  ;;  %vm1696_vm13 = vcmp.ge.f32.partialorder %v1326_v43, 0.0  ;;  %v1824_v48 = vmul.f32 0.2, %v1326_v43 }
 0x179   : > { %vm1695_vm1 = vcmp.ge.f32.partialorder %v1321_v46, 0.0  ;;  %v1823_v51 = vmul.f32 0.2, %v1321_v46  ;;  %v16432_v52 = vpop.f32.mrb[68].mxu0  ;;  %v2379_v53 = vld [vmem:[#allocation2 + $0x1f1] sm:$0xff] }
 0x17a   : > { %2248 = vst.msk [vmem:[#allocation2 + $0x231] sm:$0xff] %vm2077_vm4, %v2045_v47  ;;  %v1952_v54 = vsel %vm1696_vm13, %v1326_v43, %v1824_v48  ;;  %v1336_v56 = vadd.f32 %v20126_v55, %v16432_v52  ;;  %v1330_v61 = vpop.f32.mrb[69].mxu0  ;;  %16574 = vmatmul.mubr.msk.f32.vlgmr.msra.gmra.mrb[0].mxu1 %vm2077_vm4, %v2379_v53 }
 0x17b   : > { %v1951_v57 = vsel %vm1695_vm1, %v1321_v46, %v1823_v51  ;;  %v1331_v58 = vadd.f32 %v20126_v55, %v1330_v61  ;;  %16576 = vmatprep.mubr.msk.f32.mxu1 %vm2077_vm4, %v2380_v49  ;;  %18057 = vmatpush3.bf16.msra.mxu1 %v20057_v26 }
 0x17c   : > { %v2046_v60 = vmax.f32 %v1951_v57, %v1952_v54  ;;  %vm1698_vm14 = vcmp.ge.f32.partialorder %v1336_v56, 0.0  ;;  %v1826_v62 = vmul.f32 0.2, %v1336_v56  ;;  %18059 = vmatprep.subr.bf16.mxu1 %v18058_v50 }
 0x17d   : > { %vm1697_vm15 = vcmp.ge.f32.partialorder %v1331_v58, 0.0  ;;  %v1825_v63 = vmul.f32 0.2, %v1331_v58  ;;  %v16435_v0 = vpop.f32.mrb[70].mxu0 }
 0x17e   : > { %2249 = vst.msk [vmem:[#allocation2 + $0x241] sm:$0xff] %vm2077_vm4, %v2046_v60  ;;  %v1954_v3 = vsel %vm1698_vm14, %v1336_v56, %v1826_v62  ;;  %v1346_v26 = vadd.f32 %v20126_v55, %v16435_v0  ;;  %v1340_v4 = vpop.f32.mrb[71].mxu0 }
 0x17f   : > { %v1953_v6 = vsel %vm1697_vm15, %v1331_v58, %v1825_v63  ;;  %v1341_v7 = vadd.f32 %v20126_v55, %v1340_v4  ;;  %18061 = vmatpush3.bf16.msra.mxu1 %v18058_v50 }
 0x180   : > { %v2047_v8 = vmax.f32 %v1953_v6, %v1954_v3  ;;  %vm1700_vm0 = vcmp.ge.f32.partialorder %v1346_v26, 0.0  ;;  %v1828_v9 = vmul.f32 0.2, %v1346_v26  ;;  %18063 = vmatprep.subr.bf16.mxu1 %v20141_v5 }
 0x181   : > { %vm1699_vm2 = vcmp.ge.f32.partialorder %v1341_v7, 0.0  ;;  %v1827_v10 = vmul.f32 0.2, %v1341_v7  ;;  %v16438_v11 = vpop.f32.mrb[72].mxu0  ;;  %v2381_v12 = vld [vmem:[#allocation2 + $0x231] sm:$0xff] }
 0x182   : > { %2250 = vst.msk [vmem:[#allocation2 + $0x251] sm:$0xff] %vm2077_vm4, %v2047_v8  ;;  %v1956_v13 = vsel %vm1700_vm0, %v1346_v26, %v1828_v9  ;;  %v1356_v14 = vadd.f32 %v20126_v55, %v16438_v11  ;;  %v1350_v15 = vpop.f32.mrb[73].mxu0  ;;  %16577 = vmatmul.mubr.msk.f32.gmra.mrb[2].mxu1 %vm2077_vm4, %v2381_v12 }
 0x183   : > { %v1955_v16 = vsel %vm1699_vm2, %v1341_v7, %v1827_v10  ;;  %v1351_v17 = vadd.f32 %v20126_v55, %v1350_v15 }
 0x184   : > { %v2048_v18 = vmax.f32 %v1955_v16, %v1956_v13  ;;  %vm1702_vm3 = vcmp.ge.f32.partialorder %v1356_v14, 0.0  ;;  %v1830_v19 = vmul.f32 0.2, %v1356_v14 }
 0x185   : > { %vm1701_vm5 = vcmp.ge.f32.partialorder %v1351_v17, 0.0  ;;  %v1829_v20 = vmul.f32 0.2, %v1351_v17  ;;  %v16441_v21 = vpop.f32.mrb[74].mxu0  ;;  %v2382_v22 = vld [vmem:[#allocation2 + $0x241] sm:$0xff] }
 0x186   : > { %2251 = vst.msk [vmem:[#allocation2 + $0x261] sm:$0xff] %vm2077_vm4, %v2048_v18  ;;  %v1958_v23 = vsel %vm1702_vm3, %v1356_v14, %v1830_v19  ;;  %v1366_v24 = vadd.f32 %v20126_v55, %v16441_v21  ;;  %v1360_v25 = vpop.f32.mrb[75].mxu0  ;;  %16579 = vmatprep.mubr.msk.f32.mxu1 %vm2077_vm4, %v2382_v22 }
 0x187   : > { %v1957_v27 = vsel %vm1701_vm5, %v1351_v17, %v1829_v20  ;;  %v1361_v28 = vadd.f32 %v20126_v55, %v1360_v25 }
 0x188   : > { %v2049_v29 = vmax.f32 %v1957_v27, %v1958_v23  ;;  %vm1704_vm6 = vcmp.ge.f32.partialorder %v1366_v24, 0.0  ;;  %v1832_v30 = vmul.f32 0.2, %v1366_v24 }
 0x189   : > { %vm1703_vm7 = vcmp.ge.f32.partialorder %v1361_v28, 0.0  ;;  %v1831_v31 = vmul.f32 0.2, %v1361_v28  ;;  %v16444_v32 = vpop.f32.mrb[76].mxu0  ;;  %v2383_v33 = vld [vmem:[#allocation2 + $0x251] sm:$0xff] }
 0x18a   : > { %2252 = vst.msk [vmem:[#allocation2 + $0x271] sm:$0xff] %vm2077_vm4, %v2049_v29  ;;  %v1960_v34 = vsel %vm1704_vm6, %v1366_v24, %v1832_v30  ;;  %v1376_v35 = vadd.f32 %v20126_v55, %v16444_v32  ;;  %v1370_v36 = vpop.f32.mrb[77].mxu0  ;;  %16580 = vmatmul.mubr.msk.f32.gmra.mrb[4].mxu1 %vm2077_vm4, %v2383_v33  ;;  %v20468_v59 = vld [vmem:[#allocation2 + $0x250] sm:$0xff] }
 0x18b   : > { %v1959_v37 = vsel %vm1703_vm7, %v1361_v28, %v1831_v31  ;;  %v1371_v38 = vadd.f32 %v20126_v55, %v1370_v36 }
 0x18c   : > { %v2050_v39 = vmax.f32 %v1959_v37, %v1960_v34  ;;  %vm1706_vm8 = vcmp.ge.f32.partialorder %v1376_v35, 0.0  ;;  %v1834_v40 = vmul.f32 0.2, %v1376_v35 }
 0x18d   : > { %vm1705_vm9 = vcmp.ge.f32.partialorder %v1371_v38, 0.0  ;;  %v1833_v41 = vmul.f32 0.2, %v1371_v38  ;;  %v16447_v42 = vpop.f32.mrb[78].mxu0  ;;  %v2384_v43 = vld [vmem:[#allocation2 + $0x261] sm:$0xff] }
 0x18e   : > { %2253 = vst.msk [vmem:[#allocation2 + $0x281] sm:$0xff] %vm2077_vm4, %v2050_v39  ;;  %v1962_v44 = vsel %vm1706_vm8, %v1376_v35, %v1834_v40  ;;  %v1386_v45 = vadd.f32 %v20126_v55, %v16447_v42  ;;  %v1380_v46 = vpop.f32.mrb[79].mxu0  ;;  %16582 = vmatprep.mubr.msk.f32.mxu1 %vm2077_vm4, %v2384_v43 }
 0x18f   : > { %v1961_v47 = vsel %vm1705_vm9, %v1371_v38, %v1833_v41  ;;  %v1381_v48 = vadd.f32 %v20126_v55, %v1380_v46 }
 0x190   : > { %v2051_v49 = vmax.f32 %v1961_v47, %v1962_v44  ;;  %vm1708_vm10 = vcmp.ge.f32.partialorder %v1386_v45, 0.0  ;;  %v1836_v50 = vmul.f32 0.2, %v1386_v45 }
 0x191   : > { %vm1707_vm11 = vcmp.ge.f32.partialorder %v1381_v48, 0.0  ;;  %v1835_v51 = vmul.f32 0.2, %v1381_v48  ;;  %v16450_v52 = vpop.f32.mrb[80].mxu0  ;;  %v2385_v53 = vld [vmem:[#allocation2 + $0x271] sm:$0xff] }
 0x192   : > { %2254 = vst.msk [vmem:[#allocation2 + $0x291] sm:$0xff] %vm2077_vm4, %v2051_v49  ;;  %v1964_v54 = vsel %vm1708_vm10, %v1386_v45, %v1836_v50  ;;  %v1396_v56 = vadd.f32 %v20126_v55, %v16450_v52  ;;  %v1390_v61 = vpop.f32.mrb[81].mxu0  ;;  %16583 = vmatmul.mubr.msk.f32.gmra.mrb[6].mxu1 %vm2077_vm4, %v2385_v53 }
 0x193   : > { %v1963_v57 = vsel %vm1707_vm11, %v1381_v48, %v1835_v51  ;;  %v1391_v58 = vadd.f32 %v20126_v55, %v1390_v61 }
 0x194   : > { %v2052_v60 = vmax.f32 %v1963_v57, %v1964_v54  ;;  %vm1710_vm12 = vcmp.ge.f32.partialorder %v1396_v56, 0.0  ;;  %v1838_v62 = vmul.f32 0.2, %v1396_v56 }
 0x195   : > { %vm1709_vm13 = vcmp.ge.f32.partialorder %v1391_v58, 0.0  ;;  %v1837_v63 = vmul.f32 0.2, %v1391_v58  ;;  %v16453_v0 = vpop.f32.mrb[82].mxu0  ;;  %v2386_v1 = vld [vmem:[#allocation2 + $0x281] sm:$0xff] }
 0x196   : > { %2255 = vst.msk [vmem:[#allocation2 + $0x2a1] sm:$0xff] %vm2077_vm4, %v2052_v60  ;;  %v1966_v2 = vsel %vm1710_vm12, %v1396_v56, %v1838_v62  ;;  %v1406_v3 = vadd.f32 %v20126_v55, %v16453_v0  ;;  %v1400_v26 = vpop.f32.mrb[83].mxu0  ;;  %16585 = vmatprep.mubr.msk.f32.mxu1 %vm2077_vm4, %v2386_v1 }
 0x197   : > { %v1965_v4 = vsel %vm1709_vm13, %v1391_v58, %v1837_v63  ;;  %v1401_v6 = vadd.f32 %v20126_v55, %v1400_v26 }
 0x198   : > { %v2053_v7 = vmax.f32 %v1965_v4, %v1966_v2  ;;  %vm1712_vm1 = vcmp.ge.f32.partialorder %v1406_v3, 0.0  ;;  %v1840_v8 = vmul.f32 0.2, %v1406_v3 }
 0x199   : > { %vm1711_vm14 = vcmp.ge.f32.partialorder %v1401_v6, 0.0  ;;  %v1839_v9 = vmul.f32 0.2, %v1401_v6  ;;  %v16456_v10 = vpop.f32.mrb[84].mxu0  ;;  %v2387_v11 = vld [vmem:[#allocation2 + $0x291] sm:$0xff] }
 0x19a   : > { %2256 = vst.msk [vmem:[#allocation2 + $0x2b1] sm:$0xff] %vm2077_vm4, %v2053_v7  ;;  %v1968_v12 = vsel %vm1712_vm1, %v1406_v3, %v1840_v8  ;;  %v1416_v13 = vadd.f32 %v20126_v55, %v16456_v10  ;;  %v1410_v14 = vpop.f32.mrb[85].mxu0  ;;  %16586 = vmatmul.mubr.msk.f32.gmra.mrb[8].mxu1 %vm2077_vm4, %v2387_v11 }
 0x19b   : > { %v1967_v15 = vsel %vm1711_vm14, %v1401_v6, %v1839_v9  ;;  %v1411_v16 = vadd.f32 %v20126_v55, %v1410_v14 }
 0x19c   : > { %v2054_v17 = vmax.f32 %v1967_v15, %v1968_v12  ;;  %vm1714_vm15 = vcmp.ge.f32.partialorder %v1416_v13, 0.0  ;;  %v1842_v18 = vmul.f32 0.2, %v1416_v13 }
 0x19d   : > { %vm1713_vm0 = vcmp.ge.f32.partialorder %v1411_v16, 0.0  ;;  %v1841_v19 = vmul.f32 0.2, %v1411_v16  ;;  %v16459_v20 = vpop.f32.mrb[86].mxu0  ;;  %v2388_v21 = vld [vmem:[#allocation2 + $0x2a1] sm:$0xff] }
 0x19e   : > { %2257 = vst.msk [vmem:[#allocation2 + $0x2c1] sm:$0xff] %vm2077_vm4, %v2054_v17  ;;  %v1970_v22 = vsel %vm1714_vm15, %v1416_v13, %v1842_v18  ;;  %v1426_v23 = vadd.f32 %v20126_v55, %v16459_v20  ;;  %v1420_v24 = vpop.f32.mrb[87].mxu0  ;;  %16588 = vmatprep.mubr.msk.f32.mxu1 %vm2077_vm4, %v2388_v21 }
 0x19f   : > { %v1969_v25 = vsel %vm1713_vm0, %v1411_v16, %v1841_v19  ;;  %v1421_v27 = vadd.f32 %v20126_v55, %v1420_v24 }
 0x1a0   : > { %v2055_v28 = vmax.f32 %v1969_v25, %v1970_v22  ;;  %vm1716_vm2 = vcmp.ge.f32.partialorder %v1426_v23, 0.0  ;;  %v1844_v29 = vmul.f32 0.2, %v1426_v23 }
 0x1a1   : > { %vm1715_vm3 = vcmp.ge.f32.partialorder %v1421_v27, 0.0  ;;  %v1843_v30 = vmul.f32 0.2, %v1421_v27  ;;  %v16462_v31 = vpop.f32.mrb[88].mxu0  ;;  %v2389_v32 = vld [vmem:[#allocation2 + $0x2b1] sm:$0xff] }
 0x1a2   : > { %2258 = vst.msk [vmem:[#allocation2 + $0x2d1] sm:$0xff] %vm2077_vm4, %v2055_v28  ;;  %v1972_v33 = vsel %vm1716_vm2, %v1426_v23, %v1844_v29  ;;  %v1436_v34 = vadd.f32 %v20126_v55, %v16462_v31  ;;  %v1430_v35 = vpop.f32.mrb[89].mxu0  ;;  %16589 = vmatmul.mubr.msk.f32.gmra.mrb[10].mxu1 %vm2077_vm4, %v2389_v32 }
 0x1a3   : > { %v1971_v36 = vsel %vm1715_vm3, %v1421_v27, %v1843_v30  ;;  %v1431_v37 = vadd.f32 %v20126_v55, %v1430_v35 }
 0x1a4   : > { %v2056_v38 = vmax.f32 %v1971_v36, %v1972_v33  ;;  %vm1718_vm5 = vcmp.ge.f32.partialorder %v1436_v34, 0.0  ;;  %v1846_v39 = vmul.f32 0.2, %v1436_v34 }
 0x1a5   : > { %vm1717_vm6 = vcmp.ge.f32.partialorder %v1431_v37, 0.0  ;;  %v1845_v40 = vmul.f32 0.2, %v1431_v37  ;;  %v16465_v41 = vpop.f32.mrb[90].mxu0  ;;  %v2390_v42 = vld [vmem:[#allocation2 + $0x2c1] sm:$0xff] }
 0x1a6   : > { %2259 = vst.msk [vmem:[#allocation2 + $0x2e1] sm:$0xff] %vm2077_vm4, %v2056_v38  ;;  %v1974_v43 = vsel %vm1718_vm5, %v1436_v34, %v1846_v39  ;;  %v1446_v44 = vadd.f32 %v20126_v55, %v16465_v41  ;;  %v1440_v45 = vpop.f32.mrb[91].mxu0  ;;  %16591 = vmatprep.mubr.msk.f32.mxu1 %vm2077_vm4, %v2390_v42 }
 0x1a7   : > { %v1973_v46 = vsel %vm1717_vm6, %v1431_v37, %v1845_v40  ;;  %v1441_v47 = vadd.f32 %v20126_v55, %v1440_v45 }
 0x1a8   : > { %v2057_v48 = vmax.f32 %v1973_v46, %v1974_v43  ;;  %vm1720_vm7 = vcmp.ge.f32.partialorder %v1446_v44, 0.0  ;;  %v1848_v49 = vmul.f32 0.2, %v1446_v44 }
 0x1a9   : > { %vm1719_vm8 = vcmp.ge.f32.partialorder %v1441_v47, 0.0  ;;  %v1847_v50 = vmul.f32 0.2, %v1441_v47  ;;  %v16468_v51 = vpop.f32.mrb[92].mxu0  ;;  %v2391_v52 = vld [vmem:[#allocation2 + $0x2d1] sm:$0xff] }
 0x1aa   : > { %2260 = vst.msk [vmem:[#allocation2 + $0x2f1] sm:$0xff] %vm2077_vm4, %v2057_v48  ;;  %v1976_v53 = vsel %vm1720_vm7, %v1446_v44, %v1848_v49  ;;  %v1456_v54 = vadd.f32 %v20126_v55, %v16468_v51  ;;  %v1450_v56 = vpop.f32.mrb[93].mxu0  ;;  %16592 = vmatmul.mubr.msk.f32.gmra.mrb[12].mxu1 %vm2077_vm4, %v2391_v52 }
 0x1ab   : > { %v1975_v61 = vsel %vm1719_vm8, %v1441_v47, %v1847_v50  ;;  %v1451_v57 = vadd.f32 %v20126_v55, %v1450_v56 }
 0x1ac   : > { %v2058_v58 = vmax.f32 %v1975_v61, %v1976_v53  ;;  %vm1722_vm9 = vcmp.ge.f32.partialorder %v1456_v54, 0.0  ;;  %v1850_v60 = vmul.f32 0.2, %v1456_v54 }
 0x1ad   : > { %vm1721_vm10 = vcmp.ge.f32.partialorder %v1451_v57, 0.0  ;;  %v1849_v62 = vmul.f32 0.2, %v1451_v57  ;;  %v16471_v63 = vpop.f32.mrb[94].mxu0  ;;  %v2392_v0 = vld [vmem:[#allocation2 + $0x2e1] sm:$0xff] }
 0x1ae   : > { %2261 = vst.msk [vmem:[#allocation2 + $0x301] sm:$0xff] %vm2077_vm4, %v2058_v58  ;;  %v1978_v1 = vsel %vm1722_vm9, %v1456_v54, %v1850_v60  ;;  %v1466_v2 = vadd.f32 %v20126_v55, %v16471_v63  ;;  %v1460_v3 = vpop.f32.mrb[95].mxu0  ;;  %16594 = vmatprep.mubr.msk.f32.mxu1 %vm2077_vm4, %v2392_v0 }
 0x1af   : > { %v1977_v26 = vsel %vm1721_vm10, %v1451_v57, %v1849_v62  ;;  %v1461_v4 = vadd.f32 %v20126_v55, %v1460_v3 }
 0x1b0   : > { %v2059_v6 = vmax.f32 %v1977_v26, %v1978_v1  ;;  %vm1724_vm11 = vcmp.ge.f32.partialorder %v1466_v2, 0.0  ;;  %v1852_v7 = vmul.f32 0.2, %v1466_v2 }
 0x1b1   : > { %vm1723_vm12 = vcmp.ge.f32.partialorder %v1461_v4, 0.0  ;;  %v1851_v8 = vmul.f32 0.2, %v1461_v4  ;;  %v16474_v9 = vpop.f32.mrb[96].mxu0  ;;  %v2393_v10 = vld [vmem:[#allocation2 + $0x2f1] sm:$0xff] }
 0x1b2   : > { %2262 = vst.msk [vmem:[#allocation2 + $0x311] sm:$0xff] %vm2077_vm4, %v2059_v6  ;;  %v1980_v11 = vsel %vm1724_vm11, %v1466_v2, %v1852_v7  ;;  %v1476_v12 = vadd.f32 %v20126_v55, %v16474_v9  ;;  %v1470_v13 = vpop.f32.mrb[97].mxu0  ;;  %16595 = vmatmul.mubr.msk.f32.gmra.mrb[14].mxu1 %vm2077_vm4, %v2393_v10 }
 0x1b3   : > { %v1979_v14 = vsel %vm1723_vm12, %v1461_v4, %v1851_v8  ;;  %v1471_v15 = vadd.f32 %v20126_v55, %v1470_v13 }
 0x1b4   : > { %v2060_v16 = vmax.f32 %v1979_v14, %v1980_v11  ;;  %vm1726_vm13 = vcmp.ge.f32.partialorder %v1476_v12, 0.0  ;;  %v1854_v17 = vmul.f32 0.2, %v1476_v12 }
 0x1b5   : > { %vm1725_vm1 = vcmp.ge.f32.partialorder %v1471_v15, 0.0  ;;  %v1853_v18 = vmul.f32 0.2, %v1471_v15  ;;  %v16477_v19 = vpop.f32.mrb[98].mxu0  ;;  %v2394_v20 = vld [vmem:[#allocation2 + $0x301] sm:$0xff] }
 0x1b6   : > { %2263 = vst.msk [vmem:[#allocation2 + $0x321] sm:$0xff] %vm2077_vm4, %v2060_v16  ;;  %v1982_v21 = vsel %vm1726_vm13, %v1476_v12, %v1854_v17  ;;  %v1486_v22 = vadd.f32 %v20126_v55, %v16477_v19  ;;  %v1480_v23 = vpop.f32.mrb[99].mxu0  ;;  %16597 = vmatprep.mubr.msk.f32.mxu1 %vm2077_vm4, %v2394_v20 }
 0x1b7   : > { %v1981_v24 = vsel %vm1725_vm1, %v1471_v15, %v1853_v18  ;;  %v1481_v25 = vadd.f32 %v20126_v55, %v1480_v23 }
 0x1b8   : > { %v2061_v27 = vmax.f32 %v1981_v24, %v1982_v21  ;;  %vm1728_vm14 = vcmp.ge.f32.partialorder %v1486_v22, 0.0  ;;  %v1856_v28 = vmul.f32 0.2, %v1486_v22 }
 0x1b9   : > { %vm1727_vm15 = vcmp.ge.f32.partialorder %v1481_v25, 0.0  ;;  %v1855_v29 = vmul.f32 0.2, %v1481_v25  ;;  %v16480_v30 = vpop.f32.mrb[100].mxu0  ;;  %v2395_v31 = vld [vmem:[#allocation2 + $0x311] sm:$0xff] }
 0x1ba   : > { %2264 = vst.msk [vmem:[#allocation2 + $0x331] sm:$0xff] %vm2077_vm4, %v2061_v27  ;;  %v1984_v32 = vsel %vm1728_vm14, %v1486_v22, %v1856_v28  ;;  %v1496_v33 = vadd.f32 %v20126_v55, %v16480_v30  ;;  %v1490_v34 = vpop.f32.mrb[101].mxu0  ;;  %16598 = vmatmul.mubr.msk.f32.gmra.mrb[16].mxu1 %vm2077_vm4, %v2395_v31 }
 0x1bb   : > { %v1983_v35 = vsel %vm1727_vm15, %v1481_v25, %v1855_v29  ;;  %v1491_v36 = vadd.f32 %v20126_v55, %v1490_v34 }
 0x1bc   : > { %v2062_v37 = vmax.f32 %v1983_v35, %v1984_v32  ;;  %vm1730_vm0 = vcmp.ge.f32.partialorder %v1496_v33, 0.0  ;;  %v1858_v38 = vmul.f32 0.2, %v1496_v33 }
 0x1bd   : > { %vm1729_vm2 = vcmp.ge.f32.partialorder %v1491_v36, 0.0  ;;  %v1857_v39 = vmul.f32 0.2, %v1491_v36  ;;  %v16483_v40 = vpop.f32.mrb[102].mxu0  ;;  %v2396_v41 = vld [vmem:[#allocation2 + $0x321] sm:$0xff] }
 0x1be   : > { %2265 = vst.msk [vmem:[#allocation2 + $0x341] sm:$0xff] %vm2077_vm4, %v2062_v37  ;;  %v1986_v42 = vsel %vm1730_vm0, %v1496_v33, %v1858_v38  ;;  %v1506_v43 = vadd.f32 %v20126_v55, %v16483_v40  ;;  %v1500_v44 = vpop.f32.mrb[103].mxu0  ;;  %16600 = vmatprep.mubr.msk.f32.mxu1 %vm2077_vm4, %v2396_v41 }
 0x1bf   : > { %v1985_v45 = vsel %vm1729_vm2, %v1491_v36, %v1857_v39  ;;  %v1501_v46 = vadd.f32 %v20126_v55, %v1500_v44 }
 0x1c0   : > { %v2063_v47 = vmax.f32 %v1985_v45, %v1986_v42  ;;  %vm1732_vm3 = vcmp.ge.f32.partialorder %v1506_v43, 0.0  ;;  %v1860_v48 = vmul.f32 0.2, %v1506_v43 }
 0x1c1   : > { %vm1731_vm5 = vcmp.ge.f32.partialorder %v1501_v46, 0.0  ;;  %v1859_v49 = vmul.f32 0.2, %v1501_v46  ;;  %v16486_v50 = vpop.f32.mrb[104].mxu0  ;;  %v2397_v51 = vld [vmem:[#allocation2 + $0x331] sm:$0xff] }
 0x1c2   : > { %2266 = vst.msk [vmem:[#allocation2 + $0x351] sm:$0xff] %vm2077_vm4, %v2063_v47  ;;  %v1988_v52 = vsel %vm1732_vm3, %v1506_v43, %v1860_v48  ;;  %v1516_v53 = vadd.f32 %v20126_v55, %v16486_v50  ;;  %v1510_v54 = vpop.f32.mrb[105].mxu0  ;;  %16601 = vmatmul.mubr.msk.f32.gmra.mrb[18].mxu1 %vm2077_vm4, %v2397_v51 }
 0x1c3   : > { %v1987_v56 = vsel %vm1731_vm5, %v1501_v46, %v1859_v49  ;;  %v1511_v61 = vadd.f32 %v20126_v55, %v1510_v54 }
 0x1c4   : > { %v2064_v57 = vmax.f32 %v1987_v56, %v1988_v52  ;;  %vm1734_vm6 = vcmp.ge.f32.partialorder %v1516_v53, 0.0  ;;  %v1862_v58 = vmul.f32 0.2, %v1516_v53 }
 0x1c5   : > { %vm1733_vm7 = vcmp.ge.f32.partialorder %v1511_v61, 0.0  ;;  %v1861_v60 = vmul.f32 0.2, %v1511_v61  ;;  %v16489_v62 = vpop.f32.mrb[106].mxu0  ;;  %v2398_v63 = vld [vmem:[#allocation2 + $0x341] sm:$0xff] }
 0x1c6   : > { %2267 = vst.msk [vmem:[#allocation2 + $0x361] sm:$0xff] %vm2077_vm4, %v2064_v57  ;;  %v1990_v0 = vsel %vm1734_vm6, %v1516_v53, %v1862_v58  ;;  %v1526_v1 = vadd.f32 %v20126_v55, %v16489_v62  ;;  %v1520_v2 = vpop.f32.mrb[107].mxu0  ;;  %16603 = vmatprep.mubr.msk.f32.mxu1 %vm2077_vm4, %v2398_v63 }
 0x1c7   : > { %v1989_v3 = vsel %vm1733_vm7, %v1511_v61, %v1861_v60  ;;  %v1521_v26 = vadd.f32 %v20126_v55, %v1520_v2 }
 0x1c8   : > { %v2065_v4 = vmax.f32 %v1989_v3, %v1990_v0  ;;  %vm1736_vm8 = vcmp.ge.f32.partialorder %v1526_v1, 0.0  ;;  %v1864_v6 = vmul.f32 0.2, %v1526_v1 }
 0x1c9   : > { %vm1735_vm9 = vcmp.ge.f32.partialorder %v1521_v26, 0.0  ;;  %v1863_v7 = vmul.f32 0.2, %v1521_v26  ;;  %v16492_v8 = vpop.f32.mrb[108].mxu0  ;;  %v2399_v9 = vld [vmem:[#allocation2 + $0x351] sm:$0xff] }
 0x1ca   : > { %2268 = vst.msk [vmem:[#allocation2 + $0x371] sm:$0xff] %vm2077_vm4, %v2065_v4  ;;  %v1992_v10 = vsel %vm1736_vm8, %v1526_v1, %v1864_v6  ;;  %v1536_v11 = vadd.f32 %v20126_v55, %v16492_v8  ;;  %v1530_v12 = vpop.f32.mrb[109].mxu0  ;;  %16604 = vmatmul.mubr.msk.f32.gmra.mrb[20].mxu1 %vm2077_vm4, %v2399_v9 }
 0x1cb   : > { %v1991_v13 = vsel %vm1735_vm9, %v1521_v26, %v1863_v7  ;;  %v1531_v14 = vadd.f32 %v20126_v55, %v1530_v12 }
 0x1cc   : > { %v2066_v15 = vmax.f32 %v1991_v13, %v1992_v10  ;;  %vm1738_vm10 = vcmp.ge.f32.partialorder %v1536_v11, 0.0  ;;  %v1866_v16 = vmul.f32 0.2, %v1536_v11 }
 0x1cd   : > { %vm1737_vm11 = vcmp.ge.f32.partialorder %v1531_v14, 0.0  ;;  %v1865_v17 = vmul.f32 0.2, %v1531_v14  ;;  %v16495_v18 = vpop.f32.mrb[110].mxu0  ;;  %v2400_v19 = vld [vmem:[#allocation2 + $0x361] sm:$0xff] }
 0x1ce   : > { %2269 = vst.msk [vmem:[#allocation2 + $0x381] sm:$0xff] %vm2077_vm4, %v2066_v15  ;;  %v1994_v20 = vsel %vm1738_vm10, %v1536_v11, %v1866_v16  ;;  %v1546_v21 = vadd.f32 %v20126_v55, %v16495_v18  ;;  %v1540_v22 = vpop.f32.mrb[111].mxu0  ;;  %16606 = vmatprep.mubr.msk.f32.mxu1 %vm2077_vm4, %v2400_v19 }
 0x1cf   : > { %v1993_v23 = vsel %vm1737_vm11, %v1531_v14, %v1865_v17  ;;  %v1541_v24 = vadd.f32 %v20126_v55, %v1540_v22 }
 0x1d0   : > { %v2067_v25 = vmax.f32 %v1993_v23, %v1994_v20  ;;  %vm1740_vm12 = vcmp.ge.f32.partialorder %v1546_v21, 0.0  ;;  %v1868_v27 = vmul.f32 0.2, %v1546_v21 }
 0x1d1   : > { %vm1739_vm13 = vcmp.ge.f32.partialorder %v1541_v24, 0.0  ;;  %v1867_v28 = vmul.f32 0.2, %v1541_v24  ;;  %v16498_v29 = vpop.f32.mrb[112].mxu0  ;;  %v2401_v30 = vld [vmem:[#allocation2 + $0x371] sm:$0xff] }
 0x1d2   : > { %2270 = vst.msk [vmem:[#allocation2 + $0x391] sm:$0xff] %vm2077_vm4, %v2067_v25  ;;  %v1996_v31 = vsel %vm1740_vm12, %v1546_v21, %v1868_v27  ;;  %v1556_v32 = vadd.f32 %v20126_v55, %v16498_v29  ;;  %v1550_v33 = vpop.f32.mrb[113].mxu0  ;;  %16607 = vmatmul.mubr.msk.f32.gmra.mrb[22].mxu1 %vm2077_vm4, %v2401_v30 }
 0x1d3   : > { %v1995_v34 = vsel %vm1739_vm13, %v1541_v24, %v1867_v28  ;;  %v1551_v35 = vadd.f32 %v20126_v55, %v1550_v33 }
 0x1d4   : > { %v2068_v36 = vmax.f32 %v1995_v34, %v1996_v31  ;;  %vm1742_vm1 = vcmp.ge.f32.partialorder %v1556_v32, 0.0  ;;  %v1870_v37 = vmul.f32 0.2, %v1556_v32 }
 0x1d5   : > { %vm1741_vm14 = vcmp.ge.f32.partialorder %v1551_v35, 0.0  ;;  %v1869_v38 = vmul.f32 0.2, %v1551_v35  ;;  %v16501_v39 = vpop.f32.mrb[114].mxu0  ;;  %v2402_v40 = vld [vmem:[#allocation2 + $0x381] sm:$0xff] }
 0x1d6   : > { %2271 = vst.msk [vmem:[#allocation2 + $0x3a1] sm:$0xff] %vm2077_vm4, %v2068_v36  ;;  %v1998_v41 = vsel %vm1742_vm1, %v1556_v32, %v1870_v37  ;;  %v1566_v42 = vadd.f32 %v20126_v55, %v16501_v39  ;;  %v1560_v43 = vpop.f32.mrb[115].mxu0  ;;  %16609 = vmatprep.mubr.msk.f32.mxu1 %vm2077_vm4, %v2402_v40 }
 0x1d7   : > { %v1997_v44 = vsel %vm1741_vm14, %v1551_v35, %v1869_v38  ;;  %v1561_v45 = vadd.f32 %v20126_v55, %v1560_v43  ;;  %vm8837_vm14 = vcmask 523264  }
 0x1d8   : > { %v2069_v46 = vmax.f32 %v1997_v44, %v1998_v41  ;;  %vm1744_vm15 = vcmp.ge.f32.partialorder %v1566_v42, 0.0  ;;  %v1872_v47 = vmul.f32 0.2, %v1566_v42 }
 0x1d9   : > { %vm1743_vm0 = vcmp.ge.f32.partialorder %v1561_v45, 0.0  ;;  %v1871_v48 = vmul.f32 0.2, %v1561_v45  ;;  %v16504_v49 = vpop.f32.mrb[116].mxu0  ;;  %v2403_v50 = vld [vmem:[#allocation2 + $0x391] sm:$0xff] }
 0x1da   : > { %2272 = vst.msk [vmem:[#allocation2 + $0x3b1] sm:$0xff] %vm2077_vm4, %v2069_v46  ;;  %v2000_v51 = vsel %vm1744_vm15, %v1566_v42, %v1872_v47  ;;  %v1576_v52 = vadd.f32 %v20126_v55, %v16504_v49  ;;  %v1570_v53 = vpop.f32.mrb[117].mxu0  ;;  %16610 = vmatmul.mubr.msk.f32.gmra.mrb[24].mxu1 %vm2077_vm4, %v2403_v50  ;;  %vm8839_vm15 = vcmask 517120  }
 0x1db   : > { %v1999_v54 = vsel %vm1743_vm0, %v1561_v45, %v1871_v48  ;;  %v1571_v56 = vadd.f32 %v20126_v55, %v1570_v53 }
 0x1dc   : > { %v2070_v61 = vmax.f32 %v1999_v54, %v2000_v51  ;;  %vm1746_vm2 = vcmp.ge.f32.partialorder %v1576_v52, 0.0  ;;  %v1874_v57 = vmul.f32 0.2, %v1576_v52 }
 0x1dd   : > { %vm1745_vm3 = vcmp.ge.f32.partialorder %v1571_v56, 0.0  ;;  %v1873_v58 = vmul.f32 0.2, %v1571_v56  ;;  %v16507_v60 = vpop.f32.mrb[118].mxu0  ;;  %v2404_v62 = vld [vmem:[#allocation2 + $0x3a1] sm:$0xff] }
 0x1de   : > { %2273 = vst.msk [vmem:[#allocation2 + $0x3c1] sm:$0xff] %vm2077_vm4, %v2070_v61  ;;  %v2002_v63 = vsel %vm1746_vm2, %v1576_v52, %v1874_v57  ;;  %v1586_v0 = vadd.f32 %v20126_v55, %v16507_v60  ;;  %v1580_v1 = vpop.f32.mrb[119].mxu0  ;;  %16612 = vmatprep.mubr.msk.f32.mxu1 %vm2077_vm4, %v2404_v62  ;;  %v2280_v61 = vld [vmem:[#allocation2] sm:$0xff]  ;;  %v14311_v60 = vld [vmem:[%s24263_s3 + $0x50] sm:$0xff]  ;;  %v14312_v62 = vld [vmem:[%s24263_s3 + $0x58] sm:$0xff] }
 0x1df   : > { %v2001_v2 = vsel %vm1745_vm3, %v1571_v56, %v1873_v58  ;;  %v1581_v3 = vadd.f32 %v20126_v55, %v1580_v1 }
 0x1e0   : > { %v2071_v26 = vmax.f32 %v2001_v2, %v2002_v63  ;;  %vm1748_vm5 = vcmp.ge.f32.partialorder %v1586_v0, 0.0  ;;  %v1876_v4 = vmul.f32 0.2, %v1586_v0  ;;  %v20283_v2 = vld [vmem:[#allocation2 + $0x10] sm:$0xff] }
 0x1e1   : > { %vm1747_vm6 = vcmp.ge.f32.partialorder %v1581_v3, 0.0  ;;  %v1875_v6 = vmul.f32 0.2, %v1581_v3  ;;  %v16510_v7 = vpop.f32.mrb[120].mxu0  ;;  %v2405_v8 = vld [vmem:[#allocation2 + $0x3b1] sm:$0xff] }
 0x1e2   : > { %2274 = vst.msk [vmem:[#allocation2 + $0x3d1] sm:$0xff] %vm2077_vm4, %v2071_v26  ;;  %v2004_v9 = vsel %vm1748_vm5, %v1586_v0, %v1876_v4  ;;  %v1596_v10 = vadd.f32 %v20126_v55, %v16510_v7  ;;  %v1590_v11 = vpop.f32.mrb[121].mxu0  ;;  %16613 = vmatmul.mubr.msk.f32.gmra.mrb[26].mxu1 %vm2077_vm4, %v2405_v8  ;;  %v18066_v0 = vpack.c.bf16 %v14312_v62, %v14311_v60  ;;  %v14378_v26 = vld [vmem:[%s24263_s3 + $0x68] sm:$0xff]  ;;  %v20451_v60 = vld [vmem:[#allocation2 + $0x1f0] sm:$0xff] }
 0x1e3   : > { %v2003_v12 = vsel %vm1747_vm6, %v1581_v3, %v1875_v6  ;;  %v1591_v13 = vadd.f32 %v20126_v55, %v1590_v11  ;;  %v14377_v3 = vld [vmem:[%s24263_s3 + $0x60] sm:$0xff] }
 0x1e4   : > { %v2072_v14 = vmax.f32 %v2003_v12, %v2004_v9  ;;  %vm1750_vm7 = vcmp.ge.f32.partialorder %v1596_v10, 0.0  ;;  %v1878_v15 = vmul.f32 0.2, %v1596_v10  ;;  %v20295_v6 = vld [vmem:[#allocation2 + $0x20] sm:$0xff]  ;;  %v20300_v7 = vpack.c.bf16 %v14378_v26, %v14377_v3  ;;  %v20304_v9 = vld [vmem:[#allocation2 + $0x30] sm:$0xff] }
 0x1e5   : > { %vm1749_vm8 = vcmp.ge.f32.partialorder %v1591_v13, 0.0  ;;  %v1877_v16 = vmul.f32 0.2, %v1591_v13  ;;  %v16513_v17 = vpop.f32.mrb[122].mxu0  ;;  %v2406_v18 = vld [vmem:[#allocation2 + $0x3c1] sm:$0xff]  ;;  %v20317_v12 = vld [vmem:[#allocation2 + $0x50] sm:$0xff] }
 0x1e6   : > { %2275 = vst.msk [vmem:[#allocation2 + $0x3e1] sm:$0xff] %vm2077_vm4, %v2072_v14  ;;  %v2006_v19 = vsel %vm1750_vm7, %v1596_v10, %v1878_v15  ;;  %v1606_v20 = vadd.f32 %v20126_v55, %v16513_v17  ;;  %v1600_v21 = vpop.f32.mrb[123].mxu0  ;;  %16615 = vmatprep.mubr.msk.f32.mxu1 %vm2077_vm4, %v2406_v18  ;;  %v20310_v11 = vld [vmem:[#allocation2 + $0x40] sm:$0xff] }
 0x1e7   : > { %v2005_v22 = vsel %vm1749_vm8, %v1591_v13, %v1877_v16  ;;  %v1601_v23 = vadd.f32 %v20126_v55, %v1600_v21  ;;  %v20323_v14 = vld [vmem:[#allocation2 + $0x60] sm:$0xff]  ;;  %v20329_v16 = vld [vmem:[#allocation2 + $0x70] sm:$0xff] }
 0x1e8   : > { %v2073_v24 = vmax.f32 %v2005_v22, %v2006_v19  ;;  %vm1752_vm9 = vcmp.ge.f32.partialorder %v1606_v20, 0.0  ;;  %v1880_v25 = vmul.f32 0.2, %v1606_v20  ;;  %v20335_v18 = vld [vmem:[#allocation2 + $0x80] sm:$0xff] }
 0x1e9   : > { %vm1751_vm10 = vcmp.ge.f32.partialorder %v1601_v23, 0.0  ;;  %v1879_v27 = vmul.f32 0.2, %v1601_v23  ;;  %v16516_v28 = vpop.f32.mrb[124].mxu0  ;;  %v2407_v29 = vld [vmem:[#allocation2 + $0x3d1] sm:$0xff]  ;;  %v20347_v22 = vld [vmem:[#allocation2 + $0xa0] sm:$0xff] }
 0x1ea   : > { %2276 = vst.msk [vmem:[#allocation2 + $0x3f1] sm:$0xff] %vm2077_vm4, %v2073_v24  ;;  %v2008_v30 = vsel %vm1752_vm9, %v1606_v20, %v1880_v25  ;;  %v1616_v31 = vadd.f32 %v20126_v55, %v16516_v28  ;;  %v1610_v32 = vpop.f32.mrb[125].mxu0  ;;  %16616 = vmatmul.mubr.msk.f32.gmra.mrb[28].mxu1 %vm2077_vm4, %v2407_v29  ;;  %v20341_v20 = vld [vmem:[#allocation2 + $0x90] sm:$0xff]  ;;  %v20355_v24 = vld [vmem:[#allocation2 + $0xc0] sm:$0xff] }
 0x1eb   : > { %v2007_v33 = vsel %vm1751_vm10, %v1601_v23, %v1879_v27  ;;  %v1611_v34 = vadd.f32 %v20126_v55, %v1610_v32  ;;  %v20351_v23 = vld [vmem:[#allocation2 + $0xb0] sm:$0xff]  ;;  %v20367_v29 = vld [vmem:[#allocation2 + $0xe0] sm:$0xff] }
 0x1ec   : > { %v2074_v35 = vmax.f32 %v2007_v33, %v2008_v30  ;;  %vm1754_vm11 = vcmp.ge.f32.partialorder %v1616_v31, 0.0  ;;  %v1882_v36 = vmul.f32 0.2, %v1616_v31  ;;  %v20361_v27 = vld [vmem:[#allocation2 + $0xd0] sm:$0xff]  ;;  %v20464_v26 = vld [vmem:[#allocation2 + $0x240] sm:$0xff] }
 0x1ed   : > { %vm1753_vm12 = vcmp.ge.f32.partialorder %v1611_v34, 0.0  ;;  %v1881_v37 = vmul.f32 0.2, %v1611_v34  ;;  %v2408_v38 = vld [vmem:[#allocation2 + $0x3e1] sm:$0xff]  ;;  %v16519_v39 = vpop.f32.mrb[126].mxu0  ;;  %v20371_v30 = vld [vmem:[#allocation2 + $0xf0] sm:$0xff] }
 0x1ee   : > { %2277 = vst.msk [vmem:[#allocation2 + $0x401] sm:$0xff] %vm2077_vm4, %v2074_v35  ;;  %v2010_v40 = vsel %vm1754_vm11, %v1616_v31, %v1882_v36  ;;  %16618 = vmatprep.mubr.msk.f32.mxu1 %vm2077_vm4, %v2408_v38  ;;  %v1626_v41 = vadd.f32 %v20126_v55, %v16519_v39  ;;  %v1620_v42 = vpop.f32.mrb[127].mxu0  ;;  %v20375_v31 = vld [vmem:[#allocation2 + $0x100] sm:$0xff]  ;;  %v20381_v33 = vld [vmem:[#allocation2 + $0x110] sm:$0xff] }
 0x1ef   : > { %v2009_v43 = vsel %vm1753_vm12, %v1611_v34, %v1881_v37  ;;  %v1621_v44 = vadd.f32 %v20126_v55, %v1620_v42  ;;  %v20387_v35 = vld [vmem:[#allocation2 + $0x120] sm:$0xff]  ;;  %v20391_v36 = vld [vmem:[#allocation2 + $0x130] sm:$0xff] }
 0x1f0   : > { %v2075_v45 = vmax.f32 %v2009_v43, %v2010_v40  ;;  %vm1756_vm13 = vcmp.ge.f32.partialorder %v1626_v41, 0.0  ;;  %v1884_v46 = vmul.f32 0.2, %v1626_v41  ;;  %v20395_v37 = vld [vmem:[#allocation2 + $0x140] sm:$0xff]  ;;  %v20401_v39 = vld [vmem:[#allocation2 + $0x150] sm:$0xff] }
 0x1f1   : > { %vm1755_vm1 = vcmp.ge.f32.partialorder %v1621_v44, 0.0  ;;  %v1883_v47 = vmul.f32 0.2, %v1621_v44  ;;  %v20257_v48 = vpop.f32.mrb[128].mxu0  ;;  %v2409_v49 = vld [vmem:[#allocation2 + $0x3f1] sm:$0xff]  ;;  %v20415_v43 = vld [vmem:[#allocation2 + $0x180] sm:$0xff] }
 0x1f2   : > { %24427 = vst [vmem:[#allocation5_spill] sm:$0xff] %v20257_v48  ;;  %2278 = vst.msk [vmem:[#allocation2 + $0x411] sm:$0xff] %vm2077_vm4, %v2075_v45  ;;  %v2012_v50 = vsel %vm1756_vm13, %v1626_v41, %v1884_v46  ;;  %v20260_v51 = vpop.f32.mrb[129].mxu0  ;;  %16619 = vmatmul.mubr.msk.f32.gmra.mrb[30].mxu1 %vm2077_vm4, %v2409_v49  ;;  %v20407_v41 = vld [vmem:[#allocation2 + $0x160] sm:$0xff]  ;;  %v20411_v42 = vld [vmem:[#allocation2 + $0x170] sm:$0xff] }
 0x1f3   : > { %24428 = vst [vmem:[#allocation6_spill] sm:$0xff] %v20260_v51  ;;  %v2011_v52 = vsel %vm1755_vm1, %v1621_v44, %v1883_v47  ;;  %v20421_v45 = vld [vmem:[#allocation2 + $0x190] sm:$0xff]  ;;  %v20427_v47 = vld [vmem:[#allocation2 + $0x1a0] sm:$0xff] }
 0x1f4   : > { %v2076_v53 = vmax.f32 %v2011_v52, %v2012_v50  ;;  %v20431_v49 = vld [vmem:[#allocation2 + $0x1b0] sm:$0xff]  ;;  %v20435_v50 = vld [vmem:[#allocation2 + $0x1c0] sm:$0xff] }
 0x1f5   : > { %v20263_v54 = vpop.f32.mrb[130].mxu0  ;;  %v2410_v55 = vld [vmem:[#allocation2 + $0x401] sm:$0xff] }
 0x1f6   : > { %24429 = vst [vmem:[#allocation7_spill] sm:$0xff] %v20263_v54  ;;  %2279 = vst.msk [vmem:[#allocation2 + $0x421] sm:$0xff] %vm2077_vm4, %v2076_v53  ;;  %v20266_v56 = vpop.f32.mrb[131].mxu0  ;;  %16621 = vmatprep.mubr.msk.f32.mxu1 %vm2077_vm4, %v2410_v55  ;;  %v20441_v53 = vld [vmem:[#allocation2 + $0x1d0] sm:$0xff]  ;;  %v20580_v54 = vld [vmem:[#allocation2 + $0x400] sm:$0xff] }
 0x1f7   : > { %24430 = vst [vmem:[#allocation8_spill] sm:$0xff] %v20266_v56  ;;  %v20576_v56 = vld [vmem:[#allocation2 + $0x3f0] sm:$0xff]  ;;  %24463 = vst [vmem:[#allocation41_spill] sm:$0xff] %v20580_v54  ;;  %v3571_v51 = vld [vmem:[#allocation2 + $0x2] sm:$0xff] }
 0x1f8   : > { %24462 = vst [vmem:[#allocation40_spill] sm:$0xff] %v20576_v56 }
 0x1f9   : > { %v20269_v57 = vpop.f32.mrb[132].mxu0  ;;  %v2411_v58 = vld [vmem:[#allocation2 + $0x411] sm:$0xff] }
 0x1fa   : > { %24431 = vst [vmem:[#allocation9_spill] sm:$0xff] %v20269_v57  ;;  %v20277_v63 = vpop.f32.mrb[133].mxu0  ;;  %16622 = vmatmul.mubr.msk.f32.gmra.mrb[32].mxu1 %vm2077_vm4, %v2411_v58  ;;  %v2312_v58 = vld [vmem:[#allocation2 + $0x220] sm:$0xff]  ;;  %v20584_v48 = vld [vmem:[#allocation2 + $0x410] sm:$0xff] }
 0x1fb   : > { %24432 = vst [vmem:[#allocation10_spill] sm:$0xff] %v20277_v63  ;;  %16632 = vmatprep.mubr.msk.f32.mxu1 %vm2077_vm4, %v2280_v61  ;;  %v20447_v61 = vld [vmem:[#allocation2 + $0x1e0] sm:$0xff]  ;;  %v20568_v63 = vld [vmem:[#allocation2 + $0x3d0] sm:$0xff] }
 0x1fc   : > { %24460 = vst [vmem:[#allocation38_spill] sm:$0xff] %v20568_v63  ;;  %v20572_v57 = vld [vmem:[#allocation2 + $0x3e0] sm:$0xff] }
 0x1fd   : > { %v20281_v1 = vpop.f32.mrb[134].mxu0  ;;  %24461 = vst [vmem:[#allocation39_spill] sm:$0xff] %v20572_v57 }
 0x1fe   : > { %24433 = vst [vmem:[#allocation11_spill] sm:$0xff] %v20281_v1  ;;  %v20291_v4 = vpop.f32.mrb[135].mxu0  ;;  %16633 = vmatmul.mubr.msk.f32.vlgmr.msra.gmra.mrb[34].mxu1 %vm2077_vm4, %v20283_v2  ;;  %v20564_v1 = vld [vmem:[#allocation2 + $0x3c0] sm:$0xff] }
 0x1ff   : > { %24434 = vst [vmem:[#allocation12_spill] sm:$0xff] %v20291_v4  ;;  %18065 = vmatpush3.bf16.msra.mxu1 %v20141_v5  ;;  %16635 = vmatprep.mubr.msk.f32.mxu1 %vm2077_vm4, %v20295_v6  ;;  %v20560_v4 = vld [vmem:[#allocation2 + $0x3b0] sm:$0xff]  ;;  %24459 = vst [vmem:[#allocation37_spill] sm:$0xff] %v20564_v1 }
 0x200   : > { %18067 = vmatprep.subr.bf16.mxu1 %v18066_v0  ;;  %24458 = vst [vmem:[#allocation36_spill] sm:$0xff] %v20560_v4 }
 0x201   : > { %v20302_v8 = vpop.f32.mrb[136].mxu0 }
 0x202   : > { %24435 = vst [vmem:[#allocation13_spill] sm:$0xff] %v20302_v8  ;;  %v20306_v10 = vpop.f32.mrb[137].mxu0  ;;  %16636 = vmatmul.mubr.msk.f32.gmra.mrb[36].mxu1 %vm2077_vm4, %v20304_v9  ;;  %v20556_v8 = vld [vmem:[#allocation2 + $0x3a0] sm:$0xff] }
 0x203   : > { %24436 = vst [vmem:[#allocation14_spill] sm:$0xff] %v20306_v10  ;;  %16638 = vmatprep.mubr.msk.f32.mxu1 %vm2077_vm4, %v20310_v11  ;;  %18069 = vmatpush3.bf16.msra.mxu1 %v18066_v0  ;;  %v20458_v0 = vld [vmem:[#allocation2 + $0x230] sm:$0xff]  ;;  %24457 = vst [vmem:[#allocation35_spill] sm:$0xff] %v20556_v8 }
 0x204   : > { %18071 = vmatprep.subr.bf16.mxu1 %v20300_v7  ;;  %v20552_v10 = vld [vmem:[#allocation2 + $0x390] sm:$0xff] }
 0x205   : > { %v20315_v5 = vpop.f32.mrb[138].mxu0 }
 0x206   : > { %24437 = vst [vmem:[#allocation15_spill] sm:$0xff] %v20315_v5  ;;  %v20319_v13 = vpop.f32.mrb[139].mxu0  ;;  %16639 = vmatmul.mubr.msk.f32.gmra.mrb[38].mxu1 %vm2077_vm4, %v20317_v12  ;;  %v20548_v5 = vld [vmem:[#allocation2 + $0x380] sm:$0xff] }
 0x207   : > { %24438 = vst [vmem:[#allocation16_spill] sm:$0xff] %v20319_v13  ;;  %16641 = vmatprep.mubr.msk.f32.mxu1 %vm2077_vm4, %v20323_v14  ;;  %v20544_v13 = vld [vmem:[#allocation2 + $0x370] sm:$0xff] }
 0x209   : > { %v20327_v15 = vpop.f32.mrb[140].mxu0 }
 0x20a   : > { %24439 = vst [vmem:[#allocation17_spill] sm:$0xff] %v20327_v15  ;;  %v20331_v17 = vpop.f32.mrb[141].mxu0  ;;  %16642 = vmatmul.mubr.msk.f32.gmra.mrb[40].mxu1 %vm2077_vm4, %v20329_v16  ;;  %v20540_v15 = vld [vmem:[#allocation2 + $0x360] sm:$0xff] }
 0x20b   : > { %24440 = vst [vmem:[#allocation18_spill] sm:$0xff] %v20331_v17  ;;  %16644 = vmatprep.mubr.msk.f32.mxu1 %vm2077_vm4, %v20335_v18  ;;  %v20536_v17 = vld [vmem:[#allocation2 + $0x350] sm:$0xff] }
 0x20d   : > { %v20339_v19 = vpop.f32.mrb[142].mxu0 }
 0x20e   : > { %24441 = vst [vmem:[#allocation19_spill] sm:$0xff] %v20339_v19  ;;  %v20343_v21 = vpop.f32.mrb[143].mxu0  ;;  %16645 = vmatmul.mubr.msk.f32.gmra.mrb[42].mxu1 %vm2077_vm4, %v20341_v20  ;;  %v20532_v19 = vld [vmem:[#allocation2 + $0x340] sm:$0xff] }
 0x20f   : > { %24442 = vst [vmem:[#allocation20_spill] sm:$0xff] %v20343_v21  ;;  %16647 = vmatprep.mubr.msk.f32.mxu1 %vm2077_vm4, %v20347_v22  ;;  %v20528_v21 = vld [vmem:[#allocation2 + $0x330] sm:$0xff] }
 0x212   : > { %16648 = vmatmul.mubr.msk.f32.gmra.mrb[44].mxu1 %vm2077_vm4, %v20351_v23 }
 0x213   : > { %16650 = vmatprep.mubr.msk.f32.mxu1 %vm2077_vm4, %v20355_v24 }
 0x215   : > { %v20359_v25 = vpop.f32.mrb[144].mxu0 }
 0x216   : > { %24443 = vst [vmem:[#allocation21_spill] sm:$0xff] %v20359_v25  ;;  %v20363_v28 = vpop.f32.mrb[145].mxu0  ;;  %16651 = vmatmul.mubr.msk.f32.gmra.mrb[46].mxu1 %vm2077_vm4, %v20361_v27  ;;  %v20524_v25 = vld [vmem:[#allocation2 + $0x320] sm:$0xff] }
 0x217   : > { %24444 = vst [vmem:[#allocation22_spill] sm:$0xff] %v20363_v28  ;;  %16653 = vmatprep.mubr.msk.f32.mxu1 %vm2077_vm4, %v20367_v29  ;;  %v20520_v28 = vld [vmem:[#allocation2 + $0x310] sm:$0xff] }
 0x21a   : > { %16654 = vmatmul.mubr.msk.f32.gmra.mrb[48].mxu1 %vm2077_vm4, %v20371_v30 }
 0x21b   : > { %16656 = vmatprep.mubr.msk.f32.mxu1 %vm2077_vm4, %v20375_v31 }
 0x21d   : > { %v20379_v32 = vpop.f32.mrb[146].mxu0 }
 0x21e   : > { %24445 = vst [vmem:[#allocation23_spill] sm:$0xff] %v20379_v32  ;;  %v20383_v34 = vpop.f32.mrb[147].mxu0  ;;  %16657 = vmatmul.mubr.msk.f32.gmra.mrb[50].mxu1 %vm2077_vm4, %v20381_v33  ;;  %v20516_v32 = vld [vmem:[#allocation2 + $0x300] sm:$0xff] }
 0x21f   : > { %24446 = vst [vmem:[#allocation24_spill] sm:$0xff] %v20383_v34  ;;  %16659 = vmatprep.mubr.msk.f32.mxu1 %vm2077_vm4, %v20387_v35  ;;  %v20512_v34 = vld [vmem:[#allocation2 + $0x2f0] sm:$0xff] }
 0x222   : > { %16660 = vmatmul.mubr.msk.f32.gmra.mrb[52].mxu1 %vm2077_vm4, %v20391_v36 }
 0x223   : > { %16662 = vmatprep.mubr.msk.f32.mxu1 %vm2077_vm4, %v20395_v37 }
 0x225   : > { %v20399_v38 = vpop.f32.mrb[148].mxu0 }
 0x226   : > { %24447 = vst [vmem:[#allocation25_spill] sm:$0xff] %v20399_v38  ;;  %v20403_v40 = vpop.f32.mrb[149].mxu0  ;;  %16663 = vmatmul.mubr.msk.f32.gmra.mrb[54].mxu1 %vm2077_vm4, %v20401_v39  ;;  %v20508_v38 = vld [vmem:[#allocation2 + $0x2e0] sm:$0xff] }
 0x227   : > { %24448 = vst [vmem:[#allocation26_spill] sm:$0xff] %v20403_v40  ;;  %16665 = vmatprep.mubr.msk.f32.mxu1 %vm2077_vm4, %v20407_v41  ;;  %v20504_v40 = vld [vmem:[#allocation2 + $0x2d0] sm:$0xff] }
 0x22a   : > { %16666 = vmatmul.mubr.msk.f32.gmra.mrb[56].mxu1 %vm2077_vm4, %v20411_v42 }
 0x22b   : > { %16668 = vmatprep.mubr.msk.f32.mxu1 %vm2077_vm4, %v20415_v43 }
 0x22d   : > { %v20419_v44 = vpop.f32.mrb[150].mxu0 }
 0x22e   : > { %24449 = vst [vmem:[#allocation27_spill] sm:$0xff] %v20419_v44  ;;  %v20423_v46 = vpop.f32.mrb[151].mxu0  ;;  %16669 = vmatmul.mubr.msk.f32.gmra.mrb[58].mxu1 %vm2077_vm4, %v20421_v45  ;;  %v20492_v44 = vld [vmem:[#allocation2 + $0x2a0] sm:$0xff] }
 0x22f   : > { %24450 = vst [vmem:[#allocation28_spill] sm:$0xff] %v20423_v46  ;;  %16671 = vmatprep.mubr.msk.f32.mxu1 %vm2077_vm4, %v20427_v47  ;;  %v20488_v46 = vld [vmem:[#allocation2 + $0x290] sm:$0xff] }
 0x232   : > { %16672 = vmatmul.mubr.msk.f32.gmra.mrb[60].mxu1 %vm2077_vm4, %v20431_v49 }
 0x233   : > { %16674 = vmatprep.mubr.msk.f32.mxu1 %vm2077_vm4, %v20435_v50 }
 0x235   : > { %v20439_v52 = vpop.f32.mrb[152].mxu0 }
 0x236   : > { %24451 = vst [vmem:[#allocation29_spill] sm:$0xff] %v20439_v52  ;;  %v20443_v55 = vpop.f32.mrb[153].mxu0  ;;  %16675 = vmatmul.mubr.msk.f32.gmra.mrb[62].mxu1 %vm2077_vm4, %v20441_v53  ;;  %v20484_v52 = vld [vmem:[#allocation2 + $0x280] sm:$0xff] }
 0x237   : > { %24452 = vst [vmem:[#allocation30_spill] sm:$0xff] %v20443_v55  ;;  %16677 = vmatprep.mubr.msk.f32.mxu1 %vm2077_vm4, %v20447_v61 }
 0x23a   : > { %16678 = vmatmul.mubr.msk.f32.gmra.mrb[0].mxu1 %vm2077_vm4, %v20451_v60 }
 0x23b   : > { %16680 = vmatprep.mubr.msk.f32.mxu1 %vm2077_vm4, %v2312_v58  ;;  %v20472_v58 = vld [vmem:[#allocation2 + $0x260] sm:$0xff] }
 0x23d   : > { %v20456_v62 = vpop.f32.mrb[154].mxu0 }
 0x23e   : > { %24453 = vst [vmem:[#allocation31_spill] sm:$0xff] %v20456_v62  ;;  %v20460_v3 = vpop.f32.mrb[155].mxu0  ;;  %16681 = vmatmul.mubr.msk.f32.gmra.mrb[2].mxu1 %vm2077_vm4, %v20458_v0 }
 0x23f   : > { %24454 = vst [vmem:[#allocation32_spill] sm:$0xff] %v20460_v3  ;;  %16683 = vmatprep.mubr.msk.f32.mxu1 %vm2077_vm4, %v20464_v26  ;;  %v20478_v3 = vld [vmem:[#allocation2 + $0x270] sm:$0xff] }
 0x242   : > { %16684 = vmatmul.mubr.msk.f32.gmra.mrb[4].mxu1 %vm2077_vm4, %v20468_v59 }
 0x243   : > { %16686 = vmatprep.mubr.msk.f32.mxu1 %vm2077_vm4, %v20472_v58 }
 0x245   : > { %v20476_v62 = vpop.f32.mrb[156].mxu0 }
 0x246   : > { %24455 = vst [vmem:[#allocation33_spill] sm:$0xff] %v20476_v62  ;;  %v20480_v55 = vpop.f32.mrb[157].mxu0  ;;  %16687 = vmatmul.mubr.msk.f32.gmra.mrb[6].mxu1 %vm2077_vm4, %v20478_v3  ;;  %v20496_v62 = vld [vmem:[#allocation2 + $0x2b0] sm:$0xff] }
 0x247   : > { %24456 = vst [vmem:[#allocation34_spill] sm:$0xff] %v20480_v55  ;;  %16689 = vmatprep.mubr.msk.f32.mxu1 %vm2077_vm4, %v20484_v52  ;;  %v20500_v55 = vld [vmem:[#allocation2 + $0x2c0] sm:$0xff] }
 0x24a   : > { %16690 = vmatmul.mubr.msk.f32.gmra.mrb[8].mxu1 %vm2077_vm4, %v20488_v46 }
 0x24b   : > { %16692 = vmatprep.mubr.msk.f32.mxu1 %vm2077_vm4, %v20492_v44 }
 0x24e   : > { %16693 = vmatmul.mubr.msk.f32.gmra.mrb[10].mxu1 %vm2077_vm4, %v20496_v62 }
 0x24f   : > { %16695 = vmatprep.mubr.msk.f32.mxu1 %vm2077_vm4, %v20500_v55 }
 0x252   : > { %16696 = vmatmul.mubr.msk.f32.gmra.mrb[12].mxu1 %vm2077_vm4, %v20504_v40 }
 0x253   : > { %16698 = vmatprep.mubr.msk.f32.mxu1 %vm2077_vm4, %v20508_v38 }
 0x256   : > { %16699 = vmatmul.mubr.msk.f32.gmra.mrb[14].mxu1 %vm2077_vm4, %v20512_v34 }
 0x257   : > { %16701 = vmatprep.mubr.msk.f32.mxu1 %vm2077_vm4, %v20516_v32 }
 0x25a   : > { %16702 = vmatmul.mubr.msk.f32.gmra.mrb[16].mxu1 %vm2077_vm4, %v20520_v28 }
 0x25b   : > { %16704 = vmatprep.mubr.msk.f32.mxu1 %vm2077_vm4, %v20524_v25 }
 0x25e   : > { %16705 = vmatmul.mubr.msk.f32.gmra.mrb[18].mxu1 %vm2077_vm4, %v20528_v21 }
 0x25f   : > { %16707 = vmatprep.mubr.msk.f32.mxu1 %vm2077_vm4, %v20532_v19 }
 0x262   : > { %16708 = vmatmul.mubr.msk.f32.gmra.mrb[20].mxu1 %vm2077_vm4, %v20536_v17 }
 0x263   : > { %16710 = vmatprep.mubr.msk.f32.mxu1 %vm2077_vm4, %v20540_v15 }
 0x266   : > { %16711 = vmatmul.mubr.msk.f32.gmra.mrb[22].mxu1 %vm2077_vm4, %v20544_v13 }
 0x267   : > { %16713 = vmatprep.mubr.msk.f32.mxu1 %vm2077_vm4, %v20548_v5 }
 0x26a   : > { %16714 = vmatmul.mubr.msk.f32.gmra.mrb[24].mxu1 %vm2077_vm4, %v20552_v10 }
 0x26b   : > { %16716 = vmatprep.mubr.msk.f32.mxu1 %vm2077_vm4, %v20556_v8  ;;  %v20605_v8 = vld [vmem:[#allocation2 + $0x22] sm:$0xff] }
 0x26e   : > { %16717 = vmatmul.mubr.msk.f32.gmra.mrb[26].mxu1 %vm2077_vm4, %v20560_v4  ;;  %v14446_v4 = vld [vmem:[%s24263_s3 + $0x88] sm:$0xff] }
 0x26f   : > { %16719 = vmatprep.mubr.msk.f32.mxu1 %vm2077_vm4, %v20564_v1  ;;  %v20595_v1 = vld [vmem:[#allocation2 + $0x12] sm:$0xff] }
 0x272   : > { %16720 = vmatmul.mubr.msk.f32.gmra.mrb[28].mxu1 %vm2077_vm4, %v20568_v63  ;;  %v14379_v63 = vld [vmem:[%s24263_s3 + $0x70] sm:$0xff] }
 0x273   : > { %16722 = vmatprep.mubr.msk.f32.mxu1 %vm2077_vm4, %v20572_v57  ;;  %v14380_v57 = vld [vmem:[%s24263_s3 + $0x78] sm:$0xff] }
 0x276   : > { %16723 = vmatmul.mubr.msk.f32.gmra.mrb[30].mxu1 %vm2077_vm4, %v20576_v56  ;;  %v18074_v56 = vpack.c.bf16 %v14380_v57, %v14379_v63  ;;  %v20612_v57 = vld [vmem:[#allocation2 + $0x32] sm:$0xff]  ;;  %v20616_v63 = vld [vmem:[#allocation2 + $0x42] sm:$0xff] }
 0x277   : > { %16725 = vmatprep.mubr.msk.f32.mxu1 %vm2077_vm4, %v20580_v54  ;;  %v14445_v54 = vld [vmem:[%s24263_s3 + $0x80] sm:$0xff]  ;;  %24464 = vst [vmem:[#allocation42_spill] sm:$0xff] %v20612_v57  ;;  %24465 = vst [vmem:[#allocation43_spill] sm:$0xff] %v20616_v63 }
 0x27a   : > { %16726 = vmatmul.mubr.msk.f32.gmra.mrb[32].mxu1 %vm2077_vm4, %v20584_v48 }
 0x27b   : > { %16736 = vmatprep.mubr.msk.f32.mxu1 %vm2077_vm4, %v3571_v51  ;;  %v20610_v51 = vpack.c.bf16 %v14446_v4, %v14445_v54  ;;  %v20625_v54 = vld [vmem:[#allocation2 + $0x62] sm:$0xff]  ;;  %v20629_v4 = vld [vmem:[#allocation2 + $0x72] sm:$0xff] }
 0x27c   : > { %24467 = vst [vmem:[#allocation45_spill] sm:$0xff] %v20625_v54  ;;  %24468 = vst [vmem:[#allocation46_spill] sm:$0xff] %v20629_v4 }
 0x27e   : > { %16737 = vmatmul.mubr.msk.f32.vlgmr.msra.gmra.mrb[34].mxu1 %vm2077_vm4, %v20595_v1 }
 0x27f   : > { %18073 = vmatpush3.bf16.msra.mxu1 %v20300_v7  ;;  %16739 = vmatprep.mubr.msk.f32.mxu1 %vm2077_vm4, %v20605_v8  ;;  %v20621_v7 = vld [vmem:[#allocation2 + $0x52] sm:$0xff] }
 0x280   : > { %18075 = vmatprep.subr.bf16.mxu1 %v18074_v56  ;;  %24466 = vst [vmem:[#allocation44_spill] sm:$0xff] %v20621_v7 }
 0x282   : > { %16740 = vmatmul.mubr.msk.f32.gmra.mrb[36].mxu1 %vm2077_vm4, %v20612_v57  ;;  %v20633_v57 = vld [vmem:[#allocation2 + $0x82] sm:$0xff] }
 0x283   : > { %16742 = vmatprep.mubr.msk.f32.mxu1 %vm2077_vm4, %v20616_v63  ;;  %18077 = vmatpush3.bf16.msra.mxu1 %v18074_v56  ;;  %24469 = vst [vmem:[#allocation47_spill] sm:$0xff] %v20633_v57  ;;  %v20637_v56 = vld [vmem:[#allocation2 + $0x92] sm:$0xff] }
 0x284   : > { %18079 = vmatprep.subr.bf16.mxu1 %v20610_v51  ;;  %24470 = vst [vmem:[#allocation48_spill] sm:$0xff] %v20637_v56  ;;  %v20725_v63 = vld [vmem:[#allocation2 + $0x1f2] sm:$0xff] }
 0x285   : > { %24492 = vst [vmem:[#allocation70_spill] sm:$0xff] %v20725_v63 }
 0x286   : > { %16743 = vmatmul.mubr.msk.f32.gmra.mrb[38].mxu1 %vm2077_vm4, %v20621_v7  ;;  %v20641_v7 = vld [vmem:[#allocation2 + $0xa2] sm:$0xff] }
 0x287   : > { %16745 = vmatprep.mubr.msk.f32.mxu1 %vm2077_vm4, %v20625_v54  ;;  %24471 = vst [vmem:[#allocation49_spill] sm:$0xff] %v20641_v7  ;;  %v20645_v54 = vld [vmem:[#allocation2 + $0xb2] sm:$0xff] }
 0x288   : > { %24472 = vst [vmem:[#allocation50_spill] sm:$0xff] %v20645_v54 }
 0x28a   : > { %16746 = vmatmul.mubr.msk.f32.gmra.mrb[40].mxu1 %vm2077_vm4, %v20629_v4  ;;  %v20649_v4 = vld [vmem:[#allocation2 + $0xc2] sm:$0xff] }
 0x28b   : > { %16748 = vmatprep.mubr.msk.f32.mxu1 %vm2077_vm4, %v20633_v57  ;;  %24473 = vst [vmem:[#allocation51_spill] sm:$0xff] %v20649_v4  ;;  %v20653_v57 = vld [vmem:[#allocation2 + $0xd2] sm:$0xff] }
 0x28c   : > { %24474 = vst [vmem:[#allocation52_spill] sm:$0xff] %v20653_v57 }
 0x28e   : > { %16749 = vmatmul.mubr.msk.f32.gmra.mrb[42].mxu1 %vm2077_vm4, %v20637_v56  ;;  %v20657_v56 = vld [vmem:[#allocation2 + $0xe2] sm:$0xff] }
 0x28f   : > { %16751 = vmatprep.mubr.msk.f32.mxu1 %vm2077_vm4, %v20641_v7  ;;  %24475 = vst [vmem:[#allocation53_spill] sm:$0xff] %v20657_v56  ;;  %v20661_v7 = vld [vmem:[#allocation2 + $0xf2] sm:$0xff] }
 0x290   : > { %24476 = vst [vmem:[#allocation54_spill] sm:$0xff] %v20661_v7 }
 0x292   : > { %16752 = vmatmul.mubr.msk.f32.gmra.mrb[44].mxu1 %vm2077_vm4, %v20645_v54  ;;  %v20665_v54 = vld [vmem:[#allocation2 + $0x102] sm:$0xff] }
 0x293   : > { %16754 = vmatprep.mubr.msk.f32.mxu1 %vm2077_vm4, %v20649_v4  ;;  %24477 = vst [vmem:[#allocation55_spill] sm:$0xff] %v20665_v54  ;;  %v20669_v4 = vld [vmem:[#allocation2 + $0x112] sm:$0xff] }
 0x294   : > { %24478 = vst [vmem:[#allocation56_spill] sm:$0xff] %v20669_v4 }
 0x296   : > { %16755 = vmatmul.mubr.msk.f32.gmra.mrb[46].mxu1 %vm2077_vm4, %v20653_v57  ;;  %v20673_v57 = vld [vmem:[#allocation2 + $0x122] sm:$0xff] }
 0x297   : > { %16757 = vmatprep.mubr.msk.f32.mxu1 %vm2077_vm4, %v20657_v56  ;;  %24479 = vst [vmem:[#allocation57_spill] sm:$0xff] %v20673_v57  ;;  %v20677_v56 = vld [vmem:[#allocation2 + $0x132] sm:$0xff] }
 0x298   : > { %24480 = vst [vmem:[#allocation58_spill] sm:$0xff] %v20677_v56 }
 0x29a   : > { %16758 = vmatmul.mubr.msk.f32.gmra.mrb[48].mxu1 %vm2077_vm4, %v20661_v7  ;;  %v20681_v7 = vld [vmem:[#allocation2 + $0x142] sm:$0xff] }
 0x29b   : > { %16760 = vmatprep.mubr.msk.f32.mxu1 %vm2077_vm4, %v20665_v54  ;;  %24481 = vst [vmem:[#allocation59_spill] sm:$0xff] %v20681_v7  ;;  %v20685_v54 = vld [vmem:[#allocation2 + $0x152] sm:$0xff] }
 0x29c   : > { %24482 = vst [vmem:[#allocation60_spill] sm:$0xff] %v20685_v54 }
 0x29e   : > { %16761 = vmatmul.mubr.msk.f32.gmra.mrb[50].mxu1 %vm2077_vm4, %v20669_v4  ;;  %v20689_v4 = vld [vmem:[#allocation2 + $0x162] sm:$0xff] }
 0x29f   : > { %16763 = vmatprep.mubr.msk.f32.mxu1 %vm2077_vm4, %v20673_v57  ;;  %24483 = vst [vmem:[#allocation61_spill] sm:$0xff] %v20689_v4  ;;  %v20693_v57 = vld [vmem:[#allocation2 + $0x172] sm:$0xff] }
 0x2a0   : > { %24484 = vst [vmem:[#allocation62_spill] sm:$0xff] %v20693_v57 }
 0x2a2   : > { %16764 = vmatmul.mubr.msk.f32.gmra.mrb[52].mxu1 %vm2077_vm4, %v20677_v56  ;;  %v20697_v56 = vld [vmem:[#allocation2 + $0x182] sm:$0xff] }
 0x2a3   : > { %16766 = vmatprep.mubr.msk.f32.mxu1 %vm2077_vm4, %v20681_v7  ;;  %24485 = vst [vmem:[#allocation63_spill] sm:$0xff] %v20697_v56  ;;  %v20701_v7 = vld [vmem:[#allocation2 + $0x192] sm:$0xff] }
 0x2a4   : > { %24486 = vst [vmem:[#allocation64_spill] sm:$0xff] %v20701_v7 }
 0x2a6   : > { %16767 = vmatmul.mubr.msk.f32.gmra.mrb[54].mxu1 %vm2077_vm4, %v20685_v54  ;;  %v20705_v54 = vld [vmem:[#allocation2 + $0x1a2] sm:$0xff] }
 0x2a7   : > { %16769 = vmatprep.mubr.msk.f32.mxu1 %vm2077_vm4, %v20689_v4  ;;  %24487 = vst [vmem:[#allocation65_spill] sm:$0xff] %v20705_v54  ;;  %v20709_v4 = vld [vmem:[#allocation2 + $0x1b2] sm:$0xff] }
 0x2a8   : > { %24488 = vst [vmem:[#allocation66_spill] sm:$0xff] %v20709_v4 }
 0x2aa   : > { %16770 = vmatmul.mubr.msk.f32.gmra.mrb[56].mxu1 %vm2077_vm4, %v20693_v57  ;;  %v20713_v57 = vld [vmem:[#allocation2 + $0x1c2] sm:$0xff] }
 0x2ab   : > { %16772 = vmatprep.mubr.msk.f32.mxu1 %vm2077_vm4, %v20697_v56  ;;  %24489 = vst [vmem:[#allocation67_spill] sm:$0xff] %v20713_v57  ;;  %v20717_v56 = vld [vmem:[#allocation2 + $0x1d2] sm:$0xff] }
 0x2ac   : > { %24490 = vst [vmem:[#allocation68_spill] sm:$0xff] %v20717_v56 }
 0x2ae   : > { %16773 = vmatmul.mubr.msk.f32.gmra.mrb[58].mxu1 %vm2077_vm4, %v20701_v7  ;;  %v20721_v7 = vld [vmem:[#allocation2 + $0x1e2] sm:$0xff] }
 0x2af   : > { %16775 = vmatprep.mubr.msk.f32.mxu1 %vm2077_vm4, %v20705_v54  ;;  %24491 = vst [vmem:[#allocation69_spill] sm:$0xff] %v20721_v7  ;;  %v3603_v54 = vld [vmem:[#allocation2 + $0x222] sm:$0xff] }
 0x2b2   : > { %16776 = vmatmul.mubr.msk.f32.gmra.mrb[60].mxu1 %vm2077_vm4, %v20709_v4  ;;  %v20730_v4 = vld [vmem:[#allocation2 + $0x232] sm:$0xff] }
 0x2b3   : > { %16778 = vmatprep.mubr.msk.f32.mxu1 %vm2077_vm4, %v20713_v57  ;;  %24493 = vst [vmem:[#allocation71_spill] sm:$0xff] %v20730_v4  ;;  %v20734_v57 = vld [vmem:[#allocation2 + $0x242] sm:$0xff] }
 0x2b4   : > { %24494 = vst [vmem:[#allocation72_spill] sm:$0xff] %v20734_v57 }
 0x2b6   : > { %16779 = vmatmul.mubr.msk.f32.gmra.mrb[62].mxu1 %vm2077_vm4, %v20717_v56  ;;  %v20738_v56 = vld [vmem:[#allocation2 + $0x252] sm:$0xff] }
 0x2b7   : > { %16781 = vmatprep.mubr.msk.f32.mxu1 %vm2077_vm4, %v20721_v7  ;;  %24495 = vst [vmem:[#allocation73_spill] sm:$0xff] %v20738_v56  ;;  %v20742_v7 = vld [vmem:[#allocation2 + $0x262] sm:$0xff] }
 0x2b8   : > { %24496 = vst [vmem:[#allocation74_spill] sm:$0xff] %v20742_v7 }
 0x2ba   : > { %16782 = vmatmul.mubr.msk.f32.gmra.mrb[0].mxu1 %vm2077_vm4, %v20725_v63  ;;  %v14514_v63 = vld [vmem:[%s24263_s3 + $0xa8] sm:$0xff] }
 0x2bb   : > { %16784 = vmatprep.mubr.msk.f32.mxu1 %vm2077_vm4, %v3603_v54  ;;  %v20746_v54 = vld [vmem:[#allocation2 + $0x272] sm:$0xff] }
 0x2bc   : > { %24497 = vst [vmem:[#allocation75_spill] sm:$0xff] %v20746_v54 }
 0x2be   : > { %16785 = vmatmul.mubr.msk.f32.gmra.mrb[2].mxu1 %vm2077_vm4, %v20730_v4  ;;  %v20750_v4 = vld [vmem:[#allocation2 + $0x282] sm:$0xff] }
 0x2bf   : > { %16787 = vmatprep.mubr.msk.f32.mxu1 %vm2077_vm4, %v20734_v57  ;;  %24498 = vst [vmem:[#allocation76_spill] sm:$0xff] %v20750_v4  ;;  %v20754_v57 = vld [vmem:[#allocation2 + $0x292] sm:$0xff] }
 0x2c0   : > { %24499 = vst [vmem:[#allocation77_spill] sm:$0xff] %v20754_v57 }
 0x2c2   : > { %16788 = vmatmul.mubr.msk.f32.gmra.mrb[4].mxu1 %vm2077_vm4, %v20738_v56  ;;  %v20758_v56 = vld [vmem:[#allocation2 + $0x2a2] sm:$0xff] }
 0x2c3   : > { %16790 = vmatprep.mubr.msk.f32.mxu1 %vm2077_vm4, %v20742_v7  ;;  %24500 = vst [vmem:[#allocation78_spill] sm:$0xff] %v20758_v56  ;;  %v20762_v7 = vld [vmem:[#allocation2 + $0x2b2] sm:$0xff] }
 0x2c4   : > { %24501 = vst [vmem:[#allocation79_spill] sm:$0xff] %v20762_v7 }
 0x2c6   : > { %16791 = vmatmul.mubr.msk.f32.gmra.mrb[6].mxu1 %vm2077_vm4, %v20746_v54  ;;  %v20766_v54 = vld [vmem:[#allocation2 + $0x2c2] sm:$0xff] }
 0x2c7   : > { %16793 = vmatprep.mubr.msk.f32.mxu1 %vm2077_vm4, %v20750_v4  ;;  %24502 = vst [vmem:[#allocation80_spill] sm:$0xff] %v20766_v54  ;;  %v20770_v4 = vld [vmem:[#allocation2 + $0x2d2] sm:$0xff] }
 0x2c8   : > { %24503 = vst [vmem:[#allocation81_spill] sm:$0xff] %v20770_v4 }
 0x2ca   : > { %16794 = vmatmul.mubr.msk.f32.gmra.mrb[8].mxu1 %vm2077_vm4, %v20754_v57  ;;  %v20774_v57 = vld [vmem:[#allocation2 + $0x2e2] sm:$0xff] }
 0x2cb   : > { %16796 = vmatprep.mubr.msk.f32.mxu1 %vm2077_vm4, %v20758_v56  ;;  %24504 = vst [vmem:[#allocation82_spill] sm:$0xff] %v20774_v57  ;;  %v20778_v56 = vld [vmem:[#allocation2 + $0x2f2] sm:$0xff] }
 0x2cc   : > { %24505 = vst [vmem:[#allocation83_spill] sm:$0xff] %v20778_v56 }
 0x2ce   : > { %16797 = vmatmul.mubr.msk.f32.gmra.mrb[10].mxu1 %vm2077_vm4, %v20762_v7  ;;  %v20782_v7 = vld [vmem:[#allocation2 + $0x302] sm:$0xff] }
 0x2cf   : > { %16799 = vmatprep.mubr.msk.f32.mxu1 %vm2077_vm4, %v20766_v54  ;;  %24506 = vst [vmem:[#allocation84_spill] sm:$0xff] %v20782_v7  ;;  %v20786_v54 = vld [vmem:[#allocation2 + $0x312] sm:$0xff] }
 0x2d0   : > { %24507 = vst [vmem:[#allocation85_spill] sm:$0xff] %v20786_v54 }
 0x2d2   : > { %16800 = vmatmul.mubr.msk.f32.gmra.mrb[12].mxu1 %vm2077_vm4, %v20770_v4  ;;  %v20790_v4 = vld [vmem:[#allocation2 + $0x322] sm:$0xff] }
 0x2d3   : > { %16802 = vmatprep.mubr.msk.f32.mxu1 %vm2077_vm4, %v20774_v57  ;;  %24508 = vst [vmem:[#allocation86_spill] sm:$0xff] %v20790_v4  ;;  %v20794_v57 = vld [vmem:[#allocation2 + $0x332] sm:$0xff] }
 0x2d4   : > { %24509 = vst [vmem:[#allocation87_spill] sm:$0xff] %v20794_v57 }
 0x2d6   : > { %16803 = vmatmul.mubr.msk.f32.gmra.mrb[14].mxu1 %vm2077_vm4, %v20778_v56  ;;  %v20798_v56 = vld [vmem:[#allocation2 + $0x342] sm:$0xff] }
 0x2d7   : > { %16805 = vmatprep.mubr.msk.f32.mxu1 %vm2077_vm4, %v20782_v7  ;;  %24510 = vst [vmem:[#allocation88_spill] sm:$0xff] %v20798_v56  ;;  %v20802_v7 = vld [vmem:[#allocation2 + $0x352] sm:$0xff] }
 0x2d8   : > { %24511 = vst [vmem:[#allocation89_spill] sm:$0xff] %v20802_v7 }
 0x2da   : > { %16806 = vmatmul.mubr.msk.f32.gmra.mrb[16].mxu1 %vm2077_vm4, %v20786_v54  ;;  %v20806_v54 = vld [vmem:[#allocation2 + $0x362] sm:$0xff] }
 0x2db   : > { %16808 = vmatprep.mubr.msk.f32.mxu1 %vm2077_vm4, %v20790_v4  ;;  %24512 = vst [vmem:[#allocation90_spill] sm:$0xff] %v20806_v54  ;;  %v20810_v4 = vld [vmem:[#allocation2 + $0x372] sm:$0xff] }
 0x2dc   : > { %24513 = vst [vmem:[#allocation91_spill] sm:$0xff] %v20810_v4 }
 0x2de   : > { %16809 = vmatmul.mubr.msk.f32.gmra.mrb[18].mxu1 %vm2077_vm4, %v20794_v57  ;;  %v20814_v57 = vld [vmem:[#allocation2 + $0x382] sm:$0xff] }
 0x2df   : > { %16811 = vmatprep.mubr.msk.f32.mxu1 %vm2077_vm4, %v20798_v56  ;;  %24514 = vst [vmem:[#allocation92_spill] sm:$0xff] %v20814_v57  ;;  %v20818_v56 = vld [vmem:[#allocation2 + $0x392] sm:$0xff] }
 0x2e0   : > { %24515 = vst [vmem:[#allocation93_spill] sm:$0xff] %v20818_v56 }
 0x2e2   : > { %16812 = vmatmul.mubr.msk.f32.gmra.mrb[20].mxu1 %vm2077_vm4, %v20802_v7  ;;  %v20822_v7 = vld [vmem:[#allocation2 + $0x3a2] sm:$0xff] }
 0x2e3   : > { %16814 = vmatprep.mubr.msk.f32.mxu1 %vm2077_vm4, %v20806_v54  ;;  %24516 = vst [vmem:[#allocation94_spill] sm:$0xff] %v20822_v7  ;;  %v20826_v54 = vld [vmem:[#allocation2 + $0x3b2] sm:$0xff] }
 0x2e4   : > { %24517 = vst [vmem:[#allocation95_spill] sm:$0xff] %v20826_v54 }
 0x2e6   : > { %16815 = vmatmul.mubr.msk.f32.gmra.mrb[22].mxu1 %vm2077_vm4, %v20810_v4  ;;  %v20830_v4 = vld [vmem:[#allocation2 + $0x3c2] sm:$0xff] }
 0x2e7   : > { %16817 = vmatprep.mubr.msk.f32.mxu1 %vm2077_vm4, %v20814_v57  ;;  %24518 = vst [vmem:[#allocation96_spill] sm:$0xff] %v20830_v4  ;;  %v20834_v57 = vld [vmem:[#allocation2 + $0x3d2] sm:$0xff] }
 0x2e8   : > { %24519 = vst [vmem:[#allocation97_spill] sm:$0xff] %v20834_v57 }
 0x2ea   : > { %16818 = vmatmul.mubr.msk.f32.gmra.mrb[24].mxu1 %vm2077_vm4, %v20818_v56  ;;  %v20838_v56 = vld [vmem:[#allocation2 + $0x3e2] sm:$0xff] }
 0x2eb   : > { %16820 = vmatprep.mubr.msk.f32.mxu1 %vm2077_vm4, %v20822_v7  ;;  %24520 = vst [vmem:[#allocation98_spill] sm:$0xff] %v20838_v56  ;;  %v20842_v7 = vld [vmem:[#allocation2 + $0x3f2] sm:$0xff] }
 0x2ec   : > { %24521 = vst [vmem:[#allocation99_spill] sm:$0xff] %v20842_v7 }
 0x2ee   : > { %16821 = vmatmul.mubr.msk.f32.gmra.mrb[26].mxu1 %vm2077_vm4, %v20826_v54  ;;  %v20846_v54 = vld [vmem:[#allocation2 + $0x402] sm:$0xff] }
 0x2ef   : > { %16823 = vmatprep.mubr.msk.f32.mxu1 %vm2077_vm4, %v20830_v4  ;;  %24522 = vst [vmem:[#allocation100_spill] sm:$0xff] %v20846_v54  ;;  %v20850_v4 = vld [vmem:[#allocation2 + $0x412] sm:$0xff] }
 0x2f0   : > { %24523 = vst [vmem:[#allocation101_spill] sm:$0xff] %v20850_v4 }
 0x2f2   : > { %16824 = vmatmul.mubr.msk.f32.gmra.mrb[28].mxu1 %vm2077_vm4, %v20834_v57  ;;  %v14447_v57 = vld [vmem:[%s24263_s3 + $0x90] sm:$0xff] }
 0x2f3   : > { %16826 = vmatprep.mubr.msk.f32.mxu1 %vm2077_vm4, %v20838_v56  ;;  %v14448_v56 = vld [vmem:[%s24263_s3 + $0x98] sm:$0xff] }
 0x2f6   : > { %16827 = vmatmul.mubr.msk.f32.gmra.mrb[30].mxu1 %vm2077_vm4, %v20842_v7  ;;  %v18082_v7 = vpack.c.bf16 %v14448_v56, %v14447_v57  ;;  %v21176_v57 = vld [vmem:[#allocation2 + $0x2c1] sm:$0xff] }
 0x2f7   : > { %16829 = vmatprep.mubr.msk.f32.mxu1 %vm2077_vm4, %v20846_v54  ;;  %v14513_v54 = vld [vmem:[%s24263_s3 + $0xa0] sm:$0xff] }
 0x2f8   : > { %v21192_v56 = vld [vmem:[#allocation2 + $0x301] sm:$0xff] }
 0x2fa   : > { %16830 = vmatmul.mubr.msk.f32.gmra.mrb[32].mxu1 %vm2077_vm4, %v20850_v4  ;;  %v20873_v4 = vpack.c.bf16 %v14514_v63, %v14513_v54  ;;  %v21180_v63 = vld [vmem:[#allocation2 + $0x2d1] sm:$0xff] }
 0x2fb   : > { %16840 = vmatprep.mubr.msk.f32.mxu1 %vm2077_vm4, %v20283_v2  ;;  %v20932_v2 = vld [vmem:[#allocation2 + $0x200] sm:$0xff]  ;;  %v21196_v54 = vld [vmem:[#allocation2 + $0x311] sm:$0xff] }
 0x2fe   : > { %16841 = vmatmul.mubr.msk.f32.vlgmr.msra.gmra.mrb[34].mxu1 %vm2077_vm4, %v20295_v6  ;;  %v24525_v6 = vld [vmem:[#allocation36_spill] sm:$0xff] }
 0x2ff   : > { %18081 = vmatpush3.bf16.msra.mxu1 %v20610_v51  ;;  %16843 = vmatprep.mubr.msk.f32.mxu1 %vm2077_vm4, %v20304_v9  ;;  %v24526_v9 = vld [vmem:[#allocation37_spill] sm:$0xff]  ;;  %v21172_v51 = vld [vmem:[#allocation2 + $0x2b1] sm:$0xff] }
 0x300   : > { %18083 = vmatprep.subr.bf16.mxu1 %v18082_v7 }
 0x302   : > { %16844 = vmatmul.mubr.msk.f32.gmra.mrb[36].mxu1 %vm2077_vm4, %v20310_v11  ;;  %v24527_v11 = vld [vmem:[#allocation38_spill] sm:$0xff] }
 0x303   : > { %16846 = vmatprep.mubr.msk.f32.mxu1 %vm2077_vm4, %v20317_v12  ;;  %18085 = vmatpush3.bf16.msra.mxu1 %v18082_v7  ;;  %v24528_v12 = vld [vmem:[#allocation39_spill] sm:$0xff]  ;;  %v21184_v7 = vld [vmem:[#allocation2 + $0x2e1] sm:$0xff] }
 0x304   : > { %18087 = vmatprep.subr.bf16.mxu1 %v20873_v4 }
 0x306   : > { %16847 = vmatmul.mubr.msk.f32.gmra.mrb[38].mxu1 %vm2077_vm4, %v20323_v14  ;;  %v14515_v14 = vld [vmem:[%s24263_s3 + $0xb0] sm:$0xff] }
 0x307   : > { %16849 = vmatprep.mubr.msk.f32.mxu1 %vm2077_vm4, %v20329_v16  ;;  %v4991_v16 = vld [vmem:[#allocation2 + $0x11] sm:$0xff] }
 0x30a   : > { %16850 = vmatmul.mubr.msk.f32.gmra.mrb[40].mxu1 %vm2077_vm4, %v20335_v18  ;;  %v21009_v18 = vld [vmem:[#allocation2 + $0x21] sm:$0xff] }
 0x30b   : > { %16852 = vmatprep.mubr.msk.f32.mxu1 %vm2077_vm4, %v20341_v20  ;;  %v21019_v20 = vld [vmem:[#allocation2 + $0x31] sm:$0xff] }
 0x30e   : > { %16853 = vmatmul.mubr.msk.f32.gmra.mrb[42].mxu1 %vm2077_vm4, %v20347_v22  ;;  %v21026_v22 = vld [vmem:[#allocation2 + $0x41] sm:$0xff] }
 0x30f   : > { %16855 = vmatprep.mubr.msk.f32.mxu1 %vm2077_vm4, %v20351_v23  ;;  %v21030_v23 = vld [vmem:[#allocation2 + $0x51] sm:$0xff] }
 0x312   : > { %16856 = vmatmul.mubr.msk.f32.gmra.mrb[44].mxu1 %vm2077_vm4, %v20355_v24  ;;  %v21035_v24 = vld [vmem:[#allocation2 + $0x61] sm:$0xff] }
 0x313   : > { %16858 = vmatprep.mubr.msk.f32.mxu1 %vm2077_vm4, %v20361_v27  ;;  %v21043_v27 = vld [vmem:[#allocation2 + $0x81] sm:$0xff] }
 0x316   : > { %16859 = vmatmul.mubr.msk.f32.gmra.mrb[46].mxu1 %vm2077_vm4, %v20367_v29  ;;  %v21051_v29 = vld [vmem:[#allocation2 + $0xa1] sm:$0xff] }
 0x317   : > { %16861 = vmatprep.mubr.msk.f32.mxu1 %vm2077_vm4, %v20371_v30  ;;  %v21055_v30 = vld [vmem:[#allocation2 + $0xb1] sm:$0xff] }
 0x31a   : > { %16862 = vmatmul.mubr.msk.f32.gmra.mrb[48].mxu1 %vm2077_vm4, %v20375_v31  ;;  %v21059_v31 = vld [vmem:[#allocation2 + $0xc1] sm:$0xff] }
 0x31b   : > { %16864 = vmatprep.mubr.msk.f32.mxu1 %vm2077_vm4, %v20381_v33  ;;  %v21067_v33 = vld [vmem:[#allocation2 + $0xe1] sm:$0xff] }
 0x31e   : > { %16865 = vmatmul.mubr.msk.f32.gmra.mrb[50].mxu1 %vm2077_vm4, %v20387_v35  ;;  %v21075_v35 = vld [vmem:[#allocation2 + $0x101] sm:$0xff] }
 0x31f   : > { %16867 = vmatprep.mubr.msk.f32.mxu1 %vm2077_vm4, %v20391_v36  ;;  %v21079_v36 = vld [vmem:[#allocation2 + $0x111] sm:$0xff] }
 0x322   : > { %16868 = vmatmul.mubr.msk.f32.gmra.mrb[52].mxu1 %vm2077_vm4, %v20395_v37  ;;  %v21083_v37 = vld [vmem:[#allocation2 + $0x121] sm:$0xff] }
 0x323   : > { %16870 = vmatprep.mubr.msk.f32.mxu1 %vm2077_vm4, %v20401_v39  ;;  %v21091_v39 = vld [vmem:[#allocation2 + $0x141] sm:$0xff] }
 0x326   : > { %16871 = vmatmul.mubr.msk.f32.gmra.mrb[54].mxu1 %vm2077_vm4, %v20407_v41  ;;  %v21099_v41 = vld [vmem:[#allocation2 + $0x161] sm:$0xff] }
 0x327   : > { %16873 = vmatprep.mubr.msk.f32.mxu1 %vm2077_vm4, %v20411_v42  ;;  %v21103_v42 = vld [vmem:[#allocation2 + $0x171] sm:$0xff] }
 0x32a   : > { %16874 = vmatmul.mubr.msk.f32.gmra.mrb[56].mxu1 %vm2077_vm4, %v20415_v43  ;;  %v21107_v43 = vld [vmem:[#allocation2 + $0x181] sm:$0xff] }
 0x32b   : > { %16876 = vmatprep.mubr.msk.f32.mxu1 %vm2077_vm4, %v20421_v45  ;;  %v21115_v45 = vld [vmem:[#allocation2 + $0x1a1] sm:$0xff] }
 0x32e   : > { %16877 = vmatmul.mubr.msk.f32.gmra.mrb[58].mxu1 %vm2077_vm4, %v20427_v47  ;;  %v21123_v47 = vld [vmem:[#allocation2 + $0x1c1] sm:$0xff] }
 0x32f   : > { %16879 = vmatprep.mubr.msk.f32.mxu1 %vm2077_vm4, %v20431_v49  ;;  %v21127_v49 = vld [vmem:[#allocation2 + $0x1d1] sm:$0xff] }
 0x332   : > { %16880 = vmatmul.mubr.msk.f32.gmra.mrb[60].mxu1 %vm2077_vm4, %v20435_v50  ;;  %v21131_v50 = vld [vmem:[#allocation2 + $0x1e1] sm:$0xff] }
 0x333   : > { %16882 = vmatprep.mubr.msk.f32.mxu1 %vm2077_vm4, %v20441_v53  ;;  %v21139_v53 = vld [vmem:[#allocation2 + $0x201] sm:$0xff] }
 0x336   : > { %16883 = vmatmul.mubr.msk.f32.gmra.mrb[62].mxu1 %vm2077_vm4, %v20447_v61  ;;  %v21144_v61 = vld [vmem:[#allocation2 + $0x241] sm:$0xff] }
 0x337   : > { %16885 = vmatprep.mubr.msk.f32.mxu1 %vm2077_vm4, %v20451_v60  ;;  %v21148_v60 = vld [vmem:[#allocation2 + $0x251] sm:$0xff] }
 0x33a   : > { %16886 = vmatmul.mubr.msk.f32.gmra.mrb[0].mxu1 %vm2077_vm4, %v20932_v2 }
 0x33b   : > { %16888 = vmatprep.mubr.msk.f32.mxu1 %vm2077_vm4, %v20458_v0  ;;  %v21156_v0 = vld [vmem:[#allocation2 + $0x271] sm:$0xff] }
 0x33e   : > { %16889 = vmatmul.mubr.msk.f32.gmra.mrb[2].mxu1 %vm2077_vm4, %v20464_v26  ;;  %v21164_v26 = vld [vmem:[#allocation2 + $0x291] sm:$0xff] }
 0x33f   : > { %16891 = vmatprep.mubr.msk.f32.mxu1 %vm2077_vm4, %v20468_v59  ;;  %v24524_v59 = vld [vmem:[#allocation35_spill] sm:$0xff] }
 0x342   : > { %16892 = vmatmul.mubr.msk.f32.gmra.mrb[4].mxu1 %vm2077_vm4, %v20472_v58  ;;  %v21168_v58 = vld [vmem:[#allocation2 + $0x2a1] sm:$0xff] }
 0x343   : > { %16894 = vmatprep.mubr.msk.f32.mxu1 %vm2077_vm4, %v20478_v3  ;;  %v21160_v3 = vld [vmem:[#allocation2 + $0x281] sm:$0xff] }
 0x346   : > { %16895 = vmatmul.mubr.msk.f32.gmra.mrb[6].mxu1 %vm2077_vm4, %v20484_v52  ;;  %v21135_v52 = vld [vmem:[#allocation2 + $0x1f1] sm:$0xff] }
 0x347   : > { %16897 = vmatprep.mubr.msk.f32.mxu1 %vm2077_vm4, %v20488_v46  ;;  %v21119_v46 = vld [vmem:[#allocation2 + $0x1b1] sm:$0xff] }
 0x34a   : > { %16898 = vmatmul.mubr.msk.f32.gmra.mrb[8].mxu1 %vm2077_vm4, %v20492_v44  ;;  %v21111_v44 = vld [vmem:[#allocation2 + $0x191] sm:$0xff] }
 0x34b   : > { %16900 = vmatprep.mubr.msk.f32.mxu1 %vm2077_vm4, %v20496_v62  ;;  %v21152_v62 = vld [vmem:[#allocation2 + $0x261] sm:$0xff] }
 0x34e   : > { %16901 = vmatmul.mubr.msk.f32.gmra.mrb[10].mxu1 %vm2077_vm4, %v20500_v55  ;;  %v5023_v55 = vld [vmem:[#allocation2 + $0x231] sm:$0xff] }
 0x34f   : > { %16903 = vmatprep.mubr.msk.f32.mxu1 %vm2077_vm4, %v20504_v40  ;;  %v21095_v40 = vld [vmem:[#allocation2 + $0x151] sm:$0xff] }
 0x352   : > { %16904 = vmatmul.mubr.msk.f32.gmra.mrb[12].mxu1 %vm2077_vm4, %v20508_v38  ;;  %v21087_v38 = vld [vmem:[#allocation2 + $0x131] sm:$0xff] }
 0x353   : > { %16906 = vmatprep.mubr.msk.f32.mxu1 %vm2077_vm4, %v20512_v34  ;;  %v21071_v34 = vld [vmem:[#allocation2 + $0xf1] sm:$0xff] }
 0x356   : > { %16907 = vmatmul.mubr.msk.f32.gmra.mrb[14].mxu1 %vm2077_vm4, %v20516_v32  ;;  %v21063_v32 = vld [vmem:[#allocation2 + $0xd1] sm:$0xff] }
 0x357   : > { %16909 = vmatprep.mubr.msk.f32.mxu1 %vm2077_vm4, %v20520_v28  ;;  %v21047_v28 = vld [vmem:[#allocation2 + $0x91] sm:$0xff] }
 0x35a   : > { %16910 = vmatmul.mubr.msk.f32.gmra.mrb[16].mxu1 %vm2077_vm4, %v20524_v25  ;;  %v21039_v25 = vld [vmem:[#allocation2 + $0x71] sm:$0xff] }
 0x35b   : > { %16912 = vmatprep.mubr.msk.f32.mxu1 %vm2077_vm4, %v20528_v21 }
 0x35e   : > { %16913 = vmatmul.mubr.msk.f32.gmra.mrb[18].mxu1 %vm2077_vm4, %v20532_v19  ;;  %v14582_v19 = vld [vmem:[%s24263_s3 + $0xc8] sm:$0xff] }
 0x35f   : > { %16915 = vmatprep.mubr.msk.f32.mxu1 %vm2077_vm4, %v20536_v17 }
 0x362   : > { %16916 = vmatmul.mubr.msk.f32.gmra.mrb[20].mxu1 %vm2077_vm4, %v20540_v15  ;;  %v14516_v15 = vld [vmem:[%s24263_s3 + $0xb8] sm:$0xff] }
 0x363   : > { %16918 = vmatprep.mubr.msk.f32.mxu1 %vm2077_vm4, %v20544_v13  ;;  %v24529_v13 = vld [vmem:[#allocation40_spill] sm:$0xff]  ;;  %v18090_v17 = vpack.c.bf16 %v14516_v15, %v14515_v14  ;;  %v21228_v14 = vld [vmem:[#allocation2 + $0x391] sm:$0xff]  ;;  %v21232_v15 = vld [vmem:[#allocation2 + $0x3a1] sm:$0xff] }
 0x364   : > { %24531 = vst [vmem:[#allocation35_spill] sm:$0xff] %v21228_v14  ;;  %24532 = vst [vmem:[#allocation36_spill] sm:$0xff] %v21232_v15 }
 0x366   : > { %16919 = vmatmul.mubr.msk.f32.gmra.mrb[22].mxu1 %vm2077_vm4, %v20548_v5  ;;  %v24530_v5 = vld [vmem:[#allocation41_spill] sm:$0xff] }
 0x367   : > { %16921 = vmatprep.mubr.msk.f32.mxu1 %vm2077_vm4, %v20552_v10  ;;  %v20998_v10 = vld [vmem:[#allocation2 + $0x420] sm:$0xff] }
 0x36a   : > { %16922 = vmatmul.mubr.msk.f32.gmra.mrb[24].mxu1 %vm2077_vm4, %v24524_v59  ;;  %v21200_v59 = vld [vmem:[#allocation2 + $0x321] sm:$0xff] }
 0x36b   : > { %16924 = vmatprep.mubr.msk.f32.mxu1 %vm2077_vm4, %v24525_v6  ;;  %v21204_v6 = vld [vmem:[#allocation2 + $0x331] sm:$0xff] }
 0x36e   : > { %16925 = vmatmul.mubr.msk.f32.gmra.mrb[26].mxu1 %vm2077_vm4, %v24526_v9  ;;  %v21208_v9 = vld [vmem:[#allocation2 + $0x341] sm:$0xff] }
 0x36f   : > { %16927 = vmatprep.mubr.msk.f32.mxu1 %vm2077_vm4, %v24527_v11  ;;  %v21212_v11 = vld [vmem:[#allocation2 + $0x351] sm:$0xff] }
 0x372   : > { %16928 = vmatmul.mubr.msk.f32.gmra.mrb[28].mxu1 %vm2077_vm4, %v24528_v12  ;;  %v21216_v12 = vld [vmem:[#allocation2 + $0x361] sm:$0xff] }
 0x373   : > { %16930 = vmatprep.mubr.msk.f32.mxu1 %vm2077_vm4, %v24529_v13  ;;  %v21220_v13 = vld [vmem:[#allocation2 + $0x371] sm:$0xff] }
 0x376   : > { %16931 = vmatmul.mubr.msk.f32.gmra.mrb[30].mxu1 %vm2077_vm4, %v24530_v5  ;;  %v21224_v5 = vld [vmem:[#allocation2 + $0x381] sm:$0xff] }
 0x377   : > { %16933 = vmatprep.mubr.msk.f32.mxu1 %vm2077_vm4, %v20584_v48  ;;  %v14581_v48 = vld [vmem:[%s24263_s3 + $0xc0] sm:$0xff] }
 0x378   : > { %v21024_v21 = vpack.c.bf16 %v14582_v19, %v14581_v48  ;;  %v21244_v48 = vld [vmem:[#allocation2 + $0x3d1] sm:$0xff]  ;;  %v21248_v19 = vld [vmem:[#allocation2 + $0x3e1] sm:$0xff] }
 0x379   : > { %24535 = vst [vmem:[#allocation39_spill] sm:$0xff] %v21244_v48  ;;  %24536 = vst [vmem:[#allocation40_spill] sm:$0xff] %v21248_v19 }
 0x37a   : > { %16934 = vmatmul.mubr.msk.f32.gmra.mrb[32].mxu1 %vm2077_vm4, %v20998_v10 }
 0x37b   : > { %16944 = vmatprep.mubr.msk.f32.mxu1 %vm2077_vm4, %v4991_v16  ;;  %v21236_v16 = vld [vmem:[#allocation2 + $0x3b1] sm:$0xff] }
 0x37c   : > { %24533 = vst [vmem:[#allocation37_spill] sm:$0xff] %v21236_v16 }
 0x37e   : > { %16945 = vmatmul.mubr.msk.f32.vlgmr.msra.gmra.mrb[34].mxu1 %vm2077_vm4, %v21009_v18 }
 0x37f   : > { %18089 = vmatpush3.bf16.msra.mxu1 %v20873_v4  ;;  %16947 = vmatprep.mubr.msk.f32.mxu1 %vm2077_vm4, %v21019_v20  ;;  %v21188_v4 = vld [vmem:[#allocation2 + $0x2f1] sm:$0xff] }
 0x380   : > { %18091 = vmatprep.subr.bf16.mxu1 %v18090_v17 }
 0x382   : > { %16948 = vmatmul.mubr.msk.f32.gmra.mrb[36].mxu1 %vm2077_vm4, %v21026_v22 }
 0x383   : > { %16950 = vmatprep.mubr.msk.f32.mxu1 %vm2077_vm4, %v21030_v23  ;;  %18093 = vmatpush3.bf16.msra.mxu1 %v18090_v17  ;;  %v21240_v17 = vld [vmem:[#allocation2 + $0x3c1] sm:$0xff] }
 0x384   : > { %18095 = vmatprep.subr.bf16.mxu1 %v21024_v21  ;;  %24534 = vst [vmem:[#allocation38_spill] sm:$0xff] %v21240_v17 }
 0x386   : > { %16951 = vmatmul.mubr.msk.f32.gmra.mrb[38].mxu1 %vm2077_vm4, %v21035_v24 }
 0x387   : > { %16953 = vmatprep.mubr.msk.f32.mxu1 %vm2077_vm4, %v21039_v25 }
 0x38a   : > { %16954 = vmatmul.mubr.msk.f32.gmra.mrb[40].mxu1 %vm2077_vm4, %v21043_v27 }
 0x38b   : > { %16956 = vmatprep.mubr.msk.f32.mxu1 %vm2077_vm4, %v21047_v28 }
 0x38e   : > { %16957 = vmatmul.mubr.msk.f32.gmra.mrb[42].mxu1 %vm2077_vm4, %v21051_v29 }
 0x38f   : > { %16959 = vmatprep.mubr.msk.f32.mxu1 %vm2077_vm4, %v21055_v30 }
 0x392   : > { %16960 = vmatmul.mubr.msk.f32.gmra.mrb[44].mxu1 %vm2077_vm4, %v21059_v31 }
 0x393   : > { %16962 = vmatprep.mubr.msk.f32.mxu1 %vm2077_vm4, %v21063_v32 }
 0x396   : > { %16963 = vmatmul.mubr.msk.f32.gmra.mrb[46].mxu1 %vm2077_vm4, %v21067_v33 }
 0x397   : > { %16965 = vmatprep.mubr.msk.f32.mxu1 %vm2077_vm4, %v21071_v34 }
 0x39a   : > { %16966 = vmatmul.mubr.msk.f32.gmra.mrb[48].mxu1 %vm2077_vm4, %v21075_v35 }
 0x39b   : > { %16968 = vmatprep.mubr.msk.f32.mxu1 %vm2077_vm4, %v21079_v36 }
 0x39e   : > { %16969 = vmatmul.mubr.msk.f32.gmra.mrb[50].mxu1 %vm2077_vm4, %v21083_v37 }
 0x39f   : > { %16971 = vmatprep.mubr.msk.f32.mxu1 %vm2077_vm4, %v21087_v38 }
 0x3a2   : > { %16972 = vmatmul.mubr.msk.f32.gmra.mrb[52].mxu1 %vm2077_vm4, %v21091_v39 }
 0x3a3   : > { %16974 = vmatprep.mubr.msk.f32.mxu1 %vm2077_vm4, %v21095_v40 }
 0x3a6   : > { %16975 = vmatmul.mubr.msk.f32.gmra.mrb[54].mxu1 %vm2077_vm4, %v21099_v41 }
 0x3a7   : > { %16977 = vmatprep.mubr.msk.f32.mxu1 %vm2077_vm4, %v21103_v42 }
 0x3aa   : > { %16978 = vmatmul.mubr.msk.f32.gmra.mrb[56].mxu1 %vm2077_vm4, %v21107_v43 }
 0x3ab   : > { %16980 = vmatprep.mubr.msk.f32.mxu1 %vm2077_vm4, %v21111_v44 }
 0x3ae   : > { %16981 = vmatmul.mubr.msk.f32.gmra.mrb[58].mxu1 %vm2077_vm4, %v21115_v45 }
 0x3af   : > { %16983 = vmatprep.mubr.msk.f32.mxu1 %vm2077_vm4, %v21119_v46 }
 0x3b2   : > { %16984 = vmatmul.mubr.msk.f32.gmra.mrb[60].mxu1 %vm2077_vm4, %v21123_v47 }
 0x3b3   : > { %16986 = vmatprep.mubr.msk.f32.mxu1 %vm2077_vm4, %v21127_v49 }
 0x3b6   : > { %16987 = vmatmul.mubr.msk.f32.gmra.mrb[62].mxu1 %vm2077_vm4, %v21131_v50 }
 0x3b7   : > { %16989 = vmatprep.mubr.msk.f32.mxu1 %vm2077_vm4, %v21135_v52 }
 0x3ba   : > { %16990 = vmatmul.mubr.msk.f32.gmra.mrb[0].mxu1 %vm2077_vm4, %v21139_v53 }
 0x3bb   : > { %16992 = vmatprep.mubr.msk.f32.mxu1 %vm2077_vm4, %v5023_v55  ;;  %v21252_v55 = vld [vmem:[#allocation2 + $0x3f1] sm:$0xff] }
 0x3bc   : > { %24537 = vst [vmem:[#allocation41_spill] sm:$0xff] %v21252_v55 }
 0x3be   : > { %16993 = vmatmul.mubr.msk.f32.gmra.mrb[2].mxu1 %vm2077_vm4, %v21144_v61 }
 0x3bf   : > { %16995 = vmatprep.mubr.msk.f32.mxu1 %vm2077_vm4, %v21148_v60 }
 0x3c2   : > { %16996 = vmatmul.mubr.msk.f32.gmra.mrb[4].mxu1 %vm2077_vm4, %v21152_v62 }
 0x3c3   : > { %16998 = vmatprep.mubr.msk.f32.mxu1 %vm2077_vm4, %v21156_v0 }
 0x3c6   : > { %16999 = vmatmul.mubr.msk.f32.gmra.mrb[6].mxu1 %vm2077_vm4, %v21160_v3 }
 0x3c7   : > { %17001 = vmatprep.mubr.msk.f32.mxu1 %vm2077_vm4, %v21164_v26 }
 0x3ca   : > { %17002 = vmatmul.mubr.msk.f32.gmra.mrb[8].mxu1 %vm2077_vm4, %v21168_v58 }
 0x3cb   : > { %17004 = vmatprep.mubr.msk.f32.mxu1 %vm2077_vm4, %v21172_v51 }
 0x3ce   : > { %17005 = vmatmul.mubr.msk.f32.gmra.mrb[10].mxu1 %vm2077_vm4, %v21176_v57 }
 0x3cf   : > { %17007 = vmatprep.mubr.msk.f32.mxu1 %vm2077_vm4, %v21180_v63 }
 0x3d2   : > { %17008 = vmatmul.mubr.msk.f32.gmra.mrb[12].mxu1 %vm2077_vm4, %v21184_v7 }
 0x3d3   : > { %17010 = vmatprep.mubr.msk.f32.mxu1 %vm2077_vm4, %v21188_v4 }
 0x3d6   : > { %17011 = vmatmul.mubr.msk.f32.gmra.mrb[14].mxu1 %vm2077_vm4, %v21192_v56 }
 0x3d7   : > { %17013 = vmatprep.mubr.msk.f32.mxu1 %vm2077_vm4, %v21196_v54 }
 0x3da   : > { %17014 = vmatmul.mubr.msk.f32.gmra.mrb[16].mxu1 %vm2077_vm4, %v21200_v59 }
 0x3db   : > { %17016 = vmatprep.mubr.msk.f32.mxu1 %vm2077_vm4, %v21204_v6 }
 0x3de   : > { %17017 = vmatmul.mubr.msk.f32.gmra.mrb[18].mxu1 %vm2077_vm4, %v21208_v9 }
 0x3df   : > { %17019 = vmatprep.mubr.msk.f32.mxu1 %vm2077_vm4, %v21212_v11 }
 0x3e2   : > { %17020 = vmatmul.mubr.msk.f32.gmra.mrb[20].mxu1 %vm2077_vm4, %v21216_v12 }
 0x3e3   : > { %17022 = vmatprep.mubr.msk.f32.mxu1 %vm2077_vm4, %v21220_v13 }
 0x3e6   : > { %17023 = vmatmul.mubr.msk.f32.gmra.mrb[22].mxu1 %vm2077_vm4, %v21224_v5 }
 0x3e7   : > { %17025 = vmatprep.mubr.msk.f32.mxu1 %vm2077_vm4, %v21228_v14  ;;  %v24541_v14 = vld [vmem:[#allocation42_spill] sm:$0xff] }
 0x3ea   : > { %17026 = vmatmul.mubr.msk.f32.gmra.mrb[24].mxu1 %vm2077_vm4, %v21232_v15  ;;  %v14650_v15 = vld [vmem:[%s24263_s3 + $0xe8] sm:$0xff] }
 0x3eb   : > { %17028 = vmatprep.mubr.msk.f32.mxu1 %vm2077_vm4, %v21236_v16  ;;  %v21256_v16 = vld [vmem:[#allocation2 + $0x401] sm:$0xff] }
 0x3ec   : > { %24538 = vst [vmem:[#allocation102_spill] sm:$0xff] %v21256_v16 }
 0x3ee   : > { %17029 = vmatmul.mubr.msk.f32.gmra.mrb[26].mxu1 %vm2077_vm4, %v21240_v17  ;;  %v21260_v17 = vld [vmem:[#allocation2 + $0x411] sm:$0xff] }
 0x3ef   : > { %17031 = vmatprep.mubr.msk.f32.mxu1 %vm2077_vm4, %v21244_v48  ;;  %24539 = vst [vmem:[#allocation103_spill] sm:$0xff] %v21260_v17  ;;  %v21264_v48 = vld [vmem:[#allocation2 + $0x421] sm:$0xff] }
 0x3f0   : > { %24540 = vst [vmem:[#allocation104_spill] sm:$0xff] %v21264_v48 }
 0x3f2   : > { %17032 = vmatmul.mubr.msk.f32.gmra.mrb[28].mxu1 %vm2077_vm4, %v21248_v19  ;;  %v14583_v19 = vld [vmem:[%s24263_s3 + $0xd0] sm:$0xff] }
 0x3f3   : > { %17034 = vmatprep.mubr.msk.f32.mxu1 %vm2077_vm4, %v21252_v55  ;;  %v14584_v55 = vld [vmem:[%s24263_s3 + $0xd8] sm:$0xff] }
 0x3f6   : > { %17035 = vmatmul.mubr.msk.f32.gmra.mrb[30].mxu1 %vm2077_vm4, %v21256_v16  ;;  %v18098_v16 = vpack.c.bf16 %v14584_v55, %v14583_v19  ;;  %v24543_v19 = vld [vmem:[#allocation44_spill] sm:$0xff]  ;;  %v24544_v55 = vld [vmem:[#allocation45_spill] sm:$0xff] }
 0x3f7   : > { %17037 = vmatprep.mubr.msk.f32.mxu1 %vm2077_vm4, %v21260_v17  ;;  %v14649_v17 = vld [vmem:[%s24263_s3 + $0xe0] sm:$0xff] }
 0x3fa   : > { %17038 = vmatmul.mubr.msk.f32.gmra.mrb[32].mxu1 %vm2077_vm4, %v21264_v48  ;;  %v21287_v48 = vpack.c.bf16 %v14650_v15, %v14649_v17  ;;  %v24548_v15 = vld [vmem:[#allocation49_spill] sm:$0xff]  ;;  %v24549_v17 = vld [vmem:[#allocation50_spill] sm:$0xff] }
 0x3fb   : > { %17048 = vmatprep.mubr.msk.f32.mxu1 %vm2077_vm4, %v20595_v1  ;;  %v24542_v1 = vld [vmem:[#allocation43_spill] sm:$0xff] }
 0x3fe   : > { %17049 = vmatmul.mubr.msk.f32.vlgmr.msra.gmra.mrb[34].mxu1 %vm2077_vm4, %v20605_v8  ;;  %v24545_v8 = vld [vmem:[#allocation46_spill] sm:$0xff] }
 0x3ff   : > { %18097 = vmatpush3.bf16.msra.mxu1 %v21024_v21  ;;  %17051 = vmatprep.mubr.msk.f32.mxu1 %vm2077_vm4, %v24541_v14  ;;  %v24546_v21 = vld [vmem:[#allocation47_spill] sm:$0xff]  ;;  %v24547_v14 = vld [vmem:[#allocation48_spill] sm:$0xff] }
 0x400   : > { %18099 = vmatprep.subr.bf16.mxu1 %v18098_v16 }
 0x402   : > { %17052 = vmatmul.mubr.msk.f32.gmra.mrb[36].mxu1 %vm2077_vm4, %v24542_v1  ;;  %v24551_v1 = vld [vmem:[#allocation52_spill] sm:$0xff] }
 0x403   : > { %17054 = vmatprep.mubr.msk.f32.mxu1 %vm2077_vm4, %v24543_v19  ;;  %18101 = vmatpush3.bf16.msra.mxu1 %v18098_v16  ;;  %v24550_v16 = vld [vmem:[#allocation51_spill] sm:$0xff]  ;;  %v24552_v19 = vld [vmem:[#allocation53_spill] sm:$0xff] }
 0x404   : > { %18103 = vmatprep.subr.bf16.mxu1 %v21287_v48 }
 0x406   : > { %17055 = vmatmul.mubr.msk.f32.gmra.mrb[38].mxu1 %vm2077_vm4, %v24544_v55  ;;  %v24553_v55 = vld [vmem:[#allocation54_spill] sm:$0xff] }
 0x407   : > { %17057 = vmatprep.mubr.msk.f32.mxu1 %vm2077_vm4, %v24545_v8  ;;  %v24554_v8 = vld [vmem:[#allocation55_spill] sm:$0xff] }
 0x40a   : > { %17058 = vmatmul.mubr.msk.f32.gmra.mrb[40].mxu1 %vm2077_vm4, %v24546_v21  ;;  %v24555_v21 = vld [vmem:[#allocation56_spill] sm:$0xff] }
 0x40b   : > { %17060 = vmatprep.mubr.msk.f32.mxu1 %vm2077_vm4, %v24547_v14  ;;  %v24556_v14 = vld [vmem:[#allocation57_spill] sm:$0xff] }
 0x40e   : > { %17061 = vmatmul.mubr.msk.f32.gmra.mrb[42].mxu1 %vm2077_vm4, %v24548_v15  ;;  %v24557_v15 = vld [vmem:[#allocation58_spill] sm:$0xff] }
 0x40f   : > { %17063 = vmatprep.mubr.msk.f32.mxu1 %vm2077_vm4, %v24549_v17  ;;  %v24558_v17 = vld [vmem:[#allocation59_spill] sm:$0xff] }
 0x412   : > { %17064 = vmatmul.mubr.msk.f32.gmra.mrb[44].mxu1 %vm2077_vm4, %v24550_v16  ;;  %v24559_v16 = vld [vmem:[#allocation60_spill] sm:$0xff] }
 0x413   : > { %17066 = vmatprep.mubr.msk.f32.mxu1 %vm2077_vm4, %v24551_v1  ;;  %v24560_v1 = vld [vmem:[#allocation61_spill] sm:$0xff] }
 0x416   : > { %17067 = vmatmul.mubr.msk.f32.gmra.mrb[46].mxu1 %vm2077_vm4, %v24552_v19  ;;  %v24561_v19 = vld [vmem:[#allocation62_spill] sm:$0xff] }
 0x417   : > { %17069 = vmatprep.mubr.msk.f32.mxu1 %vm2077_vm4, %v24553_v55  ;;  %v24562_v55 = vld [vmem:[#allocation63_spill] sm:$0xff] }
 0x41a   : > { %17070 = vmatmul.mubr.msk.f32.gmra.mrb[48].mxu1 %vm2077_vm4, %v24554_v8  ;;  %v24563_v8 = vld [vmem:[#allocation64_spill] sm:$0xff] }
 0x41b   : > { %17072 = vmatprep.mubr.msk.f32.mxu1 %vm2077_vm4, %v24555_v21  ;;  %v24564_v21 = vld [vmem:[#allocation65_spill] sm:$0xff] }
 0x41e   : > { %17073 = vmatmul.mubr.msk.f32.gmra.mrb[50].mxu1 %vm2077_vm4, %v24556_v14  ;;  %v24565_v14 = vld [vmem:[#allocation66_spill] sm:$0xff] }
 0x41f   : > { %17075 = vmatprep.mubr.msk.f32.mxu1 %vm2077_vm4, %v24557_v15  ;;  %v24566_v15 = vld [vmem:[#allocation67_spill] sm:$0xff] }
 0x422   : > { %17076 = vmatmul.mubr.msk.f32.gmra.mrb[52].mxu1 %vm2077_vm4, %v24558_v17  ;;  %v24567_v17 = vld [vmem:[#allocation68_spill] sm:$0xff] }
 0x423   : > { %17078 = vmatprep.mubr.msk.f32.mxu1 %vm2077_vm4, %v24559_v16  ;;  %v24568_v16 = vld [vmem:[#allocation69_spill] sm:$0xff] }
 0x426   : > { %17079 = vmatmul.mubr.msk.f32.gmra.mrb[54].mxu1 %vm2077_vm4, %v24560_v1  ;;  %v24569_v1 = vld [vmem:[#allocation70_spill] sm:$0xff] }
 0x427   : > { %17081 = vmatprep.mubr.msk.f32.mxu1 %vm2077_vm4, %v24561_v19  ;;  %v21346_v19 = vld [vmem:[#allocation2 + $0x202] sm:$0xff] }
 0x428   : > { %24570 = vst [vmem:[#allocation42_spill] sm:$0xff] %v21346_v19 }
 0x42a   : > { %17082 = vmatmul.mubr.msk.f32.gmra.mrb[56].mxu1 %vm2077_vm4, %v24562_v55  ;;  %v24571_v55 = vld [vmem:[#allocation71_spill] sm:$0xff] }
 0x42b   : > { %17084 = vmatprep.mubr.msk.f32.mxu1 %vm2077_vm4, %v24563_v8  ;;  %v24572_v8 = vld [vmem:[#allocation72_spill] sm:$0xff] }
 0x42e   : > { %17085 = vmatmul.mubr.msk.f32.gmra.mrb[58].mxu1 %vm2077_vm4, %v24564_v21  ;;  %v24573_v21 = vld [vmem:[#allocation73_spill] sm:$0xff] }
 0x42f   : > { %17087 = vmatprep.mubr.msk.f32.mxu1 %vm2077_vm4, %v24565_v14  ;;  %v24574_v14 = vld [vmem:[#allocation74_spill] sm:$0xff] }
 0x432   : > { %17088 = vmatmul.mubr.msk.f32.gmra.mrb[60].mxu1 %vm2077_vm4, %v24566_v15  ;;  %v24575_v15 = vld [vmem:[#allocation75_spill] sm:$0xff] }
 0x433   : > { %17090 = vmatprep.mubr.msk.f32.mxu1 %vm2077_vm4, %v24567_v17  ;;  %v24576_v17 = vld [vmem:[#allocation76_spill] sm:$0xff] }
 0x436   : > { %17091 = vmatmul.mubr.msk.f32.gmra.mrb[62].mxu1 %vm2077_vm4, %v24568_v16  ;;  %v24577_v16 = vld [vmem:[#allocation77_spill] sm:$0xff] }
 0x437   : > { %17093 = vmatprep.mubr.msk.f32.mxu1 %vm2077_vm4, %v24569_v1  ;;  %v24578_v1 = vld [vmem:[#allocation78_spill] sm:$0xff] }
 0x43a   : > { %17094 = vmatmul.mubr.msk.f32.gmra.mrb[0].mxu1 %vm2077_vm4, %v21346_v19  ;;  %v6414_v19 = vld [vmem:[#allocation2 + $0x40] sm:$0xff] }
 0x43b   : > { %17096 = vmatprep.mubr.msk.f32.mxu1 %vm2077_vm4, %v24571_v55  ;;  %v24579_v55 = vld [vmem:[#allocation79_spill] sm:$0xff] }
 0x43e   : > { %17097 = vmatmul.mubr.msk.f32.gmra.mrb[2].mxu1 %vm2077_vm4, %v24572_v8  ;;  %v24580_v8 = vld [vmem:[#allocation80_spill] sm:$0xff] }
 0x43f   : > { %17099 = vmatprep.mubr.msk.f32.mxu1 %vm2077_vm4, %v24573_v21  ;;  %v24581_v21 = vld [vmem:[#allocation81_spill] sm:$0xff] }
 0x442   : > { %17100 = vmatmul.mubr.msk.f32.gmra.mrb[4].mxu1 %vm2077_vm4, %v24574_v14  ;;  %v24582_v14 = vld [vmem:[#allocation82_spill] sm:$0xff] }
 0x443   : > { %17102 = vmatprep.mubr.msk.f32.mxu1 %vm2077_vm4, %v24575_v15  ;;  %v24583_v15 = vld [vmem:[#allocation83_spill] sm:$0xff] }
 0x446   : > { %17103 = vmatmul.mubr.msk.f32.gmra.mrb[6].mxu1 %vm2077_vm4, %v24576_v17  ;;  %v24584_v17 = vld [vmem:[#allocation84_spill] sm:$0xff] }
 0x447   : > { %17105 = vmatprep.mubr.msk.f32.mxu1 %vm2077_vm4, %v24577_v16  ;;  %v24585_v16 = vld [vmem:[#allocation85_spill] sm:$0xff] }
 0x44a   : > { %17106 = vmatmul.mubr.msk.f32.gmra.mrb[8].mxu1 %vm2077_vm4, %v24578_v1  ;;  %v24586_v1 = vld [vmem:[#allocation86_spill] sm:$0xff] }
 0x44b   : > { %17108 = vmatprep.mubr.msk.f32.mxu1 %vm2077_vm4, %v24579_v55  ;;  %v24587_v55 = vld [vmem:[#allocation87_spill] sm:$0xff] }
 0x44e   : > { %17109 = vmatmul.mubr.msk.f32.gmra.mrb[10].mxu1 %vm2077_vm4, %v24580_v8  ;;  %v24588_v8 = vld [vmem:[#allocation88_spill] sm:$0xff] }
 0x44f   : > { %17111 = vmatprep.mubr.msk.f32.mxu1 %vm2077_vm4, %v24581_v21  ;;  %v24589_v21 = vld [vmem:[#allocation89_spill] sm:$0xff] }
 0x452   : > { %17112 = vmatmul.mubr.msk.f32.gmra.mrb[12].mxu1 %vm2077_vm4, %v24582_v14  ;;  %v24590_v14 = vld [vmem:[#allocation90_spill] sm:$0xff] }
 0x453   : > { %17114 = vmatprep.mubr.msk.f32.mxu1 %vm2077_vm4, %v24583_v15  ;;  %v24591_v15 = vld [vmem:[#allocation91_spill] sm:$0xff] }
 0x456   : > { %17115 = vmatmul.mubr.msk.f32.gmra.mrb[14].mxu1 %vm2077_vm4, %v24584_v17  ;;  %v24592_v17 = vld [vmem:[#allocation92_spill] sm:$0xff] }
 0x457   : > { %17117 = vmatprep.mubr.msk.f32.mxu1 %vm2077_vm4, %v24585_v16  ;;  %v24593_v16 = vld [vmem:[#allocation93_spill] sm:$0xff] }
 0x45a   : > { %17118 = vmatmul.mubr.msk.f32.gmra.mrb[16].mxu1 %vm2077_vm4, %v24586_v1  ;;  %v24594_v1 = vld [vmem:[#allocation94_spill] sm:$0xff] }
 0x45b   : > { %17120 = vmatprep.mubr.msk.f32.mxu1 %vm2077_vm4, %v24587_v55  ;;  %v24595_v55 = vld [vmem:[#allocation95_spill] sm:$0xff] }
 0x45e   : > { %17121 = vmatmul.mubr.msk.f32.gmra.mrb[18].mxu1 %vm2077_vm4, %v24588_v8  ;;  %v24596_v8 = vld [vmem:[#allocation96_spill] sm:$0xff] }
 0x45f   : > { %17123 = vmatprep.mubr.msk.f32.mxu1 %vm2077_vm4, %v24589_v21  ;;  %v24597_v21 = vld [vmem:[#allocation97_spill] sm:$0xff] }
 0x462   : > { %17124 = vmatmul.mubr.msk.f32.gmra.mrb[20].mxu1 %vm2077_vm4, %v24590_v14  ;;  %v24598_v14 = vld [vmem:[#allocation98_spill] sm:$0xff] }
 0x463   : > { %17126 = vmatprep.mubr.msk.f32.mxu1 %vm2077_vm4, %v24591_v15  ;;  %v24599_v15 = vld [vmem:[#allocation99_spill] sm:$0xff] }
 0x466   : > { %17127 = vmatmul.mubr.msk.f32.gmra.mrb[22].mxu1 %vm2077_vm4, %v24592_v17  ;;  %v24600_v17 = vld [vmem:[#allocation100_spill] sm:$0xff] }
 0x467   : > { %17129 = vmatprep.mubr.msk.f32.mxu1 %vm2077_vm4, %v24593_v16  ;;  %v24601_v16 = vld [vmem:[#allocation101_spill] sm:$0xff] }
 0x46a   : > { %17130 = vmatmul.mubr.msk.f32.gmra.mrb[24].mxu1 %vm2077_vm4, %v24594_v1  ;;  %v21412_v1 = vld [vmem:[#allocation2 + $0x422] sm:$0xff] }
 0x46b   : > { %17132 = vmatprep.mubr.msk.f32.mxu1 %vm2077_vm4, %v24595_v55  ;;  %24602 = vst [vmem:[#allocation43_spill] sm:$0xff] %v21412_v1  ;;  %v14651_v55 = vld [vmem:[%s24263_s3 + $0xf0] sm:$0xff] }
 0x46e   : > { %17133 = vmatmul.mubr.msk.f32.gmra.mrb[26].mxu1 %vm2077_vm4, %v24596_v8  ;;  %v14652_v8 = vld [vmem:[%s24263_s3 + $0xf8] sm:$0xff] }
 0x46f   : > { %17135 = vmatprep.mubr.msk.f32.mxu1 %vm2077_vm4, %v24597_v21  ;;  %v6412_v21 = vld [vmem:[#allocation2 + $0x20] sm:$0xff] }
 0x472   : > { %17136 = vmatmul.mubr.msk.f32.gmra.mrb[28].mxu1 %vm2077_vm4, %v24598_v14  ;;  %v18106_v14 = vpack.c.bf16 %v14652_v8, %v14651_v55  ;;  %v6415_v55 = vld [vmem:[#allocation2 + $0x50] sm:$0xff]  ;;  %v6416_v8 = vld [vmem:[#allocation2 + $0x60] sm:$0xff] }
 0x473   : > { %17138 = vmatprep.mubr.msk.f32.mxu1 %vm2077_vm4, %v24599_v15  ;;  %v6413_v15 = vld [vmem:[#allocation2 + $0x30] sm:$0xff] }
 0x476   : > { %17139 = vmatmul.mubr.msk.f32.gmra.mrb[30].mxu1 %vm2077_vm4, %v24600_v17  ;;  %v14717_v17 = vld [vmem:[%s24263_s3 + $0x100] sm:$0xff] }
 0x477   : > { %17141 = vmatprep.mubr.msk.f32.mxu1 %vm2077_vm4, %v24601_v16  ;;  %v14718_v16 = vld [vmem:[%s24263_s3 + $0x108] sm:$0xff] }
 0x47a   : > { %17142 = vmatmul.mubr.msk.f32.gmra.mrb[32].mxu1 %vm2077_vm4, %v21412_v1  ;;  %v21432_v1 = vpack.c.bf16 %v14718_v16, %v14717_v17  ;;  %v6421_v17 = vld [vmem:[#allocation2 + $0xb0] sm:$0xff]  ;;  %v6422_v16 = vld [vmem:[#allocation2 + $0xc0] sm:$0xff] }
 0x47b   : > { %17152 = vmatprep.mubr.msk.f32.mxu1 %vm2077_vm4, %v6412_v21  ;;  %v6417_v21 = vld [vmem:[#allocation2 + $0x70] sm:$0xff] }
 0x47e   : > { %17153 = vmatmul.mubr.msk.f32.vlgmr.msra.gmra.mrb[34].mxu1 %vm2077_vm4, %v6413_v15  ;;  %v6418_v15 = vld [vmem:[#allocation2 + $0x80] sm:$0xff] }
 0x47f   : > { %18105 = vmatpush3.bf16.msra.mxu1 %v21287_v48  ;;  %17155 = vmatprep.mubr.msk.f32.mxu1 %vm2077_vm4, %v6414_v19  ;;  %v6419_v48 = vld [vmem:[#allocation2 + $0x90] sm:$0xff]  ;;  %v6420_v19 = vld [vmem:[#allocation2 + $0xa0] sm:$0xff] }
 0x480   : > { %18107 = vmatprep.subr.bf16.mxu1 %v18106_v14 }
 0x482   : > { %17156 = vmatmul.mubr.msk.f32.gmra.mrb[36].mxu1 %vm2077_vm4, %v6415_v55  ;;  %v6424_v55 = vld [vmem:[#allocation2 + $0xe0] sm:$0xff] }
 0x483   : > { %17158 = vmatprep.mubr.msk.f32.mxu1 %vm2077_vm4, %v6416_v8  ;;  %18109 = vmatpush3.bf16.msra.mxu1 %v18106_v14  ;;  %v6423_v14 = vld [vmem:[#allocation2 + $0xd0] sm:$0xff] }
 0x484   : > { %18111 = vmatprep.subr.bf16.mxu1 %v21432_v1  ;;  %v6425_v8 = vld [vmem:[#allocation2 + $0xf0] sm:$0xff] }
 0x486   : > { %17159 = vmatmul.mubr.msk.f32.gmra.mrb[38].mxu1 %vm2077_vm4, %v6417_v21  ;;  %v6426_v21 = vld [vmem:[#allocation2 + $0x100] sm:$0xff] }
 0x487   : > { %17161 = vmatprep.mubr.msk.f32.mxu1 %vm2077_vm4, %v6418_v15  ;;  %v6427_v15 = vld [vmem:[#allocation2 + $0x110] sm:$0xff] }
 0x48a   : > { %17162 = vmatmul.mubr.msk.f32.gmra.mrb[40].mxu1 %vm2077_vm4, %v6419_v48  ;;  %v6428_v48 = vld [vmem:[#allocation2 + $0x120] sm:$0xff] }
 0x48b   : > { %17164 = vmatprep.mubr.msk.f32.mxu1 %vm2077_vm4, %v6420_v19  ;;  %v6429_v19 = vld [vmem:[#allocation2 + $0x130] sm:$0xff] }
 0x48e   : > { %17165 = vmatmul.mubr.msk.f32.gmra.mrb[42].mxu1 %vm2077_vm4, %v6421_v17  ;;  %v6430_v17 = vld [vmem:[#allocation2 + $0x140] sm:$0xff] }
 0x48f   : > { %17167 = vmatprep.mubr.msk.f32.mxu1 %vm2077_vm4, %v6422_v16  ;;  %v6431_v16 = vld [vmem:[#allocation2 + $0x150] sm:$0xff] }
 0x492   : > { %17168 = vmatmul.mubr.msk.f32.gmra.mrb[44].mxu1 %vm2077_vm4, %v6423_v14  ;;  %v6432_v14 = vld [vmem:[#allocation2 + $0x160] sm:$0xff] }
 0x493   : > { %17170 = vmatprep.mubr.msk.f32.mxu1 %vm2077_vm4, %v6424_v55  ;;  %v6433_v55 = vld [vmem:[#allocation2 + $0x170] sm:$0xff] }
 0x496   : > { %17171 = vmatmul.mubr.msk.f32.gmra.mrb[46].mxu1 %vm2077_vm4, %v6425_v8  ;;  %v6434_v8 = vld [vmem:[#allocation2 + $0x180] sm:$0xff] }
 0x497   : > { %17173 = vmatprep.mubr.msk.f32.mxu1 %vm2077_vm4, %v6426_v21  ;;  %v6435_v21 = vld [vmem:[#allocation2 + $0x190] sm:$0xff] }
 0x49a   : > { %17174 = vmatmul.mubr.msk.f32.gmra.mrb[48].mxu1 %vm2077_vm4, %v6427_v15  ;;  %v6436_v15 = vld [vmem:[#allocation2 + $0x1a0] sm:$0xff] }
 0x49b   : > { %17176 = vmatprep.mubr.msk.f32.mxu1 %vm2077_vm4, %v6428_v48  ;;  %v6437_v48 = vld [vmem:[#allocation2 + $0x1b0] sm:$0xff] }
 0x49e   : > { %17177 = vmatmul.mubr.msk.f32.gmra.mrb[50].mxu1 %vm2077_vm4, %v6429_v19  ;;  %v6438_v19 = vld [vmem:[#allocation2 + $0x1c0] sm:$0xff] }
 0x49f   : > { %17179 = vmatprep.mubr.msk.f32.mxu1 %vm2077_vm4, %v6430_v17  ;;  %v6439_v17 = vld [vmem:[#allocation2 + $0x1d0] sm:$0xff] }
 0x4a2   : > { %17180 = vmatmul.mubr.msk.f32.gmra.mrb[52].mxu1 %vm2077_vm4, %v6431_v16  ;;  %v6440_v16 = vld [vmem:[#allocation2 + $0x1e0] sm:$0xff] }
 0x4a3   : > { %17182 = vmatprep.mubr.msk.f32.mxu1 %vm2077_vm4, %v6432_v14  ;;  %v6441_v14 = vld [vmem:[#allocation2 + $0x1f0] sm:$0xff] }
 0x4a6   : > { %17183 = vmatmul.mubr.msk.f32.gmra.mrb[54].mxu1 %vm2077_vm4, %v6433_v55  ;;  %v6443_v55 = vld [vmem:[#allocation2 + $0x210] sm:$0xff] }
 0x4a7   : > { %17185 = vmatprep.mubr.msk.f32.mxu1 %vm2077_vm4, %v6434_v8  ;;  %v6444_v8 = vld [vmem:[#allocation2 + $0x240] sm:$0xff] }
 0x4aa   : > { %17186 = vmatmul.mubr.msk.f32.gmra.mrb[56].mxu1 %vm2077_vm4, %v6435_v21  ;;  %v6445_v21 = vld [vmem:[#allocation2 + $0x250] sm:$0xff] }
 0x4ab   : > { %17188 = vmatprep.mubr.msk.f32.mxu1 %vm2077_vm4, %v6436_v15  ;;  %v6446_v15 = vld [vmem:[#allocation2 + $0x260] sm:$0xff] }
 0x4ae   : > { %17189 = vmatmul.mubr.msk.f32.gmra.mrb[58].mxu1 %vm2077_vm4, %v6437_v48  ;;  %v6447_v48 = vld [vmem:[#allocation2 + $0x270] sm:$0xff] }
 0x4af   : > { %17191 = vmatprep.mubr.msk.f32.mxu1 %vm2077_vm4, %v6438_v19  ;;  %v6448_v19 = vld [vmem:[#allocation2 + $0x280] sm:$0xff] }
 0x4b2   : > { %17192 = vmatmul.mubr.msk.f32.gmra.mrb[60].mxu1 %vm2077_vm4, %v6439_v17  ;;  %v6449_v17 = vld [vmem:[#allocation2 + $0x290] sm:$0xff] }
 0x4b3   : > { %17194 = vmatprep.mubr.msk.f32.mxu1 %vm2077_vm4, %v6440_v16  ;;  %v6451_v16 = vld [vmem:[#allocation2 + $0x2b0] sm:$0xff] }
 0x4b6   : > { %17195 = vmatmul.mubr.msk.f32.gmra.mrb[62].mxu1 %vm2077_vm4, %v6441_v14  ;;  %v6452_v14 = vld [vmem:[#allocation2 + $0x2c0] sm:$0xff] }
 0x4b7   : > { %17197 = vmatprep.mubr.msk.f32.mxu1 %vm2077_vm4, %v20932_v2  ;;  %v6450_v2 = vld [vmem:[#allocation2 + $0x2a0] sm:$0xff] }
 0x4ba   : > { %17198 = vmatmul.mubr.msk.f32.gmra.mrb[0].mxu1 %vm2077_vm4, %v6443_v55  ;;  %v6453_v55 = vld [vmem:[#allocation2 + $0x2d0] sm:$0xff] }
 0x4bb   : > { %17200 = vmatprep.mubr.msk.f32.mxu1 %vm2077_vm4, %v6444_v8  ;;  %v6454_v8 = vld [vmem:[#allocation2 + $0x2e0] sm:$0xff] }
 0x4be   : > { %17201 = vmatmul.mubr.msk.f32.gmra.mrb[2].mxu1 %vm2077_vm4, %v6445_v21  ;;  %v6455_v21 = vld [vmem:[#allocation2 + $0x2f0] sm:$0xff] }
 0x4bf   : > { %17203 = vmatprep.mubr.msk.f32.mxu1 %vm2077_vm4, %v6446_v15  ;;  %v6456_v15 = vld [vmem:[#allocation2 + $0x300] sm:$0xff] }
 0x4c2   : > { %17204 = vmatmul.mubr.msk.f32.gmra.mrb[4].mxu1 %vm2077_vm4, %v6447_v48  ;;  %v6457_v48 = vld [vmem:[#allocation2 + $0x310] sm:$0xff] }
 0x4c3   : > { %17206 = vmatprep.mubr.msk.f32.mxu1 %vm2077_vm4, %v6448_v19  ;;  %v6458_v19 = vld [vmem:[#allocation2 + $0x320] sm:$0xff] }
 0x4c6   : > { %17207 = vmatmul.mubr.msk.f32.gmra.mrb[6].mxu1 %vm2077_vm4, %v6449_v17  ;;  %v6459_v17 = vld [vmem:[#allocation2 + $0x330] sm:$0xff] }
 0x4c7   : > { %17209 = vmatprep.mubr.msk.f32.mxu1 %vm2077_vm4, %v6450_v2  ;;  %v6460_v2 = vld [vmem:[#allocation2 + $0x340] sm:$0xff] }
 0x4ca   : > { %17210 = vmatmul.mubr.msk.f32.gmra.mrb[8].mxu1 %vm2077_vm4, %v6451_v16  ;;  %v6461_v16 = vld [vmem:[#allocation2 + $0x350] sm:$0xff] }
 0x4cb   : > { %17212 = vmatprep.mubr.msk.f32.mxu1 %vm2077_vm4, %v6452_v14  ;;  %v6462_v14 = vld [vmem:[#allocation2 + $0x360] sm:$0xff] }
 0x4ce   : > { %17213 = vmatmul.mubr.msk.f32.gmra.mrb[10].mxu1 %vm2077_vm4, %v6453_v55  ;;  %v6463_v55 = vld [vmem:[#allocation2 + $0x370] sm:$0xff] }
 0x4cf   : > { %17215 = vmatprep.mubr.msk.f32.mxu1 %vm2077_vm4, %v6454_v8  ;;  %v6464_v8 = vld [vmem:[#allocation2 + $0x380] sm:$0xff] }
 0x4d2   : > { %17216 = vmatmul.mubr.msk.f32.gmra.mrb[12].mxu1 %vm2077_vm4, %v6455_v21  ;;  %v6465_v21 = vld [vmem:[#allocation2 + $0x390] sm:$0xff] }
 0x4d3   : > { %17218 = vmatprep.mubr.msk.f32.mxu1 %vm2077_vm4, %v6456_v15  ;;  %v6466_v15 = vld [vmem:[#allocation2 + $0x3a0] sm:$0xff] }
 0x4d6   : > { %17219 = vmatmul.mubr.msk.f32.gmra.mrb[14].mxu1 %vm2077_vm4, %v6457_v48  ;;  %v6467_v48 = vld [vmem:[#allocation2 + $0x3b0] sm:$0xff] }
 0x4d7   : > { %17221 = vmatprep.mubr.msk.f32.mxu1 %vm2077_vm4, %v6458_v19  ;;  %v6468_v19 = vld [vmem:[#allocation2 + $0x3c0] sm:$0xff] }
 0x4da   : > { %17222 = vmatmul.mubr.msk.f32.gmra.mrb[16].mxu1 %vm2077_vm4, %v6459_v17  ;;  %v6469_v17 = vld [vmem:[#allocation2 + $0x3d0] sm:$0xff] }
 0x4db   : > { %17224 = vmatprep.mubr.msk.f32.mxu1 %vm2077_vm4, %v6460_v2  ;;  %v6470_v2 = vld [vmem:[#allocation2 + $0x3e0] sm:$0xff] }
 0x4de   : > { %17225 = vmatmul.mubr.msk.f32.gmra.mrb[18].mxu1 %vm2077_vm4, %v6461_v16  ;;  %v6471_v16 = vld [vmem:[#allocation2 + $0x3f0] sm:$0xff] }
 0x4df   : > { %17227 = vmatprep.mubr.msk.f32.mxu1 %vm2077_vm4, %v6462_v14  ;;  %v6472_v14 = vld [vmem:[#allocation2 + $0x400] sm:$0xff] }
 0x4e2   : > { %17228 = vmatmul.mubr.msk.f32.gmra.mrb[20].mxu1 %vm2077_vm4, %v6463_v55  ;;  %v6473_v55 = vld [vmem:[#allocation2 + $0x410] sm:$0xff] }
 0x4e3   : > { %17230 = vmatprep.mubr.msk.f32.mxu1 %vm2077_vm4, %v6464_v8  ;;  %v6475_v8 = vld [vmem:[#allocation2 + $0x430] sm:$0xff] }
 0x4e6   : > { %17231 = vmatmul.mubr.msk.f32.gmra.mrb[22].mxu1 %vm2077_vm4, %v6465_v21  ;;  %v14719_v21 = vld [vmem:[%s24263_s3 + $0x110] sm:$0xff] }
 0x4e7   : > { %17233 = vmatprep.mubr.msk.f32.mxu1 %vm2077_vm4, %v6466_v15  ;;  %v14720_v15 = vld [vmem:[%s24263_s3 + $0x118] sm:$0xff] }
 0x4ea   : > { %17234 = vmatmul.mubr.msk.f32.gmra.mrb[24].mxu1 %vm2077_vm4, %v6467_v48  ;;  %v18114_v48 = vpack.c.bf16 %v14720_v15, %v14719_v21  ;;  %v7878_v21 = vld [vmem:[#allocation2 + $0x322] sm:$0xff]  ;;  %v14788_v15 = vld [vmem:[%s24265_s5 + $0x50] sm:$0xff] }
 0x4eb   : > { %17236 = vmatprep.mubr.msk.f32.mxu1 %vm2077_vm4, %v6468_v19  ;;  %v7874_v19 = vld [vmem:[#allocation2 + $0x2e2] sm:$0xff] }
 0x4ee   : > { %17237 = vmatmul.mubr.msk.f32.gmra.mrb[26].mxu1 %vm2077_vm4, %v6469_v17  ;;  %v7875_v17 = vld [vmem:[#allocation2 + $0x2f2] sm:$0xff] }
 0x4ef   : > { %17239 = vmatprep.mubr.msk.f32.mxu1 %vm2077_vm4, %v6470_v2  ;;  %v7876_v2 = vld [vmem:[#allocation2 + $0x302] sm:$0xff] }
 0x4f2   : > { %17240 = vmatmul.mubr.msk.f32.gmra.mrb[28].mxu1 %vm2077_vm4, %v6471_v16  ;;  %v14786_v16 = vld [vmem:[%s24265_s5 + $0x40] sm:$0xff] }
 0x4f3   : > { %17242 = vmatprep.mubr.msk.f32.mxu1 %vm2077_vm4, %v6472_v14  ;;  %v14787_v14 = vld [vmem:[%s24265_s5 + $0x48] sm:$0xff] }
 0x4f6   : > { %17243 = vmatmul.mubr.msk.f32.gmra.mrb[30].mxu1 %vm2077_vm4, %v6473_v55  ;;  %v18118_v55 = vpack.c.bf16 %v14787_v14, %v14786_v16  ;;  %v24621_v16 = vld [vmem:[#allocation10_spill] sm:$0xff] }
 0x4f7   : > { %17245 = vmatprep.mubr.msk.f32.mxu1 %vm2077_vm4, %v20998_v10  ;;  %v7153_v10 = vld [vmem:[#allocation2 + $0x211] sm:$0xff] }
 0x4f8   : > { %18119 = vmatprep.subr.bf16.mxu0 %v18118_v55 }
 0x4f9   : > { %18121 = vmatpush3.bf16.msra.mxu0 %v18118_v55 }
 0x4fa   : > { %17246 = vmatmul.mubr.msk.f32.gmra.mrb[32].mxu1 %vm2077_vm4, %v6475_v8  ;;  %v7877_v8 = vld [vmem:[#allocation2 + $0x312] sm:$0xff] }
 0x4fb   : > { %17256 = vmatprep.mubr.msk.f32.mxu1 %vm2077_vm4, %v21009_v18  ;;  %v24603_v18 = vld [vmem:[#allocation35_spill] sm:$0xff] }
 0x4fe   : > { %17257 = vmatmul.mubr.msk.f32.vlgmr.msra.gmra.mrb[34].mxu1 %vm2077_vm4, %v21019_v20  ;;  %v24604_v20 = vld [vmem:[#allocation36_spill] sm:$0xff] }
 0x4ff   : > { %18113 = vmatpush3.bf16.msra.mxu1 %v21432_v1  ;;  %17259 = vmatprep.mubr.msk.f32.mxu1 %vm2077_vm4, %v21026_v22  ;;  %v24605_v22 = vld [vmem:[#allocation37_spill] sm:$0xff]  ;;  %v7873_v1 = vld [vmem:[#allocation2 + $0x2d2] sm:$0xff] }
 0x500   : > { %18115 = vmatprep.subr.bf16.mxu1 %v18114_v48 }
 0x502   : > { %17260 = vmatmul.mubr.msk.f32.gmra.mrb[36].mxu1 %vm2077_vm4, %v21030_v23  ;;  %v24606_v23 = vld [vmem:[#allocation38_spill] sm:$0xff] }
 0x503   : > { %17262 = vmatprep.mubr.msk.f32.mxu1 %vm2077_vm4, %v21035_v24  ;;  %18117 = vmatpush3.bf16.msra.mxu1 %v18114_v48  ;;  %v24607_v24 = vld [vmem:[#allocation39_spill] sm:$0xff] }
 0x504   : > { %v14789_v48 = vld [vmem:[%s24265_s5 + $0x58] sm:$0xff] }
 0x506   : > { %17263 = vmatmul.mubr.msk.f32.gmra.mrb[38].mxu1 %vm2077_vm4, %v21039_v25  ;;  %v24608_v25 = vld [vmem:[#allocation40_spill] sm:$0xff] }
 0x507   : > { %17265 = vmatprep.mubr.msk.f32.mxu1 %vm2077_vm4, %v21043_v27  ;;  %v24609_v27 = vld [vmem:[#allocation41_spill] sm:$0xff] }
 0x50a   : > { %17266 = vmatmul.mubr.msk.f32.gmra.mrb[40].mxu1 %vm2077_vm4, %v21047_v28  ;;  %v24610_v28 = vld [vmem:[#allocation102_spill] sm:$0xff] }
 0x50b   : > { %17268 = vmatprep.mubr.msk.f32.mxu1 %vm2077_vm4, %v21051_v29  ;;  %v24611_v29 = vld [vmem:[#allocation103_spill] sm:$0xff] }
 0x50e   : > { %17269 = vmatmul.mubr.msk.f32.gmra.mrb[42].mxu1 %vm2077_vm4, %v21055_v30  ;;  %v24612_v30 = vld [vmem:[#allocation104_spill] sm:$0xff] }
 0x50f   : > { %17271 = vmatprep.mubr.msk.f32.mxu1 %vm2077_vm4, %v21059_v31  ;;  %v7185_v31 = vld [vmem:[#allocation2 + $0x431] sm:$0xff] }
 0x512   : > { %17272 = vmatmul.mubr.msk.f32.gmra.mrb[44].mxu1 %vm2077_vm4, %v21063_v32  ;;  %v7832_v32 = vld [vmem:[#allocation2 + $0x22] sm:$0xff] }
 0x513   : > { %17274 = vmatprep.mubr.msk.f32.mxu1 %vm2077_vm4, %v21067_v33  ;;  %v7833_v33 = vld [vmem:[#allocation2 + $0x32] sm:$0xff] }
 0x516   : > { %17275 = vmatmul.mubr.msk.f32.gmra.mrb[46].mxu1 %vm2077_vm4, %v21071_v34  ;;  %v7834_v34 = vld [vmem:[#allocation2 + $0x42] sm:$0xff] }
 0x517   : > { %17277 = vmatprep.mubr.msk.f32.mxu1 %vm2077_vm4, %v21075_v35  ;;  %v7835_v35 = vld [vmem:[#allocation2 + $0x52] sm:$0xff] }
 0x51a   : > { %17278 = vmatmul.mubr.msk.f32.gmra.mrb[48].mxu1 %vm2077_vm4, %v21079_v36  ;;  %v7836_v36 = vld [vmem:[#allocation2 + $0x62] sm:$0xff] }
 0x51b   : > { %17280 = vmatprep.mubr.msk.f32.mxu1 %vm2077_vm4, %v21083_v37  ;;  %v7837_v37 = vld [vmem:[#allocation2 + $0x72] sm:$0xff] }
 0x51e   : > { %17281 = vmatmul.mubr.msk.f32.gmra.mrb[50].mxu1 %vm2077_vm4, %v21087_v38  ;;  %v7838_v38 = vld [vmem:[#allocation2 + $0x82] sm:$0xff] }
 0x51f   : > { %17283 = vmatprep.mubr.msk.f32.mxu1 %vm2077_vm4, %v21091_v39  ;;  %v7839_v39 = vld [vmem:[#allocation2 + $0x92] sm:$0xff] }
 0x522   : > { %17284 = vmatmul.mubr.msk.f32.gmra.mrb[52].mxu1 %vm2077_vm4, %v21095_v40  ;;  %v7840_v40 = vld [vmem:[#allocation2 + $0xa2] sm:$0xff] }
 0x523   : > { %17286 = vmatprep.mubr.msk.f32.mxu1 %vm2077_vm4, %v21099_v41  ;;  %v7841_v41 = vld [vmem:[#allocation2 + $0xb2] sm:$0xff] }
 0x526   : > { %17287 = vmatmul.mubr.msk.f32.gmra.mrb[54].mxu1 %vm2077_vm4, %v21103_v42  ;;  %v7842_v42 = vld [vmem:[#allocation2 + $0xc2] sm:$0xff] }
 0x527   : > { %17289 = vmatprep.mubr.msk.f32.mxu1 %vm2077_vm4, %v21107_v43  ;;  %v7843_v43 = vld [vmem:[#allocation2 + $0xd2] sm:$0xff] }
 0x52a   : > { %17290 = vmatmul.mubr.msk.f32.gmra.mrb[56].mxu1 %vm2077_vm4, %v21111_v44  ;;  %v7844_v44 = vld [vmem:[#allocation2 + $0xe2] sm:$0xff] }
 0x52b   : > { %17292 = vmatprep.mubr.msk.f32.mxu1 %vm2077_vm4, %v21115_v45  ;;  %v7845_v45 = vld [vmem:[#allocation2 + $0xf2] sm:$0xff] }
 0x52e   : > { %17293 = vmatmul.mubr.msk.f32.gmra.mrb[58].mxu1 %vm2077_vm4, %v21119_v46  ;;  %v7846_v46 = vld [vmem:[#allocation2 + $0x102] sm:$0xff] }
 0x52f   : > { %17295 = vmatprep.mubr.msk.f32.mxu1 %vm2077_vm4, %v21123_v47  ;;  %v7847_v47 = vld [vmem:[#allocation2 + $0x112] sm:$0xff] }
 0x532   : > { %17296 = vmatmul.mubr.msk.f32.gmra.mrb[60].mxu1 %vm2077_vm4, %v21127_v49  ;;  %v7848_v49 = vld [vmem:[#allocation2 + $0x122] sm:$0xff] }
 0x533   : > { %17298 = vmatprep.mubr.msk.f32.mxu1 %vm2077_vm4, %v21131_v50  ;;  %v7849_v50 = vld [vmem:[#allocation2 + $0x132] sm:$0xff] }
 0x536   : > { %17299 = vmatmul.mubr.msk.f32.gmra.mrb[62].mxu1 %vm2077_vm4, %v21135_v52  ;;  %v7850_v52 = vld [vmem:[#allocation2 + $0x142] sm:$0xff] }
 0x537   : > { %17301 = vmatprep.mubr.msk.f32.mxu1 %vm2077_vm4, %v21139_v53  ;;  %v7851_v53 = vld [vmem:[#allocation2 + $0x152] sm:$0xff] }
 0x53a   : > { %17302 = vmatmul.mubr.msk.f32.gmra.mrb[0].mxu1 %vm2077_vm4, %v7153_v10  ;;  %v21691_v10 = vpack.c.bf16 %v14789_v48, %v14788_v15 }
 0x53b   : > { %17304 = vmatprep.mubr.msk.f32.mxu1 %vm2077_vm4, %v21144_v61  ;;  %v7852_v61 = vld [vmem:[#allocation2 + $0x162] sm:$0xff] }
 0x53c   : > { %18123 = vmatprep.subr.bf16.mxu0 %v21691_v10 }
 0x53d   : > { %18125 = vmatpush3.bf16.msra.mxu0 %v21691_v10 }
 0x53e   : > { %17305 = vmatmul.mubr.msk.f32.gmra.mrb[2].mxu1 %vm2077_vm4, %v21148_v60  ;;  %v7853_v60 = vld [vmem:[#allocation2 + $0x172] sm:$0xff] }
 0x53f   : > { %17307 = vmatprep.mubr.msk.f32.mxu1 %vm2077_vm4, %v21152_v62  ;;  %v7854_v62 = vld [vmem:[#allocation2 + $0x182] sm:$0xff] }
 0x542   : > { %17308 = vmatmul.mubr.msk.f32.gmra.mrb[4].mxu1 %vm2077_vm4, %v21156_v0  ;;  %v7855_v0 = vld [vmem:[#allocation2 + $0x192] sm:$0xff] }
 0x543   : > { %17310 = vmatprep.mubr.msk.f32.mxu1 %vm2077_vm4, %v21160_v3  ;;  %v7856_v3 = vld [vmem:[#allocation2 + $0x1a2] sm:$0xff] }
 0x546   : > { %17311 = vmatmul.mubr.msk.f32.gmra.mrb[6].mxu1 %vm2077_vm4, %v21164_v26  ;;  %v7857_v26 = vld [vmem:[#allocation2 + $0x1b2] sm:$0xff] }
 0x547   : > { %17313 = vmatprep.mubr.msk.f32.mxu1 %vm2077_vm4, %v21168_v58  ;;  %v7858_v58 = vld [vmem:[#allocation2 + $0x1c2] sm:$0xff] }
 0x54a   : > { %17314 = vmatmul.mubr.msk.f32.gmra.mrb[8].mxu1 %vm2077_vm4, %v21172_v51  ;;  %v7859_v51 = vld [vmem:[#allocation2 + $0x1d2] sm:$0xff] }
 0x54b   : > { %17316 = vmatprep.mubr.msk.f32.mxu1 %vm2077_vm4, %v21176_v57  ;;  %v7860_v57 = vld [vmem:[#allocation2 + $0x1e2] sm:$0xff] }
 0x54e   : > { %17317 = vmatmul.mubr.msk.f32.gmra.mrb[10].mxu1 %vm2077_vm4, %v21180_v63  ;;  %v7861_v63 = vld [vmem:[#allocation2 + $0x1f2] sm:$0xff] }
 0x54f   : > { %17319 = vmatprep.mubr.msk.f32.mxu1 %vm2077_vm4, %v21184_v7  ;;  %v24613_v7 = vld [vmem:[#allocation42_spill] sm:$0xff] }
 0x552   : > { %17320 = vmatmul.mubr.msk.f32.gmra.mrb[12].mxu1 %vm2077_vm4, %v21188_v4  ;;  %v7863_v4 = vld [vmem:[#allocation2 + $0x212] sm:$0xff] }
 0x553   : > { %17322 = vmatprep.mubr.msk.f32.mxu1 %vm2077_vm4, %v21192_v56  ;;  %v7864_v56 = vld [vmem:[#allocation2 + $0x242] sm:$0xff] }
 0x556   : > { %17323 = vmatmul.mubr.msk.f32.gmra.mrb[14].mxu1 %vm2077_vm4, %v21196_v54  ;;  %v7865_v54 = vld [vmem:[#allocation2 + $0x252] sm:$0xff] }
 0x557   : > { %17325 = vmatprep.mubr.msk.f32.mxu1 %vm2077_vm4, %v21200_v59  ;;  %v7866_v59 = vld [vmem:[#allocation2 + $0x262] sm:$0xff] }
 0x55a   : > { %17326 = vmatmul.mubr.msk.f32.gmra.mrb[16].mxu1 %vm2077_vm4, %v21204_v6  ;;  %v7867_v6 = vld [vmem:[#allocation2 + $0x272] sm:$0xff] }
 0x55b   : > { %17328 = vmatprep.mubr.msk.f32.mxu1 %vm2077_vm4, %v21208_v9  ;;  %v7868_v9 = vld [vmem:[#allocation2 + $0x282] sm:$0xff] }
 0x55e   : > { %17329 = vmatmul.mubr.msk.f32.gmra.mrb[18].mxu1 %vm2077_vm4, %v21212_v11  ;;  %v7869_v11 = vld [vmem:[#allocation2 + $0x292] sm:$0xff] }
 0x55f   : > { %17331 = vmatprep.mubr.msk.f32.mxu1 %vm2077_vm4, %v21216_v12  ;;  %v7870_v12 = vld [vmem:[#allocation2 + $0x2a2] sm:$0xff] }
 0x562   : > { %17332 = vmatmul.mubr.msk.f32.gmra.mrb[20].mxu1 %vm2077_vm4, %v21220_v13  ;;  %v7871_v13 = vld [vmem:[#allocation2 + $0x2b2] sm:$0xff] }
 0x563   : > { %17334 = vmatprep.mubr.msk.f32.mxu1 %vm2077_vm4, %v21224_v5  ;;  %v7872_v5 = vld [vmem:[#allocation2 + $0x2c2] sm:$0xff] }
 0x566   : > { %17335 = vmatmul.mubr.msk.f32.gmra.mrb[22].mxu1 %vm2077_vm4, %v24603_v18  ;;  %v7879_v18 = vld [vmem:[#allocation2 + $0x332] sm:$0xff] }
 0x567   : > { %17337 = vmatprep.mubr.msk.f32.mxu1 %vm2077_vm4, %v24604_v20  ;;  %v7880_v20 = vld [vmem:[#allocation2 + $0x342] sm:$0xff] }
 0x56a   : > { %17338 = vmatmul.mubr.msk.f32.gmra.mrb[24].mxu1 %vm2077_vm4, %v24605_v22  ;;  %v24614_v22 = vmov 0.0  }
 0x56b   : > { %17340 = vmatprep.mubr.msk.f32.mxu1 %vm2077_vm4, %v24606_v23  ;;  %8841 = vst.msk [vmem:[#allocation3 + $0x10] sm:$0xff] %vm8837_vm14, %v24614_v22  ;;  %8838 = vst.msk [vmem:[#allocation3] sm:$0xff] %vm8837_vm14, %v24614_v22  ;;  %v14790_v23 = vld [vmem:[%s24265_s5 + $0x60] sm:$0xff] }
 0x56c   : > { %8842 = vst.msk [vmem:[#allocation3 + $0x18] sm:$0x3] %vm8839_vm15, %v24614_v22  ;;  %8840 = vst.msk [vmem:[#allocation3 + $0x8] sm:$0x3] %vm8839_vm15, %v24614_v22 }
 0x56d   : > { %8843 = vst.msk [vmem:[#allocation3 + $0x20] sm:$0xff] %vm8837_vm14, %v24614_v22  ;;  %8845 = vst.msk [vmem:[#allocation3 + $0x30] sm:$0xff] %vm8837_vm14, %v24614_v22 }
 0x56e   : > { %17341 = vmatmul.mubr.msk.f32.gmra.mrb[26].mxu1 %vm2077_vm4, %v24607_v24  ;;  %8844 = vst.msk [vmem:[#allocation3 + $0x28] sm:$0x3] %vm8839_vm15, %v24614_v22  ;;  %8846 = vst.msk [vmem:[#allocation3 + $0x38] sm:$0x3] %vm8839_vm15, %v24614_v22  ;;  %v14791_v24 = vld [vmem:[%s24265_s5 + $0x68] sm:$0xff] }
 0x56f   : > { %17343 = vmatprep.mubr.msk.f32.mxu1 %vm2077_vm4, %v24608_v25  ;;  %8847 = vst.msk [vmem:[#allocation3 + $0x40] sm:$0xff] %vm8837_vm14, %v24614_v22  ;;  %8849 = vst.msk [vmem:[#allocation3 + $0x50] sm:$0xff] %vm8837_vm14, %v24614_v22  ;;  %v18126_v25 = vpack.c.bf16 %v14791_v24, %v14790_v23  ;;  %v8978_v24 = vld [vmem:[%s24265_s5 + $0x10] sm:$0xff] }
 0x570   : > { %8848 = vst.msk [vmem:[#allocation3 + $0x48] sm:$0x3] %vm8839_vm15, %v24614_v22  ;;  %8850 = vst.msk [vmem:[#allocation3 + $0x58] sm:$0x3] %vm8839_vm15, %v24614_v22 }
 0x571   : > { %8851 = vst.msk [vmem:[#allocation3 + $0x60] sm:$0xff] %vm8837_vm14, %v24614_v22  ;;  %8853 = vst.msk [vmem:[#allocation3 + $0x70] sm:$0xff] %vm8837_vm14, %v24614_v22  ;;  %18127 = vmatprep.subr.bf16.mxu0 %v18126_v25 }
 0x572   : > { %17344 = vmatmul.mubr.msk.f32.gmra.mrb[28].mxu1 %vm2077_vm4, %v24609_v27  ;;  %8852 = vst.msk [vmem:[#allocation3 + $0x68] sm:$0x3] %vm8839_vm15, %v24614_v22  ;;  %8854 = vst.msk [vmem:[#allocation3 + $0x78] sm:$0x3] %vm8839_vm15, %v24614_v22  ;;  %v7881_v27 = vld [vmem:[#allocation2 + $0x352] sm:$0xff]  ;;  %18129 = vmatpush3.bf16.msra.mxu0 %v18126_v25 }
 0x573   : > { %17346 = vmatprep.mubr.msk.f32.mxu1 %vm2077_vm4, %v24610_v28  ;;  %8855 = vst.msk [vmem:[#allocation3 + $0x80] sm:$0xff] %vm8837_vm14, %v24614_v22  ;;  %8857 = vst.msk [vmem:[#allocation3 + $0x90] sm:$0xff] %vm8837_vm14, %v24614_v22  ;;  %v7882_v28 = vld [vmem:[#allocation2 + $0x362] sm:$0xff]  ;;  %v8979_v25 = vld [vmem:[%s24265_s5 + $0x18] sm:$0xff] }
 0x574   : > { %8856 = vst.msk [vmem:[#allocation3 + $0x88] sm:$0x3] %vm8839_vm15, %v24614_v22  ;;  %8858 = vst.msk [vmem:[#allocation3 + $0x98] sm:$0x3] %vm8839_vm15, %v24614_v22 }
 0x575   : > { %8859 = vst.msk [vmem:[#allocation3 + $0xa0] sm:$0xff] %vm8837_vm14, %v24614_v22  ;;  %8861 = vst.msk [vmem:[#allocation3 + $0xb0] sm:$0xff] %vm8837_vm14, %v24614_v22 }
 0x576   : > { %17347 = vmatmul.mubr.msk.f32.gmra.mrb[30].mxu1 %vm2077_vm4, %v24611_v29  ;;  %8860 = vst.msk [vmem:[#allocation3 + $0xa8] sm:$0x3] %vm8839_vm15, %v24614_v22  ;;  %8862 = vst.msk [vmem:[#allocation3 + $0xb8] sm:$0x3] %vm8839_vm15, %v24614_v22  ;;  %v14792_v29 = vld [vmem:[%s24265_s5 + $0x70] sm:$0xff] }
 0x577   : > { %17349 = vmatprep.mubr.msk.f32.mxu1 %vm2077_vm4, %v24612_v30  ;;  %8863 = vst.msk [vmem:[#allocation3 + $0xc0] sm:$0xff] %vm8837_vm14, %v24614_v22  ;;  %8865 = vst.msk [vmem:[#allocation3 + $0xd0] sm:$0xff] %vm8837_vm14, %v24614_v22  ;;  %v14793_v30 = vld [vmem:[%s24265_s5 + $0x78] sm:$0xff] }
 0x578   : > { %8864 = vst.msk [vmem:[#allocation3 + $0xc8] sm:$0x3] %vm8839_vm15, %v24614_v22  ;;  %8866 = vst.msk [vmem:[#allocation3 + $0xd8] sm:$0x3] %vm8839_vm15, %v24614_v22 }
 0x579   : > { %8867 = vst.msk [vmem:[#allocation3 + $0xe0] sm:$0xff] %vm8837_vm14, %v24614_v22  ;;  %8869 = vst.msk [vmem:[#allocation3 + $0xf0] sm:$0xff] %vm8837_vm14, %v24614_v22 }
 0x57a   : > { %17350 = vmatmul.mubr.msk.f32.gmra.mrb[32].mxu1 %vm2077_vm4, %v7185_v31  ;;  %8868 = vst.msk [vmem:[#allocation3 + $0xe8] sm:$0x3] %vm8839_vm15, %v24614_v22  ;;  %8870 = vst.msk [vmem:[#allocation3 + $0xf8] sm:$0x3] %vm8839_vm15, %v24614_v22  ;;  %v18130_v31 = vpack.c.bf16 %v14793_v30, %v14792_v29 }
 0x57b   : > { %17360 = vmatprep.mubr.msk.f32.mxu1 %vm2077_vm4, %v7832_v32  ;;  %8871 = vst.msk [vmem:[#allocation3 + $0x100] sm:$0xff] %vm8837_vm14, %v24614_v22  ;;  %8873 = vst.msk [vmem:[#allocation3 + $0x110] sm:$0xff] %vm8837_vm14, %v24614_v22  ;;  %v7883_v32 = vld [vmem:[#allocation2 + $0x372] sm:$0xff] }
 0x57c   : > { %8872 = vst.msk [vmem:[#allocation3 + $0x108] sm:$0x3] %vm8839_vm15, %v24614_v22  ;;  %8874 = vst.msk [vmem:[#allocation3 + $0x118] sm:$0x3] %vm8839_vm15, %v24614_v22  ;;  %18131 = vmatprep.subr.bf16.mxu0 %v18130_v31 }
 0x57d   : > { %8875 = vst.msk [vmem:[#allocation3 + $0x120] sm:$0xff] %vm8837_vm14, %v24614_v22  ;;  %8877 = vst.msk [vmem:[#allocation3 + $0x130] sm:$0xff] %vm8837_vm14, %v24614_v22  ;;  %18133 = vmatpush3.bf16.msra.mxu0 %v18130_v31 }
 0x57e   : > { %17361 = vmatmul.mubr.msk.f32.vlgmr.msra.gmra.mrb[34].mxu1 %vm2077_vm4, %v7833_v33  ;;  %8876 = vst.msk [vmem:[#allocation3 + $0x128] sm:$0x3] %vm8839_vm15, %v24614_v22  ;;  %8878 = vst.msk [vmem:[#allocation3 + $0x138] sm:$0x3] %vm8839_vm15, %v24614_v22  ;;  %v7884_v33 = vld [vmem:[#allocation2 + $0x382] sm:$0xff] }
 0x57f   : > { %17363 = vmatprep.mubr.msk.f32.mxu1 %vm2077_vm4, %v7834_v34  ;;  %8879 = vst.msk [vmem:[#allocation3 + $0x140] sm:$0xff] %vm8837_vm14, %v24614_v22  ;;  %8881 = vst.msk [vmem:[#allocation3 + $0x150] sm:$0xff] %vm8837_vm14, %v24614_v22  ;;  %v8984_v34 = vld [vmem:[#allocation3 + $0x1] sm:$0xff] }
 0x580   : > { %8880 = vst.msk [vmem:[#allocation3 + $0x148] sm:$0x3] %vm8839_vm15, %v24614_v22  ;;  %8882 = vst.msk [vmem:[#allocation3 + $0x158] sm:$0x3] %vm8839_vm15, %v24614_v22  ;;  %17472 = vmatprep.mubr.msk.f32.mxu0 %vm8837_vm14, %v8984_v34 }
 0x581   : > { %8883 = vst.msk [vmem:[#allocation3 + $0x160] sm:$0xff] %vm8837_vm14, %v24614_v22  ;;  %8885 = vst.msk [vmem:[#allocation3 + $0x170] sm:$0xff] %vm8837_vm14, %v24614_v22 }
 0x582   : > { %17364 = vmatmul.mubr.msk.f32.gmra.mrb[36].mxu1 %vm2077_vm4, %v7835_v35  ;;  %8884 = vst.msk [vmem:[#allocation3 + $0x168] sm:$0x3] %vm8839_vm15, %v24614_v22  ;;  %8886 = vst.msk [vmem:[#allocation3 + $0x178] sm:$0x3] %vm8839_vm15, %v24614_v22  ;;  %v7885_v35 = vld [vmem:[#allocation2 + $0x392] sm:$0xff] }
 0x583   : > { %17366 = vmatprep.mubr.msk.f32.mxu1 %vm2077_vm4, %v7836_v36  ;;  %8887 = vst.msk [vmem:[#allocation3 + $0x180] sm:$0xff] %vm8837_vm14, %v24614_v22  ;;  %8889 = vst.msk [vmem:[#allocation3 + $0x190] sm:$0xff] %vm8837_vm14, %v24614_v22  ;;  %v7886_v36 = vld [vmem:[#allocation2 + $0x3a2] sm:$0xff] }
 0x584   : > { %8888 = vst.msk [vmem:[#allocation3 + $0x188] sm:$0x3] %vm8839_vm15, %v24614_v22  ;;  %8890 = vst.msk [vmem:[#allocation3 + $0x198] sm:$0x3] %vm8839_vm15, %v24614_v22 }
 0x585   : > { %8891 = vst.msk [vmem:[#allocation3 + $0x1a0] sm:$0xff] %vm8837_vm14, %v24614_v22  ;;  %8893 = vst.msk [vmem:[#allocation3 + $0x1b0] sm:$0xff] %vm8837_vm14, %v24614_v22 }
 0x586   : > { %17367 = vmatmul.mubr.msk.f32.gmra.mrb[38].mxu1 %vm2077_vm4, %v7837_v37  ;;  %8892 = vst.msk [vmem:[#allocation3 + $0x1a8] sm:$0x3] %vm8839_vm15, %v24614_v22  ;;  %8894 = vst.msk [vmem:[#allocation3 + $0x1b8] sm:$0x3] %vm8839_vm15, %v24614_v22  ;;  %v7887_v37 = vld [vmem:[#allocation2 + $0x3b2] sm:$0xff] }
 0x587   : > { %17369 = vmatprep.mubr.msk.f32.mxu1 %vm2077_vm4, %v7838_v38  ;;  %8895 = vst.msk [vmem:[#allocation3 + $0x1c0] sm:$0xff] %vm8837_vm14, %v24614_v22  ;;  %8897 = vst.msk [vmem:[#allocation3 + $0x1d0] sm:$0xff] %vm8837_vm14, %v24614_v22  ;;  %v7888_v38 = vld [vmem:[#allocation2 + $0x3c2] sm:$0xff] }
 0x588   : > { %8896 = vst.msk [vmem:[#allocation3 + $0x1c8] sm:$0x3] %vm8839_vm15, %v24614_v22  ;;  %8898 = vst.msk [vmem:[#allocation3 + $0x1d8] sm:$0x3] %vm8839_vm15, %v24614_v22 }
 0x589   : > { %8899 = vst.msk [vmem:[#allocation3 + $0x1e0] sm:$0xff] %vm8837_vm14, %v24614_v22  ;;  %8901 = vst.msk [vmem:[#allocation3 + $0x1f0] sm:$0xff] %vm8837_vm14, %v24614_v22 }
 0x58a   : > { %17370 = vmatmul.mubr.msk.f32.gmra.mrb[40].mxu1 %vm2077_vm4, %v7839_v39  ;;  %8900 = vst.msk [vmem:[#allocation3 + $0x1e8] sm:$0x3] %vm8839_vm15, %v24614_v22  ;;  %8902 = vst.msk [vmem:[#allocation3 + $0x1f8] sm:$0x3] %vm8839_vm15, %v24614_v22  ;;  %v7889_v39 = vld [vmem:[#allocation2 + $0x3d2] sm:$0xff] }
 0x58b   : > { %17372 = vmatprep.mubr.msk.f32.mxu1 %vm2077_vm4, %v7840_v40  ;;  %8903 = vst.msk [vmem:[#allocation3 + $0x200] sm:$0xff] %vm8837_vm14, %v24614_v22  ;;  %8905 = vst.msk [vmem:[#allocation3 + $0x210] sm:$0xff] %vm8837_vm14, %v24614_v22  ;;  %v7890_v40 = vld [vmem:[#allocation2 + $0x3e2] sm:$0xff] }
 0x58c   : > { %8904 = vst.msk [vmem:[#allocation3 + $0x208] sm:$0x3] %vm8839_vm15, %v24614_v22  ;;  %8906 = vst.msk [vmem:[#allocation3 + $0x218] sm:$0x3] %vm8839_vm15, %v24614_v22 }
 0x58d   : > { %8907 = vst.msk [vmem:[#allocation3 + $0x220] sm:$0xff] %vm8837_vm14, %v24614_v22  ;;  %8909 = vst.msk [vmem:[#allocation3 + $0x230] sm:$0xff] %vm8837_vm14, %v24614_v22 }
 0x58e   : > { %17373 = vmatmul.mubr.msk.f32.gmra.mrb[42].mxu1 %vm2077_vm4, %v7841_v41  ;;  %8908 = vst.msk [vmem:[#allocation3 + $0x228] sm:$0x3] %vm8839_vm15, %v24614_v22  ;;  %8910 = vst.msk [vmem:[#allocation3 + $0x238] sm:$0x3] %vm8839_vm15, %v24614_v22  ;;  %v7891_v41 = vld [vmem:[#allocation2 + $0x3f2] sm:$0xff] }
 0x58f   : > { %17375 = vmatprep.mubr.msk.f32.mxu1 %vm2077_vm4, %v7842_v42  ;;  %v7892_v42 = vld [vmem:[#allocation2 + $0x402] sm:$0xff] }
 0x592   : > { %17376 = vmatmul.mubr.msk.f32.gmra.mrb[44].mxu1 %vm2077_vm4, %v7843_v43  ;;  %v7893_v43 = vld [vmem:[#allocation2 + $0x412] sm:$0xff] }
 0x593   : > { %17378 = vmatprep.mubr.msk.f32.mxu1 %vm2077_vm4, %v7844_v44  ;;  %v24615_v44 = vld [vmem:[#allocation43_spill] sm:$0xff] }
 0x596   : > { %17379 = vmatmul.mubr.msk.f32.gmra.mrb[46].mxu1 %vm2077_vm4, %v7845_v45  ;;  %v7895_v45 = vld [vmem:[#allocation2 + $0x432] sm:$0xff] }
 0x597   : > { %17381 = vmatprep.mubr.msk.f32.mxu1 %vm2077_vm4, %v7846_v46  ;;  %v8976_v46 = vld [vmem:[%s24265_s5] sm:$0xff] }
 0x59a   : > { %17382 = vmatmul.mubr.msk.f32.gmra.mrb[48].mxu1 %vm2077_vm4, %v7847_v47  ;;  %v8977_v47 = vld [vmem:[%s24265_s5 + $0x8] sm:$0xff] }
 0x59b   : > { %17384 = vmatprep.mubr.msk.f32.mxu1 %vm2077_vm4, %v7848_v49  ;;  %v21876_v49 = vpack.c.bf16 %v8977_v47, %v8976_v46 }
 0x59d   : > { %18135 = vmatprep.subr.bf16.mxu0 %v21876_v49 }
 0x59e   : > { %17385 = vmatmul.mubr.msk.f32.gmra.mrb[50].mxu1 %vm2077_vm4, %v7849_v50 }
 0x59f   : > { %17387 = vmatprep.mubr.msk.f32.mxu1 %vm2077_vm4, %v7850_v52  ;;  %v21882_v52 = vld [vmem:[%s24264_s4] ss:$0 sm:$0xff] }
 0x5a2   : > { %17388 = vmatmul.mubr.msk.f32.gmra.mrb[52].mxu1 %vm2077_vm4, %v7851_v53  ;;  %v24616_v53 = vld [vmem:[#allocation5_spill] sm:$0xff] }
 0x5a3   : > { %17390 = vmatprep.mubr.msk.f32.mxu1 %vm2077_vm4, %v7852_v61 }
 0x5a6   : > { %17391 = vmatmul.mubr.msk.f32.gmra.mrb[54].mxu1 %vm2077_vm4, %v7853_v60 }
 0x5a7   : > { %17393 = vmatprep.mubr.msk.f32.mxu1 %vm2077_vm4, %v7854_v62  ;;  %v24617_v62 = vld [vmem:[#allocation6_spill] sm:$0xff] }
 0x5aa   : > { %17394 = vmatmul.mubr.msk.f32.gmra.mrb[56].mxu1 %vm2077_vm4, %v7855_v0 }
 0x5ab   : > { %17396 = vmatprep.mubr.msk.f32.mxu1 %vm2077_vm4, %v7856_v3 }
 0x5ae   : > { %17397 = vmatmul.mubr.msk.f32.gmra.mrb[58].mxu1 %vm2077_vm4, %v7857_v26 }
 0x5af   : > { %17399 = vmatprep.mubr.msk.f32.mxu1 %vm2077_vm4, %v7858_v58 }
 0x5b2   : > { %17400 = vmatmul.mubr.msk.f32.gmra.mrb[60].mxu1 %vm2077_vm4, %v7859_v51 }
 0x5b3   : > { %17402 = vmatprep.mubr.msk.f32.mxu1 %vm2077_vm4, %v7860_v57  ;;  %v24618_v57 = vld [vmem:[#allocation7_spill] sm:$0xff] }
 0x5b6   : > { %17403 = vmatmul.mubr.msk.f32.gmra.mrb[62].mxu1 %vm2077_vm4, %v7861_v63 }
 0x5b7   : > { %17405 = vmatprep.mubr.msk.f32.mxu1 %vm2077_vm4, %v24613_v7 }
 0x5ba   : > { %17406 = vmatmul.mubr.msk.f32.gmra.mrb[0].mxu1 %vm2077_vm4, %v7863_v4 }
 0x5bb   : > { %17408 = vmatprep.mubr.msk.f32.mxu1 %vm2077_vm4, %v7864_v56  ;;  %v24619_v56 = vld [vmem:[#allocation8_spill] sm:$0xff] }
 0x5be   : > { %17409 = vmatmul.mubr.msk.f32.gmra.mrb[2].mxu1 %vm2077_vm4, %v7865_v54 }
 0x5bf   : > { %17411 = vmatprep.mubr.msk.f32.mxu1 %vm2077_vm4, %v7866_v59 }
 0x5c2   : > { %17412 = vmatmul.mubr.msk.f32.gmra.mrb[4].mxu1 %vm2077_vm4, %v7867_v6 }
 0x5c3   : > { %17414 = vmatprep.mubr.msk.f32.mxu1 %vm2077_vm4, %v7868_v9 }
 0x5c6   : > { %17415 = vmatmul.mubr.msk.f32.gmra.mrb[6].mxu1 %vm2077_vm4, %v7869_v11 }
 0x5c7   : > { %17417 = vmatprep.mubr.msk.f32.mxu1 %vm2077_vm4, %v7870_v12 }
 0x5ca   : > { %17418 = vmatmul.mubr.msk.f32.gmra.mrb[8].mxu1 %vm2077_vm4, %v7871_v13 }
 0x5cb   : > { %17420 = vmatprep.mubr.msk.f32.mxu1 %vm2077_vm4, %v7872_v5 }
 0x5ce   : > { %17421 = vmatmul.mubr.msk.f32.gmra.mrb[10].mxu1 %vm2077_vm4, %v7873_v1  ;;  %v24620_v1 = vld [vmem:[#allocation9_spill] sm:$0xff] }
 0x5cf   : > { %17423 = vmatprep.mubr.msk.f32.mxu1 %vm2077_vm4, %v7874_v19 }
 0x5d2   : > { %17424 = vmatmul.mubr.msk.f32.gmra.mrb[12].mxu1 %vm2077_vm4, %v7875_v17 }
 0x5d3   : > { %17426 = vmatprep.mubr.msk.f32.mxu1 %vm2077_vm4, %v7876_v2 }
 0x5d6   : > { %17427 = vmatmul.mubr.msk.f32.gmra.mrb[14].mxu1 %vm2077_vm4, %v7877_v8 }
 0x5d7   : > { %17429 = vmatprep.mubr.msk.f32.mxu1 %vm2077_vm4, %v7878_v21 }
 0x5da   : > { %17430 = vmatmul.mubr.msk.f32.gmra.mrb[16].mxu1 %vm2077_vm4, %v7879_v18 }
 0x5db   : > { %17432 = vmatprep.mubr.msk.f32.mxu1 %vm2077_vm4, %v7880_v20  ;;  %v24622_v20 = vld [vmem:[#allocation11_spill] sm:$0xff] }
 0x5de   : > { %17433 = vmatmul.mubr.msk.f32.gmra.mrb[18].mxu1 %vm2077_vm4, %v7881_v27 }
 0x5df   : > { %17435 = vmatprep.mubr.msk.f32.mxu1 %vm2077_vm4, %v7882_v28  ;;  %v24623_v28 = vld [vmem:[#allocation12_spill] sm:$0xff] }
 0x5e2   : > { %17436 = vmatmul.mubr.msk.f32.gmra.mrb[20].mxu1 %vm2077_vm4, %v7883_v32 }
 0x5e3   : > { %17438 = vmatprep.mubr.msk.f32.mxu1 %vm2077_vm4, %v7884_v33 }
 0x5e6   : > { %17439 = vmatmul.mubr.msk.f32.gmra.mrb[22].mxu1 %vm2077_vm4, %v7885_v35  ;;  %v18138_v35 = vpack.c.bf16 %v8979_v25, %v8978_v24  ;;  %v24630_v25 = vld [vmem:[#allocation19_spill] sm:$0xff] }
 0x5e7   : > { %17441 = vmatprep.mubr.msk.f32.mxu1 %vm2077_vm4, %v7886_v36 }
 0x5ea   : > { %17442 = vmatmul.mubr.msk.f32.gmra.mrb[24].mxu1 %vm2077_vm4, %v7887_v37 }
 0x5eb   : > { %17444 = vmatprep.mubr.msk.f32.mxu1 %vm2077_vm4, %v7888_v38  ;;  %v24624_v38 = vld [vmem:[#allocation13_spill] sm:$0xff] }
 0x5ee   : > { %17445 = vmatmul.mubr.msk.f32.gmra.mrb[26].mxu1 %vm2077_vm4, %v7889_v39 }
 0x5ef   : > { %17447 = vmatprep.mubr.msk.f32.mxu1 %vm2077_vm4, %v7890_v40 }
 0x5f2   : > { %17448 = vmatmul.mubr.msk.f32.gmra.mrb[28].mxu1 %vm2077_vm4, %v7891_v41  ;;  %v8980_v41 = vld [vmem:[%s24265_s5 + $0x20] sm:$0xff] }
 0x5f3   : > { %17450 = vmatprep.mubr.msk.f32.mxu1 %vm2077_vm4, %v7892_v42  ;;  %v8981_v42 = vld [vmem:[%s24265_s5 + $0x28] sm:$0xff] }
 0x5f6   : > { %17451 = vmatmul.mubr.msk.f32.gmra.mrb[30].mxu1 %vm2077_vm4, %v7893_v43 }
 0x5f7   : > { %17453 = vmatprep.mubr.msk.f32.mxu1 %vm2077_vm4, %v24615_v44  ;;  %v24625_v44 = vld [vmem:[#allocation14_spill] sm:$0xff] }
 0x5fa   : > { %17454 = vmatmul.mubr.msk.f32.gmra.mrb[32].mxu1 %vm2077_vm4, %v7895_v45 }
 0x651   : > { %v17362_v50 = vpop.f32.mrb[34].mxu1 }
 0x652   : > { %v18522_v61 = vadd.f32 %v17362_v50, %v24616_v53  ;;  %v8159_v60 = vpop.f32.mrb[35].mxu1 }
 0x653   : > { %v18523_v0 = vadd.f32 %v8159_v60, %v24617_v62  ;;  %v18142_v62 = vpack.c.bf16 %v8981_v42, %v8980_v41 }
 0x654   : > { %v8550_v3 = vadd.f32 %v18522_v61, %v21882_v52 }
 0x655   : > { %v8549_v26 = vadd.f32 %v18523_v0, %v21882_v52  ;;  %v17365_v58 = vpop.f32.mrb[36].mxu1 }
 0x656   : > { %vm8614_vm4 = vcmp.ge.f32.partialorder %v8550_v3, 0.0  ;;  %v8678_v51 = vmul.f32 0.2, %v8550_v3  ;;  %v18524_v63 = vadd.f32 %v17365_v58, %v24618_v57  ;;  %v8169_v7 = vpop.f32.mrb[37].mxu1  ;;  %v8982_v57 = vld [vmem:[%s24265_s5 + $0x30] sm:$0xff] }
 0x657   : > { %vm8613_vm0 = vcmp.ge.f32.partialorder %v8549_v26, 0.0  ;;  %v8677_v4 = vmul.f32 0.2, %v8549_v26  ;;  %v18525_v54 = vadd.f32 %v8169_v7, %v24619_v56 }
 0x658   : > { %v8742_v59 = vsel %vm8614_vm4, %v8550_v3, %v8678_v51  ;;  %v8552_v6 = vadd.f32 %v18524_v63, %v21882_v52  ;;  %v8983_v63 = vld [vmem:[%s24265_s5 + $0x38] sm:$0xff] }
 0x659   : > { %v8741_v9 = vsel %vm8613_vm0, %v8549_v26, %v8677_v4  ;;  %v8551_v11 = vadd.f32 %v18525_v54, %v21882_v52  ;;  %v17368_v12 = vpop.f32.mrb[38].mxu1  ;;  %v24626_v26 = vld [vmem:[#allocation15_spill] sm:$0xff]  ;;  %v24627_v4 = vld [vmem:[#allocation16_spill] sm:$0xff] }
 0x65a   : > { %v8805_v13 = vmax.f32 %v8741_v9, %v8742_v59  ;;  %vm8616_vm2 = vcmp.ge.f32.partialorder %v8552_v6, 0.0  ;;  %v8680_v5 = vmul.f32 0.2, %v8552_v6  ;;  %v18526_v19 = vadd.f32 %v17368_v12, %v24620_v1  ;;  %v8179_v17 = vpop.f32.mrb[39].mxu1  ;;  %v24628_v1 = vld [vmem:[#allocation17_spill] sm:$0xff] }
 0x65b   : > { %vm8615_vm3 = vcmp.ge.f32.partialorder %v8551_v11, 0.0  ;;  %v8679_v2 = vmul.f32 0.2, %v8551_v11  ;;  %v18527_v14 = vadd.f32 %v8179_v17, %v24621_v16  ;;  %v18146_v12 = vpack.c.bf16 %v8983_v63, %v8982_v57  ;;  %v14859_v16 = vld [vmem:[%s24265_s5 + $0x88] sm:$0xff]  ;;  %v24635_v57 = vld [vmem:[#allocation24_spill] sm:$0xff] }
 0x65c   : > { %8912 = vst.msk [vmem:[#allocation3 + $0x11] sm:$0xff] %vm8837_vm14, %v8805_v13  ;;  %v8744_v55 = vsel %vm8616_vm2, %v8552_v6, %v8680_v5  ;;  %v8554_v8 = vadd.f32 %v18526_v19, %v21882_v52 }
 0x65d   : > { %v8743_v21 = vsel %vm8615_vm3, %v8551_v11, %v8679_v2  ;;  %v8553_v15 = vadd.f32 %v18527_v14, %v21882_v52  ;;  %v17371_v48 = vpop.f32.mrb[40].mxu1  ;;  %v14858_v2 = vld [vmem:[%s24265_s5 + $0x80] sm:$0xff] }
 0x65e   : > { %v8806_v10 = vmax.f32 %v8743_v21, %v8744_v55  ;;  %vm8618_vm5 = vcmp.ge.f32.partialorder %v8554_v8, 0.0  ;;  %v8682_v18 = vmul.f32 0.2, %v8554_v8  ;;  %v18528_v22 = vadd.f32 %v17371_v48, %v24622_v20  ;;  %v8189_v23 = vpop.f32.mrb[41].mxu1  ;;  %v24629_v55 = vld [vmem:[#allocation18_spill] sm:$0xff] }
 0x65f   : > { %vm8617_vm6 = vcmp.ge.f32.partialorder %v8553_v15, 0.0  ;;  %v8681_v27 = vmul.f32 0.2, %v8553_v15  ;;  %v18529_v29 = vadd.f32 %v8189_v23, %v24623_v28 }
 0x660   : > { %8913 = vst.msk [vmem:[#allocation3 + $0x21] sm:$0xff] %vm8837_vm14, %v8806_v10  ;;  %v8746_v30 = vsel %vm8618_vm5, %v8554_v8, %v8682_v18  ;;  %v8556_v31 = vadd.f32 %v18528_v22, %v21882_v52  ;;  %v21945_v22 = vpack.c.bf16 %v14859_v16, %v14858_v2 }
 0x661   : > { %v8745_v32 = vsel %vm8617_vm6, %v8553_v15, %v8681_v27  ;;  %v8555_v33 = vadd.f32 %v18529_v29, %v21882_v52  ;;  %v17374_v34 = vpop.f32.mrb[42].mxu1 }
 0x662   : > { %v8807_v36 = vmax.f32 %v8745_v32, %v8746_v30  ;;  %vm8620_vm7 = vcmp.ge.f32.partialorder %v8556_v31, 0.0  ;;  %v8684_v37 = vmul.f32 0.2, %v8556_v31  ;;  %v18530_v39 = vadd.f32 %v17374_v34, %v24624_v38  ;;  %v8199_v40 = vpop.f32.mrb[43].mxu1  ;;  %v24631_v30 = vld [vmem:[#allocation20_spill] sm:$0xff] }
 0x663   : > { %vm8619_vm8 = vcmp.ge.f32.partialorder %v8555_v33, 0.0  ;;  %v8683_v43 = vmul.f32 0.2, %v8555_v33  ;;  %v18531_v45 = vadd.f32 %v8199_v40, %v24625_v44  ;;  %v8985_v46 = vld [vmem:[#allocation3 + $0x11] sm:$0xff]  ;;  %v24632_v40 = vld [vmem:[#allocation21_spill] sm:$0xff]  ;;  %v24633_v44 = vld [vmem:[#allocation22_spill] sm:$0xff] }
 0x664   : > { %8914 = vst.msk [vmem:[#allocation3 + $0x31] sm:$0xff] %vm8837_vm14, %v8807_v36  ;;  %v8748_v47 = vsel %vm8620_vm7, %v8556_v31, %v8684_v37  ;;  %v8558_v50 = vadd.f32 %v18530_v39, %v21882_v52  ;;  %17473 = vmatmul.mubr.msk.f32.vlgmr.msra.gmra.mrb[158].mxu0 %vm8837_vm14, %v8985_v46 }
 0x665   : > { %v8747_v53 = vsel %vm8619_vm8, %v8555_v33, %v8683_v43  ;;  %v8557_v61 = vadd.f32 %v18531_v45, %v21882_v52  ;;  %v17377_v60 = vpop.f32.mrb[44].mxu1  ;;  %18137 = vmatpush3.bf16.msra.mxu0 %v21876_v49 }
 0x666   : > { %v8808_v0 = vmax.f32 %v8747_v53, %v8748_v47  ;;  %vm8622_vm9 = vcmp.ge.f32.partialorder %v8558_v50, 0.0  ;;  %v8686_v3 = vmul.f32 0.2, %v8558_v50  ;;  %v18532_v58 = vadd.f32 %v17377_v60, %v24626_v26  ;;  %v8209_v51 = vpop.f32.mrb[45].mxu1  ;;  %18139 = vmatprep.subr.bf16.mxu0 %v18138_v35 }
 0x667   : > { %vm8621_vm10 = vcmp.ge.f32.partialorder %v8557_v61, 0.0  ;;  %v8685_v7 = vmul.f32 0.2, %v8557_v61  ;;  %v18533_v49 = vadd.f32 %v8209_v51, %v24627_v4  ;;  %v8986_v56 = vld [vmem:[#allocation3 + $0x21] sm:$0xff] }
 0x668   : > { %8915 = vst.msk [vmem:[#allocation3 + $0x41] sm:$0xff] %vm8837_vm14, %v8808_v0  ;;  %v8750_v54 = vsel %vm8622_vm9, %v8558_v50, %v8686_v3  ;;  %v8560_v59 = vadd.f32 %v18532_v58, %v21882_v52  ;;  %17475 = vmatprep.mubr.msk.f32.mxu0 %vm8837_vm14, %v8986_v56  ;;  %v24634_v3 = vld [vmem:[#allocation23_spill] sm:$0xff] }
 0x669   : > { %v8749_v6 = vsel %vm8621_vm10, %v8557_v61, %v8685_v7  ;;  %v8559_v9 = vadd.f32 %v18533_v49, %v21882_v52  ;;  %v17380_v11 = vpop.f32.mrb[46].mxu1  ;;  %18141 = vmatpush3.bf16.msra.mxu0 %v18138_v35 }
 0x66a   : > { %v8809_v13 = vmax.f32 %v8749_v6, %v8750_v54  ;;  %vm8624_vm11 = vcmp.ge.f32.partialorder %v8560_v59, 0.0  ;;  %v8688_v5 = vmul.f32 0.2, %v8560_v59  ;;  %v18534_v19 = vadd.f32 %v17380_v11, %v24628_v1  ;;  %v8219_v17 = vpop.f32.mrb[47].mxu1  ;;  %18143 = vmatprep.subr.bf16.mxu0 %v18142_v62  ;;  %v24636_v11 = vld [vmem:[#allocation25_spill] sm:$0xff]  ;;  %v24637_v1 = vld [vmem:[#allocation26_spill] sm:$0xff] }
 0x66b   : > { %vm8623_vm12 = vcmp.ge.f32.partialorder %v8559_v9, 0.0  ;;  %v8687_v14 = vmul.f32 0.2, %v8559_v9  ;;  %v18535_v8 = vadd.f32 %v8219_v17, %v24629_v55  ;;  %v8987_v21 = vld [vmem:[#allocation3 + $0x31] sm:$0xff] }
 0x66c   : > { %8916 = vst.msk [vmem:[#allocation3 + $0x51] sm:$0xff] %vm8837_vm14, %v8809_v13  ;;  %v8752_v15 = vsel %vm8624_vm11, %v8560_v59, %v8688_v5  ;;  %v8562_v48 = vadd.f32 %v18534_v19, %v21882_v52  ;;  %17476 = vmatmul.mubr.msk.f32.gmra.mrb[160].mxu0 %vm8837_vm14, %v8987_v21 }
 0x66d   : > { %v8751_v10 = vsel %vm8623_vm12, %v8559_v9, %v8687_v14  ;;  %v8561_v18 = vadd.f32 %v18535_v8, %v21882_v52  ;;  %v17383_v20 = vpop.f32.mrb[48].mxu1  ;;  %18145 = vmatpush3.bf16.msra.mxu0 %v18142_v62 }
 0x66e   : > { %v8810_v23 = vmax.f32 %v8751_v10, %v8752_v15  ;;  %vm8626_vm13 = vcmp.ge.f32.partialorder %v8562_v48, 0.0  ;;  %v8690_v24 = vmul.f32 0.2, %v8562_v48  ;;  %v18536_v27 = vadd.f32 %v17383_v20, %v24630_v25  ;;  %v8229_v28 = vpop.f32.mrb[49].mxu1  ;;  %18147 = vmatprep.subr.bf16.mxu0 %v18146_v12 }
 0x66f   : > { %vm8625_vm1 = vcmp.ge.f32.partialorder %v8561_v18, 0.0  ;;  %v8689_v29 = vmul.f32 0.2, %v8561_v18  ;;  %v18537_v31 = vadd.f32 %v8229_v28, %v24631_v30  ;;  %v8988_v32 = vld [vmem:[#allocation3 + $0x41] sm:$0xff] }
 0x670   : > { %8917 = vst.msk [vmem:[#allocation3 + $0x61] sm:$0xff] %vm8837_vm14, %v8810_v23  ;;  %v8754_v33 = vsel %vm8626_vm13, %v8562_v48, %v8690_v24  ;;  %v8564_v34 = vadd.f32 %v18536_v27, %v21882_v52  ;;  %17478 = vmatprep.mubr.msk.f32.mxu0 %vm8837_vm14, %v8988_v32  ;;  %v24638_v48 = vld [vmem:[#allocation27_spill] sm:$0xff]  ;;  %v24639_v23 = vld [vmem:[#allocation28_spill] sm:$0xff] }
 0x671   : > { %v8753_v35 = vsel %vm8625_vm1, %v8561_v18, %v8689_v29  ;;  %v8563_v36 = vadd.f32 %v18537_v31, %v21882_v52  ;;  %v17386_v37 = vpop.f32.mrb[50].mxu1  ;;  %18149 = vmatpush3.bf16.msra.mxu0 %v18146_v12 }
 0x672   : > { %v8811_v38 = vmax.f32 %v8753_v35, %v8754_v33  ;;  %vm8628_vm15 = vcmp.ge.f32.partialorder %v8564_v34, 0.0  ;;  %v8692_v39 = vmul.f32 0.2, %v8564_v34  ;;  %v18538_v41 = vadd.f32 %v17386_v37, %v24632_v40  ;;  %v8239_v42 = vpop.f32.mrb[51].mxu1  ;;  %18151 = vmatprep.subr.bf16.mxu0 %v21945_v22 }
 0x673   : > { %vm8627_vm4 = vcmp.ge.f32.partialorder %v8563_v36, 0.0  ;;  %v8691_v43 = vmul.f32 0.2, %v8563_v36  ;;  %v18539_v45 = vadd.f32 %v8239_v42, %v24633_v44  ;;  %v8989_v46 = vld [vmem:[#allocation3 + $0x51] sm:$0xff] }
 0x674   : > { %8918 = vst.msk [vmem:[#allocation3 + $0x71] sm:$0xff] %vm8837_vm14, %v8811_v38  ;;  %v8756_v47 = vsel %vm8628_vm15, %v8564_v34, %v8692_v39  ;;  %v8566_v50 = vadd.f32 %v18538_v41, %v21882_v52  ;;  %17479 = vmatmul.mubr.msk.f32.gmra.mrb[162].mxu0 %vm8837_vm14, %v8989_v46  ;;  %v24640_v34 = vld [vmem:[#allocation29_spill] sm:$0xff]  ;;  %v24641_v38 = vld [vmem:[#allocation30_spill] sm:$0xff] }
 0x675   : > { %v8755_v53 = vsel %vm8627_vm4, %v8563_v36, %v8691_v43  ;;  %v8565_v61 = vadd.f32 %v18539_v45, %v21882_v52  ;;  %v17389_v60 = vpop.f32.mrb[52].mxu1 }
 0x676   : > { %v8812_v62 = vmax.f32 %v8755_v53, %v8756_v47  ;;  %vm8630_vm0 = vcmp.ge.f32.partialorder %v8566_v50, 0.0  ;;  %v8694_v0 = vmul.f32 0.2, %v8566_v50  ;;  %v18540_v26 = vadd.f32 %v17389_v60, %v24634_v3  ;;  %v8249_v58 = vpop.f32.mrb[53].mxu1 }
 0x677   : > { %vm8629_vm2 = vcmp.ge.f32.partialorder %v8565_v61, 0.0  ;;  %v8693_v51 = vmul.f32 0.2, %v8565_v61  ;;  %v18541_v63 = vadd.f32 %v8249_v58, %v24635_v57  ;;  %v8990_v7 = vld [vmem:[#allocation3 + $0x61] sm:$0xff] }
 0x678   : > { %8919 = vst.msk [vmem:[#allocation3 + $0x81] sm:$0xff] %vm8837_vm14, %v8812_v62  ;;  %v8758_v4 = vsel %vm8630_vm0, %v8566_v50, %v8694_v0  ;;  %v8568_v49 = vadd.f32 %v18540_v26, %v21882_v52  ;;  %17481 = vmatprep.mubr.msk.f32.mxu0 %vm8837_vm14, %v8990_v7  ;;  %v24642_v50 = vld [vmem:[#allocation31_spill] sm:$0xff]  ;;  %v24643_v62 = vld [vmem:[#allocation32_spill] sm:$0xff] }
 0x679   : > { %v8757_v56 = vsel %vm8629_vm2, %v8565_v61, %v8693_v51  ;;  %v8567_v54 = vadd.f32 %v18541_v63, %v21882_v52  ;;  %v17392_v59 = vpop.f32.mrb[54].mxu1 }
 0x67a   : > { %v8813_v6 = vmax.f32 %v8757_v56, %v8758_v4  ;;  %vm8632_vm3 = vcmp.ge.f32.partialorder %v8568_v49, 0.0  ;;  %v8696_v9 = vmul.f32 0.2, %v8568_v49  ;;  %v18542_v12 = vadd.f32 %v17392_v59, %v24636_v11  ;;  %v8259_v13 = vpop.f32.mrb[55].mxu1 }
 0x67b   : > { %vm8631_vm5 = vcmp.ge.f32.partialorder %v8567_v54, 0.0  ;;  %v8695_v5 = vmul.f32 0.2, %v8567_v54  ;;  %v18543_v19 = vadd.f32 %v8259_v13, %v24637_v1  ;;  %v8991_v17 = vld [vmem:[#allocation3 + $0x71] sm:$0xff] }
 0x67c   : > { %8920 = vst.msk [vmem:[#allocation3 + $0x91] sm:$0xff] %vm8837_vm14, %v8813_v6  ;;  %v8760_v2 = vsel %vm8632_vm3, %v8568_v49, %v8696_v9  ;;  %v8570_v16 = vadd.f32 %v18542_v12, %v21882_v52  ;;  %17482 = vmatmul.mubr.msk.f32.gmra.mrb[164].mxu0 %vm8837_vm14, %v8991_v17  ;;  %v24644_v49 = vld [vmem:[#allocation33_spill] sm:$0xff]  ;;  %v24645_v6 = vld [vmem:[#allocation34_spill] sm:$0xff] }
 0x67d   : > { %v8759_v14 = vsel %vm8631_vm5, %v8567_v54, %v8695_v5  ;;  %v8569_v55 = vadd.f32 %v18543_v19, %v21882_v52  ;;  %v17395_v8 = vpop.f32.mrb[56].mxu1 }
 0x67e   : > { %v8814_v21 = vmax.f32 %v8759_v14, %v8760_v2  ;;  %vm8634_vm6 = vcmp.ge.f32.partialorder %v8570_v16, 0.0  ;;  %v8698_v15 = vmul.f32 0.2, %v8570_v16  ;;  %v18544_v10 = vadd.f32 %v17395_v8, %v24638_v48  ;;  %v8269_v18 = vpop.f32.mrb[57].mxu1 }
 0x67f   : > { %vm8633_vm7 = vcmp.ge.f32.partialorder %v8569_v55, 0.0  ;;  %v8697_v20 = vmul.f32 0.2, %v8569_v55  ;;  %v18545_v24 = vadd.f32 %v8269_v18, %v24639_v23  ;;  %v8992_v25 = vld [vmem:[#allocation3 + $0x81] sm:$0xff] }
 0x680   : > { %8921 = vst.msk [vmem:[#allocation3 + $0xa1] sm:$0xff] %vm8837_vm14, %v8814_v21  ;;  %v8762_v27 = vsel %vm8634_vm6, %v8570_v16, %v8698_v15  ;;  %v8572_v28 = vadd.f32 %v18544_v10, %v21882_v52  ;;  %17484 = vmatprep.mubr.msk.f32.mxu0 %vm8837_vm14, %v8992_v25 }
 0x681   : > { %v8761_v29 = vsel %vm8633_vm7, %v8569_v55, %v8697_v20  ;;  %v8571_v30 = vadd.f32 %v18545_v24, %v21882_v52  ;;  %v17398_v31 = vpop.f32.mrb[58].mxu1 }
 0x682   : > { %v8815_v32 = vmax.f32 %v8761_v29, %v8762_v27  ;;  %vm8636_vm8 = vcmp.ge.f32.partialorder %v8572_v28, 0.0  ;;  %v8700_v33 = vmul.f32 0.2, %v8572_v28  ;;  %v18546_v35 = vadd.f32 %v17398_v31, %v24640_v34  ;;  %v8279_v36 = vpop.f32.mrb[59].mxu1 }
 0x683   : > { %vm8635_vm9 = vcmp.ge.f32.partialorder %v8571_v30, 0.0  ;;  %v8699_v37 = vmul.f32 0.2, %v8571_v30  ;;  %v18547_v39 = vadd.f32 %v8279_v36, %v24641_v38  ;;  %v8993_v40 = vld [vmem:[#allocation3 + $0x91] sm:$0xff] }
 0x684   : > { %8922 = vst.msk [vmem:[#allocation3 + $0xb1] sm:$0xff] %vm8837_vm14, %v8815_v32  ;;  %v8764_v41 = vsel %vm8636_vm8, %v8572_v28, %v8700_v33  ;;  %v8574_v42 = vadd.f32 %v18546_v35, %v21882_v52  ;;  %17485 = vmatmul.mubr.msk.f32.gmra.mrb[166].mxu0 %vm8837_vm14, %v8993_v40 }
 0x685   : > { %v8763_v43 = vsel %vm8635_vm9, %v8571_v30, %v8699_v37  ;;  %v8573_v44 = vadd.f32 %v18547_v39, %v21882_v52  ;;  %v17401_v45 = vpop.f32.mrb[60].mxu1 }
 0x686   : > { %v8816_v46 = vmax.f32 %v8763_v43, %v8764_v41  ;;  %vm8638_vm10 = vcmp.ge.f32.partialorder %v8574_v42, 0.0  ;;  %v8702_v47 = vmul.f32 0.2, %v8574_v42  ;;  %v18548_v53 = vadd.f32 %v17401_v45, %v24642_v50  ;;  %v8289_v61 = vpop.f32.mrb[61].mxu1  ;;  %v9000_v50 = vld [vmem:[#allocation3 + $0x121] sm:$0xff] }
 0x687   : > { %vm8637_vm11 = vcmp.ge.f32.partialorder %v8573_v44, 0.0  ;;  %v8701_v60 = vmul.f32 0.2, %v8573_v44  ;;  %v18549_v0 = vadd.f32 %v8289_v61, %v24643_v62  ;;  %v8994_v3 = vld [vmem:[#allocation3 + $0xa1] sm:$0xff] }
 0x688   : > { %8923 = vst.msk [vmem:[#allocation3 + $0xc1] sm:$0xff] %vm8837_vm14, %v8816_v46  ;;  %v8766_v26 = vsel %vm8638_vm10, %v8574_v42, %v8702_v47  ;;  %v8576_v58 = vadd.f32 %v18548_v53, %v21882_v52  ;;  %17487 = vmatprep.mubr.msk.f32.mxu0 %vm8837_vm14, %v8994_v3 }
 0x689   : > { %v8765_v51 = vsel %vm8637_vm11, %v8573_v44, %v8701_v60  ;;  %v8575_v57 = vadd.f32 %v18549_v0, %v21882_v52  ;;  %v17404_v63 = vpop.f32.mrb[62].mxu1 }
 0x68a   : > { %v8817_v7 = vmax.f32 %v8765_v51, %v8766_v26  ;;  %vm8640_vm12 = vcmp.ge.f32.partialorder %v8576_v58, 0.0  ;;  %v8704_v4 = vmul.f32 0.2, %v8576_v58  ;;  %v18550_v56 = vadd.f32 %v17404_v63, %v24644_v49  ;;  %v8299_v54 = vpop.f32.mrb[63].mxu1 }
 0x68b   : > { %vm8639_vm13 = vcmp.ge.f32.partialorder %v8575_v57, 0.0  ;;  %v8703_v59 = vmul.f32 0.2, %v8575_v57  ;;  %v18551_v9 = vadd.f32 %v8299_v54, %v24645_v6  ;;  %v8995_v11 = vld [vmem:[#allocation3 + $0xb1] sm:$0xff] }
 0x68c   : > { %8924 = vst.msk [vmem:[#allocation3 + $0xd1] sm:$0xff] %vm8837_vm14, %v8817_v7  ;;  %v8768_v12 = vsel %vm8640_vm12, %v8576_v58, %v8704_v4  ;;  %v8578_v13 = vadd.f32 %v18550_v56, %v21882_v52  ;;  %17488 = vmatmul.mubr.msk.f32.gmra.mrb[168].mxu0 %vm8837_vm14, %v8995_v11 }
 0x68d   : > { %v8767_v5 = vsel %vm8639_vm13, %v8575_v57, %v8703_v59  ;;  %v8577_v1 = vadd.f32 %v18551_v9, %v21882_v52  ;;  %v17407_v19 = vpop.f32.mrb[0].mxu1 }
 0x68e   : > { %v8818_v17 = vmax.f32 %v8767_v5, %v8768_v12  ;;  %vm8642_vm1 = vcmp.ge.f32.partialorder %v8578_v13, 0.0  ;;  %v8706_v2 = vmul.f32 0.2, %v8578_v13  ;;  %v8580_v16 = vadd.f32 %v17407_v19, %v21882_v52  ;;  %v8309_v14 = vpop.f32.mrb[1].mxu1 }
 0x68f   : > { %vm8641_vm15 = vcmp.ge.f32.partialorder %v8577_v1, 0.0  ;;  %v8705_v55 = vmul.f32 0.2, %v8577_v1  ;;  %v8579_v8 = vadd.f32 %v21882_v52, %v8309_v14  ;;  %v8996_v21 = vld [vmem:[#allocation3 + $0xc1] sm:$0xff] }
 0x690   : > { %8925 = vst.msk [vmem:[#allocation3 + $0xe1] sm:$0xff] %vm8837_vm14, %v8818_v17  ;;  %v8770_v15 = vsel %vm8642_vm1, %v8578_v13, %v8706_v2  ;;  %vm8644_vm4 = vcmp.ge.f32.partialorder %v8580_v16, 0.0  ;;  %v8708_v48 = vmul.f32 0.2, %v8580_v16  ;;  %17490 = vmatprep.mubr.msk.f32.mxu0 %vm8837_vm14, %v8996_v21 }
 0x691   : > { %v8769_v10 = vsel %vm8641_vm15, %v8577_v1, %v8705_v55  ;;  %vm8643_vm0 = vcmp.ge.f32.partialorder %v8579_v8, 0.0  ;;  %v8707_v18 = vmul.f32 0.2, %v8579_v8  ;;  %v17410_v20 = vpop.f32.mrb[2].mxu1 }
 0x692   : > { %v8819_v23 = vmax.f32 %v8769_v10, %v8770_v15  ;;  %v8772_v24 = vsel %vm8644_vm4, %v8580_v16, %v8708_v48  ;;  %v8582_v25 = vadd.f32 %v17410_v20, %v21882_v52  ;;  %v8319_v27 = vpop.f32.mrb[3].mxu1 }
 0x693   : > { %v8771_v28 = vsel %vm8643_vm0, %v8579_v8, %v8707_v18  ;;  %v8581_v29 = vadd.f32 %v21882_v52, %v8319_v27  ;;  %v8997_v30 = vld [vmem:[#allocation3 + $0xd1] sm:$0xff] }
 0x694   : > { %8926 = vst.msk [vmem:[#allocation3 + $0xf1] sm:$0xff] %vm8837_vm14, %v8819_v23  ;;  %v8820_v31 = vmax.f32 %v8771_v28, %v8772_v24  ;;  %vm8646_vm2 = vcmp.ge.f32.partialorder %v8582_v25, 0.0  ;;  %v8710_v32 = vmul.f32 0.2, %v8582_v25  ;;  %17491 = vmatmul.mubr.msk.f32.gmra.mrb[170].mxu0 %vm8837_vm14, %v8997_v30 }
 0x695   : > { %vm8645_vm3 = vcmp.ge.f32.partialorder %v8581_v29, 0.0  ;;  %v8709_v33 = vmul.f32 0.2, %v8581_v29  ;;  %v17413_v34 = vpop.f32.mrb[4].mxu1 }
 0x696   : > { %8927 = vst.msk [vmem:[#allocation3 + $0x101] sm:$0xff] %vm8837_vm14, %v8820_v31  ;;  %v8774_v35 = vsel %vm8646_vm2, %v8582_v25, %v8710_v32  ;;  %v8584_v36 = vadd.f32 %v17413_v34, %v21882_v52  ;;  %v8329_v37 = vpop.f32.mrb[5].mxu1 }
 0x697   : > { %v8773_v38 = vsel %vm8645_vm3, %v8581_v29, %v8709_v33  ;;  %v8583_v39 = vadd.f32 %v21882_v52, %v8329_v37  ;;  %v22007_v40 = vld [vmem:[#allocation3 + $0xe1] sm:$0xff] }
 0x698   : > { %v8821_v41 = vmax.f32 %v8773_v38, %v8774_v35  ;;  %vm8648_vm5 = vcmp.ge.f32.partialorder %v8584_v36, 0.0  ;;  %v8712_v42 = vmul.f32 0.2, %v8584_v36  ;;  %17493 = vmatprep.mubr.msk.f32.mxu0 %vm8837_vm14, %v22007_v40 }
 0x699   : > { %vm8647_vm6 = vcmp.ge.f32.partialorder %v8583_v39, 0.0  ;;  %v8711_v43 = vmul.f32 0.2, %v8583_v39  ;;  %v17416_v44 = vpop.f32.mrb[6].mxu1 }
 0x69a   : > { %8928 = vst.msk [vmem:[#allocation3 + $0x131] sm:$0xff] %vm8837_vm14, %v8821_v41  ;;  %v8776_v45 = vsel %vm8648_vm5, %v8584_v36, %v8712_v42  ;;  %v8586_v46 = vadd.f32 %v17416_v44, %v21882_v52  ;;  %v8339_v47 = vpop.f32.mrb[7].mxu1 }
 0x69b   : > { %v8775_v53 = vsel %vm8647_vm6, %v8583_v39, %v8711_v43  ;;  %v8585_v61 = vadd.f32 %v21882_v52, %v8339_v47  ;;  %v22014_v60 = vld [vmem:[#allocation3 + $0xf1] sm:$0xff] }
 0x69c   : > { %v8822_v62 = vmax.f32 %v8775_v53, %v8776_v45  ;;  %vm8650_vm7 = vcmp.ge.f32.partialorder %v8586_v46, 0.0  ;;  %v8714_v0 = vmul.f32 0.2, %v8586_v46  ;;  %17494 = vmatmul.mubr.msk.f32.gmra.mrb[172].mxu0 %vm8837_vm14, %v22014_v60 }
 0x69d   : > { %vm8649_vm8 = vcmp.ge.f32.partialorder %v8585_v61, 0.0  ;;  %v8713_v3 = vmul.f32 0.2, %v8585_v61  ;;  %v17419_v26 = vpop.f32.mrb[8].mxu1  ;;  %17496 = vmatprep.mubr.msk.f32.mxu0 %vm8837_vm14, %v9000_v50 }
 0x69e   : > { %8929 = vst.msk [vmem:[#allocation3 + $0x141] sm:$0xff] %vm8837_vm14, %v8822_v62  ;;  %v8778_v58 = vsel %vm8650_vm7, %v8586_v46, %v8714_v0  ;;  %v8588_v51 = vadd.f32 %v17419_v26, %v21882_v52  ;;  %v8349_v57 = vpop.f32.mrb[9].mxu1 }
 0x69f   : > { %v8777_v63 = vsel %vm8649_vm8, %v8585_v61, %v8713_v3  ;;  %v8587_v7 = vadd.f32 %v21882_v52, %v8349_v57 }
 0x6a0   : > { %v8823_v4 = vmax.f32 %v8777_v63, %v8778_v58  ;;  %vm8652_vm9 = vcmp.ge.f32.partialorder %v8588_v51, 0.0  ;;  %v8716_v49 = vmul.f32 0.2, %v8588_v51 }
 0x6a1   : > { %vm8651_vm10 = vcmp.ge.f32.partialorder %v8587_v7, 0.0  ;;  %v8715_v56 = vmul.f32 0.2, %v8587_v7  ;;  %v17422_v54 = vpop.f32.mrb[10].mxu1  ;;  %v22022_v59 = vld [vmem:[#allocation3 + $0x131] sm:$0xff] }
 0x6a2   : > { %8930 = vst.msk [vmem:[#allocation3 + $0x151] sm:$0xff] %vm8837_vm14, %v8823_v4  ;;  %v8780_v6 = vsel %vm8652_vm9, %v8588_v51, %v8716_v49  ;;  %v8590_v9 = vadd.f32 %v17422_v54, %v21882_v52  ;;  %v8359_v11 = vpop.f32.mrb[11].mxu1  ;;  %17497 = vmatmul.mubr.msk.f32.gmra.mrb[174].mxu0 %vm8837_vm14, %v22022_v59 }
 0x6a3   : > { %v8779_v12 = vsel %vm8651_vm10, %v8587_v7, %v8715_v56  ;;  %v8589_v13 = vadd.f32 %v21882_v52, %v8359_v11 }
 0x6a4   : > { %v8824_v5 = vmax.f32 %v8779_v12, %v8780_v6  ;;  %vm8654_vm11 = vcmp.ge.f32.partialorder %v8590_v9, 0.0  ;;  %v8718_v1 = vmul.f32 0.2, %v8590_v9 }
 0x6a5   : > { %vm8653_vm12 = vcmp.ge.f32.partialorder %v8589_v13, 0.0  ;;  %v8717_v19 = vmul.f32 0.2, %v8589_v13  ;;  %v17425_v17 = vpop.f32.mrb[12].mxu1  ;;  %v22029_v2 = vld [vmem:[#allocation3 + $0x141] sm:$0xff] }
 0x6a6   : > { %8931 = vst.msk [vmem:[#allocation3 + $0x161] sm:$0xff] %vm8837_vm14, %v8824_v5  ;;  %v8782_v16 = vsel %vm8654_vm11, %v8590_v9, %v8718_v1  ;;  %v8592_v14 = vadd.f32 %v17425_v17, %v21882_v52  ;;  %v8369_v55 = vpop.f32.mrb[13].mxu1  ;;  %17499 = vmatprep.mubr.msk.f32.mxu0 %vm8837_vm14, %v22029_v2 }
 0x6a7   : > { %v8781_v8 = vsel %vm8653_vm12, %v8589_v13, %v8717_v19  ;;  %v8591_v21 = vadd.f32 %v21882_v52, %v8369_v55 }
 0x6a8   : > { %v8825_v15 = vmax.f32 %v8781_v8, %v8782_v16  ;;  %vm8656_vm13 = vcmp.ge.f32.partialorder %v8592_v14, 0.0  ;;  %v8720_v48 = vmul.f32 0.2, %v8592_v14 }
 0x6a9   : > { %vm8655_vm1 = vcmp.ge.f32.partialorder %v8591_v21, 0.0  ;;  %v8719_v10 = vmul.f32 0.2, %v8591_v21  ;;  %v17428_v18 = vpop.f32.mrb[14].mxu1  ;;  %v22036_v20 = vld [vmem:[#allocation3 + $0x151] sm:$0xff] }
 0x6aa   : > { %8932 = vst.msk [vmem:[#allocation3 + $0x171] sm:$0xff] %vm8837_vm14, %v8825_v15  ;;  %v8784_v23 = vsel %vm8656_vm13, %v8592_v14, %v8720_v48  ;;  %v8594_v24 = vadd.f32 %v17428_v18, %v21882_v52  ;;  %v8379_v25 = vpop.f32.mrb[15].mxu1  ;;  %17500 = vmatmul.mubr.msk.f32.gmra.mrb[176].mxu0 %vm8837_vm14, %v22036_v20 }
 0x6ab   : > { %v8783_v27 = vsel %vm8655_vm1, %v8591_v21, %v8719_v10  ;;  %v8593_v28 = vadd.f32 %v21882_v52, %v8379_v25 }
 0x6ac   : > { %v8826_v29 = vmax.f32 %v8783_v27, %v8784_v23  ;;  %vm8658_vm15 = vcmp.ge.f32.partialorder %v8594_v24, 0.0  ;;  %v8722_v30 = vmul.f32 0.2, %v8594_v24 }
 0x6ad   : > { %vm8657_vm4 = vcmp.ge.f32.partialorder %v8593_v28, 0.0  ;;  %v8721_v31 = vmul.f32 0.2, %v8593_v28  ;;  %v17431_v32 = vpop.f32.mrb[16].mxu1  ;;  %v22043_v33 = vld [vmem:[#allocation3 + $0x161] sm:$0xff] }
 0x6ae   : > { %8933 = vst.msk [vmem:[#allocation3 + $0x181] sm:$0xff] %vm8837_vm14, %v8826_v29  ;;  %v8786_v34 = vsel %vm8658_vm15, %v8594_v24, %v8722_v30  ;;  %v8596_v35 = vadd.f32 %v17431_v32, %v21882_v52  ;;  %v8389_v36 = vpop.f32.mrb[17].mxu1  ;;  %17502 = vmatprep.mubr.msk.f32.mxu0 %vm8837_vm14, %v22043_v33 }
 0x6af   : > { %v8785_v37 = vsel %vm8657_vm4, %v8593_v28, %v8721_v31  ;;  %v8595_v38 = vadd.f32 %v21882_v52, %v8389_v36 }
 0x6b0   : > { %v8827_v39 = vmax.f32 %v8785_v37, %v8786_v34  ;;  %vm8660_vm0 = vcmp.ge.f32.partialorder %v8596_v35, 0.0  ;;  %v8724_v41 = vmul.f32 0.2, %v8596_v35 }
 0x6b1   : > { %vm8659_vm2 = vcmp.ge.f32.partialorder %v8595_v38, 0.0  ;;  %v8723_v42 = vmul.f32 0.2, %v8595_v38  ;;  %v17434_v43 = vpop.f32.mrb[18].mxu1  ;;  %v22050_v44 = vld [vmem:[#allocation3 + $0x171] sm:$0xff] }
 0x6b2   : > { %8934 = vst.msk [vmem:[#allocation3 + $0x191] sm:$0xff] %vm8837_vm14, %v8827_v39  ;;  %v8788_v45 = vsel %vm8660_vm0, %v8596_v35, %v8724_v41  ;;  %v8598_v46 = vadd.f32 %v17434_v43, %v21882_v52  ;;  %v8399_v47 = vpop.f32.mrb[19].mxu1  ;;  %17503 = vmatmul.mubr.msk.f32.gmra.mrb[178].mxu0 %vm8837_vm14, %v22050_v44 }
 0x6b3   : > { %v8787_v50 = vsel %vm8659_vm2, %v8595_v38, %v8723_v42  ;;  %v8597_v53 = vadd.f32 %v21882_v52, %v8399_v47 }
 0x6b4   : > { %v8828_v61 = vmax.f32 %v8787_v50, %v8788_v45  ;;  %vm8662_vm3 = vcmp.ge.f32.partialorder %v8598_v46, 0.0  ;;  %v8726_v62 = vmul.f32 0.2, %v8598_v46 }
 0x6b5   : > { %vm8661_vm5 = vcmp.ge.f32.partialorder %v8597_v53, 0.0  ;;  %v8725_v0 = vmul.f32 0.2, %v8597_v53  ;;  %v17437_v3 = vpop.f32.mrb[20].mxu1  ;;  %v22057_v26 = vld [vmem:[#allocation3 + $0x181] sm:$0xff] }
 0x6b6   : > { %8935 = vst.msk [vmem:[#allocation3 + $0x1a1] sm:$0xff] %vm8837_vm14, %v8828_v61  ;;  %v8790_v58 = vsel %vm8662_vm3, %v8598_v46, %v8726_v62  ;;  %v8600_v51 = vadd.f32 %v17437_v3, %v21882_v52  ;;  %v8409_v57 = vpop.f32.mrb[21].mxu1  ;;  %17505 = vmatprep.mubr.msk.f32.mxu0 %vm8837_vm14, %v22057_v26 }
 0x6b7   : > { %v8789_v63 = vsel %vm8661_vm5, %v8597_v53, %v8725_v0  ;;  %v8599_v7 = vadd.f32 %v21882_v52, %v8409_v57 }
 0x6b8   : > { %v8829_v4 = vmax.f32 %v8789_v63, %v8790_v58  ;;  %vm8664_vm6 = vcmp.ge.f32.partialorder %v8600_v51, 0.0  ;;  %v8728_v49 = vmul.f32 0.2, %v8600_v51 }
 0x6b9   : > { %vm8663_vm7 = vcmp.ge.f32.partialorder %v8599_v7, 0.0  ;;  %v8727_v56 = vmul.f32 0.2, %v8599_v7  ;;  %v17440_v54 = vpop.f32.mrb[22].mxu1  ;;  %v22064_v6 = vld [vmem:[#allocation3 + $0x191] sm:$0xff] }
 0x6ba   : > { %8936 = vst.msk [vmem:[#allocation3 + $0x1b1] sm:$0xff] %vm8837_vm14, %v8829_v4  ;;  %v8792_v9 = vsel %vm8664_vm6, %v8600_v51, %v8728_v49  ;;  %v8602_v11 = vadd.f32 %v17440_v54, %v21882_v52  ;;  %v8419_v12 = vpop.f32.mrb[23].mxu1  ;;  %17506 = vmatmul.mubr.msk.f32.gmra.mrb[180].mxu0 %vm8837_vm14, %v22064_v6 }
 0x6bb   : > { %v8791_v13 = vsel %vm8663_vm7, %v8599_v7, %v8727_v56  ;;  %v8601_v5 = vadd.f32 %v21882_v52, %v8419_v12 }
 0x6bc   : > { %v8830_v1 = vmax.f32 %v8791_v13, %v8792_v9  ;;  %vm8666_vm8 = vcmp.ge.f32.partialorder %v8602_v11, 0.0  ;;  %v8730_v19 = vmul.f32 0.2, %v8602_v11 }
 0x6bd   : > { %vm8665_vm9 = vcmp.ge.f32.partialorder %v8601_v5, 0.0  ;;  %v8729_v17 = vmul.f32 0.2, %v8601_v5  ;;  %v17443_v16 = vpop.f32.mrb[24].mxu1  ;;  %v22071_v14 = vld [vmem:[#allocation3 + $0x1a1] sm:$0xff] }
 0x6be   : > { %8937 = vst.msk [vmem:[#allocation3 + $0x1c1] sm:$0xff] %vm8837_vm14, %v8830_v1  ;;  %v8794_v55 = vsel %vm8666_vm8, %v8602_v11, %v8730_v19  ;;  %v8604_v8 = vadd.f32 %v17443_v16, %v21882_v52  ;;  %v8429_v21 = vpop.f32.mrb[25].mxu1  ;;  %17508 = vmatprep.mubr.msk.f32.mxu0 %vm8837_vm14, %v22071_v14 }
 0x6bf   : > { %v8793_v15 = vsel %vm8665_vm9, %v8601_v5, %v8729_v17  ;;  %v8603_v48 = vadd.f32 %v21882_v52, %v8429_v21  ;;  %v14860_v21 = vld [vmem:[%s24265_s5 + $0x90] sm:$0xff] }
 0x6c0   : > { %v8831_v10 = vmax.f32 %v8793_v15, %v8794_v55  ;;  %vm8668_vm10 = vcmp.ge.f32.partialorder %v8604_v8, 0.0  ;;  %v8732_v18 = vmul.f32 0.2, %v8604_v8  ;;  %v14861_v15 = vld [vmem:[%s24265_s5 + $0x98] sm:$0xff] }
 0x6c1   : > { %vm8667_vm11 = vcmp.ge.f32.partialorder %v8603_v48, 0.0  ;;  %v8731_v23 = vmul.f32 0.2, %v8603_v48  ;;  %v17446_v24 = vpop.f32.mrb[26].mxu1  ;;  %v22078_v25 = vld [vmem:[#allocation3 + $0x1b1] sm:$0xff] }
 0x6c2   : > { %8938 = vst.msk [vmem:[#allocation3 + $0x1d1] sm:$0xff] %vm8837_vm14, %v8831_v10  ;;  %v8796_v27 = vsel %vm8668_vm10, %v8604_v8, %v8732_v18  ;;  %v8606_v28 = vadd.f32 %v17446_v24, %v21882_v52  ;;  %v8439_v29 = vpop.f32.mrb[27].mxu1  ;;  %17509 = vmatmul.mubr.msk.f32.gmra.mrb[182].mxu0 %vm8837_vm14, %v22078_v25  ;;  %v22127_v10 = vld [vmem:[#allocation3 + $0x10] sm:$0xff]  ;;  %v14862_v18 = vld [vmem:[%s24265_s5 + $0xa0] sm:$0xff] }
 0x6c3   : > { %v8795_v30 = vsel %vm8667_vm11, %v8603_v48, %v8731_v23  ;;  %v8605_v31 = vadd.f32 %v21882_v52, %v8439_v29  ;;  %v18154_v48 = vpack.c.bf16 %v14861_v15, %v14860_v21  ;;  %v14863_v23 = vld [vmem:[%s24265_s5 + $0xa8] sm:$0xff]  ;;  %v22137_v24 = vld [vmem:[#allocation3 + $0x20] sm:$0xff]  ;;  %v14864_v29 = vld [vmem:[%s24265_s5 + $0xb0] sm:$0xff] }
 0x6c4   : > { %v8832_v32 = vmax.f32 %v8795_v30, %v8796_v27  ;;  %vm8670_vm12 = vcmp.ge.f32.partialorder %v8606_v28, 0.0  ;;  %v8734_v34 = vmul.f32 0.2, %v8606_v28  ;;  %v18158_v27 = vpack.c.bf16 %v14863_v23, %v14862_v18  ;;  %v14865_v30 = vld [vmem:[%s24265_s5 + $0xb8] sm:$0xff]  ;;  %v14902_v15 = vld [vmem:[%s24265_s5 + $0xe0] sm:$0xff] }
 0x6c5   : > { %vm8669_vm13 = vcmp.ge.f32.partialorder %v8605_v31, 0.0  ;;  %v8733_v35 = vmul.f32 0.2, %v8605_v31  ;;  %v17449_v36 = vpop.f32.mrb[28].mxu1  ;;  %v22085_v37 = vld [vmem:[#allocation3 + $0x1c1] sm:$0xff]  ;;  %v22274_v21 = vld [vmem:[#allocation3 + $0x12] sm:$0xff] }
 0x6c6   : > { %8939 = vst.msk [vmem:[#allocation3 + $0x1e1] sm:$0xff] %vm8837_vm14, %v8832_v32  ;;  %v8798_v38 = vsel %vm8670_vm12, %v8606_v28, %v8734_v34  ;;  %v8608_v39 = vadd.f32 %v17449_v36, %v21882_v52  ;;  %v8449_v41 = vpop.f32.mrb[29].mxu1  ;;  %17511 = vmatprep.mubr.msk.f32.mxu0 %vm8837_vm14, %v22085_v37  ;;  %v22142_v28 = vld [vmem:[#allocation3 + $0x30] sm:$0xff]  ;;  %v14898_v34 = vld [vmem:[%s24265_s5 + $0xc0] sm:$0xff] }
 0x6c7   : > { %v8797_v42 = vsel %vm8669_vm13, %v8605_v31, %v8733_v35  ;;  %v8607_v43 = vadd.f32 %v21882_v52, %v8449_v41  ;;  %v22152_v31 = vld [vmem:[#allocation3 + $0x40] sm:$0xff]  ;;  %v22156_v32 = vld [vmem:[#allocation3 + $0x50] sm:$0xff]  ;;  %v14899_v35 = vld [vmem:[%s24265_s5 + $0xc8] sm:$0xff] }
 0x6c8   : > { %v8833_v45 = vmax.f32 %v8797_v42, %v8798_v38  ;;  %vm8672_vm1 = vcmp.ge.f32.partialorder %v8608_v39, 0.0  ;;  %v8736_v46 = vmul.f32 0.2, %v8608_v39  ;;  %v22166_v36 = vld [vmem:[#allocation3 + $0x60] sm:$0xff]  ;;  %v18166_v38 = vpack.c.bf16 %v14899_v35, %v14898_v34  ;;  %v22178_v42 = vld [vmem:[#allocation3 + $0x90] sm:$0xff] }
 0x6c9   : > { %vm8671_vm15 = vcmp.ge.f32.partialorder %v8607_v43, 0.0  ;;  %v8735_v47 = vmul.f32 0.2, %v8607_v43  ;;  %v17452_v50 = vpop.f32.mrb[30].mxu1  ;;  %v22092_v53 = vld [vmem:[#allocation3 + $0x1d1] sm:$0xff]  ;;  %v22174_v41 = vld [vmem:[#allocation3 + $0x80] sm:$0xff] }
 0x6ca   : > { %8940 = vst.msk [vmem:[#allocation3 + $0x1f1] sm:$0xff] %vm8837_vm14, %v8833_v45  ;;  %v8800_v61 = vsel %vm8672_vm1, %v8608_v39, %v8736_v46  ;;  %v8610_v62 = vadd.f32 %v17452_v50, %v21882_v52  ;;  %v8459_v0 = vpop.f32.mrb[31].mxu1  ;;  %17512 = vmatmul.mubr.msk.f32.gmra.mrb[184].mxu0 %vm8837_vm14, %v22092_v53  ;;  %v22170_v39 = vld [vmem:[#allocation3 + $0x70] sm:$0xff]  ;;  %v22190_v46 = vld [vmem:[#allocation3 + $0xc0] sm:$0xff] }
 0x6cb   : > { %v8799_v3 = vsel %vm8671_vm15, %v8607_v43, %v8735_v47  ;;  %v8609_v58 = vadd.f32 %v21882_v52, %v8459_v0  ;;  %v22182_v43 = vld [vmem:[#allocation3 + $0xa0] sm:$0xff]  ;;  %v22186_v45 = vld [vmem:[#allocation3 + $0xb0] sm:$0xff] }
 0x6cc   : > { %v8834_v51 = vmax.f32 %v8799_v3, %v8800_v61  ;;  %vm8674_vm4 = vcmp.ge.f32.partialorder %v8610_v62, 0.0  ;;  %v8738_v57 = vmul.f32 0.2, %v8610_v62  ;;  %v22194_v47 = vld [vmem:[#allocation3 + $0xd0] sm:$0xff]  ;;  %v22198_v50 = vld [vmem:[#allocation3 + $0xe0] sm:$0xff] }
 0x6cd   : > { %vm8673_vm0 = vcmp.ge.f32.partialorder %v8609_v58, 0.0  ;;  %v8737_v63 = vmul.f32 0.2, %v8609_v58  ;;  %v17455_v7 = vpop.f32.mrb[32].mxu1  ;;  %v22099_v4 = vld [vmem:[#allocation3 + $0x1e1] sm:$0xff]  ;;  %v22207_v0 = vld [vmem:[#allocation3 + $0x130] sm:$0xff] }
 0x6ce   : > { %8941 = vst.msk [vmem:[#allocation3 + $0x201] sm:$0xff] %vm8837_vm14, %v8834_v51  ;;  %v8802_v49 = vsel %vm8674_vm4, %v8610_v62, %v8738_v57  ;;  %v8612_v56 = vadd.f32 %v17455_v7, %v21882_v52  ;;  %v8469_v54 = vpop.f32.mrb[33].mxu1  ;;  %17514 = vmatprep.mubr.msk.f32.mxu0 %vm8837_vm14, %v22099_v4  ;;  %v8960_v61 = vld [vmem:[#allocation3 + $0x120] sm:$0xff]  ;;  %v22202_v62 = vld [vmem:[#allocation3 + $0xf0] sm:$0xff] }
 0x6cf   : > { %v8801_v9 = vsel %vm8673_vm0, %v8609_v58, %v8737_v63  ;;  %v8611_v11 = vadd.f32 %v21882_v52, %v8469_v54  ;;  %v8944_v52 = vld [vmem:[#allocation3] sm:$0xff]  ;;  %v22215_v58 = vld [vmem:[#allocation3 + $0x150] sm:$0xff] }
 0x6d0   : > { %v8835_v12 = vmax.f32 %v8801_v9, %v8802_v49  ;;  %vm8676_vm2 = vcmp.ge.f32.partialorder %v8612_v56, 0.0  ;;  %v8740_v13 = vmul.f32 0.2, %v8612_v56  ;;  %v22211_v3 = vld [vmem:[#allocation3 + $0x140] sm:$0xff]  ;;  %v22223_v57 = vld [vmem:[#allocation3 + $0x170] sm:$0xff] }
 0x6d1   : > { %vm8675_vm3 = vcmp.ge.f32.partialorder %v8611_v11, 0.0  ;;  %v8739_v5 = vmul.f32 0.2, %v8611_v11  ;;  %v22106_v1 = vld [vmem:[#allocation3 + $0x1f1] sm:$0xff]  ;;  %v22219_v51 = vld [vmem:[#allocation3 + $0x160] sm:$0xff] }
 0x6d2   : > { %8942 = vst.msk [vmem:[#allocation3 + $0x211] sm:$0xff] %vm8837_vm14, %v8835_v12  ;;  %v8804_v19 = vsel %vm8676_vm2, %v8612_v56, %v8740_v13  ;;  %17515 = vmatmul.mubr.msk.f32.gmra.mrb[186].mxu0 %vm8837_vm14, %v22106_v1  ;;  %v22227_v63 = vld [vmem:[#allocation3 + $0x180] sm:$0xff]  ;;  %v22231_v7 = vld [vmem:[#allocation3 + $0x190] sm:$0xff] }
 0x6d3   : > { %v8803_v17 = vsel %vm8675_vm3, %v8611_v11, %v8739_v5  ;;  %v22235_v49 = vld [vmem:[#allocation3 + $0x1a0] sm:$0xff]  ;;  %v22239_v56 = vld [vmem:[#allocation3 + $0x1b0] sm:$0xff] }
 0x6d4   : > { %v8836_v16 = vmax.f32 %v8803_v17, %v8804_v19  ;;  %v22243_v54 = vld [vmem:[#allocation3 + $0x1c0] sm:$0xff]  ;;  %v22247_v9 = vld [vmem:[#allocation3 + $0x1d0] sm:$0xff] }
 0x6d5   : > { %v22111_v55 = vld [vmem:[#allocation3 + $0x201] sm:$0xff]  ;;  %v22255_v12 = vld [vmem:[#allocation3 + $0x1f0] sm:$0xff] }
 0x6d6   : > { %8943 = vst.msk [vmem:[#allocation3 + $0x221] sm:$0xff] %vm8837_vm14, %v8836_v16  ;;  %17517 = vmatprep.mubr.msk.f32.mxu0 %vm8837_vm14, %v22111_v55  ;;  %v22251_v11 = vld [vmem:[#allocation3 + $0x1e0] sm:$0xff]  ;;  %v14900_v17 = vld [vmem:[%s24265_s5 + $0xd0] sm:$0xff]  ;;  %v14901_v16 = vld [vmem:[%s24265_s5 + $0xd8] sm:$0xff] }
 0x6d7   : > { %v22259_v13 = vld [vmem:[#allocation3 + $0x200] sm:$0xff]  ;;  %v22302_v35 = vld [vmem:[#allocation3 + $0x52] sm:$0xff] }
 0x6d8   : > { %24646 = vst [vmem:[#allocation44_spill] sm:$0xff] %v22259_v13  ;;  %v9667_v5 = vld [vmem:[#allocation3 + $0x2] sm:$0xff] }
 0x6d9   : > { %v22116_v8 = vld [vmem:[#allocation3 + $0x211] sm:$0xff]  ;;  %v22284_v18 = vld [vmem:[#allocation3 + $0x22] sm:$0xff] }
 0x6da   : > { %17518 = vmatmul.mubr.msk.f32.gmra.mrb[188].mxu0 %vm8837_vm14, %v22116_v8  ;;  %v22263_v19 = vld [vmem:[#allocation3 + $0x210] sm:$0xff] }
 0x6db   : > { %17536 = vmatprep.mubr.msk.f32.mxu0 %vm8837_vm14, %v8944_v52  ;;  %24647 = vst [vmem:[#allocation45_spill] sm:$0xff] %v22263_v19  ;;  %v18170_v52 = vpack.c.bf16 %v14901_v16, %v14900_v17  ;;  %v22316_v16 = vld [vmem:[#allocation3 + $0x72] sm:$0xff] }
 0x6de   : > { %17537 = vmatmul.mubr.msk.f32.vlgmr.msra.gmra.mrb[158].mxu0 %vm8837_vm14, %v22127_v10 }
 0x6df   : > { %18153 = vmatpush3.bf16.msra.mxu0 %v21945_v22  ;;  %17539 = vmatprep.mubr.msk.f32.mxu0 %vm8837_vm14, %v22137_v24  ;;  %v18162_v22 = vpack.c.bf16 %v14865_v30, %v14864_v29  ;;  %v14904_v29 = vld [vmem:[%s24265_s5 + $0xf0] sm:$0xff]  ;;  %v14905_v30 = vld [vmem:[%s24265_s5 + $0xf8] sm:$0xff] }
 0x6e0   : > { %18155 = vmatprep.subr.bf16.mxu0 %v18154_v48  ;;  %v18178_v34 = vpack.c.bf16 %v14905_v30, %v14904_v29  ;;  %v22336_v29 = vld [vmem:[#allocation3 + $0xc2] sm:$0xff]  ;;  %v22340_v30 = vld [vmem:[#allocation3 + $0xd2] sm:$0xff] }
 0x6e1   : > { %24649 = vst [vmem:[#allocation47_spill] sm:$0xff] %v22336_v29  ;;  %24650 = vst [vmem:[#allocation48_spill] sm:$0xff] %v22340_v30 }
 0x6e2   : > { %17540 = vmatmul.mubr.msk.f32.gmra.mrb[160].mxu0 %vm8837_vm14, %v22142_v28 }
 0x6e3   : > { %17542 = vmatprep.mubr.msk.f32.mxu0 %vm8837_vm14, %v22152_v31  ;;  %18157 = vmatpush3.bf16.msra.mxu0 %v18154_v48  ;;  %v14903_v48 = vld [vmem:[%s24265_s5 + $0xe8] sm:$0xff] }
 0x6e4   : > { %18159 = vmatprep.subr.bf16.mxu0 %v18158_v27  ;;  %v18174_v23 = vpack.c.bf16 %v14903_v48, %v14902_v15  ;;  %v22324_v15 = vld [vmem:[#allocation3 + $0x92] sm:$0xff]  ;;  %v22328_v48 = vld [vmem:[#allocation3 + $0xa2] sm:$0xff] }
 0x6e6   : > { %17543 = vmatmul.mubr.msk.f32.gmra.mrb[162].mxu0 %vm8837_vm14, %v22156_v32 }
 0x6e7   : > { %17545 = vmatprep.mubr.msk.f32.mxu0 %vm8837_vm14, %v22166_v36  ;;  %18161 = vmatpush3.bf16.msra.mxu0 %v18158_v27  ;;  %v22288_v27 = vld [vmem:[#allocation3 + $0x32] sm:$0xff] }
 0x6e8   : > { %18163 = vmatprep.subr.bf16.mxu0 %v18162_v22 }
 0x6ea   : > { %17546 = vmatmul.mubr.msk.f32.gmra.mrb[164].mxu0 %vm8837_vm14, %v22170_v39 }
 0x6eb   : > { %17548 = vmatprep.mubr.msk.f32.mxu0 %vm8837_vm14, %v22174_v41  ;;  %18165 = vmatpush3.bf16.msra.mxu0 %v18162_v22  ;;  %v22298_v22 = vld [vmem:[#allocation3 + $0x42] sm:$0xff] }
 0x6ec   : > { %18167 = vmatprep.subr.bf16.mxu0 %v18166_v38 }
 0x6ee   : > { %17549 = vmatmul.mubr.msk.f32.gmra.mrb[166].mxu0 %vm8837_vm14, %v22178_v42 }
 0x6ef   : > { %17551 = vmatprep.mubr.msk.f32.mxu0 %vm8837_vm14, %v22182_v43 }
 0x6f2   : > { %17552 = vmatmul.mubr.msk.f32.gmra.mrb[168].mxu0 %vm8837_vm14, %v22186_v45 }
 0x6f3   : > { %17554 = vmatprep.mubr.msk.f32.mxu0 %vm8837_vm14, %v22190_v46 }
 0x6f6   : > { %17555 = vmatmul.mubr.msk.f32.gmra.mrb[170].mxu0 %vm8837_vm14, %v22194_v47 }
 0x6f7   : > { %17557 = vmatprep.mubr.msk.f32.mxu0 %vm8837_vm14, %v22198_v50 }
 0x6fa   : > { %17558 = vmatmul.mubr.msk.f32.gmra.mrb[172].mxu0 %vm8837_vm14, %v22202_v62 }
 0x6fb   : > { %17560 = vmatprep.mubr.msk.f32.mxu0 %vm8837_vm14, %v8960_v61  ;;  %v14939_v61 = vld [vmem:[%s24265_s5 + $0x108] sm:$0xff] }
 0x6fe   : > { %17561 = vmatmul.mubr.msk.f32.gmra.mrb[174].mxu0 %vm8837_vm14, %v22207_v0 }
 0x6ff   : > { %17563 = vmatprep.mubr.msk.f32.mxu0 %vm8837_vm14, %v22211_v3 }
 0x702   : > { %17564 = vmatmul.mubr.msk.f32.gmra.mrb[176].mxu0 %vm8837_vm14, %v22215_v58 }
 0x703   : > { %17566 = vmatprep.mubr.msk.f32.mxu0 %vm8837_vm14, %v22219_v51 }
 0x706   : > { %17567 = vmatmul.mubr.msk.f32.gmra.mrb[178].mxu0 %vm8837_vm14, %v22223_v57 }
 0x707   : > { %17569 = vmatprep.mubr.msk.f32.mxu0 %vm8837_vm14, %v22227_v63 }
 0x70a   : > { %17570 = vmatmul.mubr.msk.f32.gmra.mrb[180].mxu0 %vm8837_vm14, %v22231_v7 }
 0x70b   : > { %17572 = vmatprep.mubr.msk.f32.mxu0 %vm8837_vm14, %v22235_v49 }
 0x70e   : > { %17573 = vmatmul.mubr.msk.f32.gmra.mrb[182].mxu0 %vm8837_vm14, %v22239_v56 }
 0x70f   : > { %17575 = vmatprep.mubr.msk.f32.mxu0 %vm8837_vm14, %v22243_v54 }
 0x712   : > { %17576 = vmatmul.mubr.msk.f32.gmra.mrb[184].mxu0 %vm8837_vm14, %v22247_v9 }
 0x713   : > { %17578 = vmatprep.mubr.msk.f32.mxu0 %vm8837_vm14, %v22251_v11 }
 0x716   : > { %17579 = vmatmul.mubr.msk.f32.gmra.mrb[186].mxu0 %vm8837_vm14, %v22255_v12 }
 0x717   : > { %17581 = vmatprep.mubr.msk.f32.mxu0 %vm8837_vm14, %v22259_v13 }
 0x71a   : > { %17582 = vmatmul.mubr.msk.f32.gmra.mrb[188].mxu0 %vm8837_vm14, %v22263_v19 }
 0x71b   : > { %17600 = vmatprep.mubr.msk.f32.mxu0 %vm8837_vm14, %v9667_v5  ;;  %v22312_v5 = vld [vmem:[#allocation3 + $0x62] sm:$0xff] }
 0x71e   : > { %17601 = vmatmul.mubr.msk.f32.vlgmr.msra.gmra.mrb[158].mxu0 %vm8837_vm14, %v22274_v21 }
 0x71f   : > { %18169 = vmatpush3.bf16.msra.mxu0 %v18166_v38  ;;  %17603 = vmatprep.mubr.msk.f32.mxu0 %vm8837_vm14, %v22284_v18  ;;  %v14938_v38 = vld [vmem:[%s24265_s5 + $0x100] sm:$0xff] }
 0x720   : > { %18171 = vmatprep.subr.bf16.mxu0 %v18170_v52  ;;  %v18182_v17 = vpack.c.bf16 %v14939_v61, %v14938_v38  ;;  %v9683_v38 = vld [vmem:[#allocation3 + $0x122] sm:$0xff]  ;;  %v22348_v61 = vld [vmem:[#allocation3 + $0xf2] sm:$0xff] }
 0x721   : > { %24652 = vst [vmem:[#allocation50_spill] sm:$0xff] %v22348_v61 }
 0x722   : > { %17604 = vmatmul.mubr.msk.f32.gmra.mrb[160].mxu0 %vm8837_vm14, %v22288_v27 }
 0x723   : > { %17606 = vmatprep.mubr.msk.f32.mxu0 %vm8837_vm14, %v22298_v22  ;;  %18173 = vmatpush3.bf16.msra.mxu0 %v18170_v52  ;;  %v22320_v52 = vld [vmem:[#allocation3 + $0x82] sm:$0xff] }
 0x724   : > { %18175 = vmatprep.subr.bf16.mxu0 %v18174_v23 }
 0x726   : > { %17607 = vmatmul.mubr.msk.f32.gmra.mrb[162].mxu0 %vm8837_vm14, %v22302_v35 }
 0x727   : > { %17609 = vmatprep.mubr.msk.f32.mxu0 %vm8837_vm14, %v22312_v5  ;;  %18177 = vmatpush3.bf16.msra.mxu0 %v18174_v23  ;;  %v22332_v23 = vld [vmem:[#allocation3 + $0xb2] sm:$0xff] }
 0x728   : > { %18179 = vmatprep.subr.bf16.mxu0 %v18178_v34  ;;  %24648 = vst [vmem:[#allocation46_spill] sm:$0xff] %v22332_v23 }
 0x72a   : > { %17610 = vmatmul.mubr.msk.f32.gmra.mrb[164].mxu0 %vm8837_vm14, %v22316_v16 }
 0x72b   : > { %17612 = vmatprep.mubr.msk.f32.mxu0 %vm8837_vm14, %v22320_v52  ;;  %18181 = vmatpush3.bf16.msra.mxu0 %v18178_v34  ;;  %v22344_v34 = vld [vmem:[#allocation3 + $0xe2] sm:$0xff] }
 0x72c   : > { %18183 = vmatprep.subr.bf16.mxu0 %v18182_v17  ;;  %24651 = vst [vmem:[#allocation49_spill] sm:$0xff] %v22344_v34 }
 0x72e   : > { %17613 = vmatmul.mubr.msk.f32.gmra.mrb[166].mxu0 %vm8837_vm14, %v22324_v15 }
 0x72f   : > { %17615 = vmatprep.mubr.msk.f32.mxu0 %vm8837_vm14, %v22328_v48 }
 0x732   : > { %17616 = vmatmul.mubr.msk.f32.gmra.mrb[168].mxu0 %vm8837_vm14, %v22332_v23  ;;  %v22353_v23 = vld [vmem:[#allocation3 + $0x132] sm:$0xff] }
 0x733   : > { %17618 = vmatprep.mubr.msk.f32.mxu0 %vm8837_vm14, %v22336_v29  ;;  %24653 = vst [vmem:[#allocation51_spill] sm:$0xff] %v22353_v23  ;;  %v22357_v29 = vld [vmem:[#allocation3 + $0x142] sm:$0xff] }
 0x734   : > { %24654 = vst [vmem:[#allocation52_spill] sm:$0xff] %v22357_v29 }
 0x736   : > { %17619 = vmatmul.mubr.msk.f32.gmra.mrb[170].mxu0 %vm8837_vm14, %v22340_v30  ;;  %v22361_v30 = vld [vmem:[#allocation3 + $0x152] sm:$0xff] }
 0x737   : > { %17621 = vmatprep.mubr.msk.f32.mxu0 %vm8837_vm14, %v22344_v34  ;;  %24655 = vst [vmem:[#allocation53_spill] sm:$0xff] %v22361_v30  ;;  %v22365_v34 = vld [vmem:[#allocation3 + $0x162] sm:$0xff] }
 0x738   : > { %24656 = vst [vmem:[#allocation54_spill] sm:$0xff] %v22365_v34 }
 0x73a   : > { %17622 = vmatmul.mubr.msk.f32.gmra.mrb[172].mxu0 %vm8837_vm14, %v22348_v61  ;;  %v14943_v61 = vld [vmem:[%s24265_s5 + $0x128] sm:$0xff] }
 0x73b   : > { %17624 = vmatprep.mubr.msk.f32.mxu0 %vm8837_vm14, %v9683_v38  ;;  %v22369_v38 = vld [vmem:[#allocation3 + $0x172] sm:$0xff] }
 0x73c   : > { %24657 = vst [vmem:[#allocation55_spill] sm:$0xff] %v22369_v38 }
 0x73e   : > { %17625 = vmatmul.mubr.msk.f32.gmra.mrb[174].mxu0 %vm8837_vm14, %v22353_v23  ;;  %v22373_v23 = vld [vmem:[#allocation3 + $0x182] sm:$0xff] }
 0x73f   : > { %17627 = vmatprep.mubr.msk.f32.mxu0 %vm8837_vm14, %v22357_v29  ;;  %24658 = vst [vmem:[#allocation56_spill] sm:$0xff] %v22373_v23  ;;  %v22377_v29 = vld [vmem:[#allocation3 + $0x192] sm:$0xff] }
 0x740   : > { %24659 = vst [vmem:[#allocation57_spill] sm:$0xff] %v22377_v29 }
 0x742   : > { %17628 = vmatmul.mubr.msk.f32.gmra.mrb[176].mxu0 %vm8837_vm14, %v22361_v30  ;;  %v22381_v30 = vld [vmem:[#allocation3 + $0x1a2] sm:$0xff] }
 0x743   : > { %17630 = vmatprep.mubr.msk.f32.mxu0 %vm8837_vm14, %v22365_v34  ;;  %24660 = vst [vmem:[#allocation58_spill] sm:$0xff] %v22381_v30  ;;  %v22385_v34 = vld [vmem:[#allocation3 + $0x1b2] sm:$0xff] }
 0x744   : > { %24661 = vst [vmem:[#allocation59_spill] sm:$0xff] %v22385_v34 }
 0x746   : > { %17631 = vmatmul.mubr.msk.f32.gmra.mrb[178].mxu0 %vm8837_vm14, %v22369_v38  ;;  %v22389_v38 = vld [vmem:[#allocation3 + $0x1c2] sm:$0xff] }
 0x747   : > { %17633 = vmatprep.mubr.msk.f32.mxu0 %vm8837_vm14, %v22373_v23  ;;  %24662 = vst [vmem:[#allocation60_spill] sm:$0xff] %v22389_v38  ;;  %v22393_v23 = vld [vmem:[#allocation3 + $0x1d2] sm:$0xff] }
 0x748   : > { %24663 = vst [vmem:[#allocation61_spill] sm:$0xff] %v22393_v23 }
 0x74a   : > { %17634 = vmatmul.mubr.msk.f32.gmra.mrb[180].mxu0 %vm8837_vm14, %v22377_v29  ;;  %v22397_v29 = vld [vmem:[#allocation3 + $0x1e2] sm:$0xff] }
 0x74b   : > { %17636 = vmatprep.mubr.msk.f32.mxu0 %vm8837_vm14, %v22381_v30  ;;  %24664 = vst [vmem:[#allocation62_spill] sm:$0xff] %v22397_v29  ;;  %v22401_v30 = vld [vmem:[#allocation3 + $0x1f2] sm:$0xff] }
 0x74c   : > { %24665 = vst [vmem:[#allocation63_spill] sm:$0xff] %v22401_v30 }
 0x74e   : > { %17637 = vmatmul.mubr.msk.f32.gmra.mrb[182].mxu0 %vm8837_vm14, %v22385_v34  ;;  %v22405_v34 = vld [vmem:[#allocation3 + $0x202] sm:$0xff] }
 0x74f   : > { %17639 = vmatprep.mubr.msk.f32.mxu0 %vm8837_vm14, %v22389_v38  ;;  %24666 = vst [vmem:[#allocation64_spill] sm:$0xff] %v22405_v34  ;;  %v22409_v38 = vld [vmem:[#allocation3 + $0x212] sm:$0xff] }
 0x750   : > { %24667 = vst [vmem:[#allocation65_spill] sm:$0xff] %v22409_v38 }
 0x752   : > { %17640 = vmatmul.mubr.msk.f32.gmra.mrb[184].mxu0 %vm8837_vm14, %v22393_v23  ;;  %v14940_v23 = vld [vmem:[%s24265_s5 + $0x110] sm:$0xff] }
 0x753   : > { %17642 = vmatprep.mubr.msk.f32.mxu0 %vm8837_vm14, %v22397_v29  ;;  %v14941_v29 = vld [vmem:[%s24265_s5 + $0x118] sm:$0xff] }
 0x756   : > { %17643 = vmatmul.mubr.msk.f32.gmra.mrb[186].mxu0 %vm8837_vm14, %v22401_v30  ;;  %v18186_v30 = vpack.c.bf16 %v14941_v29, %v14940_v23  ;;  %v14945_v23 = vld [vmem:[%s24265_s5 + $0x138] sm:$0xff]  ;;  %v14978_v29 = vld [vmem:[%s24265_s5 + $0x140] sm:$0xff] }
 0x757   : > { %17645 = vmatprep.mubr.msk.f32.mxu0 %vm8837_vm14, %v22405_v34  ;;  %v14942_v34 = vld [vmem:[%s24265_s5 + $0x120] sm:$0xff] }
 0x75a   : > { %17646 = vmatmul.mubr.msk.f32.gmra.mrb[188].mxu0 %vm8837_vm14, %v22409_v38  ;;  %v18190_v38 = vpack.c.bf16 %v14943_v61, %v14942_v34  ;;  %v14979_v34 = vld [vmem:[%s24265_s5 + $0x148] sm:$0xff] }
 0x75b   : > { %17664 = vmatprep.mubr.msk.f32.mxu0 %vm8837_vm14, %v22127_v10  ;;  %v14944_v10 = vld [vmem:[%s24265_s5 + $0x130] sm:$0xff]  ;;  %v18198_v61 = vpack.c.bf16 %v14979_v34, %v14978_v29  ;;  %v22512_v29 = vld [vmem:[#allocation3 + $0x21] sm:$0xff] }
 0x75c   : > { %24669 = vst [vmem:[#allocation67_spill] sm:$0xff] %v22512_v29  ;;  %v14982_v34 = vld [vmem:[%s24265_s5 + $0x160] sm:$0xff] }
 0x75e   : > { %17665 = vmatmul.mubr.msk.f32.vlgmr.msra.gmra.mrb[158].mxu0 %vm8837_vm14, %v22137_v24 }
 0x75f   : > { %18185 = vmatpush3.bf16.msra.mxu0 %v18182_v17  ;;  %17667 = vmatprep.mubr.msk.f32.mxu0 %vm8837_vm14, %v22142_v28  ;;  %v18194_v17 = vpack.c.bf16 %v14945_v23, %v14944_v10  ;;  %v14981_v10 = vld [vmem:[%s24265_s5 + $0x158] sm:$0xff] }
 0x760   : > { %18187 = vmatprep.subr.bf16.mxu0 %v18186_v30  ;;  %v10455_v23 = vld [vmem:[#allocation3 + $0x11] sm:$0xff] }
 0x762   : > { %17668 = vmatmul.mubr.msk.f32.gmra.mrb[160].mxu0 %vm8837_vm14, %v22152_v31 }
 0x763   : > { %17670 = vmatprep.mubr.msk.f32.mxu0 %vm8837_vm14, %v22156_v32  ;;  %18189 = vmatpush3.bf16.msra.mxu0 %v18186_v30  ;;  %v22467_v30 = vld [vmem:[#allocation3 + $0x100] sm:$0xff] }
 0x764   : > { %18191 = vmatprep.subr.bf16.mxu0 %v18190_v38 }
 0x766   : > { %17671 = vmatmul.mubr.msk.f32.gmra.mrb[162].mxu0 %vm8837_vm14, %v22166_v36 }
 0x767   : > { %17673 = vmatprep.mubr.msk.f32.mxu0 %vm8837_vm14, %v22170_v39  ;;  %18193 = vmatpush3.bf16.msra.mxu0 %v18190_v38  ;;  %v14980_v38 = vld [vmem:[%s24265_s5 + $0x150] sm:$0xff] }
 0x768   : > { %18195 = vmatprep.subr.bf16.mxu0 %v18194_v17 }
 0x76a   : > { %17674 = vmatmul.mubr.msk.f32.gmra.mrb[164].mxu0 %vm8837_vm14, %v22174_v41 }
 0x76b   : > { %17676 = vmatprep.mubr.msk.f32.mxu0 %vm8837_vm14, %v22178_v42  ;;  %18197 = vmatpush3.bf16.msra.mxu0 %v18194_v17  ;;  %v18202_v17 = vpack.c.bf16 %v14981_v10, %v14980_v38  ;;  %v22526_v10 = vld [vmem:[#allocation3 + $0x41] sm:$0xff] }
 0x76c   : > { %18199 = vmatprep.subr.bf16.mxu0 %v18198_v61  ;;  %24671 = vst [vmem:[#allocation69_spill] sm:$0xff] %v22526_v10 }
 0x76e   : > { %17677 = vmatmul.mubr.msk.f32.gmra.mrb[166].mxu0 %vm8837_vm14, %v22182_v43 }
 0x76f   : > { %17679 = vmatprep.mubr.msk.f32.mxu0 %vm8837_vm14, %v22186_v45 }
 0x772   : > { %17680 = vmatmul.mubr.msk.f32.gmra.mrb[168].mxu0 %vm8837_vm14, %v22190_v46 }
 0x773   : > { %17682 = vmatprep.mubr.msk.f32.mxu0 %vm8837_vm14, %v22194_v47 }
 0x776   : > { %17683 = vmatmul.mubr.msk.f32.gmra.mrb[170].mxu0 %vm8837_vm14, %v22198_v50 }
 0x777   : > { %17685 = vmatprep.mubr.msk.f32.mxu0 %vm8837_vm14, %v22202_v62 }
 0x77a   : > { %17686 = vmatmul.mubr.msk.f32.gmra.mrb[172].mxu0 %vm8837_vm14, %v22467_v30 }
 0x77b   : > { %17688 = vmatprep.mubr.msk.f32.mxu0 %vm8837_vm14, %v22207_v0  ;;  %v22501_v0 = vld [vmem:[#allocation3 + $0x220] sm:$0xff] }
 0x77c   : > { %24668 = vst [vmem:[#allocation66_spill] sm:$0xff] %v22501_v0 }
 0x77e   : > { %17689 = vmatmul.mubr.msk.f32.gmra.mrb[174].mxu0 %vm8837_vm14, %v22211_v3 }
 0x77f   : > { %17691 = vmatprep.mubr.msk.f32.mxu0 %vm8837_vm14, %v22215_v58 }
 0x782   : > { %17692 = vmatmul.mubr.msk.f32.gmra.mrb[176].mxu0 %vm8837_vm14, %v22219_v51 }
 0x783   : > { %17694 = vmatprep.mubr.msk.f32.mxu0 %vm8837_vm14, %v22223_v57 }
 0x786   : > { %17695 = vmatmul.mubr.msk.f32.gmra.mrb[178].mxu0 %vm8837_vm14, %v22227_v63 }
 0x787   : > { %17697 = vmatprep.mubr.msk.f32.mxu0 %vm8837_vm14, %v22231_v7 }
 0x78a   : > { %17698 = vmatmul.mubr.msk.f32.gmra.mrb[180].mxu0 %vm8837_vm14, %v22235_v49 }
 0x78b   : > { %17700 = vmatprep.mubr.msk.f32.mxu0 %vm8837_vm14, %v22239_v56 }
 0x78e   : > { %17701 = vmatmul.mubr.msk.f32.gmra.mrb[182].mxu0 %vm8837_vm14, %v22243_v54 }
 0x78f   : > { %17703 = vmatprep.mubr.msk.f32.mxu0 %vm8837_vm14, %v22247_v9 }
 0x792   : > { %17704 = vmatmul.mubr.msk.f32.gmra.mrb[184].mxu0 %vm8837_vm14, %v22251_v11 }
 0x793   : > { %17706 = vmatprep.mubr.msk.f32.mxu0 %vm8837_vm14, %v22255_v12 }
 0x796   : > { %17707 = vmatmul.mubr.msk.f32.gmra.mrb[186].mxu0 %vm8837_vm14, %v22259_v13  ;;  %v22522_v13 = vld [vmem:[#allocation3 + $0x31] sm:$0xff] }
 0x797   : > { %17709 = vmatprep.mubr.msk.f32.mxu0 %vm8837_vm14, %v22263_v19  ;;  %v14983_v19 = vld [vmem:[%s24265_s5 + $0x168] sm:$0xff]  ;;  %24670 = vst [vmem:[#allocation68_spill] sm:$0xff] %v22522_v13 }
 0x798   : > { %v18206_v38 = vpack.c.bf16 %v14983_v19, %v14982_v34  ;;  %v15018_v34 = vld [vmem:[%s24265_s5 + $0x180] sm:$0xff] }
 0x79a   : > { %17710 = vmatmul.mubr.msk.f32.gmra.mrb[188].mxu0 %vm8837_vm14, %v22501_v0  ;;  %v14985_v0 = vld [vmem:[%s24265_s5 + $0x178] sm:$0xff] }
 0x79b   : > { %17728 = vmatprep.mubr.msk.f32.mxu0 %vm8837_vm14, %v10455_v23  ;;  %v14984_v23 = vld [vmem:[%s24265_s5 + $0x170] sm:$0xff] }
 0x79c   : > { %v18210_v19 = vpack.c.bf16 %v14985_v0, %v14984_v23  ;;  %v22558_v23 = vld [vmem:[#allocation3 + $0x91] sm:$0xff] }
 0x79e   : > { %17729 = vmatmul.mubr.msk.f32.vlgmr.msra.gmra.mrb[158].mxu0 %vm8837_vm14, %v22512_v29  ;;  %v22536_v29 = vld [vmem:[#allocation3 + $0x51] sm:$0xff] }
 0x79f   : > { %18201 = vmatpush3.bf16.msra.mxu0 %v18198_v61  ;;  %17731 = vmatprep.mubr.msk.f32.mxu0 %vm8837_vm14, %v22522_v13  ;;  %v22540_v61 = vld [vmem:[#allocation3 + $0x61] sm:$0xff] }
 0x7a0   : > { %18203 = vmatprep.subr.bf16.mxu0 %v18202_v17  ;;  %24672 = vst [vmem:[#allocation70_spill] sm:$0xff] %v22540_v61  ;;  %v15019_v13 = vld [vmem:[%s24265_s5 + $0x188] sm:$0xff] }
 0x7a1   : > { %v18214_v0 = vpack.c.bf16 %v15019_v13, %v15018_v34  ;;  %v22570_v13 = vld [vmem:[#allocation3 + $0xc1] sm:$0xff]  ;;  %v22574_v34 = vld [vmem:[#allocation3 + $0xd1] sm:$0xff] }
 0x7a2   : > { %17732 = vmatmul.mubr.msk.f32.gmra.mrb[160].mxu0 %vm8837_vm14, %v22526_v10  ;;  %v22550_v10 = vld [vmem:[#allocation3 + $0x71] sm:$0xff] }
 0x7a3   : > { %17734 = vmatprep.mubr.msk.f32.mxu0 %vm8837_vm14, %v22536_v29  ;;  %18205 = vmatpush3.bf16.msra.mxu0 %v18202_v17  ;;  %v22554_v17 = vld [vmem:[#allocation3 + $0x81] sm:$0xff] }
 0x7a4   : > { %18207 = vmatprep.subr.bf16.mxu0 %v18206_v38 }
 0x7a6   : > { %17735 = vmatmul.mubr.msk.f32.gmra.mrb[162].mxu0 %vm8837_vm14, %v22540_v61  ;;  %v22562_v61 = vld [vmem:[#allocation3 + $0xa1] sm:$0xff] }
 0x7a7   : > { %17737 = vmatprep.mubr.msk.f32.mxu0 %vm8837_vm14, %v22550_v10  ;;  %18209 = vmatpush3.bf16.msra.mxu0 %v18206_v38  ;;  %v22566_v38 = vld [vmem:[#allocation3 + $0xb1] sm:$0xff] }
 0x7a8   : > { %18211 = vmatprep.subr.bf16.mxu0 %v18210_v19 }
 0x7aa   : > { %17738 = vmatmul.mubr.msk.f32.gmra.mrb[164].mxu0 %vm8837_vm14, %v22554_v17 }
 0x7ab   : > { %17740 = vmatprep.mubr.msk.f32.mxu0 %vm8837_vm14, %v22558_v23  ;;  %18213 = vmatpush3.bf16.msra.mxu0 %v18210_v19  ;;  %v22582_v19 = vld [vmem:[#allocation3 + $0x101] sm:$0xff] }
 0x7ac   : > { %18215 = vmatprep.subr.bf16.mxu0 %v18214_v0 }
 0x7ae   : > { %17741 = vmatmul.mubr.msk.f32.gmra.mrb[166].mxu0 %vm8837_vm14, %v22562_v61 }
 0x7af   : > { %17743 = vmatprep.mubr.msk.f32.mxu0 %vm8837_vm14, %v22566_v38 }
 0x7b2   : > { %17744 = vmatmul.mubr.msk.f32.gmra.mrb[168].mxu0 %vm8837_vm14, %v22570_v13 }
 0x7b3   : > { %17746 = vmatprep.mubr.msk.f32.mxu0 %vm8837_vm14, %v22574_v34 }
 0x7b6   : > { %17747 = vmatmul.mubr.msk.f32.gmra.mrb[170].mxu0 %vm8837_vm14, %v22007_v40  ;;  %v22616_v40 = vld [vmem:[#allocation3 + $0x221] sm:$0xff] }
 0x7b7   : > { %17749 = vmatprep.mubr.msk.f32.mxu0 %vm8837_vm14, %v22014_v60  ;;  %v15020_v60 = vld [vmem:[%s24265_s5 + $0x190] sm:$0xff] }
 0x7ba   : > { %17750 = vmatmul.mubr.msk.f32.gmra.mrb[172].mxu0 %vm8837_vm14, %v22582_v19 }
 0x7bb   : > { %17752 = vmatprep.mubr.msk.f32.mxu0 %vm8837_vm14, %v22022_v59  ;;  %v15021_v59 = vld [vmem:[%s24265_s5 + $0x198] sm:$0xff] }
 0x7be   : > { %17753 = vmatmul.mubr.msk.f32.gmra.mrb[174].mxu0 %vm8837_vm14, %v22029_v2  ;;  %v18218_v2 = vpack.c.bf16 %v15021_v59, %v15020_v60  ;;  %v24678_v60 = vld [vmem:[#allocation51_spill] sm:$0xff]  ;;  %v24679_v59 = vld [vmem:[#allocation52_spill] sm:$0xff] }
 0x7bf   : > { %17755 = vmatprep.mubr.msk.f32.mxu0 %vm8837_vm14, %v22036_v20  ;;  %v15022_v20 = vld [vmem:[%s24265_s5 + $0x1a0] sm:$0xff] }
 0x7c2   : > { %17756 = vmatmul.mubr.msk.f32.gmra.mrb[176].mxu0 %vm8837_vm14, %v22043_v33  ;;  %v15023_v33 = vld [vmem:[%s24265_s5 + $0x1a8] sm:$0xff] }
 0x7c3   : > { %17758 = vmatprep.mubr.msk.f32.mxu0 %vm8837_vm14, %v22050_v44  ;;  %v18222_v44 = vpack.c.bf16 %v15023_v33, %v15022_v20  ;;  %v24681_v20 = vld [vmem:[#allocation54_spill] sm:$0xff]  ;;  %v24682_v33 = vld [vmem:[#allocation55_spill] sm:$0xff] }
 0x7c6   : > { %17759 = vmatmul.mubr.msk.f32.gmra.mrb[178].mxu0 %vm8837_vm14, %v22057_v26  ;;  %v15024_v26 = vld [vmem:[%s24265_s5 + $0x1b0] sm:$0xff] }
 0x7c7   : > { %17761 = vmatprep.mubr.msk.f32.mxu0 %vm8837_vm14, %v22064_v6  ;;  %v15025_v6 = vld [vmem:[%s24265_s5 + $0x1b8] sm:$0xff] }
 0x7ca   : > { %17762 = vmatmul.mubr.msk.f32.gmra.mrb[180].mxu0 %vm8837_vm14, %v22071_v14  ;;  %v18226_v14 = vpack.c.bf16 %v15025_v6, %v15024_v26  ;;  %v24684_v26 = vld [vmem:[#allocation57_spill] sm:$0xff]  ;;  %v24685_v6 = vld [vmem:[#allocation58_spill] sm:$0xff] }
 0x7cb   : > { %17764 = vmatprep.mubr.msk.f32.mxu0 %vm8837_vm14, %v22078_v25  ;;  %v15058_v25 = vld [vmem:[%s24265_s5 + $0x1c0] sm:$0xff] }
 0x7ce   : > { %17765 = vmatmul.mubr.msk.f32.gmra.mrb[182].mxu0 %vm8837_vm14, %v22085_v37  ;;  %v15059_v37 = vld [vmem:[%s24265_s5 + $0x1c8] sm:$0xff] }
 0x7cf   : > { %17767 = vmatprep.mubr.msk.f32.mxu0 %vm8837_vm14, %v22092_v53  ;;  %v18230_v53 = vpack.c.bf16 %v15059_v37, %v15058_v25  ;;  %v24687_v25 = vld [vmem:[#allocation60_spill] sm:$0xff]  ;;  %v24688_v37 = vld [vmem:[#allocation61_spill] sm:$0xff] }
 0x7d2   : > { %17768 = vmatmul.mubr.msk.f32.gmra.mrb[184].mxu0 %vm8837_vm14, %v22099_v4  ;;  %v24673_v4 = vld [vmem:[#allocation46_spill] sm:$0xff] }
 0x7d3   : > { %17770 = vmatprep.mubr.msk.f32.mxu0 %vm8837_vm14, %v22106_v1  ;;  %v24674_v1 = vld [vmem:[#allocation47_spill] sm:$0xff] }
 0x7d6   : > { %17771 = vmatmul.mubr.msk.f32.gmra.mrb[186].mxu0 %vm8837_vm14, %v22111_v55  ;;  %v24675_v55 = vld [vmem:[#allocation48_spill] sm:$0xff] }
 0x7d7   : > { %17773 = vmatprep.mubr.msk.f32.mxu0 %vm8837_vm14, %v22116_v8  ;;  %v24676_v8 = vld [vmem:[#allocation49_spill] sm:$0xff] }
 0x7da   : > { %17774 = vmatmul.mubr.msk.f32.gmra.mrb[188].mxu0 %vm8837_vm14, %v22616_v40 }
 0x7db   : > { %17792 = vmatprep.mubr.msk.f32.mxu0 %vm8837_vm14, %v22274_v21  ;;  %v24677_v21 = vld [vmem:[#allocation50_spill] sm:$0xff] }
 0x7de   : > { %17793 = vmatmul.mubr.msk.f32.vlgmr.msra.gmra.mrb[158].mxu0 %vm8837_vm14, %v22284_v18 }
 0x7df   : > { %18217 = vmatpush3.bf16.msra.mxu0 %v18214_v0  ;;  %17795 = vmatprep.mubr.msk.f32.mxu0 %vm8837_vm14, %v22288_v27  ;;  %v22674_v0 = vld [vmem:[#allocation3 + $0x102] sm:$0xff] }
 0x7e0   : > { %18219 = vmatprep.subr.bf16.mxu0 %v18218_v2 }
 0x7e2   : > { %17796 = vmatmul.mubr.msk.f32.gmra.mrb[160].mxu0 %vm8837_vm14, %v22298_v22 }
 0x7e3   : > { %17798 = vmatprep.mubr.msk.f32.mxu0 %vm8837_vm14, %v22302_v35  ;;  %18221 = vmatpush3.bf16.msra.mxu0 %v18218_v2  ;;  %v24680_v2 = vld [vmem:[#allocation53_spill] sm:$0xff] }
 0x7e4   : > { %18223 = vmatprep.subr.bf16.mxu0 %v18222_v44 }
 0x7e6   : > { %17799 = vmatmul.mubr.msk.f32.gmra.mrb[162].mxu0 %vm8837_vm14, %v22312_v5 }
 0x7e7   : > { %17801 = vmatprep.mubr.msk.f32.mxu0 %vm8837_vm14, %v22316_v16  ;;  %18225 = vmatpush3.bf16.msra.mxu0 %v18222_v44  ;;  %v24683_v44 = vld [vmem:[#allocation56_spill] sm:$0xff] }
 0x7e8   : > { %18227 = vmatprep.subr.bf16.mxu0 %v18226_v14 }
 0x7ea   : > { %17802 = vmatmul.mubr.msk.f32.gmra.mrb[164].mxu0 %vm8837_vm14, %v22320_v52 }
 0x7eb   : > { %17804 = vmatprep.mubr.msk.f32.mxu0 %vm8837_vm14, %v22324_v15  ;;  %18229 = vmatpush3.bf16.msra.mxu0 %v18226_v14  ;;  %v24686_v14 = vld [vmem:[#allocation59_spill] sm:$0xff] }
 0x7ec   : > { %18231 = vmatprep.subr.bf16.mxu0 %v18230_v53 }
 0x7ee   : > { %17805 = vmatmul.mubr.msk.f32.gmra.mrb[166].mxu0 %vm8837_vm14, %v22328_v48 }
 0x7ef   : > { %17807 = vmatprep.mubr.msk.f32.mxu0 %vm8837_vm14, %v24673_v4 }
 0x7f2   : > { %17808 = vmatmul.mubr.msk.f32.gmra.mrb[168].mxu0 %vm8837_vm14, %v24674_v1 }
 0x7f3   : > { %17810 = vmatprep.mubr.msk.f32.mxu0 %vm8837_vm14, %v24675_v55 }
 0x7f6   : > { %17811 = vmatmul.mubr.msk.f32.gmra.mrb[170].mxu0 %vm8837_vm14, %v24676_v8 }
 0x7f7   : > { %17813 = vmatprep.mubr.msk.f32.mxu0 %vm8837_vm14, %v24677_v21 }
 0x7fa   : > { %17814 = vmatmul.mubr.msk.f32.gmra.mrb[172].mxu0 %vm8837_vm14, %v22674_v0 }
 0x7fb   : > { %17816 = vmatprep.mubr.msk.f32.mxu0 %vm8837_vm14, %v24678_v60  ;;  %v24689_v60 = vld [vmem:[#allocation62_spill] sm:$0xff] }
 0x7fe   : > { %17817 = vmatmul.mubr.msk.f32.gmra.mrb[174].mxu0 %vm8837_vm14, %v24679_v59 }
 0x7ff   : > { %17819 = vmatprep.mubr.msk.f32.mxu0 %vm8837_vm14, %v24680_v2 }
 0x802   : > { %17820 = vmatmul.mubr.msk.f32.gmra.mrb[176].mxu0 %vm8837_vm14, %v24681_v20 }
 0x803   : > { %17822 = vmatprep.mubr.msk.f32.mxu0 %vm8837_vm14, %v24682_v33  ;;  %v24690_v33 = vld [vmem:[#allocation63_spill] sm:$0xff] }
 0x806   : > { %17823 = vmatmul.mubr.msk.f32.gmra.mrb[178].mxu0 %vm8837_vm14, %v24683_v44  ;;  %v24691_v44 = vld [vmem:[#allocation64_spill] sm:$0xff] }
 0x807   : > { %17825 = vmatprep.mubr.msk.f32.mxu0 %vm8837_vm14, %v24684_v26  ;;  %v24692_v26 = vld [vmem:[#allocation65_spill] sm:$0xff] }
 0x80a   : > { %17826 = vmatmul.mubr.msk.f32.gmra.mrb[180].mxu0 %vm8837_vm14, %v24685_v6  ;;  %v22708_v6 = vld [vmem:[#allocation3 + $0x222] sm:$0xff] }
 0x80b   : > { %17828 = vmatprep.mubr.msk.f32.mxu0 %vm8837_vm14, %v24686_v14  ;;  %24693 = vst [vmem:[#allocation71_spill] sm:$0xff] %v22708_v6 }
 0x80e   : > { %17829 = vmatmul.mubr.msk.f32.gmra.mrb[182].mxu0 %vm8837_vm14, %v24687_v25  ;;  %v15060_v25 = vld [vmem:[%s24265_s5 + $0x1d0] sm:$0xff] }
 0x80f   : > { %17831 = vmatprep.mubr.msk.f32.mxu0 %vm8837_vm14, %v24688_v37  ;;  %v15061_v37 = vld [vmem:[%s24265_s5 + $0x1d8] sm:$0xff] }
 0x812   : > { %17832 = vmatmul.mubr.msk.f32.gmra.mrb[184].mxu0 %vm8837_vm14, %v24689_v60 }
 0x813   : > { %17834 = vmatprep.mubr.msk.f32.mxu0 %vm8837_vm14, %v24690_v33  ;;  %v15063_v33 = vld [vmem:[%s24265_s5 + $0x1e8] sm:$0xff] }
 0x816   : > { %17835 = vmatmul.mubr.msk.f32.gmra.mrb[186].mxu0 %vm8837_vm14, %v24691_v44  ;;  %v18234_v44 = vpack.c.bf16 %v15061_v37, %v15060_v25  ;;  %v15065_v25 = vld [vmem:[%s24265_s5 + $0x1f8] sm:$0xff] }
 0x817   : > { %17837 = vmatprep.mubr.msk.f32.mxu0 %vm8837_vm14, %v24692_v26  ;;  %v15062_v26 = vld [vmem:[%s24265_s5 + $0x1e0] sm:$0xff] }
 0x81a   : > { %17838 = vmatmul.mubr.msk.f32.gmra.mrb[188].mxu0 %vm8837_vm14, %v22708_v6  ;;  %v18238_v6 = vpack.c.bf16 %v15063_v33, %v15062_v26  ;;  %v11665_v33 = vld [vmem:[#allocation3 + $0x1f1] sm:$0xff] }
 0x81b   : > { %17856 = vmatprep.mubr.msk.f32.mxu0 %vm8837_vm14, %v22137_v24  ;;  %v15064_v24 = vld [vmem:[%s24265_s5 + $0x1f0] sm:$0xff] }
 0x81c   : > { %v11667_v26 = vld [vmem:[#allocation3 + $0x211] sm:$0xff] }
 0x81e   : > { %17857 = vmatmul.mubr.msk.f32.vlgmr.msra.gmra.mrb[158].mxu0 %vm8837_vm14, %v22142_v28  ;;  %v18242_v28 = vpack.c.bf16 %v15065_v25, %v15064_v24  ;;  %v13377_v24 = vld [vmem:[%s24267_s7 + $0x30] sm:$0xff] }
 0x81f   : > { %18233 = vmatpush3.bf16.msra.mxu0 %v18230_v53  ;;  %17859 = vmatprep.mubr.msk.f32.mxu0 %vm8837_vm14, %v22152_v31  ;;  %v15098_v31 = vld [vmem:[%s24265_s5 + $0x200] sm:$0xff]  ;;  %v15099_v53 = vld [vmem:[%s24265_s5 + $0x208] sm:$0xff] }
 0x820   : > { %18235 = vmatprep.subr.bf16.mxu0 %v18234_v44 }
 0x822   : > { %17860 = vmatmul.mubr.msk.f32.gmra.mrb[160].mxu0 %vm8837_vm14, %v22156_v32  ;;  %v18246_v32 = vpack.c.bf16 %v15099_v53, %v15098_v31  ;;  %v13382_v31 = vld [vmem:[%s24267_s7 + $0x58] sm:$0xff] }
 0x823   : > { %17862 = vmatprep.mubr.msk.f32.mxu0 %vm8837_vm14, %v22166_v36  ;;  %18237 = vmatpush3.bf16.msra.mxu0 %v18234_v44  ;;  %v11259_v36 = vld [vmem:[#allocation3 + $0x110] sm:$0xff]  ;;  %v11666_v44 = vld [vmem:[#allocation3 + $0x201] sm:$0xff] }
 0x824   : > { %18239 = vmatprep.subr.bf16.mxu0 %v18238_v6 }
 0x826   : > { %17863 = vmatmul.mubr.msk.f32.gmra.mrb[162].mxu0 %vm8837_vm14, %v22170_v39  ;;  %v24694_v39 = vld [vmem:[#allocation44_spill] sm:$0xff] }
 0x827   : > { %17865 = vmatprep.mubr.msk.f32.mxu0 %vm8837_vm14, %v22174_v41  ;;  %18241 = vmatpush3.bf16.msra.mxu0 %v18238_v6  ;;  %v24695_v41 = vld [vmem:[#allocation45_spill] sm:$0xff]  ;;  %v11669_v6 = vld [vmem:[#allocation3 + $0x231] sm:$0xff] }
 0x828   : > { %18243 = vmatprep.subr.bf16.mxu0 %v18242_v28 }
 0x82a   : > { %17866 = vmatmul.mubr.msk.f32.gmra.mrb[164].mxu0 %vm8837_vm14, %v22178_v42  ;;  %v24696_v42 = vld [vmem:[#allocation66_spill] sm:$0xff] }
 0x82b   : > { %17868 = vmatprep.mubr.msk.f32.mxu0 %vm8837_vm14, %v22182_v43  ;;  %18245 = vmatpush3.bf16.msra.mxu0 %v18242_v28  ;;  %v11275_v43 = vld [vmem:[#allocation3 + $0x230] sm:$0xff]  ;;  %v13380_v28 = vld [vmem:[%s24267_s7 + $0x48] sm:$0xff] }
 0x82c   : > { %18247 = vmatprep.subr.bf16.mxu0 %v18246_v32  ;;  %v18270_v53 = vpack.c.bf16 %v13382_v31, %v13380_v28  ;;  %v13421_v28 = vld [vmem:[%s24267_s7 + $0x190] sm:$0xff] }
 0x82e   : > { %17869 = vmatmul.mubr.msk.f32.gmra.mrb[166].mxu0 %vm8837_vm14, %v22186_v45  ;;  %v15100_v45 = vld [vmem:[%s24265_s5 + $0x210] sm:$0xff] }
 0x82f   : > { %17871 = vmatprep.mubr.msk.f32.mxu0 %vm8837_vm14, %v22190_v46  ;;  %v15101_v46 = vld [vmem:[%s24265_s5 + $0x218] sm:$0xff] }
 0x832   : > { %17872 = vmatmul.mubr.msk.f32.gmra.mrb[168].mxu0 %vm8837_vm14, %v22194_v47  ;;  %v24697_v47 = vld [vmem:[#allocation67_spill] sm:$0xff] }
 0x833   : > { %17874 = vmatprep.mubr.msk.f32.mxu0 %vm8837_vm14, %v22198_v50  ;;  %v18250_v50 = vpack.c.bf16 %v15101_v46, %v15100_v45  ;;  %v13383_v45 = vld [vmem:[%s24267_s7 + $0x60] sm:$0xff]  ;;  %v13385_v46 = vld [vmem:[%s24267_s7 + $0x70] sm:$0xff] }
 0x836   : > { %17875 = vmatmul.mubr.msk.f32.gmra.mrb[170].mxu0 %vm8837_vm14, %v22202_v62  ;;  %v15102_v62 = vld [vmem:[%s24265_s5 + $0x220] sm:$0xff] }
 0x837   : > { %17877 = vmatprep.mubr.msk.f32.mxu0 %vm8837_vm14, %v22467_v30  ;;  %v11655_v30 = vld [vmem:[#allocation3 + $0x151] sm:$0xff] }
 0x83a   : > { %17878 = vmatmul.mubr.msk.f32.gmra.mrb[172].mxu0 %vm8837_vm14, %v11259_v36  ;;  %v13381_v36 = vld [vmem:[%s24267_s7 + $0x50] sm:$0xff] }
 0x83b   : > { %17880 = vmatprep.mubr.msk.f32.mxu0 %vm8837_vm14, %v22211_v3  ;;  %v15103_v3 = vld [vmem:[%s24265_s5 + $0x228] sm:$0xff] }
 0x83e   : > { %17881 = vmatmul.mubr.msk.f32.gmra.mrb[174].mxu0 %vm8837_vm14, %v22215_v58  ;;  %v24698_v58 = vld [vmem:[#allocation68_spill] sm:$0xff] }
 0x83f   : > { %17883 = vmatprep.mubr.msk.f32.mxu0 %vm8837_vm14, %v22219_v51  ;;  %v24699_v51 = vld [vmem:[#allocation69_spill] sm:$0xff] }
 0x842   : > { %17884 = vmatmul.mubr.msk.f32.gmra.mrb[176].mxu0 %vm8837_vm14, %v22223_v57  ;;  %v18254_v57 = vpack.c.bf16 %v15103_v3, %v15102_v62  ;;  %v13390_v62 = vld [vmem:[%s24267_s7 + $0x98] sm:$0xff] }
 0x843   : > { %17886 = vmatprep.mubr.msk.f32.mxu0 %vm8837_vm14, %v22227_v63  ;;  %v15104_v63 = vld [vmem:[%s24265_s5 + $0x230] sm:$0xff] }
 0x846   : > { %17887 = vmatmul.mubr.msk.f32.gmra.mrb[178].mxu0 %vm8837_vm14, %v22231_v7  ;;  %v15105_v7 = vld [vmem:[%s24265_s5 + $0x238] sm:$0xff] }
 0x847   : > { %17889 = vmatprep.mubr.msk.f32.mxu0 %vm8837_vm14, %v22235_v49  ;;  %v24700_v49 = vld [vmem:[#allocation70_spill] sm:$0xff] }
 0x84a   : > { %17890 = vmatmul.mubr.msk.f32.gmra.mrb[180].mxu0 %vm8837_vm14, %v22239_v56  ;;  %v18258_v56 = vpack.c.bf16 %v15105_v7, %v15104_v63  ;;  %v13392_v63 = vld [vmem:[%s24267_s7 + $0xa8] sm:$0xff]  ;;  %v13394_v7 = vld [vmem:[%s24267_s7 + $0xb8] sm:$0xff] }
 0x84b   : > { %17892 = vmatprep.mubr.msk.f32.mxu0 %vm8837_vm14, %v22243_v54  ;;  %v11650_v54 = vld [vmem:[#allocation3 + $0xe1] sm:$0xff] }
 0x84e   : > { %17893 = vmatmul.mubr.msk.f32.gmra.mrb[182].mxu0 %vm8837_vm14, %v22247_v9  ;;  %v11651_v9 = vld [vmem:[#allocation3 + $0xf1] sm:$0xff] }
 0x84f   : > { %17895 = vmatprep.mubr.msk.f32.mxu0 %vm8837_vm14, %v22251_v11  ;;  %v11653_v11 = vld [vmem:[#allocation3 + $0x111] sm:$0xff] }
 0x852   : > { %17896 = vmatmul.mubr.msk.f32.gmra.mrb[184].mxu0 %vm8837_vm14, %v22255_v12  ;;  %v11654_v12 = vld [vmem:[#allocation3 + $0x141] sm:$0xff] }
 0x853   : > { %17898 = vmatprep.mubr.msk.f32.mxu0 %vm8837_vm14, %v24694_v39 }
 0x856   : > { %17899 = vmatmul.mubr.msk.f32.gmra.mrb[186].mxu0 %vm8837_vm14, %v24695_v41  ;;  %v13384_v41 = vld [vmem:[%s24267_s7 + $0x68] sm:$0xff] }
 0x857   : > { %17901 = vmatprep.mubr.msk.f32.mxu0 %vm8837_vm14, %v24696_v42  ;;  %v13386_v42 = vld [vmem:[%s24267_s7 + $0x78] sm:$0xff] }
 0x85a   : > { %17902 = vmatmul.mubr.msk.f32.gmra.mrb[188].mxu0 %vm8837_vm14, %v11275_v43  ;;  %v18274_v43 = vpack.c.bf16 %v13386_v42, %v13384_v41  ;;  %v13425_v41 = vld [vmem:[%s24267_s7 + $0x1b0] sm:$0xff] }
 0x85b   : > { %17920 = vmatprep.mubr.msk.f32.mxu0 %vm8837_vm14, %v24697_v47  ;;  %v18276_v47 = vpack.c.bf16 %v13385_v46, %v13383_v45  ;;  %v13430_v45 = vld [vmem:[%s24267_s7 + $0x1d8] sm:$0xff] }
 0x85e   : > { %17921 = vmatmul.mubr.msk.f32.vlgmr.msra.gmra.mrb[158].mxu0 %vm8837_vm14, %v24698_v58  ;;  %v13387_v58 = vld [vmem:[%s24267_s7 + $0x80] sm:$0xff] }
 0x85f   : > { %18249 = vmatpush3.bf16.msra.mxu0 %v18246_v32  ;;  %17923 = vmatprep.mubr.msk.f32.mxu0 %vm8837_vm14, %v24699_v51  ;;  %v13379_v32 = vld [vmem:[%s24267_s7 + $0x40] sm:$0xff]  ;;  %v13389_v51 = vld [vmem:[%s24267_s7 + $0x90] sm:$0xff] }
 0x860   : > { %18251 = vmatprep.subr.bf16.mxu0 %v18250_v50  ;;  %v18272_v39 = vpack.c.bf16 %v13381_v36, %v13379_v32  ;;  %v13426_v32 = vld [vmem:[%s24267_s7 + $0x1b8] sm:$0xff] }
 0x862   : > { %17924 = vmatmul.mubr.msk.f32.gmra.mrb[160].mxu0 %vm8837_vm14, %v22536_v29  ;;  %v11656_v29 = vld [vmem:[#allocation3 + $0x161] sm:$0xff] }
 0x863   : > { %17926 = vmatprep.mubr.msk.f32.mxu0 %vm8837_vm14, %v24700_v49  ;;  %18253 = vmatpush3.bf16.msra.mxu0 %v18250_v50  ;;  %v13388_v50 = vld [vmem:[%s24267_s7 + $0x88] sm:$0xff]  ;;  %v18282_v49 = vpack.c.bf16 %v13394_v7, %v13392_v63  ;;  %v13433_v63 = vld [vmem:[%s24267_s7 + $0x1f0] sm:$0xff] }
 0x864   : > { %18255 = vmatprep.subr.bf16.mxu0 %v18254_v57  ;;  %v18278_v3 = vpack.c.bf16 %v13390_v62, %v13388_v50  ;;  %v13429_v50 = vld [vmem:[%s24267_s7 + $0x1d0] sm:$0xff] }
 0x866   : > { %17927 = vmatmul.mubr.msk.f32.gmra.mrb[162].mxu0 %vm8837_vm14, %v22550_v10  ;;  %v11657_v10 = vld [vmem:[#allocation3 + $0x171] sm:$0xff] }
 0x867   : > { %17929 = vmatprep.mubr.msk.f32.mxu0 %vm8837_vm14, %v22554_v17  ;;  %18257 = vmatpush3.bf16.msra.mxu0 %v18254_v57  ;;  %v11659_v17 = vld [vmem:[#allocation3 + $0x191] sm:$0xff]  ;;  %v18280_v57 = vpack.c.bf16 %v13389_v51, %v13387_v58 }
 0x868   : > { %18259 = vmatprep.subr.bf16.mxu0 %v18258_v56  ;;  %v13434_v58 = vld [vmem:[%s24267_s7 + $0x1f8] sm:$0xff] }
 0x86a   : > { %17930 = vmatmul.mubr.msk.f32.gmra.mrb[164].mxu0 %vm8837_vm14, %v22558_v23  ;;  %v11660_v23 = vld [vmem:[#allocation3 + $0x1a1] sm:$0xff] }
 0x86b   : > { %17932 = vmatprep.mubr.msk.f32.mxu0 %vm8837_vm14, %v22562_v61  ;;  %18261 = vmatpush3.bf16.msra.mxu0 %v18258_v56  ;;  %v11658_v61 = vld [vmem:[#allocation3 + $0x181] sm:$0xff] }
 0x86c   : > { %v13391_v56 = vld [vmem:[%s24267_s7 + $0xa0] sm:$0xff] }
 0x86e   : > { %17933 = vmatmul.mubr.msk.f32.gmra.mrb[166].mxu0 %vm8837_vm14, %v22566_v38  ;;  %v11661_v38 = vld [vmem:[#allocation3 + $0x1b1] sm:$0xff] }
 0x86f   : > { %17935 = vmatprep.mubr.msk.f32.mxu0 %vm8837_vm14, %v22570_v13  ;;  %v11662_v13 = vld [vmem:[#allocation3 + $0x1c1] sm:$0xff] }
 0x872   : > { %17936 = vmatmul.mubr.msk.f32.gmra.mrb[168].mxu0 %vm8837_vm14, %v22574_v34  ;;  %v11663_v34 = vld [vmem:[#allocation3 + $0x1d1] sm:$0xff] }
 0x873   : > { %17938 = vmatprep.mubr.msk.f32.mxu0 %vm8837_vm14, %v11650_v54  ;;  %v13393_v54 = vld [vmem:[%s24267_s7 + $0xb0] sm:$0xff] }
 0x876   : > { %17939 = vmatmul.mubr.msk.f32.gmra.mrb[170].mxu0 %vm8837_vm14, %v11651_v9  ;;  %v18284_v9 = vpack.c.bf16 %v13393_v54, %v13391_v56  ;;  %v13438_v56 = vld [vmem:[%s24267_s7 + $0x218] sm:$0xff] }
 0x877   : > { %17941 = vmatprep.mubr.msk.f32.mxu0 %vm8837_vm14, %v22582_v19  ;;  %v11664_v19 = vld [vmem:[#allocation3 + $0x1e1] sm:$0xff] }
 0x87a   : > { %17942 = vmatmul.mubr.msk.f32.gmra.mrb[172].mxu0 %vm8837_vm14, %v11653_v11  ;;  %v13396_v11 = vld [vmem:[%s24267_s7 + $0xc8] sm:$0xff] }
 0x87b   : > { %17944 = vmatprep.mubr.msk.f32.mxu0 %vm8837_vm14, %v11654_v12  ;;  %v13398_v12 = vld [vmem:[%s24267_s7 + $0xd8] sm:$0xff] }
 0x87e   : > { %17945 = vmatmul.mubr.msk.f32.gmra.mrb[174].mxu0 %vm8837_vm14, %v11655_v30  ;;  %v18286_v30 = vpack.c.bf16 %v13398_v12, %v13396_v11  ;;  %v19326_v11 = vmov 1983009808  }
 0x87f   : > { %17947 = vmatprep.mubr.msk.f32.mxu0 %vm8837_vm14, %v11656_v29  ;;  %v13395_v29 = vld [vmem:[%s24267_s7 + $0xc0] sm:$0xff]  ;;  %v12595_v12 = vunpack.c.l.s4 %v19326_v11 }
 0x882   : > { %17948 = vmatmul.mubr.msk.f32.gmra.mrb[176].mxu0 %vm8837_vm14, %v11657_v10  ;;  %v13397_v10 = vld [vmem:[%s24267_s7 + $0xd0] sm:$0xff] }
 0x883   : > { %17950 = vmatprep.mubr.msk.f32.mxu0 %vm8837_vm14, %v11658_v61  ;;  %v18288_v61 = vpack.c.bf16 %v13397_v10, %v13395_v29 }
 0x886   : > { %17951 = vmatmul.mubr.msk.f32.gmra.mrb[178].mxu0 %vm8837_vm14, %v11659_v17  ;;  %v13400_v17 = vld [vmem:[%s24267_s7 + $0xe8] sm:$0xff] }
 0x887   : > { %17953 = vmatprep.mubr.msk.f32.mxu0 %vm8837_vm14, %v11660_v23  ;;  %v13402_v23 = vld [vmem:[%s24267_s7 + $0xf8] sm:$0xff] }
 0x88a   : > { %17954 = vmatmul.mubr.msk.f32.gmra.mrb[180].mxu0 %vm8837_vm14, %v11661_v38  ;;  %v18290_v38 = vpack.c.bf16 %v13402_v23, %v13400_v17  ;;  %v12596_v23 = vunpack.c.0.s8 %v12595_v12 }
 0x88b   : > { %17956 = vmatprep.mubr.msk.f32.mxu0 %vm8837_vm14, %v11662_v13  ;;  %v13399_v13 = vld [vmem:[%s24267_s7 + $0xe0] sm:$0xff] }
 0x88e   : > { %17957 = vmatmul.mubr.msk.f32.gmra.mrb[182].mxu0 %vm8837_vm14, %v11663_v34  ;;  %v13401_v34 = vld [vmem:[%s24267_s7 + $0xf0] sm:$0xff] }
 0x88f   : > { %17959 = vmatprep.mubr.msk.f32.mxu0 %vm8837_vm14, %v11664_v19  ;;  %v18292_v19 = vpack.c.bf16 %v13401_v34, %v13399_v13 }
 0x892   : > { %17960 = vmatmul.mubr.msk.f32.gmra.mrb[184].mxu0 %vm8837_vm14, %v11665_v33  ;;  %v13404_v33 = vld [vmem:[%s24267_s7 + $0x108] sm:$0xff] }
 0x893   : > { %17962 = vmatprep.mubr.msk.f32.mxu0 %vm8837_vm14, %v11666_v44  ;;  %v13406_v44 = vld [vmem:[%s24267_s7 + $0x118] sm:$0xff] }
 0x896   : > { %17963 = vmatmul.mubr.msk.f32.gmra.mrb[186].mxu0 %vm8837_vm14, %v11667_v26  ;;  %v18294_v26 = vpack.c.bf16 %v13406_v44, %v13404_v33 }
 0x897   : > { %17965 = vmatprep.mubr.msk.f32.mxu0 %vm8837_vm14, %v22616_v40  ;;  %v24709_v40 = vld [vmem:[#allocation65_spill] sm:$0xff] }
 0x89a   : > { %17966 = vmatmul.mubr.msk.f32.gmra.mrb[188].mxu0 %vm8837_vm14, %v11669_v6  ;;  %v13403_v6 = vld [vmem:[%s24267_s7 + $0x100] sm:$0xff] }
 0x89b   : > { %17984 = vmatprep.mubr.msk.f32.mxu0 %vm8837_vm14, %v22284_v18  ;;  %v12047_v18 = vld [vmem:[#allocation3 + $0x112] sm:$0xff] }
 0x89e   : > { %17985 = vmatmul.mubr.msk.f32.vlgmr.msra.gmra.mrb[158].mxu0 %vm8837_vm14, %v22288_v27  ;;  %v24701_v27 = vld [vmem:[#allocation55_spill] sm:$0xff] }
 0x89f   : > { %17987 = vmatprep.mubr.msk.f32.mxu0 %vm8837_vm14, %v22298_v22  ;;  %v24702_v22 = vld [vmem:[#allocation56_spill] sm:$0xff] }
 0x8a2   : > { %17988 = vmatmul.mubr.msk.f32.gmra.mrb[160].mxu0 %vm8837_vm14, %v22302_v35  ;;  %v24703_v35 = vld [vmem:[#allocation57_spill] sm:$0xff] }
 0x8a3   : > { %17990 = vmatprep.mubr.msk.f32.mxu0 %vm8837_vm14, %v22312_v5  ;;  %v24704_v5 = vld [vmem:[#allocation58_spill] sm:$0xff] }
 0x8a6   : > { %17991 = vmatmul.mubr.msk.f32.gmra.mrb[162].mxu0 %vm8837_vm14, %v22316_v16  ;;  %v24705_v16 = vld [vmem:[#allocation60_spill] sm:$0xff] }
 0x8a7   : > { %17993 = vmatprep.mubr.msk.f32.mxu0 %vm8837_vm14, %v22320_v52  ;;  %v24706_v52 = vld [vmem:[#allocation61_spill] sm:$0xff] }
 0x8aa   : > { %17994 = vmatmul.mubr.msk.f32.gmra.mrb[164].mxu0 %vm8837_vm14, %v22324_v15  ;;  %v24707_v15 = vld [vmem:[#allocation63_spill] sm:$0xff] }
 0x8ab   : > { %17996 = vmatprep.mubr.msk.f32.mxu0 %vm8837_vm14, %v22328_v48  ;;  %v24708_v48 = vld [vmem:[#allocation64_spill] sm:$0xff] }
 0x8ae   : > { %17997 = vmatmul.mubr.msk.f32.gmra.mrb[166].mxu0 %vm8837_vm14, %v24673_v4  ;;  %v24710_v4 = vld [vmem:[#allocation71_spill] sm:$0xff] }
 0x8af   : > { %17999 = vmatprep.mubr.msk.f32.mxu0 %vm8837_vm14, %v24674_v1  ;;  %v12063_v1 = vld [vmem:[#allocation3 + $0x232] sm:$0xff] }
 0x8b2   : > { %18000 = vmatmul.mubr.msk.f32.gmra.mrb[168].mxu0 %vm8837_vm14, %v24675_v55  ;;  %v13372_v55 = vld [vmem:[%s24267_s7 + $0x8] sm:$0xff] }
 0x8b3   : > { %18002 = vmatprep.mubr.msk.f32.mxu0 %vm8837_vm14, %v24676_v8  ;;  %v13374_v8 = vld [vmem:[%s24267_s7 + $0x18] sm:$0xff] }
 0x8b6   : > { %18003 = vmatmul.mubr.msk.f32.gmra.mrb[170].mxu0 %vm8837_vm14, %v24677_v21  ;;  %v18262_v21 = vpack.c.bf16 %v13374_v8, %v13372_v55  ;;  %v13413_v55 = vld [vmem:[%s24267_s7 + $0x150] sm:$0xff] }
 0x8b7   : > { %18005 = vmatprep.mubr.msk.f32.mxu0 %vm8837_vm14, %v22674_v0  ;;  %v13371_v0 = vld [vmem:[%s24267_s7] sm:$0xff] }
 0x8b8   : > { %18263 = vmatprep.subr.bf16.mxu0 %v18262_v21  ;;  %v13416_v21 = vld [vmem:[%s24267_s7 + $0x168] sm:$0xff] }
 0x8ba   : > { %18006 = vmatmul.mubr.msk.f32.gmra.mrb[172].mxu0 %vm8837_vm14, %v12047_v18  ;;  %v13405_v18 = vld [vmem:[%s24267_s7 + $0x110] sm:$0xff] }
 0x8bb   : > { %18008 = vmatprep.mubr.msk.f32.mxu0 %vm8837_vm14, %v24679_v59  ;;  %v13373_v59 = vld [vmem:[%s24267_s7 + $0x10] sm:$0xff] }
 0x8be   : > { %18009 = vmatmul.mubr.msk.f32.gmra.mrb[174].mxu0 %vm8837_vm14, %v24680_v2  ;;  %v18264_v2 = vpack.c.bf16 %v13373_v59, %v13371_v0  ;;  %v13418_v0 = vld [vmem:[%s24267_s7 + $0x178] sm:$0xff] }
 0x8bf   : > { %18011 = vmatprep.mubr.msk.f32.mxu0 %vm8837_vm14, %v24681_v20  ;;  %v13376_v20 = vld [vmem:[%s24267_s7 + $0x28] sm:$0xff]  ;;  %v18306_v59 = vpack.c.bf16 %v13418_v0, %v13416_v21 }
 0x8c0   : > { %18265 = vmatpush1.bf16.msra.mxu0 %v18264_v2  ;;  %v13415_v2 = vld [vmem:[%s24267_s7 + $0x160] sm:$0xff] }
 0x8c2   : > { %18012 = vmatmul.mubr.msk.f32.gmra.mrb[176].mxu0 %vm8837_vm14, %v24701_v27  ;;  %v18296_v27 = vpack.c.bf16 %v13405_v18, %v13403_v6 }
 0x8c3   : > { %18014 = vmatprep.mubr.msk.f32.mxu0 %vm8837_vm14, %v24702_v22  ;;  %v13408_v22 = vld [vmem:[%s24267_s7 + $0x128] sm:$0xff] }
 0x8c6   : > { %18015 = vmatmul.mubr.msk.f32.gmra.mrb[178].mxu0 %vm8837_vm14, %v24703_v35  ;;  %v13410_v35 = vld [vmem:[%s24267_s7 + $0x138] sm:$0xff] }
 0x8c7   : > { %18017 = vmatprep.mubr.msk.f32.mxu0 %vm8837_vm14, %v24704_v5  ;;  %v18298_v5 = vpack.c.bf16 %v13410_v35, %v13408_v22 }
 0x8ca   : > { %18018 = vmatmul.mubr.msk.f32.gmra.mrb[180].mxu0 %vm8837_vm14, %v24686_v14  ;;  %v13378_v14 = vld [vmem:[%s24267_s7 + $0x38] sm:$0xff] }
 0x8cb   : > { %18020 = vmatprep.mubr.msk.f32.mxu0 %vm8837_vm14, %v24705_v16  ;;  %v18266_v37 = vpack.c.bf16 %v13378_v14, %v13376_v20  ;;  %v13407_v16 = vld [vmem:[%s24267_s7 + $0x120] sm:$0xff]  ;;  %v13417_v20 = vld [vmem:[%s24267_s7 + $0x170] sm:$0xff] }
 0x8cc   : > { %v18308_v14 = vpack.c.bf16 %v13417_v20, %v13415_v2 }
 0x8cd   : > { %18267 = vmatprep.subr.bf16.mxu0 %v18266_v37  ;;  %v13420_v37 = vld [vmem:[%s24267_s7 + $0x188] sm:$0xff] }
 0x8ce   : > { %18021 = vmatmul.mubr.msk.f32.gmra.mrb[182].mxu0 %vm8837_vm14, %v24706_v52  ;;  %v13409_v52 = vld [vmem:[%s24267_s7 + $0x130] sm:$0xff] }
 0x8cf   : > { %18023 = vmatprep.mubr.msk.f32.mxu0 %vm8837_vm14, %v24689_v60  ;;  %v13375_v60 = vld [vmem:[%s24267_s7 + $0x20] sm:$0xff] }
 0x8d0   : > { %v18268_v25 = vpack.c.bf16 %v13377_v24, %v13375_v60  ;;  %v13422_v60 = vld [vmem:[%s24267_s7 + $0x198] sm:$0xff] }
 0x8d1   : > { %v18310_v24 = vpack.c.bf16 %v13422_v60, %v13420_v37 }
 0x8d2   : > { %18024 = vmatmul.mubr.msk.f32.gmra.mrb[184].mxu0 %vm8837_vm14, %v24707_v15  ;;  %v18300_v15 = vpack.c.bf16 %v13409_v52, %v13407_v16 }
 0x8d3   : > { %18026 = vmatprep.mubr.msk.f32.mxu0 %vm8837_vm14, %v24708_v48  ;;  %18269 = vmatpush1.bf16.msra.mxu0 %v18268_v25  ;;  %v13412_v48 = vld [vmem:[%s24267_s7 + $0x148] sm:$0xff]  ;;  %v13419_v25 = vld [vmem:[%s24267_s7 + $0x180] sm:$0xff] }
 0x8d4   : > { %18271 = vmatprep.subr.bf16.mxu0 %v18270_v53  ;;  %v18312_v31 = vpack.c.bf16 %v13421_v28, %v13419_v25  ;;  %v13424_v53 = vld [vmem:[%s24267_s7 + $0x1a8] sm:$0xff] }
 0x8d5   : > { %v18314_v36 = vpack.c.bf16 %v13426_v32, %v13424_v53 }
 0x8d6   : > { %18027 = vmatmul.mubr.msk.f32.gmra.mrb[186].mxu0 %vm8837_vm14, %v24709_v40  ;;  %v13414_v40 = vld [vmem:[%s24267_s7 + $0x158] sm:$0xff] }
 0x8d7   : > { %18029 = vmatprep.mubr.msk.f32.mxu0 %vm8837_vm14, %v24710_v4  ;;  %18273 = vmatpush1.bf16.msra.mxu0 %v18272_v39  ;;  %v18302_v4 = vpack.c.bf16 %v13414_v40, %v13412_v48  ;;  %v13423_v39 = vld [vmem:[%s24267_s7 + $0x1a0] sm:$0xff] }
 0x8d8   : > { %18275 = vmatprep.subr.bf16.mxu0 %v18274_v43  ;;  %v18316_v42 = vpack.c.bf16 %v13425_v41, %v13423_v39  ;;  %v13428_v43 = vld [vmem:[%s24267_s7 + $0x1c8] sm:$0xff] }
 0x8d9   : > { %v18318_v46 = vpack.c.bf16 %v13430_v45, %v13428_v43 }
 0x8da   : > { %18030 = vmatmul.mubr.msk.f32.gmra.mrb[188].mxu0 %vm8837_vm14, %v12063_v1  ;;  %v13411_v1 = vld [vmem:[%s24267_s7 + $0x140] sm:$0xff] }
 0x8db   : > { %18277 = vmatpush1.bf16.msra.mxu0 %v18276_v47  ;;  %v18304_v8 = vpack.c.bf16 %v13413_v55, %v13411_v1  ;;  %v13427_v47 = vld [vmem:[%s24267_s7 + $0x1c0] sm:$0xff] }
 0x8dc   : > { %18279 = vmatprep.subr.bf16.mxu0 %v18278_v3  ;;  %v18320_v62 = vpack.c.bf16 %v13429_v50, %v13427_v47  ;;  %v13432_v3 = vld [vmem:[%s24267_s7 + $0x1e8] sm:$0xff] }
 0x8dd   : > { %v18322_v51 = vpack.c.bf16 %v13434_v58, %v13432_v3 }
 0x8df   : > { %18281 = vmatpush1.bf16.msra.mxu0 %v18280_v57  ;;  %v13431_v57 = vld [vmem:[%s24267_s7 + $0x1e0] sm:$0xff] }
 0x8e0   : > { %18283 = vmatprep.subr.bf16.mxu0 %v18282_v49  ;;  %v18324_v7 = vpack.c.bf16 %v13433_v63, %v13431_v57  ;;  %v13436_v49 = vld [vmem:[%s24267_s7 + $0x208] sm:$0xff] }
 0x8e1   : > { %v18326_v54 = vpack.c.bf16 %v13438_v56, %v13436_v49  ;;  %v23172_v49 = vld [vmem:[%s24267_s7 + $0x200] sm:$0xff]  ;;  %v23177_v56 = vld [vmem:[%s24267_s7 + $0x210] sm:$0xff] }
 0x8e3   : > { %18285 = vmatpush1.bf16.msra.mxu0 %v18284_v9  ;;  %v23125_v9 = vld [vmem:[%s24266_s6] ss:$0 sm:$0xff] }
 0x8e4   : > { %18287 = vmatprep.subr.bf16.mxu0 %v18286_v30  ;;  %v12597_v30 = vlaneseq }
 0x8e7   : > { %18289 = vmatpush1.bf16.msra.mxu0 %v18288_v61 }
 0x8e8   : > { %18291 = vmatprep.subr.bf16.mxu0 %v18290_v38  ;;  %v23129_v38 = vshrl.u32 %v12597_v30, 7  ;;  %v23185_v30 = vld [vmem:[%s24267_s7 + $0x228] sm:$0xff] }
 0x8ea   : > { %24711 = vst [vmem:[#allocation72_spill] sm:$0xff] %v23129_v38  ;;  %v23133_v18 = vsub.s32 %v12596_v23, %v23129_v38 }
 0x8eb   : > { %18293 = vmatpush1.bf16.msra.mxu0 %v18292_v19 }
 0x8ec   : > { %18295 = vmatprep.subr.bf16.mxu0 %v18294_v26 }
 0x8ef   : > { %18297 = vmatpush1.bf16.msra.mxu0 %v18296_v27 }
 0x8f0   : > { %18299 = vmatprep.subr.bf16.mxu0 %v18298_v5 }
 0x8f3   : > { %18301 = vmatpush1.bf16.msra.mxu0 %v18300_v15 }
 0x8f4   : > { %18303 = vmatprep.subr.bf16.mxu0 %v18302_v4 }
 0x8f7   : > { %18305 = vmatpush1.bf16.msra.mxu0 %v18304_v8 }
 0x8f8   : > { %18307 = vmatprep.subr.bf16.mxu0 %v18306_v59 }
 0x8fb   : > { %18309 = vmatpush1.bf16.msra.mxu0 %v18308_v14 }
 0x8fc   : > { %18311 = vmatprep.subr.bf16.mxu0 %v18310_v24 }
 0x8ff   : > { %18313 = vmatpush1.bf16.msra.mxu0 %v18312_v31 }
 0x900   : > { %18315 = vmatprep.subr.bf16.mxu0 %v18314_v36 }
 0x903   : > { %18317 = vmatpush1.bf16.msra.mxu0 %v18316_v42 }
 0x904   : > { %18319 = vmatprep.subr.bf16.mxu0 %v18318_v46 }
 0x907   : > { %18321 = vmatpush1.bf16.msra.mxu0 %v18320_v62 }
 0x908   : > { %18323 = vmatprep.subr.bf16.mxu0 %v18322_v51 }
 0x90b   : > { %18325 = vmatpush1.bf16.msra.mxu0 %v18324_v7 }
 0x90c   : > { %18327 = vmatprep.subr.bf16.mxu0 %v18326_v54 }
 0x971   : > { %v17986_v29 = vpop.f32.mrb[158].mxu0 }
 0x972   : > { %v12434_v10 = vadd.f32 %v17986_v29, %v23125_v9  ;;  %v12235_v61 = vpop.f32.mrb[159].mxu0  ;;  %v23190_v29 = vld [vmem:[%s24267_s7 + $0x238] sm:$0xff] }
 0x973   : > { %v12433_v17 = vadd.f32 %v23125_v9, %v12235_v61 }
 0x974   : > { %vm12466_vm14 = vcmp.ge.f32.partialorder %v12434_v10, 0.0  ;;  %v12498_v13 = vmul.f32 0.2, %v12434_v10 }
 0x975   : > { %vm12465_vm5 = vcmp.ge.f32.partialorder %v12433_v17, 0.0  ;;  %v12497_v34 = vmul.f32 0.2, %v12433_v17  ;;  %v17989_v19 = vpop.f32.mrb[160].mxu0 }
 0x976   : > { %v12530_v33 = vsel %vm12466_vm14, %v12434_v10, %v12498_v13  ;;  %v12436_v44 = vadd.f32 %v17989_v19, %v23125_v9  ;;  %v12245_v26 = vpop.f32.mrb[161].mxu0 }
 0x977   : > { %v12529_v6 = vsel %vm12465_vm5, %v12433_v17, %v12497_v34  ;;  %v12435_v27 = vadd.f32 %v23125_v9, %v12245_v26 }
 0x978   : > { %v23136_v22 = vmax.f32 %v12529_v6, %v12530_v33  ;;  %vm12468_vm6 = vcmp.ge.f32.partialorder %v12436_v44, 0.0  ;;  %v12500_v35 = vmul.f32 0.2, %v12436_v44  ;;  %v23199_v33 = vsub.s32 0, %v23129_v38 }
 0x979   : > { %vm12467_vm7 = vcmp.ge.f32.partialorder %v12435_v27, 0.0  ;;  %v12499_v5 = vmul.f32 0.2, %v12435_v27  ;;  %v17992_v16 = vpop.f32.mrb[162].mxu0 }
 0x97a   : > { %v12532_v52 = vsel %vm12468_vm6, %v12436_v44, %v12500_v35  ;;  %v12438_v15 = vadd.f32 %v17992_v16, %v23125_v9  ;;  %v12255_v48 = vpop.f32.mrb[163].mxu0  ;;  %v23141_v40 = vrot.slane %v23136_v22, %v23133_v18  ;;  %v12593_v54 = vcombine.high %v23136_v22, %v23136_v22  ;;  %v23204_v44 = vld [vmem:[%s24267_s7 + $0x220] sm:$0xff]  ;;  %v23223_v16 = vld [vmem:[%s24267_s7 + $0x248] sm:$0xff] }
 0x97b   : > { %v12531_v4 = vsel %vm12467_vm7, %v12435_v27, %v12499_v5  ;;  %v12437_v1 = vadd.f32 %v23125_v9, %v12255_v48  ;;  %v23218_v5 = vld [vmem:[%s24267_s7 + $0x230] sm:$0xff]  ;;  %v23384_v35 = vld [vmem:[%s24267_s7 + $0x2e8] sm:$0xff] }
 0x97c   : > { %v23144_v55 = vmax.f32 %v12531_v4, %v12532_v52  ;;  %vm12470_vm8 = vcmp.ge.f32.partialorder %v12438_v15, 0.0  ;;  %v12502_v8 = vmul.f32 0.2, %v12438_v15  ;;  %v15139_v59 = vrot.slane %v23141_v40, 9  ;;  %v23228_v52 = vld [vmem:[%s24267_s7 + $0x258] sm:$0xff]  ;;  %24730 = vst [vmem:[#allocation91_spill] sm:$0xff] %v23384_v35 }
 0x97d   : > { %vm12469_vm9 = vcmp.ge.f32.partialorder %v12437_v1, 0.0  ;;  %v12501_v21 = vmul.f32 0.2, %v12437_v1  ;;  %v17995_v0 = vpop.f32.mrb[164].mxu0 }
 0x97e   : > { %v23149_v2 = vrot.slane %v23144_v55, %v23133_v18  ;;  %v12534_v20 = vsel %vm12470_vm8, %v12438_v15, %v12502_v8  ;;  %v12265_v37 = vpop.f32.mrb[165].mxu0  ;;  %v12440_v28 = vadd.f32 %v17995_v0, %v23125_v9  ;;  %v13121_v53 = vmax.f32 %v23141_v40, %v15139_v59  ;;  %v23242_v8 = vld [vmem:[%s24267_s7 + $0x250] sm:$0xff] }
 0x97f   : > { %v12533_v14 = vsel %vm12469_vm9, %v12437_v1, %v12501_v21  ;;  %v12439_v36 = vadd.f32 %v23125_v9, %v12265_v37  ;;  %v23231_v15 = vrot.slane %v12593_v54, %v23133_v18  ;;  %v23237_v1 = vld [vmem:[%s24267_s7 + $0x240] sm:$0xff]  ;;  %24713 = vst [vmem:[#allocation74_spill] sm:$0xff] %v23242_v8  ;;  %v23247_v21 = vld [vmem:[%s24267_s7 + $0x268] sm:$0xff]  ;;  %v23255_v37 = vld [vmem:[%s24267_s7 + $0x278] sm:$0xff] }
 0x980   : > { %v23151_v60 = vmax.f32 %v12533_v14, %v12534_v20  ;;  %v15143_v24 = vrot.slane %v23149_v2, 9  ;;  %vm12472_vm10 = vcmp.ge.f32.partialorder %v12440_v28, 0.0  ;;  %v12504_v45 = vmul.f32 0.2, %v12440_v28  ;;  %24712 = vst [vmem:[#allocation73_spill] sm:$0xff] %v23237_v1  ;;  %24714 = vst [vmem:[#allocation75_spill] sm:$0xff] %v23247_v21 }
 0x981   : > { %v17998_v25 = vpop.f32.mrb[166].mxu0  ;;  %vm12471_vm11 = vcmp.ge.f32.partialorder %v12439_v36, 0.0  ;;  %v12503_v46 = vmul.f32 0.2, %v12439_v36  ;;  %24715 = vst [vmem:[#allocation76_spill] sm:$0xff] %v23255_v37  ;;  %v12609_v54 = vcombine.high %v23231_v15, %v23231_v15 }
 0x982   : > { %v12275_v31 = vpop.f32.mrb[167].mxu0  ;;  %v13125_v32 = vmax.f32 %v23149_v2, %v15143_v24  ;;  %v23162_v43 = vrot.slane %v23151_v60, %v23133_v18  ;;  %v12442_v47 = vadd.f32 %v17998_v25, %v23125_v9  ;;  %v12536_v50 = vsel %vm12472_vm10, %v12440_v28, %v12504_v45  ;;  %v23260_v24 = vld [vmem:[%s24267_s7 + $0x260] sm:$0xff]  ;;  %v23265_v25 = vld [vmem:[%s24267_s7 + $0x270] sm:$0xff] }
 0x983   : > { %v12535_v62 = vsel %vm12471_vm11, %v12439_v36, %v12503_v46  ;;  %v12441_v3 = vadd.f32 %v23125_v9, %v12275_v31  ;;  %24716 = vst [vmem:[#allocation77_spill] sm:$0xff] %v23260_v24  ;;  %24717 = vst [vmem:[#allocation78_spill] sm:$0xff] %v23265_v25  ;;  %v12610_v28 = vcombine.high %v23144_v55, %v23144_v55  ;;  %v23276_v36 = vld [vmem:[%s24267_s7 + $0x288] sm:$0xff]  ;;  %v15142_v46 = vrot.slane %v12609_v54, 9 }
 0x984   : > { %v23158_v39 = vadd.f32 %v13125_v32, %v13121_v53  ;;  %v23167_v57 = vmax.f32 %v12535_v62, %v12536_v50  ;;  %vm12474_vm12 = vcmp.ge.f32.partialorder %v12442_v47, 0.0  ;;  %v12506_v63 = vmul.f32 0.2, %v12442_v47  ;;  %24718 = vst [vmem:[#allocation79_spill] sm:$0xff] %v23276_v36  ;;  %v23298_v50 = vld [vmem:[%s24267_s7 + $0x280] sm:$0xff]  ;;  %v23303_v62 = vld [vmem:[%s24267_s7 + $0x290] sm:$0xff] }
 0x985   : > { %v18001_v41 = vpop.f32.mrb[168].mxu0  ;;  %v15147_v11 = vrot.slane %v23162_v43, 9  ;;  %vm12473_vm13 = vcmp.ge.f32.partialorder %v12441_v3, 0.0  ;;  %v12505_v12 = vmul.f32 0.2, %v12441_v3  ;;  %24720 = vst [vmem:[#allocation81_spill] sm:$0xff] %v23298_v50  ;;  %v12625_v55 = vcombine.high %v23149_v2, %v23149_v2 }
 0x986   : > { %v12285_v42 = vpop.f32.mrb[169].mxu0  ;;  %v12444_v58 = vadd.f32 %v18001_v41, %v23125_v9  ;;  %v23194_v10 = vrot.slane %v23167_v57, %v23133_v18  ;;  %v12538_v61 = vsel %vm12474_vm12, %v12442_v47, %v12506_v63  ;;  %v23293_v47 = vld [vmem:[%s24267_s7 + $0x298] sm:$0xff]  ;;  %24721 = vst [vmem:[#allocation82_spill] sm:$0xff] %v23303_v62 }
 0x987   : > { %v12443_v23 = vadd.f32 %v23125_v9, %v12285_v42  ;;  %v12537_v13 = vsel %vm12473_vm13, %v12441_v3, %v12505_v12  ;;  %v13129_v48 = vmax.f32 %v23162_v43, %v15147_v11  ;;  %24719 = vst [vmem:[#allocation80_spill] sm:$0xff] %v23293_v47  ;;  %v12608_v3 = vcombine.high %v23141_v40, %v23141_v40  ;;  %v23324_v12 = vld [vmem:[%s24267_s7 + $0x2b8] sm:$0xff] }
 0x988   : > { %v12508_v17 = vmul.f32 0.2, %v12444_v58  ;;  %vm12476_vm1 = vcmp.ge.f32.partialorder %v12444_v58, 0.0  ;;  %v15151_v26 = vrot.slane %v23194_v10, 9  ;;  %v23207_v6 = vmax.f32 %v12537_v13, %v12538_v61  ;;  %24723 = vst [vmem:[#allocation84_spill] sm:$0xff] %v23324_v12  ;;  %v23329_v61 = vld [vmem:[%s24267_s7 + $0x2a0] sm:$0xff] }
 0x989   : > { %v18004_v51 = vpop.f32.mrb[170].mxu0  ;;  %vm12475_vm15 = vcmp.ge.f32.partialorder %v12443_v23, 0.0  ;;  %v12507_v4 = vmul.f32 0.2, %v12443_v23  ;;  %24724 = vst [vmem:[#allocation85_spill] sm:$0xff] %v23329_v61  ;;  %v12627_v13 = vcombine.high %v23151_v60, %v23151_v60  ;;  %v15140_v63 = vrot.slane %v12608_v3, 9 }
 0x98a   : > { %v12295_v7 = vpop.f32.mrb[171].mxu0  ;;  %v12446_v34 = vadd.f32 %v18004_v51, %v23125_v9  ;;  %v13133_v0 = vmax.f32 %v23194_v10, %v15151_v26  ;;  %v12540_v59 = vsel %vm12476_vm1, %v12444_v58, %v12508_v17  ;;  %v23282_v42 = vrot.slane %v23207_v6, %v23133_v18  ;;  %v23334_v17 = vld [vmem:[%s24267_s7 + $0x2b0] sm:$0xff] }
 0x98b   : > { %v12445_v14 = vadd.f32 %v23125_v9, %v12295_v7  ;;  %v12539_v31 = vsel %vm12475_vm15, %v12443_v23, %v12507_v4  ;;  %v23316_v7 = vld [vmem:[%s24267_s7 + $0x2a8] sm:$0xff]  ;;  %24725 = vst [vmem:[#allocation86_spill] sm:$0xff] %v23334_v17  ;;  %v23337_v23 = vrot.slane %v12610_v28, %v23133_v18  ;;  %v23369_v26 = vld [vmem:[%s24267_s7 + $0x2d0] sm:$0xff]  ;;  %v15141_v51 = vrot.slane %v23231_v15, 9 }
 0x98c   : > { %v12510_v20 = vmul.f32 0.2, %v12446_v34  ;;  %vm12478_vm4 = vcmp.ge.f32.partialorder %v12446_v34, 0.0  ;;  %v23278_v41 = vadd.f32 %v13133_v0, %v13129_v48  ;;  %v23307_v58 = vmax.f32 %v12539_v31, %v12540_v59  ;;  %24722 = vst [vmem:[#allocation83_spill] sm:$0xff] %v23316_v7  ;;  %v23348_v4 = vld [vmem:[%s24267_s7 + $0x2c8] sm:$0xff]  ;;  %v23359_v31 = vld [vmem:[%s24267_s7 + $0x2d8] sm:$0xff] }
 0x98d   : > { %v18007_v19 = vpop.f32.mrb[172].mxu0  ;;  %vm12477_vm0 = vcmp.ge.f32.partialorder %v12445_v14, 0.0  ;;  %v12509_v40 = vmul.f32 0.2, %v12445_v14  ;;  %24726 = vst [vmem:[#allocation87_spill] sm:$0xff] %v23348_v4  ;;  %v15155_v0 = vrot.slane %v23282_v42, 9  ;;  %v23408_v50 = vmax.f32 %v12608_v3, %v15140_v63 }
 0x98e   : > { %v23209_v27 = vpop.f32.mrb[173].mxu0  ;;  %v12542_v11 = vsel %vm12478_vm4, %v12446_v34, %v12510_v20  ;;  %v23353_v59 = vrot.slane %v23307_v58, %v23133_v18  ;;  %v12448_v60 = vadd.f32 %v18007_v19, %v23125_v9  ;;  %24727 = vst [vmem:[#allocation88_spill] sm:$0xff] %v23359_v31  ;;  %v23364_v48 = vld [vmem:[%s24267_s7 + $0x2c0] sm:$0xff]  ;;  %24729 = vst [vmem:[#allocation90_spill] sm:$0xff] %v23369_v26 }
 0x98f   : > { %v12541_v20 = vsel %vm12477_vm0, %v12445_v14, %v12509_v40  ;;  %24728 = vst [vmem:[#allocation89_spill] sm:$0xff] %v23364_v48  ;;  %v23396_v40 = vrot.slane %v12627_v13, %v23133_v18  ;;  %v13137_v38 = vmax.f32 %v23282_v42, %v15155_v0  ;;  %v12447_v7 = vadd.f32 %v23125_v9, %v23209_v27 }
 0x990   : > { %v23371_v14 = vmax.f32 %v12541_v20, %v12542_v11  ;;  %v15159_v32 = vrot.slane %v23353_v59, 9  ;;  %v23389_v11 = vld [vmem:[%s24267_s7 + $0x2f8] sm:$0xff]  ;;  %v23393_v20 = vcombine.high %v23337_v23, %v23337_v23  ;;  %v12512_v17 = vmul.f32 0.2, %v12448_v60 }
 0x991   : > { %v23269_v53 = vpop.f32.mrb[174].mxu0  ;;  %24731 = vst [vmem:[#allocation92_spill] sm:$0xff] %v23389_v11  ;;  %v12644_v13 = vcombine.high %v23167_v57, %v23167_v57  ;;  %vm12480_vm2 = vcmp.ge.f32.partialorder %v12448_v60, 0.0  ;;  %v23415_v22 = vmax.f32 %v23231_v15, %v15141_v51  ;;  %v23417_v0 = vmax.f32 %v12609_v54, %v15142_v46 }
 0x992   : > { %v23284_v45 = vpop.f32.mrb[175].mxu0  ;;  %v13141_v61 = vmax.f32 %v23353_v59, %v15159_v32  ;;  %v15144_v32 = vrot.slane %v12625_v55, 9  ;;  %v15145_v27 = vrot.slane %v23337_v23, 9  ;;  %v15146_v3 = vrot.slane %v23393_v20, 9 }
 0x993   : > { %v12642_v63 = vcombine.high %v23162_v43, %v23162_v43  ;;  %v12643_v57 = vcombine.high %v23396_v40, %v23396_v40  ;;  %v12544_v19 = vsel %vm12480_vm2, %v12448_v60, %v12512_v17  ;;  %vm12479_vm3 = vcmp.ge.f32.partialorder %v12447_v7, 0.0 }
 0x994   : > { %v23419_v48 = vadd.f32 %v13141_v61, %v13137_v38  ;;  %v12511_v15 = vmul.f32 0.2, %v12447_v7  ;;  %v12450_v46 = vadd.f32 %v23269_v53, %v23125_v9  ;;  %v12658_v51 = vrot.slane %v12644_v13, %v23133_v18 }
 0x995   : > { %v18013_v34 = vpop.f32.mrb[176].mxu0  ;;  %v12661_v54 = vcombine.high %v23207_v6, %v23207_v6  ;;  %v23438_v43 = vrot.slane %v23371_v14, %v23133_v18  ;;  %v12449_v61 = vadd.f32 %v23125_v9, %v23284_v45  ;;  %v12659_v53 = vcombine.high %v23194_v10, %v23194_v10 }
 0x996   : > { %v12325_v28 = vpop.f32.mrb[177].mxu0  ;;  %24732 = vst [vmem:[#allocation93_spill] sm:$0xff] %v23419_v48  ;;  %v12543_v17 = vsel %vm12479_vm3, %v12447_v7, %v12511_v15  ;;  %vm12482_vm14 = vcmp.ge.f32.partialorder %v12450_v46, 0.0  ;;  %v12514_v60 = vmul.f32 0.2, %v12450_v46  ;;  %v12452_v35 = vadd.f32 %v18013_v34, %v23125_v9 }
 0x997   : > { %v23445_v11 = vmax.f32 %v12543_v17, %v12544_v19  ;;  %vm12481_vm5 = vcmp.ge.f32.partialorder %v12449_v61, 0.0  ;;  %v12513_v13 = vmul.f32 0.2, %v12449_v61  ;;  %v12451_v62 = vadd.f32 %v23125_v9, %v12325_v28 }
 0x998   : > { %v12546_v4 = vsel %vm12482_vm14, %v12450_v46, %v12514_v60  ;;  %vm12484_vm6 = vcmp.ge.f32.partialorder %v12452_v35, 0.0  ;;  %v12516_v31 = vmul.f32 0.2, %v12452_v35  ;;  %v12675_v45 = vrot.slane %v12661_v54, %v23133_v18 }
 0x999   : > { %v18016_v2 = vpop.f32.mrb[178].mxu0  ;;  %v15163_v7 = vrot.slane %v23438_v43, 9  ;;  %v23454_v34 = vrot.slane %v23445_v11, %v23133_v18  ;;  %v12545_v10 = vsel %vm12481_vm5, %v12449_v61, %v12513_v13  ;;  %v12660_v19 = vcombine.high %v12658_v51, %v12658_v51 }
 0x99a   : > { %v23406_v12 = vpop.f32.mrb[179].mxu0  ;;  %v23456_v15 = vmax.f32 %v12545_v10, %v12546_v4  ;;  %vm12483_vm7 = vcmp.ge.f32.partialorder %v12451_v62, 0.0  ;;  %v12515_v46 = vmul.f32 0.2, %v12451_v62  ;;  %v23458_v17 = vmax.f32 %v12625_v55, %v15144_v32 }
 0x99b   : > { %v15167_v28 = vrot.slane %v23454_v34, 9  ;;  %v12548_v60 = vsel %vm12484_vm6, %v12452_v35, %v12516_v31  ;;  %v12454_v47 = vadd.f32 %v18016_v2, %v23125_v9  ;;  %v15148_v24 = vrot.slane %v12642_v63, 9 }
 0x99c   : > { %v15149_v25 = vrot.slane %v23396_v40, 9  ;;  %v15150_v48 = vrot.slane %v12643_v57, 9  ;;  %v12547_v21 = vsel %vm12483_vm7, %v12451_v62, %v12515_v46  ;;  %v12676_v4 = vcombine.high %v23282_v42, %v23282_v42 }
 0x99d   : > { %v23427_v26 = vpop.f32.mrb[180].mxu0  ;;  %v12677_v61 = vcombine.high %v12675_v45, %v12675_v45  ;;  %v13145_v55 = vmax.f32 %v23438_v43, %v15163_v7  ;;  %v13149_v32 = vmax.f32 %v23454_v34, %v15167_v28  ;;  %v15152_v13 = vrot.slane %v12659_v53, 9 }
 0x99e   : > { %v23431_v38 = vpop.f32.mrb[181].mxu0  ;;  %v15153_v35 = vrot.slane %v12658_v51, 9  ;;  %v15154_v31 = vrot.slane %v12660_v19, 9  ;;  %v23469_v2 = vmax.f32 %v12547_v21, %v12548_v60  ;;  %v23472_v10 = vmax.f32 %v23337_v23, %v15145_v27 }
 0x99f   : > { %v12678_v62 = vcombine.high %v23307_v58, %v23307_v58  ;;  %v23476_v46 = vadd.f32 %v13149_v32, %v13145_v55  ;;  %v12518_v1 = vmul.f32 0.2, %v12454_v47  ;;  %v23481_v7 = vmax.f32 %v23393_v20, %v15146_v3 }
 0x9a0   : > { %v23483_v28 = vmax.f32 %v12642_v63, %v15148_v24  ;;  %v23486_v8 = vmax.f32 %v23396_v40, %v15149_v25  ;;  %vm12486_vm8 = vcmp.ge.f32.partialorder %v12454_v47, 0.0  ;;  %v23490_v23 = vmax.f32 %v12643_v57, %v15150_v48 }
 0x9a1   : > { %v18022_v6 = vpop.f32.mrb[182].mxu0  ;;  %24733 = vst [vmem:[#allocation94_spill] sm:$0xff] %v23476_v46  ;;  %v15156_v27 = vrot.slane %v12676_v4, 9  ;;  %v15157_v58 = vrot.slane %v12675_v45, 9  ;;  %v15158_v60 = vrot.slane %v12677_v61, 9  ;;  %v23492_v55 = vmax.f32 %v12659_v53, %v15152_v13 }
 0x9a2   : > { %v23448_v36 = vpop.f32.mrb[183].mxu0  ;;  %v23494_v32 = vmax.f32 %v12658_v51, %v15153_v35  ;;  %v23496_v46 = vmax.f32 %v12660_v19, %v15154_v31  ;;  %v12453_v24 = vadd.f32 %v23125_v9, %v23406_v12  ;;  %v12692_v25 = vrot.slane %v12678_v62, %v23133_v18 }
 0x9a3   : > { %v12693_v40 = vcombine.high %v23353_v59, %v23353_v59  ;;  %v12550_v20 = vsel %vm12486_vm8, %v12454_v47, %v12518_v1  ;;  %v12456_v48 = vadd.f32 %v23427_v26, %v23125_v9  ;;  %v12455_v57 = vadd.f32 %v23125_v9, %v23431_v38 }
 0x9a4   : > { %vm12485_vm9 = vcmp.ge.f32.partialorder %v12453_v24, 0.0  ;;  %v12517_v63 = vmul.f32 0.2, %v12453_v24  ;;  %v12458_v51 = vadd.f32 %v18022_v6, %v23125_v9  ;;  %v23512_v12 = vmax.f32 %v12676_v4, %v15156_v27 }
 0x9a5   : > { %v18025_v54 = vpop.f32.mrb[184].mxu0  ;;  %v23514_v19 = vmax.f32 %v12675_v45, %v15157_v58  ;;  %v23516_v59 = vmax.f32 %v12677_v61, %v15158_v60  ;;  %v12695_v1 = vcombine.high %v23371_v14, %v23371_v14  ;;  %v12729_v47 = vcombine.high %v23456_v15, %v23456_v15 }
 0x9a6   : > { %v23463_v37 = vpop.f32.mrb[185].mxu0  ;;  %v12549_v26 = vsel %vm12485_vm9, %v12453_v24, %v12517_v63  ;;  %vm12488_vm10 = vcmp.ge.f32.partialorder %v12456_v48, 0.0  ;;  %v12520_v13 = vmul.f32 0.2, %v12456_v48  ;;  %v12694_v38 = vcombine.high %v12692_v25, %v12692_v25 }
 0x9a7   : > { %24734 = vst [vmem:[#allocation95_spill] sm:$0xff] %v23514_v19  ;;  %24735 = vst [vmem:[#allocation96_spill] sm:$0xff] %v23516_v59  ;;  %v12736_v6 = vrot.slane %v23456_v15, %v23133_v18  ;;  %v12571_v35 = vmax.f32 %v12549_v26, %v12550_v20  ;;  %vm12487_vm11 = vcmp.ge.f32.partialorder %v12455_v57, 0.0  ;;  %v15160_v4 = vrot.slane %v12693_v40, 9 }
 0x9a8   : > { %v12552_v45 = vsel %vm12488_vm10, %v12456_v48, %v12520_v13  ;;  %v12519_v31 = vmul.f32 0.2, %v12455_v57  ;;  %v12522_v61 = vmul.f32 0.2, %v12458_v51  ;;  %v15161_v62 = vrot.slane %v12692_v25, 9 }
 0x9a9   : > { %v23478_v42 = vpop.f32.mrb[186].mxu0  ;;  %vm12490_vm12 = vcmp.ge.f32.partialorder %v12458_v51, 0.0  ;;  %v12457_v14 = vadd.f32 %v23125_v9, %v23448_v36  ;;  %v12460_v27 = vadd.f32 %v18025_v54, %v23125_v9  ;;  %v23528_v58 = vrot.slane %v12695_v1, %v23133_v18 }
 0x9aa   : > { %v23488_v21 = vpop.f32.mrb[187].mxu0  ;;  %v23532_v60 = vcombine.high %v23438_v43, %v23438_v43  ;;  %v12743_v15 = vrot.slane %v12729_v47, %v23133_v18  ;;  %v12551_v24 = vsel %vm12487_vm11, %v12455_v57, %v12519_v31  ;;  %v12744_v20 = vcombine.high %v12736_v6, %v12736_v6 }
 0x9ab   : > { %24736 = vst [vmem:[#allocation97_spill] sm:$0xff] %v23528_v58  ;;  %v12746_v48 = vcombine.high %v23469_v2, %v23469_v2  ;;  %v12753_v63 = vrot.slane %v23469_v2, %v23133_v18  ;;  %v12572_v36 = vmax.f32 %v12551_v24, %v12552_v45  ;;  %v12554_v26 = vsel %vm12490_vm12, %v12458_v51, %v12522_v61 }
 0x9ac   : > { %24737 = vst [vmem:[#allocation98_spill] sm:$0xff] %v23532_v60  ;;  %vm12489_vm13 = vcmp.ge.f32.partialorder %v12457_v14, 0.0  ;;  %v12521_v54 = vmul.f32 0.2, %v12457_v14  ;;  %v12459_v1 = vadd.f32 %v23125_v9, %v23463_v37  ;;  %v15162_v13 = vrot.slane %v12694_v38, 9 }
 0x9ad   : > { %v23505_v3 = vpop.f32.mrb[188].mxu0  ;;  %v23541_v43 = vmax.f32 %v12693_v40, %v15160_v4  ;;  %v23543_v60 = vmax.f32 %v12692_v25, %v15161_v62  ;;  %v12524_v57 = vmul.f32 0.2, %v12460_v27  ;;  %v23547_v47 = vcombine.high %v23528_v58, %v23528_v58 }
 0x9ae   : > { %v23510_v53 = vpop.f32.mrb[189].mxu0  ;;  %v12712_v2 = vcombine.high %v23445_v11, %v23445_v11  ;;  %v12553_v45 = vsel %vm12489_vm13, %v12457_v14, %v12521_v54  ;;  %vm12492_vm1 = vcmp.ge.f32.partialorder %v12460_v27, 0.0  ;;  %v12745_v51 = vcombine.high %v12743_v15, %v12743_v15 }
 0x9af   : > { %24738 = vst [vmem:[#allocation99_spill] sm:$0xff] %v23541_v43  ;;  %24739 = vst [vmem:[#allocation100_spill] sm:$0xff] %v23543_v60  ;;  %v15171_v31 = vrot.slane %v12736_v6, 9  ;;  %v15172_v61 = vrot.slane %v12744_v20, 9  ;;  %v23551_v24 = vmax.f32 %v12553_v45, %v12554_v26  ;;  %v15173_v37 = vrot.slane %v12743_v15, 9 }
 0x9b0   : > { %24740 = vst [vmem:[#allocation101_spill] sm:$0xff] %v23547_v47  ;;  %v12760_v40 = vrot.slane %v12746_v48, %v23133_v18  ;;  %v12761_v25 = vcombine.high %v12753_v63, %v12753_v63  ;;  %vm12491_vm15 = vcmp.ge.f32.partialorder %v12459_v1, 0.0  ;;  %v12763_v4 = vcombine.high %v12571_v35, %v12571_v35 }
 0x9b1   : > { %v12556_v62 = vsel %vm12492_vm1, %v12460_v27, %v12524_v57  ;;  %v12523_v59 = vmul.f32 0.2, %v12459_v1  ;;  %v12462_v47 = vadd.f32 %v23478_v42, %v23125_v9  ;;  %v23556_v58 = vmax.f32 %v12694_v38, %v15162_v13 }
 0x9b2   : > { %v23559_v11 = vrot.slane %v12712_v2, %v23133_v18  ;;  %v23563_v14 = vcombine.high %v23454_v34, %v23454_v34  ;;  %v12770_v26 = vrot.slane %v12571_v35, %v23133_v18  ;;  %v15174_v48 = vrot.slane %v12745_v51, 9 }
 0x9b3   : > { %24741 = vst [vmem:[#allocation35_spill] sm:$0xff] %v23556_v58  ;;  %v13153_v54 = vmax.f32 %v12736_v6, %v15171_v31  ;;  %v15175_v45 = vrot.slane %v12753_v63, 9  ;;  %v12555_v60 = vsel %vm12491_vm15, %v12459_v1, %v12523_v59  ;;  %v12762_v27 = vcombine.high %v12760_v40, %v12760_v40 }
 0x9b4   : > { %24742 = vst [vmem:[#allocation36_spill] sm:$0xff] %v23559_v11  ;;  %24743 = vst [vmem:[#allocation37_spill] sm:$0xff] %v23563_v14  ;;  %v15176_v57 = vrot.slane %v12761_v25, 9  ;;  %v15177_v19 = vrot.slane %v12760_v40, 9  ;;  %v23566_v43 = vmax.f32 %v12555_v60, %v12556_v62  ;;  %v13154_v42 = vmax.f32 %v12744_v20, %v15172_v61 }
 0x9b5   : > { %v13155_v38 = vmax.f32 %v12743_v15, %v15173_v37  ;;  %v12777_v13 = vrot.slane %v12763_v4, %v23133_v18  ;;  %vm12494_vm4 = vcmp.ge.f32.partialorder %v12462_v47, 0.0  ;;  %v12778_v2 = vcombine.high %v12770_v26, %v12770_v26 }
 0x9b6   : > { %v15179_v11 = vrot.slane %v12770_v26, 9  ;;  %v12526_v34 = vmul.f32 0.2, %v12462_v47  ;;  %v12461_v35 = vadd.f32 %v23125_v9, %v23488_v21  ;;  %v13157_v14 = vmax.f32 %v12753_v63, %v15175_v45 }
 0x9b7   : > { %v12780_v6 = vcombine.high %v12572_v36, %v12572_v36  ;;  %v12787_v59 = vrot.slane %v12572_v36, %v23133_v18  ;;  %v12464_v1 = vadd.f32 %v23505_v3, %v23125_v9  ;;  %v15178_v60 = vrot.slane %v12762_v27, 9 }
 0x9b8   : > { %v13158_v31 = vmax.f32 %v12761_v25, %v15176_v57  ;;  %v13159_v20 = vmax.f32 %v12760_v40, %v15177_v19  ;;  %v12558_v15 = vsel %vm12494_vm4, %v12462_v47, %v12526_v34  ;;  %vm12493_vm0 = vcmp.ge.f32.partialorder %v12461_v35, 0.0 }
 0x9b9   : > { %v12525_v61 = vmul.f32 0.2, %v12461_v35  ;;  %vm12496_vm2 = vcmp.ge.f32.partialorder %v12464_v1, 0.0  ;;  %v12528_v37 = vmul.f32 0.2, %v12464_v1  ;;  %v23574_v4 = vcombine.high %v12777_v13, %v12777_v13 }
 0x9ba   : > { %v15180_v62 = vrot.slane %v12778_v2, 9  ;;  %v15181_v58 = vrot.slane %v12777_v13, 9  ;;  %v23576_v21 = vmax.f32 %v12770_v26, %v15179_v11  ;;  %v12794_v63 = vrot.slane %v12780_v6, %v23133_v18 }
 0x9bb   : > { %v12795_v36 = vcombine.high %v12787_v59, %v12787_v59  ;;  %v12557_v45 = vsel %vm12493_vm0, %v12461_v35, %v12525_v61  ;;  %v12463_v3 = vadd.f32 %v23125_v9, %v23510_v53  ;;  %v15183_v25 = vrot.slane %v12787_v59, 9 }
 0x9bc   : > { %v12797_v19 = vcombine.high %v23551_v24, %v23551_v24  ;;  %v23583_v47 = vmax.f32 %v12557_v45, %v12558_v15  ;;  %v12560_v40 = vsel %vm12496_vm2, %v12464_v1, %v12528_v37  ;;  %v13160_v34 = vmax.f32 %v12762_v27, %v15178_v60 }
 0x9bd   : > { %vm12495_vm3 = vcmp.ge.f32.partialorder %v12463_v3, 0.0  ;;  %v12527_v57 = vmul.f32 0.2, %v12463_v3  ;;  %v13186_v11 = vadd.f32 %v23458_v17, %v23408_v50  ;;  %vm13329_vm14 = vcmask 1041409  }
 0x9be   : > { %v23589_v26 = vrot.slane %v23551_v24, %v23133_v18  ;;  %v13156_v35 = vmax.f32 %v12745_v51, %v15174_v48  ;;  %v13187_v9 = vadd.f32 %v23472_v10, %v23415_v22  ;;  %v13188_v53 = vadd.f32 %v23481_v7, %v23417_v0 }
 0x9bf   : > { %v12559_v6 = vsel %vm12495_vm3, %v12463_v3, %v12527_v57  ;;  %v13201_v1 = vadd.f32 %v13157_v14, %v13153_v54  ;;  %v13202_v15 = vadd.f32 %v13158_v31, %v13154_v42  ;;  %v13203_v61 = vadd.f32 %v13159_v20, %v13155_v38 }
 0x9c0   : > { %vm13346_vm5 = vcmask 1040384   ;;  %v12796_v27 = vcombine.high %v12794_v63, %v12794_v63  ;;  %v15184_v60 = vrot.slane %v12795_v36, 9  ;;  %v12814_v50 = vcombine.high %v23566_v43, %v23566_v43 }
 0x9c1   : > { %v23597_v17 = vmax.f32 %v12559_v6, %v12560_v40  ;;  %v13204_v24 = vadd.f32 %v13160_v34, %v13156_v35  ;;  %v13217_v51 = vadd.f32 %v13186_v11, %v23158_v39  ;;  %v13218_v48 = vadd.f32 %v13188_v53, %v13187_v9 }
 0x9c2   : > { %v13225_v22 = vadd.f32 %v13202_v15, %v13201_v1  ;;  %v15182_v10 = vrot.slane %v23574_v4, 9  ;;  %v13162_v0 = vmax.f32 %v12778_v2, %v15180_v62  ;;  %v15185_v7 = vrot.slane %v12794_v63, 9 }
 0x9c3   : > { %v12811_v14 = vrot.slane %v12797_v19, %v23133_v18  ;;  %v12812_v54 = vcombine.high %v23589_v26, %v23589_v26  ;;  %v12821_v42 = vrot.slane %v23566_v43, %v23133_v18  ;;  %v13226_v38 = vadd.f32 %v13204_v24, %v13203_v61 }
 0x9c4   : > { %v13233_v31 = vmul.f32 0.25, %v13217_v51  ;;  %v13163_v20 = vmax.f32 %v12777_v13, %v15181_v58  ;;  %v15186_v37 = vrot.slane %v12796_v27, 9  ;;  %v13165_v45 = vmax.f32 %v12787_v59, %v15183_v25 }
 0x9c5   : > { %v13234_v39 = vmul.f32 0.25, %v13218_v48  ;;  %v13166_v3 = vmax.f32 %v12795_v36, %v15184_v60  ;;  %v15187_v40 = vrot.slane %v23589_v26, 9  ;;  %v12828_v2 = vrot.slane %v12814_v50, %v23133_v18 }
 0x9c6   : > { %v13241_v62 = vmul.f32 0.25, %v13225_v22  ;;  %v13167_v57 = vmax.f32 %v12794_v63, %v15185_v7  ;;  %v13242_v19 = vmul.f32 0.25, %v13226_v38  ;;  %v13268_v34 = vrot.slane %v13233_v31, %v23199_v33 }
 0x9c7   : > { %v13272_v11 = vrot.slane %v13234_v39, %v23199_v33  ;;  %v12813_v35 = vcombine.high %v12811_v14, %v12811_v14  ;;  %v15188_v43 = vrot.slane %v12812_v54, 9  ;;  %v15189_v9 = vrot.slane %v12811_v14, 9 }
 0x9c8   : > { %v12829_v53 = vcombine.high %v12821_v42, %v12821_v42  ;;  %v13300_v58 = vrot.slane %v13241_v62, %v23199_v33  ;;  %v13304_v13 = vrot.slane %v13242_v19, %v23199_v33  ;;  %v13168_v36 = vmax.f32 %v12796_v27, %v15186_v37 }
 0x9c9   : > { %v13330_v59 = vsel %vm13329_vm14, %v13272_v11, %v13268_v34  ;;  %v12830_v25 = vcombine.high %v12828_v2, %v12828_v2  ;;  %v15191_v6 = vrot.slane %v12821_v42, 9  ;;  %v13164_v63 = vmax.f32 %v23574_v4, %v15182_v10 }
 0x9ca   : > { %v13350_v1 = vrot.slane %v13330_v59, 1  ;;  %v13334_v15 = vsel %vm13329_vm14, %v13304_v13, %v13300_v58  ;;  %v13347_v61 = vsel %vm13346_vm5, %v13330_v59, 0.0  ;;  %v13190_v60 = vadd.f32 %v23492_v55, %v23483_v28 }
 0x9cb   : > { %v13191_v50 = vadd.f32 %v23494_v32, %v23486_v8  ;;  %v13348_v24 = vrot.slane %v13334_v15, 7  ;;  %v13192_v27 = vadd.f32 %v23496_v46, %v23490_v23  ;;  %v13205_v48 = vadd.f32 %v13165_v45, %v23576_v21 }
 0x9cc   : > { %v13351_v51 = vsel %vm13346_vm5, %v13350_v1, 0.0  ;;  %v13206_v22 = vadd.f32 %v13166_v3, %v13162_v0  ;;  %v13207_v10 = vadd.f32 %v13167_v57, %v13163_v20  ;;  %v13208_v7 = vadd.f32 %v13168_v36, %v13164_v63  ;;  %v24751_v63 = vld [vmem:[#allocation96_spill] sm:$0xff] }
 0x9cd   : > { %v13352_v4 = vsel %vm13329_vm14, %v13334_v15, %v13351_v51  ;;  %v15192_v38 = vrot.slane %v12829_v53, 9  ;;  %v13349_v28 = vsel %vm13329_vm14, %v13348_v24, %v13347_v61  ;;  %v13219_v55 = vadd.f32 %v13190_v60, %v23278_v41  ;;  %v24752_v15 = vld [vmem:[#allocation35_spill] sm:$0xff]  ;;  %v24754_v24 = vld [vmem:[#allocation73_spill] sm:$0xff] }
 0x9ce   : > { %13703 = vmatprep.mubr.f32.mxu0 %v13352_v4  ;;  %v13220_v8 = vadd.f32 %v13192_v27, %v13191_v50  ;;  %v13169_v32 = vmax.f32 %v23589_v26, %v15187_v40  ;;  %v15193_v31 = vrot.slane %v12828_v2, 9  ;;  %v13227_v37 = vadd.f32 %v13206_v22, %v13205_v48  ;;  %v24756_v27 = vld [vmem:[#allocation98_spill] sm:$0xff]  ;;  %v24757_v4 = vld [vmem:[#allocation76_spill] sm:$0xff]  ;;  %v24758_v22 = vld [vmem:[#allocation75_spill] sm:$0xff] }
 0x9cf   : > { %13704 = vmatmul.mubr.f32.vlgmr.msra.gmra.mrb[190].mxu0 %v13349_v28  ;;  %v13228_v46 = vadd.f32 %v13208_v7, %v13207_v10  ;;  %v15190_v23 = vrot.slane %v12813_v35, 9  ;;  %v13170_v21 = vmax.f32 %v12812_v54, %v15188_v43  ;;  %v24744_v0 = vpack.c.bf16 %v23177_v56, %v23172_v49  ;;  %v24760_v7 = vld [vmem:[#allocation93_spill] sm:$0xff] }
 0x9d0   : > { %v13235_v20 = vmul.f32 0.25, %v13219_v55  ;;  %v13236_v45 = vmul.f32 0.25, %v13220_v8  ;;  %v13171_v39 = vmax.f32 %v12811_v14, %v15189_v9  ;;  %v13173_v3 = vmax.f32 %v12821_v42, %v15191_v6  ;;  %v24749_v6 = vld [vmem:[#allocation95_spill] sm:$0xff]  ;;  %v24761_v8 = vld [vmem:[#allocation36_spill] sm:$0xff] }
 0x9d1   : > { %18329 = vmatpush1.bf16.msra.mxu0 %v24744_v0  ;;  %v24745_v41 = vpack.c.bf16 %v23190_v29, %v23185_v30  ;;  %v13243_v62 = vmul.f32 0.25, %v13227_v37  ;;  %v13244_v26 = vmul.f32 0.25, %v13228_v46  ;;  %v15194_v40 = vrot.slane %v12830_v25, 9 }
 0x9d2   : > { %v13174_v57 = vmax.f32 %v12829_v53, %v15192_v38  ;;  %v13276_v19 = vrot.slane %v13235_v20, %v23199_v33  ;;  %v13280_v54 = vrot.slane %v13236_v45, %v23199_v33  ;;  %v13175_v34 = vmax.f32 %v12828_v2, %v15193_v31  ;;  %v24762_v45 = vld [vmem:[#allocation97_spill] sm:$0xff] }
 0x9d3   : > { %18331 = vmatprep.subr.bf16.mxu0 %v24745_v41  ;;  %v12831_v49 = vcombine.high %v23583_v47, %v23583_v47  ;;  %v13308_v56 = vrot.slane %v13243_v62, %v23199_v33  ;;  %v13312_v14 = vrot.slane %v13244_v26, %v23199_v33  ;;  %v23642_v30 = vrot.slane %v23583_v47, %v23133_v18  ;;  %v24764_v62 = vld [vmem:[#allocation37_spill] sm:$0xff] }
 0x9d4   : > { %v12848_v29 = vcombine.high %v23597_v17, %v23597_v17  ;;  %v23648_v42 = vrot.slane %v23597_v17, %v23133_v18  ;;  %v24746_v2 = vpack.c.bf16 %v23218_v5, %v23204_v44  ;;  %v13331_v11 = vsel %vm13329_vm14, %v13280_v54, %v13276_v19  ;;  %v24748_v17 = vld [vmem:[#allocation99_spill] sm:$0xff]  ;;  %v24750_v44 = vld [vmem:[#allocation100_spill] sm:$0xff] }
 0x9d5   : > { %v13335_v43 = vsel %vm13329_vm14, %v13312_v14, %v13308_v56  ;;  %v13356_v9 = vrot.slane %v13331_v11, 1  ;;  %v24747_v47 = vpack.c.bf16 %v23228_v52, %v23223_v16  ;;  %v13353_v53 = vsel %vm13346_vm5, %v13331_v11, 0.0  ;;  %v24753_v52 = vld [vmem:[#allocation74_spill] sm:$0xff]  ;;  %v24769_v56 = vld [vmem:[#allocation79_spill] sm:$0xff] }
 0x9d6   : > { %18333 = vmatpush1.bf16.msra.mxu0 %v24746_v2  ;;  %v13172_v58 = vmax.f32 %v12813_v35, %v15190_v23  ;;  %v13354_v13 = vrot.slane %v13335_v43, 7  ;;  %v13176_v59 = vmax.f32 %v12830_v25, %v15194_v40  ;;  %v13194_v36 = vadd.f32 %v24748_v17, %v23512_v12  ;;  %v24765_v40 = vld [vmem:[#allocation78_spill] sm:$0xff] }
 0x9d7   : > { %18335 = vmatprep.subr.bf16.mxu0 %v24747_v47  ;;  %v13195_v5 = vadd.f32 %v24750_v44, %v24749_v6  ;;  %v13357_v1 = vsel %vm13346_vm5, %v13356_v9, 0.0  ;;  %v13196_v61 = vadd.f32 %v24752_v15, %v24751_v63  ;;  %v13209_v60 = vadd.f32 %v13173_v3, %v13169_v32  ;;  %v24763_v3 = vld [vmem:[#allocation101_spill] sm:$0xff]  ;;  %v24771_v6 = vld [vmem:[#allocation82_spill] sm:$0xff] }
 0x9d8   : > { %v13210_v50 = vadd.f32 %v13174_v57, %v13170_v21  ;;  %v13358_v16 = vsel %vm13329_vm14, %v13335_v43, %v13357_v1  ;;  %v24755_v35 = vpack.c.bf16 %v24753_v52, %v24754_v24  ;;  %v23671_v25 = vsel %vm13329_vm14, %v13354_v13, %v13353_v53  ;;  %v24766_v57 = vld [vmem:[#allocation77_spill] sm:$0xff]  ;;  %v24775_v52 = vld [vmem:[#allocation83_spill] sm:$0xff] }
 0x9d9   : > { %v13211_v12 = vadd.f32 %v13175_v34, %v13171_v39  ;;  %v13212_v51 = vadd.f32 %v13176_v59, %v13172_v58  ;;  %v15164_v48 = vrot.slane %v24756_v27, 9  ;;  %13774 = vmatprep.mubr.f32.mxu0 %v13358_v16  ;;  %v24759_v10 = vpack.c.bf16 %v24757_v4, %v24758_v22  ;;  %v24772_v44 = vld [vmem:[#allocation81_spill] sm:$0xff]  ;;  %v24774_v16 = vld [vmem:[#allocation84_spill] sm:$0xff] }
 0x9da   : > { %18337 = vmatpush1.bf16.msra.mxu0 %v24755_v35  ;;  %v13221_v38 = vadd.f32 %v13194_v36, %v24760_v7  ;;  %v13222_v28 = vadd.f32 %v13196_v61, %v13195_v5  ;;  %v13229_v55 = vadd.f32 %v13210_v50, %v13209_v60  ;;  %v12728_v32 = vcombine.high %v24761_v8, %v24761_v8 }
 0x9db   : > { %18339 = vmatprep.subr.bf16.mxu0 %v24759_v10  ;;  %v12845_v31 = vrot.slane %v12831_v49, %v23133_v18  ;;  %v12862_v37 = vrot.slane %v12848_v29, %v23133_v18  ;;  %v13230_v46 = vadd.f32 %v13212_v51, %v13211_v12  ;;  %v12863_v23 = vcombine.high %v23648_v42, %v23648_v42  ;;  %v24768_v49 = vld [vmem:[#allocation80_spill] sm:$0xff] }
 0x9dc   : > { %v13237_v21 = vmul.f32 0.25, %v13221_v38  ;;  %v13238_v0 = vmul.f32 0.25, %v13222_v28  ;;  %v13245_v20 = vmul.f32 0.25, %v13229_v55  ;;  %v15165_v39 = vrot.slane %v24762_v45, 9 }
 0x9dd   : > { %v15166_v41 = vrot.slane %v24763_v3, 9  ;;  %v15168_v26 = vrot.slane %v24764_v62, 9  ;;  %v24767_v19 = vpack.c.bf16 %v24765_v40, %v24766_v57  ;;  %v13246_v54 = vmul.f32 0.25, %v13230_v46 }
 0x9de   : > { %v15169_v18 = vrot.slane %v24761_v8, 9  ;;  %v12846_v34 = vcombine.high %v23642_v30, %v23642_v30  ;;  %v24770_v14 = vpack.c.bf16 %v24768_v49, %v24769_v56  ;;  %v13284_v29 = vrot.slane %v13237_v21, %v23199_v33  ;;  %v24777_v21 = vld [vmem:[#allocation86_spill] sm:$0xff]  ;;  %v24784_v49 = vld [vmem:[#allocation89_spill] sm:$0xff] }
 0x9df   : > { %18341 = vmatpush1.bf16.msra.mxu0 %v24767_v19  ;;  %v13288_v2 = vrot.slane %v13238_v0, %v23199_v33  ;;  %v12847_v11 = vcombine.high %v12845_v31, %v12845_v31  ;;  %v12864_v43 = vcombine.high %v12862_v37, %v12862_v37  ;;  %v13316_v9 = vrot.slane %v13245_v20, %v23199_v33  ;;  %v24778_v0 = vld [vmem:[#allocation85_spill] sm:$0xff] }
 0x9e0   : > { %18343 = vmatprep.subr.bf16.mxu0 %v24770_v14  ;;  %v13320_v47 = vrot.slane %v13246_v54, %v23199_v33  ;;  %v15170_v53 = vrot.slane %v12728_v32, 9  ;;  %v15199_v58 = vrot.slane %v23648_v42, 9  ;;  %v15200_v13 = vrot.slane %v12863_v23, 9 }
 0x9e1   : > { %v13332_v59 = vsel %vm13329_vm14, %v13288_v2, %v13284_v29  ;;  %v13150_v17 = vmax.f32 %v24764_v62, %v15168_v26  ;;  %v15201_v36 = vrot.slane %v12862_v37, 9  ;;  %v24773_v5 = vpack.c.bf16 %v24771_v6, %v24772_v44  ;;  %v13472_v6 = vld [vmem:[%s24267_s7 + $0x328] sm:$0xff]  ;;  %v13474_v44 = vld [vmem:[%s24267_s7 + $0x338] sm:$0xff] }
 0x9e2   : > { %v13336_v1 = vsel %vm13329_vm14, %v13320_v47, %v13316_v9  ;;  %v13362_v63 = vrot.slane %v13332_v59, 1  ;;  %v13151_v15 = vmax.f32 %v24761_v8, %v15169_v18  ;;  %v15195_v61 = vrot.slane %v23642_v30, 9  ;;  %v24786_v9 = vld [vmem:[#allocation94_spill] sm:$0xff] }
 0x9e3   : > { %18345 = vmatpush1.bf16.msra.mxu0 %v24773_v5  ;;  %v15196_v60 = vrot.slane %v12846_v34, 9  ;;  %v15197_v50 = vrot.slane %v12845_v31, 9  ;;  %v24776_v24 = vpack.c.bf16 %v24774_v16, %v24775_v52  ;;  %v15198_v35 = vrot.slane %v12847_v11, 9  ;;  %v13471_v16 = vld [vmem:[%s24267_s7 + $0x320] sm:$0xff]  ;;  %v13473_v52 = vld [vmem:[%s24267_s7 + $0x330] sm:$0xff] }
 0x9e4   : > { %v15202_v12 = vrot.slane %v12864_v43, 9  ;;  %v13360_v51 = vrot.slane %v13336_v1, 7  ;;  %v13363_v4 = vsel %vm13346_vm5, %v13362_v63, 0.0  ;;  %v13152_v22 = vmax.f32 %v12728_v32, %v15170_v53  ;;  %v24787_v53 = vld [vmem:[#allocation92_spill] sm:$0xff] }
 0x9e5   : > { %18347 = vmatprep.subr.bf16.mxu0 %v24776_v24  ;;  %v13181_v10 = vmax.f32 %v23648_v42, %v15199_v58  ;;  %v13182_v7 = vmax.f32 %v12863_v23, %v15200_v13  ;;  %v23715_v38 = vsel %vm13329_vm14, %v13336_v1, %v13363_v4  ;;  %v13146_v28 = vmax.f32 %v24756_v27, %v15164_v48  ;;  %v24780_v42 = vld [vmem:[#allocation88_spill] sm:$0xff]  ;;  %v24781_v23 = vld [vmem:[#allocation87_spill] sm:$0xff] }
 0x9e6   : > { %v13147_v55 = vmax.f32 %v24762_v45, %v15165_v39  ;;  %v13148_v8 = vmax.f32 %v24763_v3, %v15166_v41  ;;  %v13183_v46 = vmax.f32 %v12862_v37, %v15201_v36  ;;  %v24779_v20 = vpack.c.bf16 %v24777_v21, %v24778_v0  ;;  %v13463_v27 = vld [vmem:[%s24267_s7 + $0x2e0] sm:$0xff]  ;;  %v13465_v48 = vld [vmem:[%s24267_s7 + $0x2f0] sm:$0xff] }
 0x9e7   : > { %v13177_v62 = vmax.f32 %v23642_v30, %v15195_v61  ;;  %v13178_v32 = vmax.f32 %v12846_v34, %v15196_v60  ;;  %v13179_v26 = vmax.f32 %v12845_v31, %v15197_v50  ;;  %v24782_v40 = vpack.c.bf16 %v24780_v42, %v24781_v23  ;;  %v13468_v30 = vld [vmem:[%s24267_s7 + $0x308] sm:$0xff]  ;;  %v13470_v31 = vld [vmem:[%s24267_s7 + $0x318] sm:$0xff]  ;;  %v13475_v21 = vld [vmem:[%s24267_s7 + $0x340] sm:$0xff] }
 0x9e8   : > { %18349 = vmatpush1.bf16.msra.mxu0 %v24779_v20  ;;  %v13359_v37 = vsel %vm13346_vm5, %v13332_v59, 0.0  ;;  %v13180_v39 = vmax.f32 %v12847_v11, %v15198_v35  ;;  %v13184_v3 = vmax.f32 %v12864_v43, %v15202_v12  ;;  %v13198_v41 = vadd.f32 %v13150_v17, %v13146_v28  ;;  %v24783_v34 = vld [vmem:[#allocation90_spill] sm:$0xff]  ;;  %v24788_v58 = vld [vmem:[#allocation91_spill] sm:$0xff]  ;;  %v13467_v43 = vld [vmem:[%s24267_s7 + $0x300] sm:$0xff] }
 0x9e9   : > { %18351 = vmatprep.subr.bf16.mxu0 %v24782_v40  ;;  %v23741_v45 = vsel %vm13329_vm14, %v13360_v51, %v13359_v37  ;;  %v13199_v57 = vadd.f32 %v13151_v15, %v13147_v55  ;;  %v13200_v19 = vadd.f32 %v13152_v22, %v13148_v8  ;;  %v13213_v54 = vadd.f32 %v13181_v10, %v13177_v62  ;;  %v13469_v59 = vld [vmem:[%s24267_s7 + $0x310] sm:$0xff]  ;;  %v13476_v12 = vld [vmem:[%s24267_s7 + $0x348] sm:$0xff]  ;;  %v13478_v51 = vld [vmem:[%s24267_s7 + $0x358] sm:$0xff] }
 0x9ea   : > { %v13214_v18 = vadd.f32 %v13182_v7, %v13178_v32  ;;  %v24785_v56 = vpack.c.bf16 %v24783_v34, %v24784_v49  ;;  %v18356_v14 = vpack.c.bf16 %v13465_v48, %v13463_v27  ;;  %v13215_v29 = vadd.f32 %v13183_v46, %v13179_v26  ;;  %v13477_v0 = vld [vmem:[%s24267_s7 + $0x350] sm:$0xff]  ;;  %v13480_v62 = vld [vmem:[%s24267_s7 + $0x368] sm:$0xff]  ;;  %v13482_v32 = vld [vmem:[%s24267_s7 + $0x378] sm:$0xff] }
 0x9eb   : > { %v13216_v2 = vadd.f32 %v13184_v3, %v13180_v39  ;;  %v13223_v47 = vadd.f32 %v13198_v41, %v24786_v9  ;;  %v24789_v13 = vpack.c.bf16 %v24787_v53, %v24788_v58  ;;  %v18358_v11 = vpack.c.bf16 %v13470_v31, %v13468_v30  ;;  %v13479_v48 = vld [vmem:[%s24267_s7 + $0x360] sm:$0xff]  ;;  %v13481_v37 = vld [vmem:[%s24267_s7 + $0x370] sm:$0xff]  ;;  %v13484_v30 = vld [vmem:[%s24267_s7 + $0x388] sm:$0xff] }
 0x9ec   : > { %18353 = vmatpush1.bf16.msra.mxu0 %v24785_v56  ;;  %v13224_v17 = vadd.f32 %v13200_v19, %v13199_v57  ;;  %v13231_v36 = vadd.f32 %v13214_v18, %v13213_v54  ;;  %v18360_v61 = vpack.c.bf16 %v13469_v59, %v13467_v43  ;;  %v18362_v50 = vpack.c.bf16 %v13474_v44, %v13472_v6  ;;  %v13486_v31 = vld [vmem:[%s24267_s7 + $0x398] sm:$0xff]  ;;  %v13483_v41 = vld [vmem:[%s24267_s7 + $0x380] sm:$0xff]  ;;  %v13485_v57 = vld [vmem:[%s24267_s7 + $0x390] sm:$0xff] }
 0x9ed   : > { %18355 = vmatprep.subr.bf16.mxu0 %v24789_v13  ;;  %v13232_v5 = vadd.f32 %v13216_v2, %v13215_v29  ;;  %v13239_v1 = vmul.f32 0.25, %v13223_v47  ;;  %v18364_v7 = vpack.c.bf16 %v13473_v52, %v13471_v16  ;;  %v18366_v46 = vpack.c.bf16 %v13478_v51, %v13476_v12  ;;  %v13488_v19 = vld [vmem:[%s24267_s7 + $0x3a8] sm:$0xff]  ;;  %v13490_v54 = vld [vmem:[%s24267_s7 + $0x3b8] sm:$0xff]  ;;  %v13487_v49 = vld [vmem:[%s24267_s7 + $0x3a0] sm:$0xff] }
 0x9ee   : > { %v13240_v63 = vmul.f32 0.25, %v13224_v17  ;;  %v13247_v15 = vmul.f32 0.25, %v13231_v36  ;;  %v18368_v40 = vpack.c.bf16 %v13477_v0, %v13475_v21  ;;  %v18370_v27 = vpack.c.bf16 %v13482_v32, %v13480_v62  ;;  %v13489_v56 = vld [vmem:[%s24267_s7 + $0x3b0] sm:$0xff]  ;;  %v13494_v29 = vld [vmem:[%s24267_s7 + $0x3d8] sm:$0xff]  ;;  %v13491_v47 = vld [vmem:[%s24267_s7 + $0x3c0] sm:$0xff] }
 0x9ef   : > { %v13248_v60 = vmul.f32 0.25, %v13232_v5  ;;  %v13292_v24 = vrot.slane %v13239_v1, %v23199_v33  ;;  %v18372_v39 = vpack.c.bf16 %v13481_v37, %v13479_v48  ;;  %v18374_v3 = vpack.c.bf16 %v13486_v31, %v13484_v30  ;;  %v13493_v53 = vld [vmem:[%s24267_s7 + $0x3d0] sm:$0xff]  ;;  %v13496_v58 = vld [vmem:[%s24267_s7 + $0x3e8] sm:$0xff]  ;;  %v13498_v13 = vld [vmem:[%s24267_s7 + $0x3f8] sm:$0xff] }
 0x9f0   : > { %18357 = vmatpush1.bf16.msra.mxu0 %v18356_v14  ;;  %v13296_v35 = vrot.slane %v13240_v63, %v23199_v33  ;;  %v13324_v4 = vrot.slane %v13247_v15, %v23199_v33  ;;  %v18376_v18 = vpack.c.bf16 %v13485_v57, %v13483_v41  ;;  %v18378_v34 = vpack.c.bf16 %v13490_v54, %v13488_v19  ;;  %v13492_v14 = vld [vmem:[%s24267_s7 + $0x3c8] sm:$0xff]  ;;  %v13495_v59 = vld [vmem:[%s24267_s7 + $0x3e0] sm:$0xff]  ;;  %v13497_v17 = vld [vmem:[%s24267_s7 + $0x3f0] sm:$0xff] }
 0x9f1   : > { %18359 = vmatprep.subr.bf16.mxu0 %v18358_v11  ;;  %v13328_v22 = vrot.slane %v13248_v60, %v23199_v33  ;;  %v18380_v2 = vpack.c.bf16 %v13489_v56, %v13487_v49  ;;  %v18382_v9 = vpack.c.bf16 %v13494_v29, %v13492_v14  ;;  %v18384_v11 = vpack.c.bf16 %v13493_v53, %v13491_v47  ;;  %v13500_v36 = vld [vmem:[%s24267_s7 + $0x408] sm:$0xff]  ;;  %v13502_v6 = vld [vmem:[%s24267_s7 + $0x418] sm:$0xff]  ;;  %v13499_v1 = vld [vmem:[%s24267_s7 + $0x400] sm:$0xff] }
 0x9f2   : > { %v13333_v10 = vsel %vm13329_vm14, %v13296_v35, %v13292_v24  ;;  %v18386_v43 = vpack.c.bf16 %v13498_v13, %v13496_v58  ;;  %v18388_v44 = vpack.c.bf16 %v13497_v17, %v13495_v59  ;;  %v18390_v5 = vpack.c.bf16 %v13502_v6, %v13500_v36  ;;  %v13501_v63 = vld [vmem:[%s24267_s7 + $0x410] sm:$0xff]  ;;  %v13504_v15 = vld [vmem:[%s24267_s7 + $0x428] sm:$0xff]  ;;  %v13503_v16 = vld [vmem:[%s24267_s7 + $0x420] sm:$0xff] }
 0x9f3   : > { %v13337_v28 = vsel %vm13329_vm14, %v13328_v22, %v13324_v4  ;;  %v13368_v55 = vrot.slane %v13333_v10, 1  ;;  %v13365_v8 = vsel %vm13346_vm5, %v13333_v10, 0.0  ;;  %v18392_v60 = vpack.c.bf16 %v13501_v63, %v13499_v1  ;;  %v13505_v52 = vld [vmem:[%s24267_s7 + $0x430] sm:$0xff]  ;;  %v13508_v24 = vld [vmem:[%s24267_s7 + $0x448] sm:$0xff]  ;;  %v13510_v35 = vld [vmem:[%s24267_s7 + $0x458] sm:$0xff] }
 0x9f4   : > { %18361 = vmatpush1.bf16.msra.mxu0 %v18360_v61  ;;  %v13366_v20 = vrot.slane %v13337_v28, 7  ;;  %v13506_v61 = vld [vmem:[%s24267_s7 + $0x438] sm:$0xff]  ;;  %v18396_v12 = vpack.c.bf16 %v13505_v52, %v13503_v16  ;;  %v18398_v51 = vpack.c.bf16 %v13510_v35, %v13508_v24  ;;  %v13507_v4 = vld [vmem:[%s24267_s7 + $0x440] sm:$0xff]  ;;  %v13509_v22 = vld [vmem:[%s24267_s7 + $0x450] sm:$0xff]  ;;  %vm13943_vm8 = vcmask 1041408  }
 0x9f5   : > { %18363 = vmatprep.subr.bf16.mxu0 %v18362_v50  ;;  %v13369_v26 = vsel %vm13346_vm5, %v13368_v55, 0.0  ;;  %v18394_v50 = vpack.c.bf16 %v13506_v61, %v13504_v15  ;;  %v13512_v10 = vld [vmem:[%s24267_s7 + $0x468] sm:$0xff]  ;;  %v13513_v55 = vld [vmem:[%s24267_s7 + $0x470] sm:$0xff]  ;;  %v13519_v48 = vld [vmem:[%s24267_s7 + $0x4a0] sm:$0xff] }
 0x9f6   : > { %v23795_v42 = vsel %vm13329_vm14, %v13337_v28, %v13369_v26  ;;  %v23798_v23 = vsel %vm13329_vm14, %v13366_v20, %v13365_v8  ;;  %v13511_v28 = vld [vmem:[%s24267_s7 + $0x460] sm:$0xff]  ;;  %v13516_v8 = vld [vmem:[%s24267_s7 + $0x488] sm:$0xff]  ;;  %v13517_v62 = vld [vmem:[%s24267_s7 + $0x490] sm:$0xff] }
 0x9f7   : > { %v18404_v21 = vpack.c.bf16 %v13513_v55, %v13511_v28  ;;  %v13515_v20 = vld [vmem:[%s24267_s7 + $0x480] sm:$0xff]  ;;  %v13520_v32 = vld [vmem:[%s24267_s7 + $0x4a8] sm:$0xff]  ;;  %v13522_v26 = vld [vmem:[%s24267_s7 + $0x4b8] sm:$0xff] }
 0x9f8   : > { %18365 = vmatpush1.bf16.msra.mxu0 %v18364_v7  ;;  %v13521_v37 = vld [vmem:[%s24267_s7 + $0x4b0] sm:$0xff]  ;;  %v13524_v30 = vld [vmem:[%s24267_s7 + $0x4c8] sm:$0xff]  ;;  %v13526_v31 = vld [vmem:[%s24267_s7 + $0x4d8] sm:$0xff] }
 0x9f9   : > { %18367 = vmatprep.subr.bf16.mxu0 %v18366_v46  ;;  %v13518_v46 = vld [vmem:[%s24267_s7 + $0x498] sm:$0xff]  ;;  %v13523_v41 = vld [vmem:[%s24267_s7 + $0x4c0] sm:$0xff]  ;;  %v13525_v57 = vld [vmem:[%s24267_s7 + $0x4d0] sm:$0xff] }
 0x9fa   : > { %v18406_v0 = vpack.c.bf16 %v13518_v46, %v13516_v8  ;;  %v13528_v19 = vld [vmem:[%s24267_s7 + $0x4e8] sm:$0xff]  ;;  %v13530_v54 = vld [vmem:[%s24267_s7 + $0x4f8] sm:$0xff]  ;;  %v13527_v49 = vld [vmem:[%s24267_s7 + $0x4e0] sm:$0xff] }
 0x9fb   : > { %v13529_v56 = vld [vmem:[%s24267_s7 + $0x4f0] sm:$0xff]  ;;  %v13532_v14 = vld [vmem:[%s24267_s7 + $0x508] sm:$0xff]  ;;  %v13534_v29 = vld [vmem:[%s24267_s7 + $0x518] sm:$0xff] }
 0x9fc   : > { %18369 = vmatpush1.bf16.msra.mxu0 %v18368_v40  ;;  %v18408_v40 = vpack.c.bf16 %v13517_v62, %v13515_v20  ;;  %v13531_v47 = vld [vmem:[%s24267_s7 + $0x500] sm:$0xff]  ;;  %v13533_v53 = vld [vmem:[%s24267_s7 + $0x510] sm:$0xff]  ;;  %v13536_v58 = vld [vmem:[%s24267_s7 + $0x528] sm:$0xff] }
 0x9fd   : > { %18371 = vmatprep.subr.bf16.mxu0 %v18370_v27  ;;  %v18410_v27 = vpack.c.bf16 %v13522_v26, %v13520_v32  ;;  %v13538_v13 = vld [vmem:[%s24267_s7 + $0x538] sm:$0xff]  ;;  %v13535_v59 = vld [vmem:[%s24267_s7 + $0x520] sm:$0xff]  ;;  %v13537_v17 = vld [vmem:[%s24267_s7 + $0x530] sm:$0xff] }
 0x9fe   : > { %v13540_v36 = vld [vmem:[%s24267_s7 + $0x548] sm:$0xff]  ;;  %v13542_v6 = vld [vmem:[%s24267_s7 + $0x558] sm:$0xff]  ;;  %v13539_v1 = vld [vmem:[%s24267_s7 + $0x540] sm:$0xff] }
 0x9ff   : > { %v13541_v63 = vld [vmem:[%s24267_s7 + $0x550] sm:$0xff]  ;;  %v13544_v15 = vld [vmem:[%s24267_s7 + $0x568] sm:$0xff]  ;;  %v13546_v61 = vld [vmem:[%s24267_s7 + $0x578] sm:$0xff] }
 0xa00   : > { %18373 = vmatpush1.bf16.msra.mxu0 %v18372_v39  ;;  %v18412_v39 = vpack.c.bf16 %v13521_v37, %v13519_v48  ;;  %v13543_v16 = vld [vmem:[%s24267_s7 + $0x560] sm:$0xff]  ;;  %v13545_v52 = vld [vmem:[%s24267_s7 + $0x570] sm:$0xff]  ;;  %v13548_v24 = vld [vmem:[%s24267_s7 + $0x588] sm:$0xff] }
 0xa01   : > { %18375 = vmatprep.subr.bf16.mxu0 %v18374_v3  ;;  %v18414_v3 = vpack.c.bf16 %v13526_v31, %v13524_v30  ;;  %v13550_v35 = vld [vmem:[%s24267_s7 + $0x598] sm:$0xff]  ;;  %v13551_v28 = vld [vmem:[%s24267_s7 + $0x5a0] sm:$0xff]  ;;  %v13553_v55 = vld [vmem:[%s24267_s7 + $0x5b0] sm:$0xff] }
 0xa02   : > { %v13556_v8 = vld [vmem:[%s24267_s7 + $0x5c8] sm:$0xff]  ;;  %v13558_v46 = vld [vmem:[%s24267_s7 + $0x5d8] sm:$0xff]  ;;  %v13555_v20 = vld [vmem:[%s24267_s7 + $0x5c0] sm:$0xff] }
 0xa03   : > { %v13557_v62 = vld [vmem:[%s24267_s7 + $0x5d0] sm:$0xff]  ;;  %v13560_v32 = vld [vmem:[%s24267_s7 + $0x5e8] sm:$0xff]  ;;  %v13562_v26 = vld [vmem:[%s24267_s7 + $0x5f8] sm:$0xff] }
 0xa04   : > { %18377 = vmatpush1.bf16.msra.mxu0 %v18376_v18  ;;  %v18416_v18 = vpack.c.bf16 %v13525_v57, %v13523_v41  ;;  %v13559_v48 = vld [vmem:[%s24267_s7 + $0x5e0] sm:$0xff]  ;;  %v13561_v37 = vld [vmem:[%s24267_s7 + $0x5f0] sm:$0xff]  ;;  %v13564_v30 = vld [vmem:[%s24267_s7 + $0x608] sm:$0xff] }
 0xa05   : > { %18379 = vmatprep.subr.bf16.mxu0 %v18378_v34  ;;  %v18418_v34 = vpack.c.bf16 %v13530_v54, %v13528_v19  ;;  %v13566_v31 = vld [vmem:[%s24267_s7 + $0x618] sm:$0xff]  ;;  %v13563_v41 = vld [vmem:[%s24267_s7 + $0x600] sm:$0xff]  ;;  %v13565_v57 = vld [vmem:[%s24267_s7 + $0x610] sm:$0xff] }
 0xa06   : > { %v13568_v19 = vld [vmem:[%s24267_s7 + $0x628] sm:$0xff]  ;;  %v13570_v54 = vld [vmem:[%s24267_s7 + $0x638] sm:$0xff] }
 0xa08   : > { %18381 = vmatpush1.bf16.msra.mxu0 %v18380_v2  ;;  %v18420_v2 = vpack.c.bf16 %v13529_v56, %v13527_v49  ;;  %v13567_v49 = vld [vmem:[%s24267_s7 + $0x620] sm:$0xff]  ;;  %v13569_v56 = vld [vmem:[%s24267_s7 + $0x630] sm:$0xff] }
 0xa09   : > { %18383 = vmatprep.subr.bf16.mxu0 %v18382_v9  ;;  %v18422_v9 = vpack.c.bf16 %v13534_v29, %v13532_v14  ;;  %v13572_v14 = vld [vmem:[%s24267_s7 + $0x648] sm:$0xff]  ;;  %v13574_v29 = vld [vmem:[%s24267_s7 + $0x658] sm:$0xff] }
 0xa0c   : > { %18385 = vmatpush1.bf16.msra.mxu0 %v18384_v11  ;;  %v18424_v11 = vpack.c.bf16 %v13533_v53, %v13531_v47  ;;  %v13571_v47 = vld [vmem:[%s24267_s7 + $0x640] sm:$0xff]  ;;  %v13573_v53 = vld [vmem:[%s24267_s7 + $0x650] sm:$0xff] }
 0xa0d   : > { %18387 = vmatprep.subr.bf16.mxu0 %v18386_v43  ;;  %v18426_v43 = vpack.c.bf16 %v13538_v13, %v13536_v58  ;;  %v13576_v58 = vld [vmem:[%s24267_s7 + $0x668] sm:$0xff] }
 0xa10   : > { %18389 = vmatpush1.bf16.msra.mxu0 %v18388_v44  ;;  %v18428_v44 = vpack.c.bf16 %v13537_v17, %v13535_v59  ;;  %v13580_v59 = vld [vmem:[%s24267_s7 + $0x688] sm:$0xff]  ;;  %v13582_v17 = vld [vmem:[%s24267_s7 + $0x698] sm:$0xff] }
 0xa11   : > { %18391 = vmatprep.subr.bf16.mxu0 %v18390_v5  ;;  %v18430_v5 = vpack.c.bf16 %v13542_v6, %v13540_v36  ;;  %v18470_v6 = vpack.c.bf16 %v13582_v17, %v13580_v59 }
 0xa13   : > { %13775 = vmatmul.mubr.f32.vlgmr.msra.gmra.mrb[190].mxu0 %v23671_v25  ;;  %v13514_v25 = vld [vmem:[%s24267_s7 + $0x478] sm:$0xff] }
 0xa14   : > { %18393 = vmatpush1.bf16.msra.mxu0 %v18392_v60  ;;  %13845 = vmatprep.mubr.f32.mxu0 %v23715_v38  ;;  %v18400_v38 = vpack.c.bf16 %v13509_v22, %v13507_v4  ;;  %v18402_v7 = vpack.c.bf16 %v13514_v25, %v13512_v10  ;;  %v18432_v60 = vpack.c.bf16 %v13541_v63, %v13539_v1  ;;  %v13547_v4 = vld [vmem:[%s24267_s7 + $0x580] sm:$0xff]  ;;  %v13549_v22 = vld [vmem:[%s24267_s7 + $0x590] sm:$0xff]  ;;  %v13552_v10 = vld [vmem:[%s24267_s7 + $0x5a8] sm:$0xff] }
 0xa15   : > { %18395 = vmatprep.subr.bf16.mxu0 %v18394_v50  ;;  %v18434_v50 = vpack.c.bf16 %v13546_v61, %v13544_v15  ;;  %v13554_v25 = vld [vmem:[%s24267_s7 + $0x5b8] sm:$0xff]  ;;  %v13584_v1 = vld [vmem:[%s24267_s7 + $0x6a8] sm:$0xff] }
 0xa16   : > { %v13586_v63 = vld [vmem:[%s24267_s7 + $0x6b8] sm:$0xff] }
 0xa17   : > { %v18474_v61 = vpack.c.bf16 %v13586_v63, %v13584_v1 }
 0xa18   : > { %18397 = vmatpush1.bf16.msra.mxu0 %v18396_v12  ;;  %v18436_v12 = vpack.c.bf16 %v13545_v52, %v13543_v16  ;;  %v13588_v16 = vld [vmem:[%s24267_s7 + $0x6c8] sm:$0xff]  ;;  %v13590_v52 = vld [vmem:[%s24267_s7 + $0x6d8] sm:$0xff] }
 0xa19   : > { %18399 = vmatprep.subr.bf16.mxu0 %v18398_v51  ;;  %v18438_v51 = vpack.c.bf16 %v13550_v35, %v13548_v24  ;;  %v18478_v35 = vpack.c.bf16 %v13590_v52, %v13588_v16  ;;  %v24790_v16 = vld [vmem:[#allocation72_spill] sm:$0xff] }
 0xa1a   : > { %v13635_v52 = vsub.s32 1, %v24790_v16 }
 0xa1c   : > { %18401 = vmatpush1.bf16.msra.mxu0 %v18400_v38  ;;  %v18440_v38 = vpack.c.bf16 %v13549_v22, %v13547_v4  ;;  %v13592_v4 = vld [vmem:[%s24267_s7 + $0x6e8] sm:$0xff]  ;;  %v13594_v22 = vld [vmem:[%s24267_s7 + $0x6f8] sm:$0xff] }
 0xa1d   : > { %18403 = vmatprep.subr.bf16.mxu0 %v18402_v7  ;;  %v18442_v7 = vpack.c.bf16 %v13554_v25, %v13552_v10  ;;  %v18482_v25 = vpack.c.bf16 %v13594_v22, %v13592_v4 }
 0xa20   : > { %18405 = vmatpush1.bf16.msra.mxu0 %v18404_v21  ;;  %v18444_v21 = vpack.c.bf16 %v13553_v55, %v13551_v28  ;;  %v13596_v28 = vld [vmem:[%s24267_s7 + $0x708] sm:$0xff]  ;;  %v13598_v55 = vld [vmem:[%s24267_s7 + $0x718] sm:$0xff] }
 0xa21   : > { %18407 = vmatprep.subr.bf16.mxu0 %v18406_v0  ;;  %v18446_v0 = vpack.c.bf16 %v13558_v46, %v13556_v8  ;;  %v18486_v46 = vpack.c.bf16 %v13598_v55, %v13596_v28 }
 0xa24   : > { %18409 = vmatpush1.bf16.msra.mxu0 %v18408_v40  ;;  %v18448_v40 = vpack.c.bf16 %v13557_v62, %v13555_v20  ;;  %v13600_v20 = vld [vmem:[%s24267_s7 + $0x728] sm:$0xff]  ;;  %v13602_v62 = vld [vmem:[%s24267_s7 + $0x738] sm:$0xff] }
 0xa25   : > { %18411 = vmatprep.subr.bf16.mxu0 %v18410_v27  ;;  %v18450_v27 = vpack.c.bf16 %v13562_v26, %v13560_v32  ;;  %v18490_v26 = vpack.c.bf16 %v13602_v62, %v13600_v20  ;;  %v19327_v62 = vmov 0  }
 0xa26   : > { %19310 = vset.pattern.permute.xlu0 %v19327_v62 }
 0xa28   : > { %18413 = vmatpush1.bf16.msra.mxu0 %v18412_v39  ;;  %v18452_v39 = vpack.c.bf16 %v13561_v37, %v13559_v48  ;;  %v13604_v48 = vld [vmem:[%s24267_s7 + $0x748] sm:$0xff]  ;;  %v13606_v37 = vld [vmem:[%s24267_s7 + $0x758] sm:$0xff] }
 0xa29   : > { %18415 = vmatprep.subr.bf16.mxu0 %v18414_v3  ;;  %v18454_v3 = vpack.c.bf16 %v13566_v31, %v13564_v30  ;;  %v18494_v31 = vpack.c.bf16 %v13606_v37, %v13604_v48 }
 0xa2c   : > { %18417 = vmatpush1.bf16.msra.mxu0 %v18416_v18  ;;  %v18456_v18 = vpack.c.bf16 %v13565_v57, %v13563_v41  ;;  %v13608_v41 = vld [vmem:[%s24267_s7 + $0x768] sm:$0xff]  ;;  %v13610_v57 = vld [vmem:[%s24267_s7 + $0x778] sm:$0xff] }
 0xa2d   : > { %18419 = vmatprep.subr.bf16.mxu0 %v18418_v34  ;;  %v18458_v34 = vpack.c.bf16 %v13570_v54, %v13568_v19  ;;  %v18498_v54 = vpack.c.bf16 %v13610_v57, %v13608_v41 }
 0xa30   : > { %18421 = vmatpush1.bf16.msra.mxu0 %v18420_v2  ;;  %v18460_v2 = vpack.c.bf16 %v13569_v56, %v13567_v49  ;;  %v13612_v49 = vld [vmem:[%s24267_s7 + $0x788] sm:$0xff]  ;;  %v13614_v56 = vld [vmem:[%s24267_s7 + $0x798] sm:$0xff] }
 0xa31   : > { %18423 = vmatprep.subr.bf16.mxu0 %v18422_v9  ;;  %v18462_v9 = vpack.c.bf16 %v13574_v29, %v13572_v14  ;;  %v18502_v29 = vpack.c.bf16 %v13614_v56, %v13612_v49 }
 0xa34   : > { %18425 = vmatpush1.bf16.msra.mxu0 %v18424_v11  ;;  %v13575_v11 = vld [vmem:[%s24267_s7 + $0x660] sm:$0xff] }
 0xa35   : > { %18427 = vmatprep.subr.bf16.mxu0 %v18426_v43  ;;  %v13577_v43 = vld [vmem:[%s24267_s7 + $0x670] sm:$0xff] }
 0xa36   : > { %v18468_v36 = vpack.c.bf16 %v13577_v43, %v13575_v11  ;;  %v13620_v11 = vld [vmem:[%s24267_s7 + $0x7c8] sm:$0xff]  ;;  %v13622_v43 = vld [vmem:[%s24267_s7 + $0x7d8] sm:$0xff] }
 0xa37   : > { %v18510_v17 = vpack.c.bf16 %v13622_v43, %v13620_v11 }
 0xa38   : > { %18429 = vmatpush1.bf16.msra.mxu0 %v18428_v44  ;;  %v13579_v44 = vld [vmem:[%s24267_s7 + $0x680] sm:$0xff] }
 0xa39   : > { %18431 = vmatprep.subr.bf16.mxu0 %v18430_v5  ;;  %v13581_v5 = vld [vmem:[%s24267_s7 + $0x690] sm:$0xff] }
 0xa3a   : > { %v18472_v15 = vpack.c.bf16 %v13581_v5, %v13579_v44  ;;  %v13624_v44 = vld [vmem:[%s24267_s7 + $0x7e8] sm:$0xff]  ;;  %v13626_v5 = vld [vmem:[%s24267_s7 + $0x7f8] sm:$0xff] }
 0xa3b   : > { %v18514_v63 = vpack.c.bf16 %v13626_v5, %v13624_v44 }
 0xa3c   : > { %18433 = vmatpush1.bf16.msra.mxu0 %v18432_v60  ;;  %v13583_v60 = vld [vmem:[%s24267_s7 + $0x6a0] sm:$0xff] }
 0xa3d   : > { %18435 = vmatprep.subr.bf16.mxu0 %v18434_v50  ;;  %v13585_v50 = vld [vmem:[%s24267_s7 + $0x6b0] sm:$0xff] }
 0xa3e   : > { %v18476_v24 = vpack.c.bf16 %v13585_v50, %v13583_v60  ;;  %v13627_v50 = vld [vmem:[%s24268_s8] sm:$0x3] }
 0xa40   : > { %18437 = vmatpush1.bf16.msra.mxu0 %v18436_v12  ;;  %v13587_v12 = vld [vmem:[%s24267_s7 + $0x6c0] sm:$0xff] }
 0xa41   : > { %18439 = vmatprep.subr.bf16.mxu0 %v18438_v51  ;;  %v13589_v51 = vld [vmem:[%s24267_s7 + $0x6d0] sm:$0xff] }
 0xa42   : > { %v18480_v10 = vpack.c.bf16 %v13589_v51, %v13587_v12  ;;  %v13929_v12 = vld [vmem:[%s24269_s9] sm:$0x3] }
 0xa44   : > { %18441 = vmatpush1.bf16.msra.mxu0 %v18440_v38  ;;  %v13591_v38 = vld [vmem:[%s24267_s7 + $0x6e0] sm:$0xff] }
 0xa45   : > { %18443 = vmatprep.subr.bf16.mxu0 %v18442_v7  ;;  %v13593_v7 = vld [vmem:[%s24267_s7 + $0x6f0] sm:$0xff] }
 0xa46   : > { %v18484_v8 = vpack.c.bf16 %v13593_v7, %v13591_v38  ;;  %v13938_v38 = vrot.slane %v13929_v12, %v13635_v52 }
 0xa48   : > { %18445 = vmatpush1.bf16.msra.mxu0 %v18444_v21  ;;  %v13595_v21 = vld [vmem:[%s24267_s7 + $0x700] sm:$0xff] }
 0xa49   : > { %18447 = vmatprep.subr.bf16.mxu0 %v18446_v0  ;;  %v13597_v0 = vld [vmem:[%s24267_s7 + $0x710] sm:$0xff] }
 0xa4a   : > { %v18488_v32 = vpack.c.bf16 %v13597_v0, %v13595_v21 }
 0xa4c   : > { %18449 = vmatpush1.bf16.msra.mxu0 %v18448_v40  ;;  %v13599_v40 = vld [vmem:[%s24267_s7 + $0x720] sm:$0xff] }
 0xa4d   : > { %18451 = vmatprep.subr.bf16.mxu0 %v18450_v27  ;;  %v13601_v27 = vld [vmem:[%s24267_s7 + $0x730] sm:$0xff] }
 0xa4e   : > { %v18492_v30 = vpack.c.bf16 %v13601_v27, %v13599_v40 }
 0xa50   : > { %18453 = vmatpush1.bf16.msra.mxu0 %v18452_v39  ;;  %v13603_v39 = vld [vmem:[%s24267_s7 + $0x740] sm:$0xff] }
 0xa51   : > { %18455 = vmatprep.subr.bf16.mxu0 %v18454_v3  ;;  %v13605_v3 = vld [vmem:[%s24267_s7 + $0x750] sm:$0xff] }
 0xa52   : > { %v18496_v19 = vpack.c.bf16 %v13605_v3, %v13603_v39 }
 0xa53   : > { %13846 = vmatmul.mubr.f32.vlgmr.msra.gmra.mrb[190].mxu0 %v23741_v45  ;;  %v13578_v45 = vld [vmem:[%s24267_s7 + $0x678] sm:$0xff] }
 0xa54   : > { %18457 = vmatpush1.bf16.msra.mxu0 %v18456_v18  ;;  %13916 = vmatprep.mubr.f32.mxu0 %v23795_v42  ;;  %v18464_v42 = vpack.c.bf16 %v13573_v53, %v13571_v47  ;;  %v18466_v13 = vpack.c.bf16 %v13578_v45, %v13576_v58  ;;  %v13607_v18 = vld [vmem:[%s24267_s7 + $0x760] sm:$0xff]  ;;  %v13616_v47 = vld [vmem:[%s24267_s7 + $0x7a8] sm:$0xff]  ;;  %v13618_v53 = vld [vmem:[%s24267_s7 + $0x7b8] sm:$0xff] }
 0xa55   : > { %18459 = vmatprep.subr.bf16.mxu0 %v18458_v34  ;;  %v13609_v34 = vld [vmem:[%s24267_s7 + $0x770] sm:$0xff]  ;;  %v18506_v45 = vpack.c.bf16 %v13618_v53, %v13616_v47 }
 0xa56   : > { %v18500_v14 = vpack.c.bf16 %v13609_v34, %v13607_v18 }
 0xa58   : > { %18461 = vmatpush1.bf16.msra.mxu0 %v18460_v2  ;;  %v13611_v2 = vld [vmem:[%s24267_s7 + $0x780] sm:$0xff] }
 0xa59   : > { %18463 = vmatprep.subr.bf16.mxu0 %v18462_v9  ;;  %v13613_v9 = vld [vmem:[%s24267_s7 + $0x790] sm:$0xff] }
 0xa5a   : > { %v18504_v58 = vpack.c.bf16 %v13613_v9, %v13611_v2 }
 0xa5c   : > { %18465 = vmatpush1.bf16.msra.mxu0 %v18464_v42  ;;  %v13615_v42 = vld [vmem:[%s24267_s7 + $0x7a0] sm:$0xff] }
 0xa5d   : > { %18467 = vmatprep.subr.bf16.mxu0 %v18466_v13  ;;  %v13617_v13 = vld [vmem:[%s24267_s7 + $0x7b0] sm:$0xff] }
 0xa5e   : > { %v18508_v59 = vpack.c.bf16 %v13617_v13, %v13615_v42 }
 0xa60   : > { %18469 = vmatpush1.bf16.msra.mxu0 %v18468_v36  ;;  %v13619_v36 = vld [vmem:[%s24267_s7 + $0x7c0] sm:$0xff] }
 0xa61   : > { %18471 = vmatprep.subr.bf16.mxu0 %v18470_v6  ;;  %v13621_v6 = vld [vmem:[%s24267_s7 + $0x7d0] sm:$0xff] }
 0xa62   : > { %v18512_v1 = vpack.c.bf16 %v13621_v6, %v13619_v36 }
 0xa64   : > { %18473 = vmatpush1.bf16.msra.mxu0 %v18472_v15  ;;  %v13623_v15 = vld [vmem:[%s24267_s7 + $0x7e0] sm:$0xff] }
 0xa65   : > { %18475 = vmatprep.subr.bf16.mxu0 %v18474_v61  ;;  %v13625_v61 = vld [vmem:[%s24267_s7 + $0x7f0] sm:$0xff] }
 0xa66   : > { %v18516_v60 = vpack.c.bf16 %v13625_v61, %v13623_v15 }
 0xa68   : > { %18477 = vmatpush1.bf16.msra.mxu0 %v18476_v24  ;;  %v13632_v24 = vrot.slane %v13627_v50, %v23199_v33 }
 0xa69   : > { %18479 = vmatprep.subr.bf16.mxu0 %v18478_v35  ;;  %v13636_v35 = vrot.slane %v13627_v50, %v13635_v52 }
 0xa6c   : > { %18481 = vmatpush1.bf16.msra.mxu0 %v18480_v10 }
 0xa6d   : > { %18483 = vmatprep.subr.bf16.mxu0 %v18482_v25  ;;  %v13934_v25 = vrot.slane %v13929_v12, %v23199_v33 }
 0xa70   : > { %18485 = vmatpush1.bf16.msra.mxu0 %v18484_v8 }
 0xa71   : > { %18487 = vmatprep.subr.bf16.mxu0 %v18486_v46 }
 0xa74   : > { %18489 = vmatpush1.bf16.msra.mxu0 %v18488_v32  ;;  %v15203_v32 = vld [vmem:[#allocation4] ss:$0 sm:$0xff] }
 0xa75   : > { %18491 = vmatprep.subr.bf16.mxu0 %v18490_v26 }
 0xa78   : > { %18493 = vmatpush1.bf16.msra.mxu0 %v18492_v30 }
 0xa79   : > { %18495 = vmatprep.subr.bf16.mxu0 %v18494_v31 }
 0xa7c   : > { %18497 = vmatpush1.bf16.msra.mxu0 %v18496_v19 }
 0xa7d   : > { %18499 = vmatprep.subr.bf16.mxu0 %v18498_v54 }
 0xa80   : > { %18501 = vmatpush1.bf16.msra.mxu0 %v18500_v14 }
 0xa81   : > { %18503 = vmatprep.subr.bf16.mxu0 %v18502_v29 }
 0xa84   : > { %18505 = vmatpush1.bf16.msra.mxu0 %v18504_v58 }
 0xa85   : > { %18507 = vmatprep.subr.bf16.mxu0 %v18506_v45 }
 0xa88   : > { %18509 = vmatpush1.bf16.msra.mxu0 %v18508_v59 }
 0xa89   : > { %18511 = vmatprep.subr.bf16.mxu0 %v18510_v17 }
 0xa8c   : > { %18513 = vmatpush1.bf16.msra.mxu0 %v18512_v1 }
 0xa8d   : > { %18515 = vmatprep.subr.bf16.mxu0 %v18514_v63 }
 0xa90   : > { %18517 = vmatpush1.bf16.msra.mxu0 %v18516_v60 }
 0xa93   : > { %13917 = vmatmul.mubr.f32.vlgmr.msra.gmra.mrb[190].mxu0 %v23798_v23 }
 0xb66   : > { %v13918_v51 = vpop.f32.mrb[190].mxu0 }
 0xb67   : > { %v18552_v4 = vadd.f32 %v13918_v51, %v13632_v24  ;;  %v13920_v22 = vpop.f32.mrb[191].mxu0 }
 0xb68   : > { %v18553_v10 = vadd.f32 %v13920_v22, %v13636_v35 }
 0xb69   : > { %vm13923_vm6 = vcmp.ge.f32.partialorder %v18552_v4, 0.0  ;;  %v13925_v23 = vmul.f32 0.2, %v18552_v4 }
 0xb6a   : > { %vm13924_vm7 = vcmp.ge.f32.partialorder %v18553_v10, 0.0  ;;  %v13926_v7 = vmul.f32 0.2, %v18553_v10 }
 0xb6b   : > { %v13927_v28 = vsel %vm13923_vm6, %v18552_v4, %v13925_v23 }
 0xb6c   : > { %v13928_v55 = vsel %vm13924_vm7, %v18553_v10, %v13926_v7  ;;  %v13941_v8 = vmul.f32 %v13934_v25, %v13927_v28 }
 0xb6d   : > { %v13942_v46 = vmul.f32 %v13938_v38, %v13928_v55 }
 0xb6e   : > { %v13944_v21 = vsel %vm13943_vm8, %v13941_v8, 0.0 }
 0xb6f   : > { %v13945_v0 = vsel %vm13943_vm8, %v13942_v46, 0.0 }
 0xb70   : > { %v13946_v20 = vadd.f32 %v13945_v0, %v13944_v21 }
 0xb72   : > { %13947 = vadd.xlane.f32.xlu0 %v13946_v20 }
 0xbff   : > { %v13948_v33 = vpop.xlane.xlu0 %13947 }
 0xc00   : > { %v13956_v26 = vadd.f32 %v15203_v32, %v13948_v33 }
 0xc02   : > { %v15204_v40 = vmul.f32 -1.442695, %v13956_v26 }
 0xc04   : > { %19311 = vpow2.f32 %v15204_v40 }
 0xc0e   : > { %v19312_v27 = vpop.eup %19311 }
 0xc0f   : > { %v13960_v48 = vadd.f32 1.0, %v19312_v27 }
 0xc11   : > { %19313 = vrcp.f32 %v13960_v48 }
 0xc1b   : > { %v19314_v37 = vpop.eup %19313 }
 0xc1c   : > { %13965 = vperm.xlu0 %19310, %v19314_v37  }
 0xc9b   : > { %v13966_v30 = vpop.permute.xlu0 %13965 }
 0xc9c   : > { %v13968_v31 = vmul.f32 %v13966_v30, %v13927_v28  ;;  %v13969_v39 = vmul.f32 %v13966_v30, %v13928_v55 }
 0xc9e   : > { %v13972_v3 = vcombine.low %v13968_v31, %v13969_v39 }
 0xca0   : > { %15205 = vst.sshfl [vmem:[%s393_s24] sm:$0x33 pattern:$0x76325410] %v13972_v3 }
 0xca1 PF: > { %s23_s19 = sadd.s32 1, %s19322_s19  }
 0xca2   : > { %p20_p5 = scmp.ge.s32.totalorder %s23_s19, 4  }
 0xca4   :  { %22 = sbr.rel (!%p20_p5) target bundleno = 3 (0x3), region = 114 }

</bundles_post_ra>
